<compile_context>
chip_gen: v7x
topology: tpu7x:2x2x1
jax: 0.10.0
libtpu: 0.0.40
codegen_flags: <defaults>
</compile_context>

<pallas_src>
import functools

import jax
import jax.numpy as jnp
import numpy as np
from jax import lax
from jax.experimental import pallas as pl
from jax.experimental.pallas import tpu as pltpu


# ----------------------------------- kernel -----------------------------------
def _hidden_conv_relu(a, masks, w_ref, b_ref, k_taps, pad_left):
    """Same-padded conv(H->H, K) + bias + ReLU on a batch-flattened slab.

    a:      (M, H) activations (bf16 on v6e/v7x, f32 on v5e), M = Bt * L
    masks:  {offset d: (M, 1) bool} hoisted edge masks (shared by all layers)
    w_ref:  Ref (K*H, H) bf16 tap-stacked weight
    b_ref:  Ref (1, H) f32
    returns (M, H) f32
    """
    m = a.shape[0]
    taps = []
    for k in range(k_taps):                # static, tiny (ngram)
        d = k - pad_left                   # row offset of this tap
        if d == 0:
            t = a
        else:
            # t[i] = a[i + d] via an XLU roll over the flattened rows; rows
            # that would wrap into a neighbouring sequence are zeroed by the
            # hoisted edge mask, which is exactly the 'same' zero padding.
            t = pltpu.roll(a, shift=(-d) % m, axis=0)
            t = jnp.where(masks[d], t, jnp.zeros((), a.dtype))
        taps.append(t)
    im2col = jnp.concatenate(taps, axis=-1).astype(jnp.bfloat16)   # (M, K*H)
    y = jnp.dot(im2col, w_ref[...], preferred_element_type=jnp.float32)
    return jnp.maximum(y + b_ref[...], 0.0)                        # f32 bias+ReLU


def _single_ngram_encoder_kernel(
    x_ref,                      # (Bt, L, K*Din) bf16 -- layer-0 im2col (wrapper-built)
    w0_ref, b0_ref,             # (K*Din, H) bf16, (1, H) f32
    w1_ref, b1_ref,             # (K*H,  H) bf16, (1, H) f32
    w2_ref, b2_ref,
    w3_ref, b3_ref,
    out_ref,                    # (Bt, L, H)
    *, act_dtype,
):
    bt, L, _ = x_ref.shape
    m = bt * L
    H = w1_ref.shape[-1]
    k_taps = w1_ref.shape[0] // H
    pad_left = (k_taps - 1) // 2

    # Layer 0: conv1d(Din -> H, 'same') + ReLU as ONE matmul (im2col built in
    # the wrapper).  h stays f32 for the residual add.
    x = x_ref[...].reshape(m, x_ref.shape[-1])
    h = jnp.maximum(
        jnp.dot(x, w0_ref[...], preferred_element_type=jnp.float32) + b0_ref[...],
        0.0)                                                       # (M, H) f32

    # Hoisted 'same'-padding edge masks, shared by the three hidden layers.
    pos = lax.broadcasted_iota(jnp.int32, (m, 1), 0) % L
    masks = {}
    for k in range(k_taps):
        d = k - pad_left
        if d > 0:
            masks[d] = pos < (L - d)
        elif d < 0:
            masks[d] = pos >= (-d)

    # transform1 = mlc: 3 x (same-padded conv H->H + ReLU).
    # TODO(synk): `mlc` assumed to be this 3-layer Conv1d+ReLU stack.
    t = _hidden_conv_relu(h.astype(act_dtype), masks, w1_ref, b1_ref, k_taps, pad_left)
    t = _hidden_conv_relu(t.astype(act_dtype), masks, w2_ref, b2_ref, k_taps, pad_left)
    t = _hidden_conv_relu(t.astype(act_dtype), masks, w3_ref, b3_ref, k_taps, pad_left)

    # Residual (f32) + lane-dense writeback (H is a multiple of 128).
    out_ref[...] = (h + t).reshape(bt, L, H).astype(out_ref.dtype)


# ---------------------------------- wrapper ----------------------------------
def _elementwise_dtype():
    """bf16 elementwise (roll / mask / inter-layer activations) on bf16-VPU
    chips (v6e / v7x); f32 on v5e and older (no bf16 VPU).  The MXU always
    sees bf16 operands either way, so both paths give identical results."""
    try:
        kind = jax.devices()[0].device_kind.lower()
    except Exception:
        kind = ""
    if any(v in kind for v in ("v2", "v3", "v4", "v5")):
        return jnp.float32
    return jnp.bfloat16


def _choose_batch_tile(B, L, rows_cap, min_rows):
    """Largest divisor-of-B batch tile with bt*L <= rows_cap, preferring an
    even grid of >= 4 steps (v7x two-TensorCore balance) as long as that keeps
    M = bt*L >= min_rows (per-step overhead stays amortized)."""
    divisors = [d for d in range(1, B + 1) if B % d == 0]
    fitting = [d for d in divisors if d * L <= max(L, rows_cap)] or [1]
    best = max(fitting)
    good = [d for d in fitting if d * L >= min_rows] or [best]
    for pred in (lambda g: g % 2 == 0 and g >= 4,
                 lambda g: g % 2 == 0 and g >= 2):
        cands = [d for d in good if pred(B // d)]
        if cands:
            return max(cands)
    return best


def single_ngram_encoder(x, params, *, out_dtype=jnp.float32,
                         min_rows=512, max_rows=2048):
    """x: (B, L, input_dim) f32 -> (B, L, hidden_dim) out_dtype."""
    B, L, din = x.shape
    w0, b0, w1, b1, w2, b2, w3, b3 = params
    K, _, H = w0.shape
    assert L % 8 == 0, "sequence length must be a multiple of 8 (TPU sublane)"
    pad_left = (K - 1) // 2

    # Weights: (K, Cin, Cout) -> tap-stacked (K*Cin, Cout) bf16; biases f32.
    prep_w = lambda w: w.reshape(w.shape[0] * w.shape[1], w.shape[2]).astype(jnp.bfloat16)
    prep_b = lambda b: b.reshape(1, -1).astype(jnp.float32)
    w0p, w1p, w2p, w3p = (prep_w(w) for w in (w0, w1, w2, w3))
    b0p, b1p, b2p, b3p = (prep_b(b) for b in (b0, b1, b2, b3))
    consts = (w0p, b0p, w1p, b1p, w2p, b2p, w3p, b3p)

    # Layer-0 'same'-padded im2col built here: Din is tiny, so the K-fold DMA
    # is negligible and the kernel avoids the narrow (M, Din) lane concat.
    # The bf16 cast here is exactly what the MXU would have seen anyway.
    xp = jnp.pad(x, ((0, 0), (pad_left, K - 1 - pad_left), (0, 0)))
    x0 = jnp.concatenate([xp[:, k:k + L, :] for k in range(K)],
                         axis=-1).astype(jnp.bfloat16)             # (B, L, K*Din)

    # VMEM-derived tile sizing: target M = Bt*L in [min_rows, max_rows], but
    # never exceed the per-generation VMEM budget.
    try:
        vmem_cap = pltpu.get_tpu_info().vmem_capacity_bytes
    except Exception:
        vmem_cap = 64 * 1024 * 1024          # conservative: v7x per-core VMEM
    vmem_limit = int(vmem_cap * 0.85)        # ~15% headroom for compiler scratch

    act_dtype = _elementwise_dtype()
    act_bytes = jnp.dtype(act_dtype).itemsize
    out_bytes = jnp.dtype(out_dtype).itemsize
    per_row_bytes = (
        2 * K * din * 2          # layer-0 im2col input block (bf16, 2 buffers)
        + 2 * H * out_bytes      # output block (2 buffers)
        + H * 4                  # h kept in f32 for the residual
        + 2 * H * act_bytes      # inter-layer activation slabs
        + 2 * K * H * 2          # bf16 im2col slab + taps for the hidden convs
        + H * 4                  # slack: relayouts / compiler temps
    )
    weight_bytes = sum(a.size * a.dtype.itemsize for a in consts)
    tile_budget = max(1 << 20, int(vmem_limit * 0.8) - weight_bytes)
    rows_cap = min(max_rows, max(L, tile_budget // per_row_bytes))
    bt = _choose_batch_tile(B, L, rows_cap, min_rows)

    def run(single_buffer_weights, act_dt):
        if single_buffer_weights:
            # Constant index_map -> never re-fetched; keep ONE VMEM buffer
            # instead of the default two (dead VMEM at production H on v7x).
            cspec = lambda a: pl.BlockSpec(a.shape, lambda i, _n=a.ndim: (0,) * _n,
                                           pipeline_mode=pl.Buffered(1))
        else:
            cspec = lambda a: pl.BlockSpec(a.shape, lambda i, _n=a.ndim: (0,) * _n)
        call = pl.pallas_call(
            functools.partial(_single_ngram_encoder_kernel, act_dtype=act_dt),
            out_shape=jax.ShapeDtypeStruct((B, L, H), out_dtype),
            grid=(B // bt,),
            in_specs=[
                pl.BlockSpec((bt, L, K * din), lambda i: (i, 0, 0)),
                cspec(w0p), cspec(b0p),
                cspec(w1p), cspec(b1p),
                cspec(w2p), cspec(b2p),
                cspec(w3p), cspec(b3p),
            ],
            out_specs=pl.BlockSpec((bt, L, H), lambda i: (i, 0, 0)),
            compiler_params=pltpu.CompilerParams(
                dimension_semantics=("parallel",),
                vmem_limit_bytes=vmem_limit,
            ),
        )
        return call(x0, *consts)

    try:
        return run(True, act_dtype)
    except Exception:
        # Fallback for older jax / Mosaic stacks (no BlockSpec.pipeline_mode,
        # or no packed-bf16 roll): double-buffered weights + f32 elementwise.
        # Numerically identical, just less optimal.
        return run(False, jnp.float32)


# ----------------------------- pure-JAX reference -----------------------------
def _ref_conv1d_same(x, w, b):
    """x (B,L,Cin) f32, w (K,Cin,Cout) f32, b (1,Cout) f32 -> (B,L,Cout) f32."""
    B, L, _ = x.shape
    K = w.shape[0]
    pad_left = (K - 1) // 2
    xp = jnp.pad(x, ((0, 0), (pad_left, K - 1 - pad_left), (0, 0)))
    out = jnp.broadcast_to(b[None].astype(jnp.float32), (B, L, w.shape[2]))
    for k in range(K):
        out = out + jnp.einsum("blc,co->blo", xp[:, k:k + L, :], w[k],
                               preferred_element_type=jnp.float32)
    return out


def _ref_forward(x, params):
    w0, b0, w1, b1, w2, b2, w3, b3 = params
    h = jax.nn.relu(_ref_conv1d_same(x, w0, b0))
    t = jax.nn.relu(_ref_conv1d_same(h, w1, b1))
    t = jax.nn.relu(_ref_conv1d_same(t, w2, b2))
    t = jax.nn.relu(_ref_conv1d_same(t, w3, b3))
    return h + t


# ------------------------------------ main ------------------------------------
if __name__ == "__main__":
    # Small but TPU-shaped: H = 128 keeps the output lane-dense; B*L = 2048
    # rows lets the wrapper pick M = 512 rows per grid step on a 4-step
    # "parallel" grid (both v7x TensorCores busy, per-step overhead amortized).
    B, L = 32, 64
    input_dim, hidden_dim, ngram = 8, 128, 3

    key = jax.random.PRNGKey(0)
    keys = jax.random.split(key, 5)

    def init_conv(k, cin, cout, ksz):
        scale = 1.0 / np.sqrt(cin * ksz)
        kw, kb = jax.random.split(k)
        w = jax.random.uniform(kw, (ksz, cin, cout), jnp.float32, -scale, scale)
        b = jax.random.uniform(kb, (1, cout), jnp.float32, -scale, scale)
        return w, b

    x = jax.random.normal(keys[0], (B, L, input_dim), jnp.float32)
    w0, b0 = init_conv(keys[1], input_dim, hidden_dim, ngram)
    w1, b1 = init_conv(keys[2], hidden_dim, hidden_dim, ngram)
    w2, b2 = init_conv(keys[3], hidden_dim, hidden_dim, ngram)
    w3, b3 = init_conv(keys[4], hidden_dim, hidden_dim, ngram)
    params = (w0, b0, w1, b1, w2, b2, w3, b3)

    out = jax.block_until_ready(single_ngram_encoder(x, params))
    ref = jax.block_until_ready(_ref_forward(x, params))

    # Tolerance covers bf16 MXU operands / bf16-rounded activations across the
    # 4 chained conv layers (accumulation, bias, ReLU, residual stay f32).
    np.testing.assert_allclose(np.asarray(out), np.asarray(ref),
                               atol=5e-2, rtol=5e-2)
    print("KERNEL_OK")
</pallas_src>

<mosaic_0001>
module attributes {stable_mosaic.version = 11 : i64} {
  func.func @_single_ngram_encoder_kernel(%arg0: i32, %arg1: memref<8x64x24xbf16, #tpu.memory_space<vmem>>, %arg2: memref<24x128xbf16, #tpu.memory_space<vmem>>, %arg3: memref<1x128xf32, #tpu.memory_space<vmem>>, %arg4: memref<384x128xbf16, #tpu.memory_space<vmem>>, %arg5: memref<1x128xf32, #tpu.memory_space<vmem>>, %arg6: memref<384x128xbf16, #tpu.memory_space<vmem>>, %arg7: memref<1x128xf32, #tpu.memory_space<vmem>>, %arg8: memref<384x128xbf16, #tpu.memory_space<vmem>>, %arg9: memref<1x128xf32, #tpu.memory_space<vmem>>, %arg10: memref<8x64x128xf32, #tpu.memory_space<vmem>>) attributes {dimension_semantics = [#tpu.dimension_semantics<parallel>], iteration_bounds = array<i64: 4>, scalar_prefetch = 0 : i64, scratch_operands = 0 : i64, tpu.core_type = #tpu.core_type<tc>, window_params = [{transform_indices = @transform_0, window_bounds = array<i64: 8, 64, 24>}, {pipeline_mode = #tpu.pipeline_mode<synchronous>, transform_indices = @transform_1, window_bounds = array<i64: 24, 128>}, {pipeline_mode = #tpu.pipeline_mode<synchronous>, transform_indices = @transform_2, window_bounds = array<i64: 1, 128>}, {pipeline_mode = #tpu.pipeline_mode<synchronous>, transform_indices = @transform_3, window_bounds = array<i64: 384, 128>}, {pipeline_mode = #tpu.pipeline_mode<synchronous>, transform_indices = @transform_4, window_bounds = array<i64: 1, 128>}, {pipeline_mode = #tpu.pipeline_mode<synchronous>, transform_indices = @transform_5, window_bounds = array<i64: 384, 128>}, {pipeline_mode = #tpu.pipeline_mode<synchronous>, transform_indices = @transform_6, window_bounds = array<i64: 1, 128>}, {pipeline_mode = #tpu.pipeline_mode<synchronous>, transform_indices = @transform_7, window_bounds = array<i64: 384, 128>}, {pipeline_mode = #tpu.pipeline_mode<synchronous>, transform_indices = @transform_8, window_bounds = array<i64: 1, 128>}, {transform_indices = @transform_9, window_bounds = array<i64: 8, 64, 128>}]} {
    %c0 = arith.constant 0 : index
    %c0_0 = arith.constant 0 : index
    %c0_1 = arith.constant 0 : index
    %0 = vector.load %arg1[%c0, %c0_0, %c0_1] : memref<8x64x24xbf16, #tpu.memory_space<vmem>>, vector<8x64x24xbf16>
    %1 = vector.shape_cast %0 : vector<8x64x24xbf16> to vector<512x24xbf16>
    %c0_2 = arith.constant 0 : index
    %c0_3 = arith.constant 0 : index
    %2 = vector.load %arg2[%c0_2, %c0_3] : memref<24x128xbf16, #tpu.memory_space<vmem>>, vector<24x128xbf16>
    %cst = arith.constant dense<0.000000e+00> : vector<512x128xf32>
    %3 = tpu.matmul %1, %2, %cst {dimension_numbers = #tpu.dot_dimension_numbers<[1], [0], [0], [1], [0, 0, 1, 1], [], []>} : vector<512x24xbf16>, vector<24x128xbf16>, vector<512x128xf32> -> vector<512x128xf32>
    %c0_4 = arith.constant 0 : index
    %c0_5 = arith.constant 0 : index
    %4 = vector.load %arg3[%c0_4, %c0_5] : memref<1x128xf32, #tpu.memory_space<vmem>>, vector<1x128xf32>
    %5 = vector.broadcast %4 : vector<1x128xf32> to vector<512x128xf32>
    %6 = arith.addf %3, %5 : vector<512x128xf32>
    %cst_6 = arith.constant 0.000000e+00 : f32
    %7 = vector.broadcast %cst_6 : f32 to vector<512x128xf32>
    %8 = arith.maximumf %6, %7 : vector<512x128xf32>
    %9 = tpu.iota {dimensions = array<i32: 0>} : vector<512x1xi32>
    %c64_i32 = arith.constant 64 : i32
    %c0_i32 = arith.constant 0 : i32
    %10 = arith.cmpi eq, %c64_i32, %c0_i32 : i32
    %c1_i32 = arith.constant 1 : i32
    %11 = arith.select %10, %c1_i32, %c64_i32 : i32
    %12 = vector.broadcast %11 : i32 to vector<512x1xi32>
    %13 = arith.remsi %9, %12 : vector<512x1xi32>
    %c0_i32_7 = arith.constant 0 : i32
    %14 = vector.broadcast %c0_i32_7 : i32 to vector<512x1xi32>
    %15 = arith.cmpi ne, %13, %14 : vector<512x1xi32>
    %c0_i32_8 = arith.constant 0 : i32
    %16 = vector.broadcast %c0_i32_8 : i32 to vector<512x1xi32>
    %17 = arith.cmpi slt, %13, %16 : vector<512x1xi32>
    %c0_i32_9 = arith.constant 0 : i32
    %18 = arith.cmpi slt, %11, %c0_i32_9 : i32
    %19 = vector.broadcast %18 : i1 to vector<512x1xi1>
    %20 = vector.broadcast %19 : vector<512x1xi1> to vector<512x1xi1>
    %21 = arith.xori %17, %20 : vector<512x1xi1>
    %22 = arith.andi %21, %15 : vector<512x1xi1>
    %23 = vector.broadcast %11 : i32 to vector<512x1xi32>
    %24 = arith.addi %13, %23 : vector<512x1xi32>
    %25 = arith.select %22, %24, %13 : vector<512x1xi1>, vector<512x1xi32>
    %c1_i32_10 = arith.constant 1 : i32
    %26 = vector.broadcast %c1_i32_10 : i32 to vector<512x1xi32>
    %27 = arith.cmpi sge, %25, %26 : vector<512x1xi32>
    %c63_i32 = arith.constant 63 : i32
    %28 = vector.broadcast %c63_i32 : i32 to vector<512x1xi32>
    %29 = arith.cmpi slt, %25, %28 : vector<512x1xi32>
    %30 = arith.truncf %8 : vector<512x128xf32> to vector<512x128xbf16>
    %c1_i32_11 = arith.constant 1 : i32
    %31 = tpu.dynamic_rotate %30 by %c1_i32_11 dim 0 : vector<512x128xbf16>, i32 -> vector<512x128xbf16>
    %cst_12 = arith.constant 0.000000e+00 : bf16
    %32 = vector.shape_cast %27 : vector<512x1xi1> to vector<512x1xi1>
    %33 = vector.broadcast %32 : vector<512x1xi1> to vector<512x128xi1>
    %34 = vector.broadcast %cst_12 : bf16 to vector<512x128xbf16>
    %35 = arith.select %33, %31, %34 : vector<512x128xi1>, vector<512x128xbf16>
    %c511_i32 = arith.constant 511 : i32
    %36 = tpu.dynamic_rotate %30 by %c511_i32 dim 0 : vector<512x128xbf16>, i32 -> vector<512x128xbf16>
    %cst_13 = arith.constant 0.000000e+00 : bf16
    %37 = vector.shape_cast %29 : vector<512x1xi1> to vector<512x1xi1>
    %38 = vector.broadcast %37 : vector<512x1xi1> to vector<512x128xi1>
    %39 = vector.broadcast %cst_13 : bf16 to vector<512x128xbf16>
    %40 = arith.select %38, %36, %39 : vector<512x128xi1>, vector<512x128xbf16>
    %41 = tpu.concatenate %35, %30, %40 in 1 : vector<512x128xbf16>, vector<512x128xbf16>, vector<512x128xbf16> -> vector<512x384xbf16>
    %c0_14 = arith.constant 0 : index
    %c0_15 = arith.constant 0 : index
    %42 = vector.load %arg4[%c0_14, %c0_15] : memref<384x128xbf16, #tpu.memory_space<vmem>>, vector<384x128xbf16>
    %cst_16 = arith.constant dense<0.000000e+00> : vector<512x128xf32>
    %43 = tpu.matmul %41, %42, %cst_16 {dimension_numbers = #tpu.dot_dimension_numbers<[1], [0], [0], [1], [0, 0, 1, 1], [], []>} : vector<512x384xbf16>, vector<384x128xbf16>, vector<512x128xf32> -> vector<512x128xf32>
    %c0_17 = arith.constant 0 : index
    %c0_18 = arith.constant 0 : index
    %44 = vector.load %arg5[%c0_17, %c0_18] : memref<1x128xf32, #tpu.memory_space<vmem>>, vector<1x128xf32>
    %45 = vector.broadcast %44 : vector<1x128xf32> to vector<512x128xf32>
    %46 = arith.addf %43, %45 : vector<512x128xf32>
    %cst_19 = arith.constant 0.000000e+00 : f32
    %47 = vector.broadcast %cst_19 : f32 to vector<512x128xf32>
    %48 = arith.maximumf %46, %47 : vector<512x128xf32>
    %49 = arith.truncf %48 : vector<512x128xf32> to vector<512x128xbf16>
    %c1_i32_20 = arith.constant 1 : i32
    %50 = tpu.dynamic_rotate %49 by %c1_i32_20 dim 0 : vector<512x128xbf16>, i32 -> vector<512x128xbf16>
    %cst_21 = arith.constant 0.000000e+00 : bf16
    %51 = vector.shape_cast %27 : vector<512x1xi1> to vector<512x1xi1>
    %52 = vector.broadcast %51 : vector<512x1xi1> to vector<512x128xi1>
    %53 = vector.broadcast %cst_21 : bf16 to vector<512x128xbf16>
    %54 = arith.select %52, %50, %53 : vector<512x128xi1>, vector<512x128xbf16>
    %c511_i32_22 = arith.constant 511 : i32
    %55 = tpu.dynamic_rotate %49 by %c511_i32_22 dim 0 : vector<512x128xbf16>, i32 -> vector<512x128xbf16>
    %cst_23 = arith.constant 0.000000e+00 : bf16
    %56 = vector.shape_cast %29 : vector<512x1xi1> to vector<512x1xi1>
    %57 = vector.broadcast %56 : vector<512x1xi1> to vector<512x128xi1>
    %58 = vector.broadcast %cst_23 : bf16 to vector<512x128xbf16>
    %59 = arith.select %57, %55, %58 : vector<512x128xi1>, vector<512x128xbf16>
    %60 = tpu.concatenate %54, %49, %59 in 1 : vector<512x128xbf16>, vector<512x128xbf16>, vector<512x128xbf16> -> vector<512x384xbf16>
    %c0_24 = arith.constant 0 : index
    %c0_25 = arith.constant 0 : index
    %61 = vector.load %arg6[%c0_24, %c0_25] : memref<384x128xbf16, #tpu.memory_space<vmem>>, vector<384x128xbf16>
    %cst_26 = arith.constant dense<0.000000e+00> : vector<512x128xf32>
    %62 = tpu.matmul %60, %61, %cst_26 {dimension_numbers = #tpu.dot_dimension_numbers<[1], [0], [0], [1], [0, 0, 1, 1], [], []>} : vector<512x384xbf16>, vector<384x128xbf16>, vector<512x128xf32> -> vector<512x128xf32>
    %c0_27 = arith.constant 0 : index
    %c0_28 = arith.constant 0 : index
    %63 = vector.load %arg7[%c0_27, %c0_28] : memref<1x128xf32, #tpu.memory_space<vmem>>, vector<1x128xf32>
    %64 = vector.broadcast %63 : vector<1x128xf32> to vector<512x128xf32>
    %65 = arith.addf %62, %64 : vector<512x128xf32>
    %cst_29 = arith.constant 0.000000e+00 : f32
    %66 = vector.broadcast %cst_29 : f32 to vector<512x128xf32>
    %67 = arith.maximumf %65, %66 : vector<512x128xf32>
    %68 = arith.truncf %67 : vector<512x128xf32> to vector<512x128xbf16>
    %c1_i32_30 = arith.constant 1 : i32
    %69 = tpu.dynamic_rotate %68 by %c1_i32_30 dim 0 : vector<512x128xbf16>, i32 -> vector<512x128xbf16>
    %cst_31 = arith.constant 0.000000e+00 : bf16
    %70 = vector.shape_cast %27 : vector<512x1xi1> to vector<512x1xi1>
    %71 = vector.broadcast %70 : vector<512x1xi1> to vector<512x128xi1>
    %72 = vector.broadcast %cst_31 : bf16 to vector<512x128xbf16>
    %73 = arith.select %71, %69, %72 : vector<512x128xi1>, vector<512x128xbf16>
    %c511_i32_32 = arith.constant 511 : i32
    %74 = tpu.dynamic_rotate %68 by %c511_i32_32 dim 0 : vector<512x128xbf16>, i32 -> vector<512x128xbf16>
    %cst_33 = arith.constant 0.000000e+00 : bf16
    %75 = vector.shape_cast %29 : vector<512x1xi1> to vector<512x1xi1>
    %76 = vector.broadcast %75 : vector<512x1xi1> to vector<512x128xi1>
    %77 = vector.broadcast %cst_33 : bf16 to vector<512x128xbf16>
    %78 = arith.select %76, %74, %77 : vector<512x128xi1>, vector<512x128xbf16>
    %79 = tpu.concatenate %73, %68, %78 in 1 : vector<512x128xbf16>, vector<512x128xbf16>, vector<512x128xbf16> -> vector<512x384xbf16>
    %c0_34 = arith.constant 0 : index
    %c0_35 = arith.constant 0 : index
    %80 = vector.load %arg8[%c0_34, %c0_35] : memref<384x128xbf16, #tpu.memory_space<vmem>>, vector<384x128xbf16>
    %cst_36 = arith.constant dense<0.000000e+00> : vector<512x128xf32>
    %81 = tpu.matmul %79, %80, %cst_36 {dimension_numbers = #tpu.dot_dimension_numbers<[1], [0], [0], [1], [0, 0, 1, 1], [], []>} : vector<512x384xbf16>, vector<384x128xbf16>, vector<512x128xf32> -> vector<512x128xf32>
    %c0_37 = arith.constant 0 : index
    %c0_38 = arith.constant 0 : index
    %82 = vector.load %arg9[%c0_37, %c0_38] : memref<1x128xf32, #tpu.memory_space<vmem>>, vector<1x128xf32>
    %83 = vector.broadcast %82 : vector<1x128xf32> to vector<512x128xf32>
    %84 = arith.addf %81, %83 : vector<512x128xf32>
    %cst_39 = arith.constant 0.000000e+00 : f32
    %85 = vector.broadcast %cst_39 : f32 to vector<512x128xf32>
    %86 = arith.maximumf %84, %85 : vector<512x128xf32>
    %87 = arith.addf %8, %86 : vector<512x128xf32>
    %88 = vector.shape_cast %87 : vector<512x128xf32> to vector<8x64x128xf32>
    %c0_40 = arith.constant 0 : index
    %c0_41 = arith.constant 0 : index
    %c0_42 = arith.constant 0 : index
    %89 = vector.load %arg10[%c0_40, %c0_41, %c0_42] : memref<8x64x128xf32, #tpu.memory_space<vmem>>, vector<8x64x128xf32>
    tpu.vector_store %arg10[%c0_40, %c0_41, %c0_42], %88 {strides = array<i32>} : memref<8x64x128xf32, #tpu.memory_space<vmem>>, vector<8x64x128xf32>,
    return
  }
  func.func @transform_0(%arg0: i32) -> (i32, i32, i32) {
    %c0_i32 = arith.constant 0 : i32
    %c0_i32_0 = arith.constant 0 : i32
    %c0_i32_1 = arith.constant 0 : i32
    return %arg0, %c0_i32, %c0_i32_0 : i32, i32, i32
  }
  func.func @transform_1(%arg0: i32) -> (i32, i32) {
    %c0_i32 = arith.constant 0 : i32
    %c0_i32_0 = arith.constant 0 : i32
    %c0_i32_1 = arith.constant 0 : i32
    return %c0_i32, %c0_i32_0 : i32, i32
  }
  func.func @transform_2(%arg0: i32) -> (i32, i32) {
    %c0_i32 = arith.constant 0 : i32
    %c0_i32_0 = arith.constant 0 : i32
    %c0_i32_1 = arith.constant 0 : i32
    return %c0_i32, %c0_i32_0 : i32, i32
  }
  func.func @transform_3(%arg0: i32) -> (i32, i32) {
    %c0_i32 = arith.constant 0 : i32
    %c0_i32_0 = arith.constant 0 : i32
    %c0_i32_1 = arith.constant 0 : i32
    return %c0_i32, %c0_i32_0 : i32, i32
  }
  func.func @transform_4(%arg0: i32) -> (i32, i32) {
    %c0_i32 = arith.constant 0 : i32
    %c0_i32_0 = arith.constant 0 : i32
    %c0_i32_1 = arith.constant 0 : i32
    return %c0_i32, %c0_i32_0 : i32, i32
  }
  func.func @transform_5(%arg0: i32) -> (i32, i32) {
    %c0_i32 = arith.constant 0 : i32
    %c0_i32_0 = arith.constant 0 : i32
    %c0_i32_1 = arith.constant 0 : i32
    return %c0_i32, %c0_i32_0 : i32, i32
  }
  func.func @transform_6(%arg0: i32) -> (i32, i32) {
    %c0_i32 = arith.constant 0 : i32
    %c0_i32_0 = arith.constant 0 : i32
    %c0_i32_1 = arith.constant 0 : i32
    return %c0_i32, %c0_i32_0 : i32, i32
  }
  func.func @transform_7(%arg0: i32) -> (i32, i32) {
    %c0_i32 = arith.constant 0 : i32
    %c0_i32_0 = arith.constant 0 : i32
    %c0_i32_1 = arith.constant 0 : i32
    return %c0_i32, %c0_i32_0 : i32, i32
  }
  func.func @transform_8(%arg0: i32) -> (i32, i32) {
    %c0_i32 = arith.constant 0 : i32
    %c0_i32_0 = arith.constant 0 : i32
    %c0_i32_1 = arith.constant 0 : i32
    return %c0_i32, %c0_i32_0 : i32, i32
  }
  func.func @transform_9(%arg0: i32) -> (i32, i32, i32) {
    %c0_i32 = arith.constant 0 : i32
    %c0_i32_0 = arith.constant 0 : i32
    %c0_i32_1 = arith.constant 0 : i32
    return %arg0, %c0_i32, %c0_i32_0 : i32, i32, i32
  }
}

module attributes {stable_mosaic.version = 11 : i64} {
  func.func @_single_ngram_encoder_kernel(%arg0: i32, %arg1: memref<8x64x24xbf16, #tpu.memory_space<vmem>>, %arg2: memref<24x128xbf16, #tpu.memory_space<vmem>>, %arg3: memref<1x128xf32, #tpu.memory_space<vmem>>, %arg4: memref<384x128xbf16, #tpu.memory_space<vmem>>, %arg5: memref<1x128xf32, #tpu.memory_space<vmem>>, %arg6: memref<384x128xbf16, #tpu.memory_space<vmem>>, %arg7: memref<1x128xf32, #tpu.memory_space<vmem>>, %arg8: memref<384x128xbf16, #tpu.memory_space<vmem>>, %arg9: memref<1x128xf32, #tpu.memory_space<vmem>>, %arg10: memref<8x64x128xf32, #tpu.memory_space<vmem>>) attributes {dimension_semantics = [#tpu.dimension_semantics<parallel>], iteration_bounds = array<i64: 4>, scalar_prefetch = 0 : i64, scratch_operands = 0 : i64, tpu.core_type = #tpu.core_type<tc>, window_params = [{transform_indices = @transform_0, window_bounds = array<i64: 8, 64, 24>}, {pipeline_mode = #tpu.pipeline_mode<synchronous>, transform_indices = @transform_1, window_bounds = array<i64: 24, 128>}, {pipeline_mode = #tpu.pipeline_mode<synchronous>, transform_indices = @transform_2, window_bounds = array<i64: 1, 128>}, {pipeline_mode = #tpu.pipeline_mode<synchronous>, transform_indices = @transform_3, window_bounds = array<i64: 384, 128>}, {pipeline_mode = #tpu.pipeline_mode<synchronous>, transform_indices = @transform_4, window_bounds = array<i64: 1, 128>}, {pipeline_mode = #tpu.pipeline_mode<synchronous>, transform_indices = @transform_5, window_bounds = array<i64: 384, 128>}, {pipeline_mode = #tpu.pipeline_mode<synchronous>, transform_indices = @transform_6, window_bounds = array<i64: 1, 128>}, {pipeline_mode = #tpu.pipeline_mode<synchronous>, transform_indices = @transform_7, window_bounds = array<i64: 384, 128>}, {pipeline_mode = #tpu.pipeline_mode<synchronous>, transform_indices = @transform_8, window_bounds = array<i64: 1, 128>}, {transform_indices = @transform_9, window_bounds = array<i64: 8, 64, 128>}]} {
    %c0 = arith.constant 0 : index
    %c0_0 = arith.constant 0 : index
    %c0_1 = arith.constant 0 : index
    %0 = vector.load %arg1[%c0, %c0_0, %c0_1] : memref<8x64x24xbf16, #tpu.memory_space<vmem>>, vector<8x64x24xbf16>
    %1 = vector.shape_cast %0 : vector<8x64x24xbf16> to vector<512x24xbf16>
    %c0_2 = arith.constant 0 : index
    %c0_3 = arith.constant 0 : index
    %2 = vector.load %arg2[%c0_2, %c0_3] : memref<24x128xbf16, #tpu.memory_space<vmem>>, vector<24x128xbf16>
    %cst = arith.constant dense<0.000000e+00> : vector<512x128xf32>
    %3 = tpu.matmul %1, %2, %cst {dimension_numbers = #tpu.dot_dimension_numbers<[1], [0], [0], [1], [0, 0, 1, 1], [], []>} : vector<512x24xbf16>, vector<24x128xbf16>, vector<512x128xf32> -> vector<512x128xf32>
    %c0_4 = arith.constant 0 : index
    %c0_5 = arith.constant 0 : index
    %4 = vector.load %arg3[%c0_4, %c0_5] : memref<1x128xf32, #tpu.memory_space<vmem>>, vector<1x128xf32>
    %5 = vector.broadcast %4 : vector<1x128xf32> to vector<512x128xf32>
    %6 = arith.addf %3, %5 : vector<512x128xf32>
    %cst_6 = arith.constant 0.000000e+00 : f32
    %7 = vector.broadcast %cst_6 : f32 to vector<512x128xf32>
    %8 = arith.maximumf %6, %7 : vector<512x128xf32>
    %9 = tpu.iota {dimensions = array<i32: 0>} : vector<512x1xi32>
    %c64_i32 = arith.constant 64 : i32
    %c0_i32 = arith.constant 0 : i32
    %10 = arith.cmpi eq, %c64_i32, %c0_i32 : i32
    %c1_i32 = arith.constant 1 : i32
    %11 = arith.select %10, %c1_i32, %c64_i32 : i32
    %12 = vector.broadcast %11 : i32 to vector<512x1xi32>
    %13 = arith.remsi %9, %12 : vector<512x1xi32>
    %c0_i32_7 = arith.constant 0 : i32
    %14 = vector.broadcast %c0_i32_7 : i32 to vector<512x1xi32>
    %15 = arith.cmpi ne, %13, %14 : vector<512x1xi32>
    %c0_i32_8 = arith.constant 0 : i32
    %16 = vector.broadcast %c0_i32_8 : i32 to vector<512x1xi32>
    %17 = arith.cmpi slt, %13, %16 : vector<512x1xi32>
    %c0_i32_9 = arith.constant 0 : i32
    %18 = arith.cmpi slt, %11, %c0_i32_9 : i32
    %19 = vector.broadcast %18 : i1 to vector<512x1xi1>
    %20 = vector.broadcast %19 : vector<512x1xi1> to vector<512x1xi1>
    %21 = arith.xori %17, %20 : vector<512x1xi1>
    %22 = arith.andi %21, %15 : vector<512x1xi1>
    %23 = vector.broadcast %11 : i32 to vector<512x1xi32>
    %24 = arith.addi %13, %23 : vector<512x1xi32>
    %25 = arith.select %22, %24, %13 : vector<512x1xi1>, vector<512x1xi32>
    %c1_i32_10 = arith.constant 1 : i32
    %26 = vector.broadcast %c1_i32_10 : i32 to vector<512x1xi32>
    %27 = arith.cmpi sge, %25, %26 : vector<512x1xi32>
    %c63_i32 = arith.constant 63 : i32
    %28 = vector.broadcast %c63_i32 : i32 to vector<512x1xi32>
    %29 = arith.cmpi slt, %25, %28 : vector<512x1xi32>
    %c1_i32_11 = arith.constant 1 : i32
    %30 = tpu.dynamic_rotate %8 by %c1_i32_11 dim 0 : vector<512x128xf32>, i32 -> vector<512x128xf32>
    %cst_12 = arith.constant 0.000000e+00 : f32
    %31 = vector.shape_cast %27 : vector<512x1xi1> to vector<512x1xi1>
    %32 = vector.broadcast %31 : vector<512x1xi1> to vector<512x128xi1>
    %33 = vector.broadcast %cst_12 : f32 to vector<512x128xf32>
    %34 = arith.select %32, %30, %33 : vector<512x128xi1>, vector<512x128xf32>
    %c511_i32 = arith.constant 511 : i32
    %35 = tpu.dynamic_rotate %8 by %c511_i32 dim 0 : vector<512x128xf32>, i32 -> vector<512x128xf32>
    %cst_13 = arith.constant 0.000000e+00 : f32
    %36 = vector.shape_cast %29 : vector<512x1xi1> to vector<512x1xi1>
    %37 = vector.broadcast %36 : vector<512x1xi1> to vector<512x128xi1>
    %38 = vector.broadcast %cst_13 : f32 to vector<512x128xf32>
    %39 = arith.select %37, %35, %38 : vector<512x128xi1>, vector<512x128xf32>
    %40 = tpu.concatenate %34, %8, %39 in 1 : vector<512x128xf32>, vector<512x128xf32>, vector<512x128xf32> -> vector<512x384xf32>
    %41 = arith.truncf %40 : vector<512x384xf32> to vector<512x384xbf16>
    %c0_14 = arith.constant 0 : index
    %c0_15 = arith.constant 0 : index
    %42 = vector.load %arg4[%c0_14, %c0_15] : memref<384x128xbf16, #tpu.memory_space<vmem>>, vector<384x128xbf16>
    %cst_16 = arith.constant dense<0.000000e+00> : vector<512x128xf32>
    %43 = tpu.matmul %41, %42, %cst_16 {dimension_numbers = #tpu.dot_dimension_numbers<[1], [0], [0], [1], [0, 0, 1, 1], [], []>} : vector<512x384xbf16>, vector<384x128xbf16>, vector<512x128xf32> -> vector<512x128xf32>
    %c0_17 = arith.constant 0 : index
    %c0_18 = arith.constant 0 : index
    %44 = vector.load %arg5[%c0_17, %c0_18] : memref<1x128xf32, #tpu.memory_space<vmem>>, vector<1x128xf32>
    %45 = vector.broadcast %44 : vector<1x128xf32> to vector<512x128xf32>
    %46 = arith.addf %43, %45 : vector<512x128xf32>
    %cst_19 = arith.constant 0.000000e+00 : f32
    %47 = vector.broadcast %cst_19 : f32 to vector<512x128xf32>
    %48 = arith.maximumf %46, %47 : vector<512x128xf32>
    %c1_i32_20 = arith.constant 1 : i32
    %49 = tpu.dynamic_rotate %48 by %c1_i32_20 dim 0 : vector<512x128xf32>, i32 -> vector<512x128xf32>
    %cst_21 = arith.constant 0.000000e+00 : f32
    %50 = vector.shape_cast %27 : vector<512x1xi1> to vector<512x1xi1>
    %51 = vector.broadcast %50 : vector<512x1xi1> to vector<512x128xi1>
    %52 = vector.broadcast %cst_21 : f32 to vector<512x128xf32>
    %53 = arith.select %51, %49, %52 : vector<512x128xi1>, vector<512x128xf32>
    %c511_i32_22 = arith.constant 511 : i32
    %54 = tpu.dynamic_rotate %48 by %c511_i32_22 dim 0 : vector<512x128xf32>, i32 -> vector<512x128xf32>
    %cst_23 = arith.constant 0.000000e+00 : f32
    %55 = vector.shape_cast %29 : vector<512x1xi1> to vector<512x1xi1>
    %56 = vector.broadcast %55 : vector<512x1xi1> to vector<512x128xi1>
    %57 = vector.broadcast %cst_23 : f32 to vector<512x128xf32>
    %58 = arith.select %56, %54, %57 : vector<512x128xi1>, vector<512x128xf32>
    %59 = tpu.concatenate %53, %48, %58 in 1 : vector<512x128xf32>, vector<512x128xf32>, vector<512x128xf32> -> vector<512x384xf32>
    %60 = arith.truncf %59 : vector<512x384xf32> to vector<512x384xbf16>
    %c0_24 = arith.constant 0 : index
    %c0_25 = arith.constant 0 : index
    %61 = vector.load %arg6[%c0_24, %c0_25] : memref<384x128xbf16, #tpu.memory_space<vmem>>, vector<384x128xbf16>
    %cst_26 = arith.constant dense<0.000000e+00> : vector<512x128xf32>
    %62 = tpu.matmul %60, %61, %cst_26 {dimension_numbers = #tpu.dot_dimension_numbers<[1], [0], [0], [1], [0, 0, 1, 1], [], []>} : vector<512x384xbf16>, vector<384x128xbf16>, vector<512x128xf32> -> vector<512x128xf32>
    %c0_27 = arith.constant 0 : index
    %c0_28 = arith.constant 0 : index
    %63 = vector.load %arg7[%c0_27, %c0_28] : memref<1x128xf32, #tpu.memory_space<vmem>>, vector<1x128xf32>
    %64 = vector.broadcast %63 : vector<1x128xf32> to vector<512x128xf32>
    %65 = arith.addf %62, %64 : vector<512x128xf32>
    %cst_29 = arith.constant 0.000000e+00 : f32
    %66 = vector.broadcast %cst_29 : f32 to vector<512x128xf32>
    %67 = arith.maximumf %65, %66 : vector<512x128xf32>
    %c1_i32_30 = arith.constant 1 : i32
    %68 = tpu.dynamic_rotate %67 by %c1_i32_30 dim 0 : vector<512x128xf32>, i32 -> vector<512x128xf32>
    %cst_31 = arith.constant 0.000000e+00 : f32
    %69 = vector.shape_cast %27 : vector<512x1xi1> to vector<512x1xi1>
    %70 = vector.broadcast %69 : vector<512x1xi1> to vector<512x128xi1>
    %71 = vector.broadcast %cst_31 : f32 to vector<512x128xf32>
    %72 = arith.select %70, %68, %71 : vector<512x128xi1>, vector<512x128xf32>
    %c511_i32_32 = arith.constant 511 : i32
    %73 = tpu.dynamic_rotate %67 by %c511_i32_32 dim 0 : vector<512x128xf32>, i32 -> vector<512x128xf32>
    %cst_33 = arith.constant 0.000000e+00 : f32
    %74 = vector.shape_cast %29 : vector<512x1xi1> to vector<512x1xi1>
    %75 = vector.broadcast %74 : vector<512x1xi1> to vector<512x128xi1>
    %76 = vector.broadcast %cst_33 : f32 to vector<512x128xf32>
    %77 = arith.select %75, %73, %76 : vector<512x128xi1>, vector<512x128xf32>
    %78 = tpu.concatenate %72, %67, %77 in 1 : vector<512x128xf32>, vector<512x128xf32>, vector<512x128xf32> -> vector<512x384xf32>
    %79 = arith.truncf %78 : vector<512x384xf32> to vector<512x384xbf16>
    %c0_34 = arith.constant 0 : index
    %c0_35 = arith.constant 0 : index
    %80 = vector.load %arg8[%c0_34, %c0_35] : memref<384x128xbf16, #tpu.memory_space<vmem>>, vector<384x128xbf16>
    %cst_36 = arith.constant dense<0.000000e+00> : vector<512x128xf32>
    %81 = tpu.matmul %79, %80, %cst_36 {dimension_numbers = #tpu.dot_dimension_numbers<[1], [0], [0], [1], [0, 0, 1, 1], [], []>} : vector<512x384xbf16>, vector<384x128xbf16>, vector<512x128xf32> -> vector<512x128xf32>
    %c0_37 = arith.constant 0 : index
    %c0_38 = arith.constant 0 : index
    %82 = vector.load %arg9[%c0_37, %c0_38] : memref<1x128xf32, #tpu.memory_space<vmem>>, vector<1x128xf32>
    %83 = vector.broadcast %82 : vector<1x128xf32> to vector<512x128xf32>
    %84 = arith.addf %81, %83 : vector<512x128xf32>
    %cst_39 = arith.constant 0.000000e+00 : f32
    %85 = vector.broadcast %cst_39 : f32 to vector<512x128xf32>
    %86 = arith.maximumf %84, %85 : vector<512x128xf32>
    %87 = arith.addf %8, %86 : vector<512x128xf32>
    %88 = vector.shape_cast %87 : vector<512x128xf32> to vector<8x64x128xf32>
    %c0_40 = arith.constant 0 : index
    %c0_41 = arith.constant 0 : index
    %c0_42 = arith.constant 0 : index
    %89 = vector.load %arg10[%c0_40, %c0_41, %c0_42] : memref<8x64x128xf32, #tpu.memory_space<vmem>>, vector<8x64x128xf32>
    tpu.vector_store %arg10[%c0_40, %c0_41, %c0_42], %88 {strides = array<i32>} : memref<8x64x128xf32, #tpu.memory_space<vmem>>, vector<8x64x128xf32>,
    return
  }
  func.func @transform_0(%arg0: i32) -> (i32, i32, i32) {
    %c0_i32 = arith.constant 0 : i32
    %c0_i32_0 = arith.constant 0 : i32
    %c0_i32_1 = arith.constant 0 : i32
    return %arg0, %c0_i32, %c0_i32_0 : i32, i32, i32
  }
  func.func @transform_1(%arg0: i32) -> (i32, i32) {
    %c0_i32 = arith.constant 0 : i32
    %c0_i32_0 = arith.constant 0 : i32
    %c0_i32_1 = arith.constant 0 : i32
    return %c0_i32, %c0_i32_0 : i32, i32
  }
  func.func @transform_2(%arg0: i32) -> (i32, i32) {
    %c0_i32 = arith.constant 0 : i32
    %c0_i32_0 = arith.constant 0 : i32
    %c0_i32_1 = arith.constant 0 : i32
    return %c0_i32, %c0_i32_0 : i32, i32
  }
  func.func @transform_3(%arg0: i32) -> (i32, i32) {
    %c0_i32 = arith.constant 0 : i32
    %c0_i32_0 = arith.constant 0 : i32
    %c0_i32_1 = arith.constant 0 : i32
    return %c0_i32, %c0_i32_0 : i32, i32
  }
  func.func @transform_4(%arg0: i32) -> (i32, i32) {
    %c0_i32 = arith.constant 0 : i32
    %c0_i32_0 = arith.constant 0 : i32
    %c0_i32_1 = arith.constant 0 : i32
    return %c0_i32, %c0_i32_0 : i32, i32
  }
  func.func @transform_5(%arg0: i32) -> (i32, i32) {
    %c0_i32 = arith.constant 0 : i32
    %c0_i32_0 = arith.constant 0 : i32
    %c0_i32_1 = arith.constant 0 : i32
    return %c0_i32, %c0_i32_0 : i32, i32
  }
  func.func @transform_6(%arg0: i32) -> (i32, i32) {
    %c0_i32 = arith.constant 0 : i32
    %c0_i32_0 = arith.constant 0 : i32
    %c0_i32_1 = arith.constant 0 : i32
    return %c0_i32, %c0_i32_0 : i32, i32
  }
  func.func @transform_7(%arg0: i32) -> (i32, i32) {
    %c0_i32 = arith.constant 0 : i32
    %c0_i32_0 = arith.constant 0 : i32
    %c0_i32_1 = arith.constant 0 : i32
    return %c0_i32, %c0_i32_0 : i32, i32
  }
  func.func @transform_8(%arg0: i32) -> (i32, i32) {
    %c0_i32 = arith.constant 0 : i32
    %c0_i32_0 = arith.constant 0 : i32
    %c0_i32_1 = arith.constant 0 : i32
    return %c0_i32, %c0_i32_0 : i32, i32
  }
  func.func @transform_9(%arg0: i32) -> (i32, i32, i32) {
    %c0_i32 = arith.constant 0 : i32
    %c0_i32_0 = arith.constant 0 : i32
    %c0_i32_1 = arith.constant 0 : i32
    return %arg0, %c0_i32, %c0_i32_0 : i32, i32, i32
  }
}

</mosaic_0001>

<bundles_post_ra>
// kernel: tpu_custom_call.1
= control target key start
LH: loop header
LB: loop body
LE: loop exit
PB: predicated region body
PF: predicated region fallthrough
CT: control target
= control target key end

     0   :  { %14 = vsyncpa [#allocation3], 0  ;;  %s11620_s0 = inlined_call_operand.vmem [shape: bf16[32,64,24], index: 0, kind: input, shape index: {}]   ;;  %s11621_s1 = inlined_call_operand.vmem [shape: bf16[24,128], index: 1, kind: input, shape index: {}]   ;;  %s11622_s2 = inlined_call_operand.vmem [shape: f32[1,128], index: 2, kind: input, shape index: {}]   ;;  %s11623_s3 = inlined_call_operand.vmem [shape: bf16[384,128], index: 3, kind: input, shape index: {}]   ;;  %s11624_s4 = inlined_call_operand.vmem [shape: f32[1,128], index: 4, kind: input, shape index: {}]   ;;  %s11625_s5 = inlined_call_operand.vmem [shape: bf16[384,128], index: 5, kind: input, shape index: {}]   ;;  %s11626_s6 = inlined_call_operand.vmem [shape: f32[1,128], index: 6, kind: input, shape index: {}]   ;;  %s11627_s7 = inlined_call_operand.vmem [shape: bf16[384,128], index: 7, kind: input, shape index: {}]   ;;  %s11628_s8 = inlined_call_operand.vmem [shape: f32[1,128], index: 8, kind: input, shape index: {}]   ;;  %s11629_s9 = inlined_call_operand.hbm [shape: f32[32,64,128], index: 9, kind: output, shape index: {}]  }
   0x1   :  { %16 = vsyncpa [#allocation3 + $0x1], 0  ;;  %s7458_s30 = smov 0   ;;  %s7460_s10 = smov 0  }
   0x2   :  { %s7462_s11 = smov 0   ;;  %s7464_s12 = smov 0  }
   0x3 LB: > { %s7479_s13 = sadd.s32 4294967295, %s7401_s12   ;;  %s6422_s14 = sadd.s32 4294967294, %s7401_s12   ;;  %s7401_s12 = sphi %s7464_s12, %s12922_s12   ;;  %s7397_s11 = sphi %s7462_s11, %s12921_s11   ;;  %s7393_s10 = sphi %s7460_s10, %s12920_s10   ;;  %s7389_s30 = sphi %s7458_s30, %s12919_s30  }
   0x4   : > { %s7483_s15 = sadd.s32 1, %s7401_s12   ;;  %s223_s16 = sadd.s32 1, %s7397_s11 }
   0x5   : > { %s220_s17 = ssub.s32 %s7401_s12, %s7483_s15  ;;  %p233_p0 = scmp.ne.s32.totalorder %s7397_s11, %s7393_s10 }
   0x6   : > { %p221_p1 = scmp.eq.s32.totalorder %s220_s17, 0  ;;  %p234_p2 = scmp.eq.s32.totalorder %s7479_s13, 3 }
   0x7   : > { %p239_p3 = scmp.ne.s32.totalorder %s7393_s10, %s7389_s30  ;;  %p240_p4 = scmp.eq.s32.totalorder %s6422_s14, 3 }
   0x8   : > { %s7494_s18 = scalar_select %p221_p1, %s7397_s11, %s223_s16  }
   0x9   : > { %p7496_p5 = por %p234_p2, %p233_p0  ;;  %p7500_p6 = por %p240_p4, %p239_p3 }
   0xa   : > { %p6425_p7 = scmp.ge.s32.totalorder %s7401_s12, 1  ;;  %p292_p8 = scmp.lt.s32.totalorder %s7401_s12, 5 }
   0xc   : > { %p293_p9 = pnand %p6425_p7, %p292_p8 }
   0xe   : > { %296 = sbr.rel (%p293_p9) target bundleno = 1806 (0x70e), region = 56 }
  0x15   : > { %v7231_v0 = vld [vmem:[%s11621_s1] sm:$0xff]   ;;  %vm678_vm0 = vcmask 1043456   ;;  %v7232_v1 = vld [vmem:[%s11621_s1 + $0x8] ss:$0 sps:$4 sm:$0xff]   ;;  %s6427_s25 = sshll.u32 %s7479_s13, 3  ;;  %vm581_vm1 = vcmask 195584   ;;  %v1035_v60 = vlaneseq }
  0x16   : > { %6879 = vmatprep.subr.bf16.mxu0 %v7231_v0  ;;  %p330_p10 = scmp.lt.s32.totalorder %s6427_s25, 31  ;;  %v680_v2 = vsel %vm678_vm0, %v7232_v1, 0  ;;  %v7265_v3 = vld [vmem:[%s11623_s3 + $0x80] sm:$0xff]   ;;  %v7266_v4 = vld [vmem:[%s11623_s3 + $0x88] sm:$0xff]   ;;  %v7267_v8 = vld [vmem:[%s11623_s3 + $0x90] sm:$0xff]   ;;  %v11630_v44 = vmov 0  }
  0x17   : > { %6880 = vmatpush3.bf16.msra.mxu0 %v7231_v0  ;;  %v7268_v11 = vld [vmem:[%s11623_s3 + $0x98] sm:$0xff]   ;;  %v7269_v31 = vld [vmem:[%s11623_s3 + $0xa0] sm:$0xff]   ;;  %v7270_v33 = vld [vmem:[%s11623_s3 + $0xa8] sm:$0xff]   ;;  %2933 = vmatprep.subr.bf16.mxu1 %v11630_v44  ;;  %vm7404_vm4 = vmmov 1   ;;  %s326_s14 = sand.u32 1, %s7393_s10   ;;  %s6724_s22 = sshll.u32 %s7479_s13, 13 }
  0x18   : > { %7187 = vmatprep.subr.msk.bf16.mxu0 %vm678_vm0, %v7232_v1  ;;  %s12924_s25 = smov (!%p330_p10, %s6427_s25), 31  ;;  %v7271_v35 = vld [vmem:[%s11623_s3 + $0xb0] sm:$0xff]   ;;  %v7272_v37 = vld [vmem:[%s11623_s3 + $0xb8] sm:$0xff]   ;;  %v7273_v43 = vld [vmem:[%s11623_s3] sm:$0xff]   ;;  %s6426_s17 = sshll.u32 %s326_s14, 9 }
  0x19   : > { %s6722_s28 = sshll.u32 %s12924_s25, 5  ;;  %2934 = vmatpush1.bf16.msra.mxu1 %v7273_v43  ;;  %v7274_v45 = vld [vmem:[%s11623_s3 + $0x8] sm:$0xff]   ;;  %v7275_v46 = vld [vmem:[%s11623_s3 + $0x10] sm:$0xff]   ;;  %v7276_v47 = vld [vmem:[%s11623_s3 + $0x18] sm:$0xff]   ;;  %s11292_s21 = scalar_lea.vmem [#allocation2], %s6426_s17 }
  0x1a   : > { %s7519_s16 = scalar_lea.vmem %s11620_s0, %s6722_s28  ;;  %2935 = vmatprep.subr.bf16.mxu1 %v11630_v44  ;;  %v7277_v48 = vld [vmem:[%s11623_s3 + $0x20] sm:$0xff]   ;;  %v7278_v49 = vld [vmem:[%s11623_s3 + $0x28] sm:$0xff]   ;;  %v7279_v50 = vld [vmem:[%s11623_s3 + $0x30] sm:$0xff]   ;;  %s6360_s23 = sshll.u32 %s11292_s21, 4  ;;  %s11572_s23 = int_to_ptr.vmem [resolvable:$true] %s6360_s23 }
  0x1b   : > { %6882 = vmatpush3.bf16.msra.mxu0 %v680_v2  ;;  %v7233_v5 = vld [vmem:[%s7519_s16] sm:$0xff]   ;;  %v7234_v6 = vld [vmem:[%s7519_s16 + $0x8] sm:$0xff]   ;;  %v7235_v7 = vld [vmem:[%s7519_s16 + $0x10] sm:$0xff]   ;;  %s11570_s26 = scalar_lea.hbm %s11629_s9, %s6724_s22  ;;  %s11579_s13 = scalar_lea.sflag [#allocation3], %s326_s14 }
  0x1c   : > { %6947 = vmatprep.subr.bf16.mxu0 %v7265_v3  ;;  %6883 = vmatprep.mubr.msk.bf16.mxu0 %vm581_vm1, %v7233_v5  ;;  %v7236_v9 = vld [vmem:[%s7519_s16 + $0x18] sm:$0xff]   ;;  %v7237_v10 = vld [vmem:[%s7519_s16 + $0x20] sm:$0xff]   ;;  %v7238_v12 = vld [vmem:[%s7519_s16 + $0x28] sm:$0xff]   ;;  %v7679_v5 = vshrl.u32 %v1035_v60, 7  ;;  %s7405_s27 = smov [#allocation2]  }
  0x1d   : > { %v7239_v13 = vld [vmem:[%s7519_s16 + $0x30] sm:$0xff]   ;;  %v7240_v14 = vld [vmem:[%s7519_s16 + $0x38] sm:$0xff]   ;;  %v7241_v15 = vld [vmem:[%s7519_s16 + $0x40] sm:$0xff]   ;;  %2936 = vmatpush1.bf16.msra.mxu1 %v7274_v45  ;;  %s7343_s28 = sshll.u32 %s7405_s27, 4  ;;  %s7344_s28 = int_to_ptr.vmem [resolvable:$false] %s7343_s28 }
  0x1e   : > { %6884 = vmatmul.mubr.msk.bf16.vlgmr.msra.gmra.mrb[0].mxu0 %vm581_vm1, %v7234_v6  ;;  %v7242_v16 = vld [vmem:[%s7519_s16 + $0x48] sm:$0xff]   ;;  %v7243_v17 = vld [vmem:[%s7519_s16 + $0x50] sm:$0xff]   ;;  %v7244_v18 = vld [vmem:[%s7519_s16 + $0x58] sm:$0xff]   ;;  %2937 = vmatprep.subr.bf16.mxu1 %v11630_v44  ;;  %vm11695_vm2 = vcmp.lt.s32.totalorder %v7679_v5, 7  ;;  %s7345_s29 = scalar_lea.vmem %s7344_s28, 16384  ;;  %p7346_p0 = scmp.lt.s32.totalorder %s11572_s23, %s7344_s28 }
  0x1f   : > { %6887 = vmatprep.mubr.msk.bf16.mxu0 %vm581_vm1, %v7235_v7  ;;  %6948 = vmatpush3.bf16.msra.mxu0 %v7265_v3  ;;  %v7245_v19 = vld [vmem:[%s7519_s16 + $0x60] sm:$0xff]   ;;  %v7246_v20 = vld [vmem:[%s7519_s16 + $0x68] sm:$0xff]   ;;  %v7247_v21 = vld [vmem:[%s7519_s16 + $0x70] sm:$0xff]  }
  0x20   : > { %6949 = vmatprep.subr.bf16.mxu0 %v7266_v4  ;;  %v7248_v22 = vld [vmem:[%s7519_s16 + $0x78] sm:$0xff]   ;;  %v7249_v23 = vld [vmem:[%s7519_s16 + $0x80] sm:$0xff]   ;;  %v7250_v24 = vld [vmem:[%s7519_s16 + $0x88] sm:$0xff]  }
  0x21   : > { %v7251_v25 = vld [vmem:[%s7519_s16 + $0x90] sm:$0xff]   ;;  %v7252_v26 = vld [vmem:[%s7519_s16 + $0x98] sm:$0xff]   ;;  %v7253_v27 = vld [vmem:[%s7519_s16 + $0xa0] sm:$0xff]   ;;  %2938 = vmatpush1.bf16.msra.mxu1 %v7275_v46 }
  0x22   : > { %v7254_v28 = vld [vmem:[%s7519_s16 + $0xa8] sm:$0xff]   ;;  %v7255_v29 = vld [vmem:[%s7519_s16 + $0xb0] sm:$0xff]   ;;  %v7256_v30 = vld [vmem:[%s7519_s16 + $0xb8] sm:$0xff]   ;;  %2939 = vmatprep.subr.bf16.mxu1 %v11630_v44 }
  0x23   : > { %6950 = vmatpush3.bf16.msra.mxu0 %v7266_v4  ;;  %v7257_v32 = vld [vmem:[%s7519_s16 + $0xc0] sm:$0xff]   ;;  %v7258_v34 = vld [vmem:[%s7519_s16 + $0xc8] sm:$0xff]   ;;  %v7259_v36 = vld [vmem:[%s7519_s16 + $0xd0] sm:$0xff]  }
  0x24   : > { %6951 = vmatprep.subr.bf16.mxu0 %v7267_v8  ;;  %v7260_v38 = vld [vmem:[%s7519_s16 + $0xd8] sm:$0xff]   ;;  %v7261_v39 = vld [vmem:[%s7519_s16 + $0xe0] sm:$0xff]   ;;  %v7262_v40 = vld [vmem:[%s7519_s16 + $0xe8] sm:$0xff]  }
  0x25   : > { %v7263_v41 = vld [vmem:[%s7519_s16 + $0xf0] sm:$0xff]   ;;  %v7264_v42 = vld [vmem:[%s7519_s16 + $0xf8] sm:$0xff]   ;;  %2940 = vmatpush1.bf16.msra.mxu1 %v7276_v47  ;;  %v7281_v52 = vld [vmem:[%s11623_s3 + $0x40] sm:$0xff]   ;;  %s7339_s16 = scalar_lea.vmem %s11572_s23, 8192 }
  0x26   : > { %6888 = vmatmul.mubr.msk.bf16.gmra.mrb[4].mxu0 %vm581_vm1, %v7236_v9  ;;  %2941 = vmatprep.subr.bf16.mxu1 %v11630_v44  ;;  %v7280_v51 = vld [vmem:[%s11623_s3 + $0x38] sm:$0xff]   ;;  %v7282_v53 = vld [vmem:[%s11623_s3 + $0x48] sm:$0xff]   ;;  %v7283_v54 = vld [vmem:[%s11623_s3 + $0x50] sm:$0xff]   ;;  %p7340_p11 = scmp.ne.s32.totalorder %s11572_s23, %s7339_s16  ;;  %p7347_p1 = scmp.lt.s32.totalorder %s7345_s29, %s7339_s16 }
  0x27   : > { %6891 = vmatprep.mubr.msk.bf16.mxu0 %vm581_vm1, %v7237_v10  ;;  %6952 = vmatpush3.bf16.msra.mxu0 %v7267_v8  ;;  %v7284_v55 = vld [vmem:[%s11623_s3 + $0x58] sm:$0xff]   ;;  %v7285_v56 = vld [vmem:[%s11623_s3 + $0x60] sm:$0xff]   ;;  %v7286_v57 = vld [vmem:[%s11623_s3 + $0x68] sm:$0xff]  }
  0x28   : > { %6953 = vmatprep.subr.bf16.mxu0 %v7268_v11  ;;  %v7287_v58 = vld [vmem:[%s11623_s3 + $0x70] sm:$0xff]   ;;  %v7670_v59 = vld [vmem:[%s11622_s2] ss:$0 sm:$0xff]  ;;  %v7288_v61 = vld [vmem:[%s11623_s3 + $0x78] sm:$0xff]   ;;  %p7341_p12 = pnand %p7340_p11, %p7496_p5  ;;  %p7348_p2 = por %p7347_p1, %p7346_p0 }
  0x29   : > { %2942 = vmatpush1.bf16.msra.mxu1 %v7277_v48 }
  0x2a   : > { %2943 = vmatprep.subr.bf16.mxu1 %v11630_v44  ;;  %p7342_p13 = pneg %p7341_p12 }
  0x2b   : > { %6954 = vmatpush3.bf16.msra.mxu0 %v7268_v11 }
  0x2c   : > { %6955 = vmatprep.subr.bf16.mxu0 %v7269_v31  ;;  %p7349_p3 = pnand %p7348_p2, %p7342_p13 }
  0x2d   : > { %2944 = vmatpush1.bf16.msra.mxu1 %v7278_v49 }
  0x2e   : > { %6892 = vmatmul.mubr.msk.bf16.gmra.mrb[8].mxu0 %vm581_vm1, %v7238_v12  ;;  %2945 = vmatprep.subr.bf16.mxu1 %v11630_v44 }
  0x2f   : > { %6895 = vmatprep.mubr.msk.bf16.mxu0 %vm581_vm1, %v7239_v13  ;;  %6956 = vmatpush3.bf16.msra.mxu0 %v7269_v31 }
  0x30   : > { %6957 = vmatprep.subr.bf16.mxu0 %v7270_v33 }
  0x31   : > { %2946 = vmatpush1.bf16.msra.mxu1 %v7279_v50 }
  0x32   : > { %2947 = vmatprep.subr.bf16.mxu1 %v11630_v44 }
  0x33   : > { %6958 = vmatpush3.bf16.msra.mxu0 %v7270_v33 }
  0x34   : > { %6959 = vmatprep.subr.bf16.mxu0 %v7271_v35 }
  0x35   : > { %2948 = vmatpush1.bf16.msra.mxu1 %v7280_v51 }
  0x36   : > { %6896 = vmatmul.mubr.msk.bf16.gmra.mrb[12].mxu0 %vm581_vm1, %v7240_v14  ;;  %2949 = vmatprep.subr.bf16.mxu1 %v11630_v44 }
  0x37   : > { %6899 = vmatprep.mubr.msk.bf16.mxu0 %vm581_vm1, %v7241_v15  ;;  %6960 = vmatpush3.bf16.msra.mxu0 %v7271_v35 }
  0x38   : > { %6961 = vmatprep.subr.bf16.mxu0 %v7272_v37 }
  0x39   : > { %2950 = vmatpush1.bf16.msra.mxu1 %v7281_v52 }
  0x3a   : > { %2951 = vmatprep.subr.bf16.mxu1 %v11630_v44 }
  0x3b   : > { %6962 = vmatpush3.bf16.msra.mxu0 %v7272_v37 }
  0x3c   : > { %4254 = vmatprep.subr.bf16.mxu0 %v11630_v44 }
  0x3d   : > { %2952 = vmatpush1.bf16.msra.mxu1 %v7282_v53 }
  0x3e   : > { %6900 = vmatmul.mubr.msk.bf16.gmra.mrb[16].mxu0 %vm581_vm1, %v7242_v16  ;;  %2953 = vmatprep.subr.bf16.mxu1 %v11630_v44 }
  0x3f   : > { %6903 = vmatprep.mubr.msk.bf16.mxu0 %vm581_vm1, %v7243_v17 }
  0x41   : > { %2954 = vmatpush1.bf16.msra.mxu1 %v7283_v54 }
  0x42   : > { %2955 = vmatprep.subr.bf16.mxu1 %v11630_v44 }
  0x45   : > { %2956 = vmatpush1.bf16.msra.mxu1 %v7284_v55 }
  0x46   : > { %6904 = vmatmul.mubr.msk.bf16.gmra.mrb[20].mxu0 %vm581_vm1, %v7244_v18  ;;  %2957 = vmatprep.subr.bf16.mxu1 %v11630_v44 }
  0x47   : > { %6907 = vmatprep.mubr.msk.bf16.mxu0 %vm581_vm1, %v7245_v19 }
  0x49   : > { %2958 = vmatpush1.bf16.msra.mxu1 %v7285_v56 }
  0x4a   : > { %2959 = vmatprep.subr.bf16.mxu1 %v11630_v44 }
  0x4d   : > { %2960 = vmatpush1.bf16.msra.mxu1 %v7286_v57 }
  0x4e   : > { %6908 = vmatmul.mubr.msk.bf16.gmra.mrb[24].mxu0 %vm581_vm1, %v7246_v20  ;;  %2961 = vmatprep.subr.bf16.mxu1 %v11630_v44 }
  0x4f   : > { %6911 = vmatprep.mubr.msk.bf16.mxu0 %vm581_vm1, %v7247_v21 }
  0x51   : > { %2962 = vmatpush1.bf16.msra.mxu1 %v7287_v58 }
  0x52   : > { %2963 = vmatprep.subr.bf16.mxu1 %v11630_v44 }
  0x55   : > { %2964 = vmatpush1.bf16.msra.mxu1 %v7288_v61  ;;  %v11955_v61 = vmov 0 }
  0x56   : > { %6912 = vmatmul.mubr.msk.bf16.gmra.mrb[28].mxu0 %vm581_vm1, %v7248_v22 }
  0x57   : > { %6915 = vmatprep.mubr.msk.bf16.mxu0 %vm581_vm1, %v7249_v23 }
  0x5e   : > { %6916 = vmatmul.mubr.msk.bf16.gmra.mrb[32].mxu0 %vm581_vm1, %v7250_v24 }
  0x5f   : > { %6919 = vmatprep.mubr.msk.bf16.mxu0 %vm581_vm1, %v7251_v25 }
  0x66   : > { %6920 = vmatmul.mubr.msk.bf16.gmra.mrb[36].mxu0 %vm581_vm1, %v7252_v26 }
  0x67   : > { %6923 = vmatprep.mubr.msk.bf16.mxu0 %vm581_vm1, %v7253_v27 }
  0x6e   : > { %6924 = vmatmul.mubr.msk.bf16.gmra.mrb[40].mxu0 %vm581_vm1, %v7254_v28 }
  0x6f   : > { %6927 = vmatprep.mubr.msk.bf16.mxu0 %vm581_vm1, %v7255_v29  ;;  %v1043_v29 = vadd.s32 56, %v7679_v5 }
  0x76   : > { %6928 = vmatmul.mubr.msk.bf16.gmra.mrb[44].mxu0 %vm581_vm1, %v7256_v30 }
  0x77   : > { %6931 = vmatprep.mubr.msk.bf16.mxu0 %vm581_vm1, %v7257_v32 }
  0x7e   : > { %6932 = vmatmul.mubr.msk.bf16.gmra.mrb[48].mxu0 %vm581_vm1, %v7258_v34 }
  0x7f   : > { %6935 = vmatprep.mubr.msk.bf16.mxu0 %vm581_vm1, %v7259_v36 }
  0x86   : > { %6936 = vmatmul.mubr.msk.bf16.gmra.mrb[52].mxu0 %vm581_vm1, %v7260_v38 }
  0x87   : > { %6939 = vmatprep.mubr.msk.bf16.mxu0 %vm581_vm1, %v7261_v39 }
  0x8e   : > { %6940 = vmatmul.mubr.msk.bf16.gmra.mrb[56].mxu0 %vm581_vm1, %v7262_v40 }
  0x8f   : > { %6943 = vmatprep.mubr.msk.bf16.mxu0 %vm581_vm1, %v7263_v41  ;;  %v1153_v41 = vand.u32 63, %v1043_v29 }
  0x91   : > { %vm1939_vm3 = vcmp.lt.s32.totalorder %v1153_v41, 63 }
  0x92   : > { %vm7746_vm5 = vmpackc.low %vm1939_vm3, %vm7404_vm4 }
  0x93   : > { %v11956_v61 = vsel %vm7746_vm5, 4294967295, %v11955_v61 }
  0x94   : > { %11957 = vst [vmem:[#allocation17_spill] sm:$0xff] %v11956_v61 }
  0x96   : > { %6944 = vmatmul.mubr.msk.bf16.gmra.mrb[60].mxu0 %vm581_vm1, %v7264_v42 }
  0xf1   : > { %v6885_v62 = vpop.f32.mrb[0].mxu0 }
  0xf2   : > { %v725_v63 = vadd.f32 %v6885_v62, %v7670_v59  ;;  %v716_v0 = vpop.f32.mrb[1].mxu0 }
  0xf3   : > { %v717_v1 = vadd.f32 %v7670_v59, %v716_v0  ;;  %v6886_v2 = vpop.f32.mrb[2].mxu0 }
  0xf4   : > { %v728_v3 = vadd.f32 %v6886_v2, %v7670_v59  ;;  %v719_v4 = vpop.f32.mrb[3].mxu0  ;;  %v7681_v6 = vmax.f32 %v725_v63, 0.0 }
  0xf5   : > { %v7683_v7 = vmax.f32 %v717_v1, 0.0  ;;  %v720_v8 = vadd.f32 %v7670_v59, %v719_v4 }
  0xf6   : > { %11943 = vst [vmem:[#allocation5_spill] sm:$0xff] %v7681_v6  ;;  %v7688_v10 = vmax.f32 %v728_v3, 0.0  ;;  %v2319_v15 = vrot.slane %v7681_v6, 1 }
  0xf7   : > { %11944 = vst [vmem:[#allocation6_spill] sm:$0xff] %v7683_v7  ;;  %v7686_v9 = vmax.f32 %v720_v8, 0.0  ;;  %v11632_v13 = vrot.slane %v7683_v7, 1 }
  0xf8   : > { %11946 = vst [vmem:[#allocation8_spill] sm:$0xff] %v7688_v10  ;;  %v2320_v25 = vrot.slane %v7688_v10, 1 }
  0xf9   : > { %11945 = vst [vmem:[#allocation7_spill] sm:$0xff] %v7686_v9  ;;  %v6889_v11 = vpop.f32.mrb[4].mxu0  ;;  %v2639_v12 = vpack.c.bf16 %v7686_v9, %v7683_v7  ;;  %v2318_v14 = vrot.slane %v7686_v9, 1 }
  0xfa   : > { %v741_v16 = vadd.f32 %v6889_v11, %v7670_v59  ;;  %v732_v17 = vpop.f32.mrb[5].mxu0  ;;  %v2442_v35 = vsel %vm11695_vm2, %v2319_v15, %v2320_v25 }
  0xfb   : > { %v733_v18 = vadd.f32 %v7670_v59, %v732_v17  ;;  %v6890_v19 = vpop.f32.mrb[6].mxu0  ;;  %2965 = vmatprep.mubr.bf16.mxu1 %v2639_v12  ;;  %v2443_v20 = vsel %vm11695_vm2, %v2318_v14, %v2319_v15  ;;  %v2444_v21 = vsel %vm11695_vm2, %v11632_v13, %v2318_v14 }
  0xfc   : > { %v744_v22 = vadd.f32 %v6890_v19, %v7670_v59  ;;  %v735_v23 = vpop.f32.mrb[7].mxu0  ;;  %v2640_v24 = vpack.c.bf16 %v2443_v20, %v2444_v21  ;;  %v7706_v26 = vmax.f32 %v741_v16, 0.0  ;;  %v1051_v20 = vadd.s32 120, %v7679_v5 }
  0xfd   : > { %v7708_v27 = vmax.f32 %v733_v18, 0.0  ;;  %v736_v28 = vadd.f32 %v7670_v59, %v735_v23 }
  0xfe   : > { %11947 = vst [vmem:[#allocation9_spill] sm:$0xff] %v7706_v26  ;;  %6963 = vmatprep.mubr.bf16.mxu0 %v2640_v24  ;;  %v7715_v32 = vmax.f32 %v744_v22, 0.0  ;;  %v2323_v37 = vrot.slane %v7706_v26, 1 }
  0xff   : > { %11948 = vst [vmem:[#allocation10_spill] sm:$0xff] %v7708_v27  ;;  %v2321_v30 = vrot.slane %v7708_v27, 1  ;;  %v7713_v31 = vmax.f32 %v736_v28, 0.0 }
 0x100   : > { %11950 = vst [vmem:[#allocation12_spill] sm:$0xff] %v7715_v32  ;;  %v2324_v47 = vrot.slane %v7715_v32, 1 }
 0x101   : > { %11949 = vst [vmem:[#allocation11_spill] sm:$0xff] %v7713_v31  ;;  %v6893_v33 = vpop.f32.mrb[8].mxu0  ;;  %v2441_v34 = vsel %vm11695_vm2, %v2320_v25, %v2321_v30  ;;  %v2322_v36 = vrot.slane %v7713_v31, 1 }
 0x102   : > { %v757_v38 = vadd.f32 %v6893_v33, %v7670_v59  ;;  %v748_v39 = vpop.f32.mrb[9].mxu0  ;;  %v2643_v40 = vpack.c.bf16 %v2441_v34, %v2442_v35  ;;  %v2438_v56 = vsel %vm11695_vm2, %v2323_v37, %v2324_v47 }
 0x103   : > { %v749_v42 = vadd.f32 %v7670_v59, %v748_v39  ;;  %v6894_v43 = vpop.f32.mrb[10].mxu0  ;;  %v2439_v45 = vsel %vm11695_vm2, %v2322_v36, %v2323_v37  ;;  %v2440_v46 = vsel %vm11695_vm2, %v2321_v30, %v2322_v36  ;;  %v1209_v36 = vand.u32 63, %v1051_v20 }
 0x104   : > { %v751_v48 = vpop.f32.mrb[11].mxu0  ;;  %6964 = vmatmul.mubr.bf16.vlgmr.msra.gmra.mrb[64].mxu0 %v2643_v40  ;;  %v2646_v49 = vpack.c.bf16 %v2439_v45, %v2440_v46  ;;  %v7730_v50 = vmax.f32 %v757_v38, 0.0  ;;  %v760_v52 = vadd.f32 %v6894_v43, %v7670_v59 }
 0x105   : > { %v7732_v51 = vmax.f32 %v749_v42, 0.0  ;;  %v752_v53 = vadd.f32 %v7670_v59, %v751_v48  ;;  %vm1947_vm6 = vcmp.lt.s32.totalorder %v1209_v36, 63 }
 0x106   : > { %11951 = vst [vmem:[#allocation13_spill] sm:$0xff] %v7730_v50  ;;  %6967 = vmatprep.mubr.bf16.mxu0 %v2646_v49  ;;  %v7741_v57 = vmax.f32 %v760_v52, 0.0  ;;  %v2327_v63 = vrot.slane %v7730_v50, 1  ;;  %vm7802_vm7 = vmpackc.low %vm1947_vm6, %vm7404_vm4  ;;  %vm11853_vm6 = vcmp.lt.s32.totalorder %v7679_v5, 1 }
 0x107   : > { %11952 = vst [vmem:[#allocation14_spill] sm:$0xff] %v7732_v51  ;;  %v2325_v54 = vrot.slane %v7732_v51, 1  ;;  %v7737_v55 = vmax.f32 %v752_v53, 0.0 }
 0x108   : > { %11954 = vst [vmem:[#allocation16_spill] sm:$0xff] %v7741_v57  ;;  %v2328_v19 = vrot.slane %v7741_v57, 1 }
 0x109   : > { %11953 = vst [vmem:[#allocation15_spill] sm:$0xff] %v7737_v55  ;;  %v6897_v58 = vpop.f32.mrb[12].mxu0  ;;  %v2437_v60 = vsel %vm11695_vm2, %v2324_v47, %v2325_v54  ;;  %v2326_v62 = vrot.slane %v7737_v55, 1 }
 0x10a   : > { %v773_v0 = vadd.f32 %v6897_v58, %v7670_v59  ;;  %v764_v1 = vpop.f32.mrb[13].mxu0  ;;  %v6547_v2 = vpack.c.bf16 %v2437_v60, %v2438_v56  ;;  %v2434_v28 = vsel %vm11695_vm2, %v2327_v63, %v2328_v19  ;;  %v11966_v60 = vmov 0 }
 0x10b   : > { %v765_v3 = vadd.f32 %v7670_v59, %v764_v1  ;;  %v6898_v4 = vpop.f32.mrb[14].mxu0  ;;  %v2435_v8 = vsel %vm11695_vm2, %v2326_v62, %v2327_v63  ;;  %v2436_v11 = vsel %vm11695_vm2, %v2325_v54, %v2326_v62  ;;  %v11967_v60 = vsel %vm7802_vm7, 4294967295, %v11966_v60 }
 0x10c   : > { %v776_v12 = vadd.f32 %v6898_v4, %v7670_v59  ;;  %v767_v14 = vpop.f32.mrb[15].mxu0  ;;  %6968 = vmatmul.mubr.msk.bf16.gmra.mrb[68].mxu0 %vm7746_vm5, %v6547_v2  ;;  %v2652_v15 = vpack.c.bf16 %v2435_v8, %v2436_v11  ;;  %v7761_v16 = vmax.f32 %v773_v0, 0.0  ;;  %11968 = vst [vmem:[#allocation26_spill] sm:$0xff] %v11967_v60 }
 0x10d   : > { %v7763_v17 = vmax.f32 %v765_v3, 0.0  ;;  %v768_v18 = vadd.f32 %v7670_v59, %v767_v14 }
 0x10e   : > { %11958 = vst [vmem:[#allocation18_spill] sm:$0xff] %v7761_v16  ;;  %6971 = vmatprep.mubr.bf16.mxu0 %v2652_v15  ;;  %v7771_v23 = vmax.f32 %v776_v12, 0.0  ;;  %v2331_v30 = vrot.slane %v7761_v16, 1 }
 0x10f   : > { %11959 = vst [vmem:[#allocation19_spill] sm:$0xff] %v7763_v17  ;;  %v7768_v21 = vmax.f32 %v768_v18, 0.0  ;;  %v2329_v22 = vrot.slane %v7763_v17, 1 }
 0x110   : > { %11961 = vst [vmem:[#allocation21_spill] sm:$0xff] %v7771_v23  ;;  %v2332_v41 = vrot.slane %v7771_v23, 1 }
 0x111   : > { %11960 = vst [vmem:[#allocation20_spill] sm:$0xff] %v7768_v21  ;;  %v6901_v24 = vpop.f32.mrb[16].mxu0  ;;  %v2433_v25 = vsel %vm11695_vm2, %v2328_v19, %v2329_v22  ;;  %v2330_v29 = vrot.slane %v7768_v21, 1 }
 0x112   : > { %v789_v33 = vadd.f32 %v6901_v24, %v7670_v59  ;;  %v780_v34 = vpop.f32.mrb[17].mxu0  ;;  %v2655_v35 = vpack.c.bf16 %v2433_v25, %v2434_v28  ;;  %v2430_v53 = vsel %vm11695_vm2, %v2331_v30, %v2332_v41  ;;  %v1059_v24 = vadd.s32 184, %v7679_v5 }
 0x113   : > { %v781_v37 = vadd.f32 %v7670_v59, %v780_v34  ;;  %v6902_v38 = vpop.f32.mrb[18].mxu0  ;;  %v2431_v39 = vsel %vm11695_vm2, %v2330_v29, %v2331_v30  ;;  %v2432_v40 = vsel %vm11695_vm2, %v2329_v22, %v2330_v29 }
 0x114   : > { %v783_v42 = vpop.f32.mrb[19].mxu0  ;;  %6972 = vmatmul.mubr.bf16.gmra.mrb[72].mxu0 %v2655_v35  ;;  %v2658_v43 = vpack.c.bf16 %v2431_v39, %v2432_v40  ;;  %v7786_v45 = vmax.f32 %v789_v33, 0.0  ;;  %v792_v47 = vadd.f32 %v6902_v38, %v7670_v59  ;;  %v1265_v40 = vand.u32 63, %v1059_v24 }
 0x115   : > { %v7788_v46 = vmax.f32 %v781_v37, 0.0  ;;  %v784_v48 = vadd.f32 %v7670_v59, %v783_v42 }
 0x116   : > { %11962 = vst [vmem:[#allocation22_spill] sm:$0xff] %v7786_v45  ;;  %6975 = vmatprep.mubr.bf16.mxu0 %v2658_v43  ;;  %v7797_v54 = vmax.f32 %v792_v47, 0.0  ;;  %v2335_v63 = vrot.slane %v7786_v45, 1  ;;  %vm1955_vm8 = vcmp.lt.s32.totalorder %v1265_v40, 63 }
 0x117   : > { %11963 = vst [vmem:[#allocation23_spill] sm:$0xff] %v7788_v46  ;;  %v2333_v49 = vrot.slane %v7788_v46, 1  ;;  %v7793_v52 = vmax.f32 %v784_v48, 0.0  ;;  %vm7858_vm9 = vmpackc.low %vm1955_vm8, %vm7404_vm4 }
 0x118   : > { %11965 = vst [vmem:[#allocation25_spill] sm:$0xff] %v7797_v54  ;;  %v2336_v22 = vrot.slane %v7797_v54, 1 }
 0x119   : > { %11964 = vst [vmem:[#allocation24_spill] sm:$0xff] %v7793_v52  ;;  %v6905_v56 = vpop.f32.mrb[20].mxu0  ;;  %v2429_v58 = vsel %vm11695_vm2, %v2332_v41, %v2333_v49  ;;  %v2334_v62 = vrot.slane %v7793_v52, 1 }
 0x11a   : > { %v805_v0 = vadd.f32 %v6905_v56, %v7670_v59  ;;  %v796_v1 = vpop.f32.mrb[21].mxu0  ;;  %v6550_v2 = vpack.c.bf16 %v2429_v58, %v2430_v53  ;;  %v2426_v34 = vsel %vm11695_vm2, %v2335_v63, %v2336_v22 }
 0x11b   : > { %v797_v3 = vadd.f32 %v7670_v59, %v796_v1  ;;  %v6906_v4 = vpop.f32.mrb[22].mxu0  ;;  %v2427_v8 = vsel %vm11695_vm2, %v2334_v62, %v2335_v63  ;;  %v2428_v11 = vsel %vm11695_vm2, %v2333_v49, %v2334_v62 }
 0x11c   : > { %v808_v12 = vadd.f32 %v6906_v4, %v7670_v59  ;;  %v799_v14 = vpop.f32.mrb[23].mxu0  ;;  %6976 = vmatmul.mubr.msk.bf16.gmra.mrb[76].mxu0 %vm7802_vm7, %v6550_v2  ;;  %v2664_v15 = vpack.c.bf16 %v2427_v8, %v2428_v11  ;;  %v7817_v18 = vmax.f32 %v805_v0, 0.0  ;;  %v11977_v11 = vmov 0 }
 0x11d   : > { %v7819_v19 = vmax.f32 %v797_v3, 0.0  ;;  %v800_v20 = vadd.f32 %v7670_v59, %v799_v14  ;;  %v11978_v11 = vsel %vm7858_vm9, 4294967295, %v11977_v11 }
 0x11e   : > { %11969 = vst [vmem:[#allocation27_spill] sm:$0xff] %v7817_v18  ;;  %6979 = vmatprep.mubr.bf16.mxu0 %v2664_v15  ;;  %v7827_v29 = vmax.f32 %v808_v12, 0.0  ;;  %v2339_v36 = vrot.slane %v7817_v18, 1  ;;  %11979 = vst [vmem:[#allocation35_spill] sm:$0xff] %v11978_v11 }
 0x11f   : > { %11970 = vst [vmem:[#allocation28_spill] sm:$0xff] %v7819_v19  ;;  %v7824_v25 = vmax.f32 %v800_v20, 0.0  ;;  %v2337_v28 = vrot.slane %v7819_v19, 1 }
 0x120   : > { %11972 = vst [vmem:[#allocation30_spill] sm:$0xff] %v7827_v29  ;;  %v2340_v48 = vrot.slane %v7827_v29, 1 }
 0x121   : > { %11971 = vst [vmem:[#allocation29_spill] sm:$0xff] %v7824_v25  ;;  %v6909_v30 = vpop.f32.mrb[24].mxu0  ;;  %v2425_v33 = vsel %vm11695_vm2, %v2336_v22, %v2337_v28  ;;  %v2338_v35 = vrot.slane %v7824_v25, 1 }
 0x122   : > { %v821_v37 = vadd.f32 %v6909_v30, %v7670_v59  ;;  %v812_v38 = vpop.f32.mrb[25].mxu0  ;;  %v2667_v39 = vpack.c.bf16 %v2425_v33, %v2426_v34  ;;  %v2422_v2 = vsel %vm11695_vm2, %v2339_v36, %v2340_v48 }
 0x123   : > { %v813_v41 = vadd.f32 %v7670_v59, %v812_v38  ;;  %v6910_v42 = vpop.f32.mrb[26].mxu0  ;;  %v2423_v43 = vsel %vm11695_vm2, %v2338_v35, %v2339_v36  ;;  %v2424_v47 = vsel %vm11695_vm2, %v2337_v28, %v2338_v35 }
 0x124   : > { %v815_v49 = vpop.f32.mrb[27].mxu0  ;;  %6980 = vmatmul.mubr.bf16.gmra.mrb[80].mxu0 %v2667_v39  ;;  %v2670_v53 = vpack.c.bf16 %v2423_v43, %v2424_v47  ;;  %v7842_v56 = vmax.f32 %v821_v37, 0.0  ;;  %v824_v62 = vadd.f32 %v6910_v42, %v7670_v59 }
 0x125   : > { %v7844_v58 = vmax.f32 %v813_v41, 0.0  ;;  %v816_v63 = vadd.f32 %v7670_v59, %v815_v49  ;;  %v1067_v41 = vadd.s32 248, %v7679_v5 }
 0x126   : > { %11973 = vst [vmem:[#allocation31_spill] sm:$0xff] %v7842_v56  ;;  %6983 = vmatprep.mubr.bf16.mxu0 %v2670_v53  ;;  %v7853_v3 = vmax.f32 %v824_v62, 0.0  ;;  %v2343_v14 = vrot.slane %v7842_v56, 1 }
 0x127   : > { %11974 = vst [vmem:[#allocation32_spill] sm:$0xff] %v7844_v58  ;;  %v2341_v0 = vrot.slane %v7844_v58, 1  ;;  %v7849_v1 = vmax.f32 %v816_v63, 0.0 }
 0x128   : > { %11976 = vst [vmem:[#allocation34_spill] sm:$0xff] %v7853_v3  ;;  %v2344_v40 = vrot.slane %v7853_v3, 1 }
 0x129   : > { %11975 = vst [vmem:[#allocation33_spill] sm:$0xff] %v7849_v1  ;;  %v6913_v4 = vpop.f32.mrb[28].mxu0  ;;  %v2421_v8 = vsel %vm11695_vm2, %v2340_v48, %v2341_v0  ;;  %v2342_v12 = vrot.slane %v7849_v1, 1 }
 0x12a   : > { %v837_v15 = vadd.f32 %v6913_v4, %v7670_v59  ;;  %v828_v20 = vpop.f32.mrb[29].mxu0  ;;  %v6553_v22 = vpack.c.bf16 %v2421_v8, %v2422_v2  ;;  %v2418_v53 = vsel %vm11695_vm2, %v2343_v14, %v2344_v40  ;;  %v1321_v8 = vand.u32 63, %v1067_v41 }
 0x12b   : > { %v829_v24 = vadd.f32 %v7670_v59, %v828_v20  ;;  %v6914_v28 = vpop.f32.mrb[30].mxu0  ;;  %v2419_v30 = vsel %vm11695_vm2, %v2342_v12, %v2343_v14  ;;  %v2420_v33 = vsel %vm11695_vm2, %v2341_v0, %v2342_v12 }
 0x12c   : > { %v840_v34 = vadd.f32 %v6914_v28, %v7670_v59  ;;  %v831_v35 = vpop.f32.mrb[31].mxu0  ;;  %6984 = vmatmul.mubr.msk.bf16.gmra.mrb[84].mxu0 %vm7858_vm9, %v6553_v22  ;;  %v2676_v36 = vpack.c.bf16 %v2419_v30, %v2420_v33  ;;  %v7873_v37 = vmax.f32 %v837_v15, 0.0  ;;  %vm1963_vm10 = vcmp.lt.s32.totalorder %v1321_v8, 63 }
 0x12d   : > { %v7875_v38 = vmax.f32 %v829_v24, 0.0  ;;  %v832_v39 = vadd.f32 %v7670_v59, %v831_v35  ;;  %vm7914_vm11 = vmpackc.low %vm1963_vm10, %vm7404_vm4 }
 0x12e   : > { %11980 = vst [vmem:[#allocation36_spill] sm:$0xff] %v7873_v37  ;;  %6987 = vmatprep.mubr.bf16.mxu0 %v2676_v36  ;;  %v7883_v47 = vmax.f32 %v840_v34, 0.0  ;;  %v2347_v63 = vrot.slane %v7873_v37, 1 }
 0x12f   : > { %11981 = vst [vmem:[#allocation37_spill] sm:$0xff] %v7875_v38  ;;  %v7880_v42 = vmax.f32 %v832_v39, 0.0  ;;  %v2345_v43 = vrot.slane %v7875_v38, 1 }
 0x130   : > { %11983 = vst [vmem:[#allocation39_spill] sm:$0xff] %v7883_v47  ;;  %v2348_v14 = vrot.slane %v7883_v47, 1 }
 0x131   : > { %11982 = vst [vmem:[#allocation38_spill] sm:$0xff] %v7880_v42  ;;  %v6917_v48 = vpop.f32.mrb[32].mxu0  ;;  %v2417_v49 = vsel %vm11695_vm2, %v2344_v40, %v2345_v43  ;;  %v2346_v62 = vrot.slane %v7880_v42, 1 }
 0x132   : > { %v853_v0 = vadd.f32 %v6917_v48, %v7670_v59  ;;  %v844_v2 = vpop.f32.mrb[33].mxu0  ;;  %v2679_v4 = vpack.c.bf16 %v2417_v49, %v2418_v53  ;;  %v2414_v40 = vsel %vm11695_vm2, %v2347_v63, %v2348_v14  ;;  %v11988_v49 = vmov 0 }
 0x133   : > { %v845_v12 = vadd.f32 %v7670_v59, %v844_v2  ;;  %v6918_v15 = vpop.f32.mrb[34].mxu0  ;;  %v2415_v20 = vsel %vm11695_vm2, %v2346_v62, %v2347_v63  ;;  %v2416_v22 = vsel %vm11695_vm2, %v2345_v43, %v2346_v62  ;;  %v11989_v49 = vsel %vm7914_vm11, 4294967295, %v11988_v49 }
 0x134   : > { %v847_v24 = vpop.f32.mrb[35].mxu0  ;;  %6988 = vmatmul.mubr.bf16.gmra.mrb[88].mxu0 %v2679_v4  ;;  %v2682_v28 = vpack.c.bf16 %v2415_v20, %v2416_v22  ;;  %v7898_v30 = vmax.f32 %v853_v0, 0.0  ;;  %v856_v34 = vadd.f32 %v6918_v15, %v7670_v59  ;;  %11990 = vst [vmem:[#allocation44_spill] sm:$0xff] %v11989_v49 }
 0x135   : > { %v7900_v33 = vmax.f32 %v845_v12, 0.0  ;;  %v848_v35 = vadd.f32 %v7670_v59, %v847_v24 }
 0x136   : > { %11984 = vst [vmem:[#allocation40_spill] sm:$0xff] %v7898_v30  ;;  %6991 = vmatprep.mubr.bf16.mxu0 %v2682_v28  ;;  %v7909_v41 = vmax.f32 %v856_v34, 0.0  ;;  %v2351_v62 = vrot.slane %v7898_v30, 1 }
 0x137   : > { %11985 = vst [vmem:[#allocation41_spill] sm:$0xff] %v7900_v33  ;;  %v2349_v36 = vrot.slane %v7900_v33, 1  ;;  %v7905_v39 = vmax.f32 %v848_v35, 0.0 }
 0x138   : > { %11987 = vst [vmem:[#allocation43_spill] sm:$0xff] %v7909_v41  ;;  %v2352_v35 = vrot.slane %v7909_v41, 1 }
 0x139   : > { %11986 = vst [vmem:[#allocation42_spill] sm:$0xff] %v7905_v39  ;;  %v6921_v43 = vpop.f32.mrb[36].mxu0  ;;  %v2413_v48 = vsel %vm11695_vm2, %v2348_v14, %v2349_v36  ;;  %v2350_v53 = vrot.slane %v7905_v39, 1 }
 0x13a   : > { %v869_v0 = vadd.f32 %v6921_v43, %v7670_v59  ;;  %v860_v2 = vpop.f32.mrb[37].mxu0  ;;  %v6556_v4 = vpack.c.bf16 %v2413_v48, %v2414_v40  ;;  %v1075_v40 = vadd.s32 312, %v7679_v5 }
 0x13b   : > { %v861_v63 = vadd.f32 %v7670_v59, %v860_v2  ;;  %v6922_v8 = vpop.f32.mrb[38].mxu0  ;;  %v2411_v12 = vsel %vm11695_vm2, %v2350_v53, %v2351_v62  ;;  %v2412_v15 = vsel %vm11695_vm2, %v2349_v36, %v2350_v53  ;;  %v2410_v2 = vsel %vm11695_vm2, %v2351_v62, %v2352_v35 }
 0x13c   : > { %v872_v20 = vadd.f32 %v6922_v8, %v7670_v59  ;;  %v863_v22 = vpop.f32.mrb[39].mxu0  ;;  %6992 = vmatmul.mubr.msk.bf16.gmra.mrb[92].mxu0 %vm7914_vm11, %v6556_v4  ;;  %v2688_v14 = vpack.c.bf16 %v2411_v12, %v2412_v15  ;;  %v7929_v24 = vmax.f32 %v869_v0, 0.0 }
 0x13d   : > { %v7931_v28 = vmax.f32 %v861_v63, 0.0  ;;  %v864_v34 = vadd.f32 %v7670_v59, %v863_v22  ;;  %v1377_v22 = vand.u32 63, %v1075_v40 }
 0x13e   : > { %11991 = vst [vmem:[#allocation45_spill] sm:$0xff] %v7929_v24  ;;  %6995 = vmatprep.mubr.bf16.mxu0 %v2688_v14  ;;  %v7939_v48 = vmax.f32 %v872_v20, 0.0  ;;  %v2355_v63 = vrot.slane %v7929_v24, 1 }
 0x13f   : > { %11992 = vst [vmem:[#allocation46_spill] sm:$0xff] %v7931_v28  ;;  %v7936_v43 = vmax.f32 %v864_v34, 0.0  ;;  %v2353_v36 = vrot.slane %v7931_v28, 1  ;;  %vm1971_vm12 = vcmp.lt.s32.totalorder %v1377_v22, 63 }
 0x140   : > { %11994 = vst [vmem:[#allocation48_spill] sm:$0xff] %v7939_v48  ;;  %v2356_v62 = vrot.slane %v7939_v48, 1  ;;  %vm7970_vm13 = vmpackc.low %vm1971_vm12, %vm7404_vm4 }
 0x141   : > { %11993 = vst [vmem:[#allocation47_spill] sm:$0xff] %v7936_v43  ;;  %v6925_v53 = vpop.f32.mrb[40].mxu0  ;;  %v2409_v0 = vsel %vm11695_vm2, %v2352_v35, %v2353_v36  ;;  %v2354_v4 = vrot.slane %v7936_v43, 1 }
 0x142   : > { %v885_v8 = vadd.f32 %v6925_v53, %v7670_v59  ;;  %v876_v12 = vpop.f32.mrb[41].mxu0  ;;  %v2691_v15 = vpack.c.bf16 %v2409_v0, %v2410_v2 }
 0x143   : > { %v877_v14 = vadd.f32 %v7670_v59, %v876_v12  ;;  %v6926_v20 = vpop.f32.mrb[42].mxu0  ;;  %v2407_v34 = vsel %vm11695_vm2, %v2354_v4, %v2355_v63  ;;  %v2408_v44 = vsel %vm11695_vm2, %v2353_v36, %v2354_v4  ;;  %v2406_v36 = vsel %vm11695_vm2, %v2355_v63, %v2356_v62 }
 0x144   : > { %v879_v35 = vpop.f32.mrb[43].mxu0  ;;  %6996 = vmatmul.mubr.bf16.gmra.mrb[96].mxu0 %v2691_v15  ;;  %v2694_v13 = vpack.c.bf16 %v2407_v34, %v2408_v44  ;;  %v7954_v49 = vmax.f32 %v885_v8, 0.0  ;;  %v888_v40 = vadd.f32 %v6926_v20, %v7670_v59  ;;  %v11999_v15 = vmov 0 }
 0x145   : > { %v7956_v53 = vmax.f32 %v877_v14, 0.0  ;;  %v880_v0 = vadd.f32 %v7670_v59, %v879_v35  ;;  %v12000_v15 = vsel %vm7970_vm13, 4294967295, %v11999_v15 }
 0x146   : > { %11995 = vst [vmem:[#allocation49_spill] sm:$0xff] %v7954_v49  ;;  %6999 = vmatprep.mubr.bf16.mxu0 %v2694_v13  ;;  %v7965_v4 = vmax.f32 %v888_v40, 0.0  ;;  %12001 = vst [vmem:[#allocation53_spill] sm:$0xff] %v12000_v15  ;;  %v2359_v22 = vrot.slane %v7954_v49, 1 }
 0x147   : > { %11996 = vst [vmem:[#allocation50_spill] sm:$0xff] %v7956_v53  ;;  %v2357_v2 = vrot.slane %v7956_v53, 1  ;;  %v7961_v12 = vmax.f32 %v880_v0, 0.0 }
 0x148   : > { %11998 = vst [vmem:[#allocation52_spill] sm:$0xff] %v7965_v4 }
 0x149   : > { %11997 = vst [vmem:[#allocation51_spill] sm:$0xff] %v7961_v12  ;;  %v6929_v44 = vpop.f32.mrb[44].mxu0  ;;  %v2405_v8 = vsel %vm11695_vm2, %v2356_v62, %v2357_v2  ;;  %v2358_v13 = vrot.slane %v7961_v12, 1 }
 0x14a   : > { %v901_v14 = vadd.f32 %v6929_v44, %v7670_v59  ;;  %v892_v20 = vpop.f32.mrb[45].mxu0  ;;  %v6559_v34 = vpack.c.bf16 %v2405_v8, %v2406_v36  ;;  %v2360_v8 = vrot.slane %v7965_v4, 1 }
 0x14b   : > { %v893_v63 = vadd.f32 %v7670_v59, %v892_v20  ;;  %v6930_v35 = vpop.f32.mrb[46].mxu0  ;;  %v2403_v40 = vsel %vm11695_vm2, %v2358_v13, %v2359_v22  ;;  %v2404_v62 = vsel %vm11695_vm2, %v2357_v2, %v2358_v13  ;;  %v1083_v20 = vadd.s32 376, %v7679_v5 }
 0x14c   : > { %v904_v0 = vadd.f32 %v6930_v35, %v7670_v59  ;;  %v895_v11 = vpop.f32.mrb[47].mxu0  ;;  %7000 = vmatmul.mubr.msk.bf16.gmra.mrb[100].mxu0 %vm7970_vm13, %v6559_v34  ;;  %v2700_v60 = vpack.c.bf16 %v2403_v40, %v2404_v62  ;;  %v7985_v61 = vmax.f32 %v901_v14, 0.0  ;;  %v2402_v34 = vsel %vm11695_vm2, %v2359_v22, %v2360_v8 }
 0x14d   : > { %v7987_v44 = vmax.f32 %v893_v63, 0.0  ;;  %v896_v36 = vadd.f32 %v7670_v59, %v895_v11 }
 0x14e   : > { %12002 = vst [vmem:[#allocation54_spill] sm:$0xff] %v7985_v61  ;;  %7003 = vmatprep.mubr.bf16.mxu0 %v2700_v60  ;;  %v7995_v13 = vmax.f32 %v904_v0, 0.0  ;;  %v2363_v63 = vrot.slane %v7985_v61, 1 }
 0x14f   : > { %12003 = vst [vmem:[#allocation55_spill] sm:$0xff] %v7987_v44  ;;  %v7992_v49 = vmax.f32 %v896_v36, 0.0  ;;  %v2361_v2 = vrot.slane %v7987_v44, 1  ;;  %v1433_v36 = vand.u32 63, %v1083_v20 }
 0x150   : > { %12005 = vst [vmem:[#allocation57_spill] sm:$0xff] %v7995_v13  ;;  %v2364_v22 = vrot.slane %v7995_v13, 1 }
 0x151   : > { %12004 = vst [vmem:[#allocation56_spill] sm:$0xff] %v7992_v49  ;;  %v6933_v35 = vpop.f32.mrb[48].mxu0  ;;  %v2401_v14 = vsel %vm11695_vm2, %v2360_v8, %v2361_v2  ;;  %v2362_v11 = vrot.slane %v7992_v49, 1  ;;  %vm1979_vm14 = vcmp.lt.s32.totalorder %v1433_v36, 63 }
 0x152   : > { %v917_v60 = vadd.f32 %v6933_v35, %v7670_v59  ;;  %v908_v40 = vpop.f32.mrb[49].mxu0  ;;  %v2703_v62 = vpack.c.bf16 %v2401_v14, %v2402_v34  ;;  %vm8026_vm15 = vmpackc.low %vm1979_vm14, %vm7404_vm4 }
 0x153   : > { %v909_v15 = vadd.f32 %v7670_v59, %v908_v40  ;;  %v6934_v0 = vpop.f32.mrb[50].mxu0  ;;  %v2399_v44 = vsel %vm11695_vm2, %v2362_v11, %v2363_v63  ;;  %v2400_v4 = vsel %vm11695_vm2, %v2361_v2, %v2362_v11  ;;  %v2398_v2 = vsel %vm11695_vm2, %v2363_v63, %v2364_v22 }
 0x154   : > { %v911_v8 = vpop.f32.mrb[51].mxu0  ;;  %7004 = vmatmul.mubr.bf16.gmra.mrb[104].mxu0 %v2703_v62  ;;  %v2706_v49 = vpack.c.bf16 %v2399_v44, %v2400_v4  ;;  %v8010_v61 = vmax.f32 %v917_v60, 0.0  ;;  %v920_v20 = vadd.f32 %v6934_v0, %v7670_v59  ;;  %v12010_v44 = vmov 0 }
 0x155   : > { %v8012_v35 = vmax.f32 %v909_v15, 0.0  ;;  %v912_v14 = vadd.f32 %v7670_v59, %v911_v8  ;;  %v12011_v44 = vsel %vm8026_vm15, 4294967295, %v12010_v44 }
 0x156   : > { %12006 = vst [vmem:[#allocation58_spill] sm:$0xff] %v8010_v61  ;;  %7007 = vmatprep.mubr.bf16.mxu0 %v2706_v49  ;;  %v8021_v11 = vmax.f32 %v920_v20, 0.0  ;;  %12012 = vst [vmem:[#allocation62_spill] sm:$0xff] %v12011_v44  ;;  %v2367_v60 = vrot.slane %v8010_v61, 1 }
 0x157   : > { %12007 = vst [vmem:[#allocation59_spill] sm:$0xff] %v8012_v35  ;;  %v2365_v34 = vrot.slane %v8012_v35, 1  ;;  %v8017_v40 = vmax.f32 %v912_v14, 0.0 }
 0x158   : > { %12009 = vst [vmem:[#allocation61_spill] sm:$0xff] %v8021_v11 }
 0x159   : > { %12008 = vst [vmem:[#allocation60_spill] sm:$0xff] %v8017_v40  ;;  %v6937_v4 = vpop.f32.mrb[52].mxu0  ;;  %v2397_v15 = vsel %vm11695_vm2, %v2364_v22, %v2365_v34  ;;  %v2366_v49 = vrot.slane %v8017_v40, 1 }
 0x15a   : > { %v933_v62 = vadd.f32 %v6937_v4, %v7670_v59  ;;  %v924_v36 = vpop.f32.mrb[53].mxu0  ;;  %v6562_v0 = vpack.c.bf16 %v2397_v15, %v2398_v2  ;;  %v2368_v15 = vrot.slane %v8021_v11, 1 }
 0x15b   : > { %v925_v63 = vadd.f32 %v7670_v59, %v924_v36  ;;  %v6938_v8 = vpop.f32.mrb[54].mxu0  ;;  %v2395_v20 = vsel %vm11695_vm2, %v2366_v49, %v2367_v60  ;;  %v2396_v22 = vsel %vm11695_vm2, %v2365_v34, %v2366_v49  ;;  %v1091_v36 = vadd.s32 440, %v7679_v5 }
 0x15c   : > { %v936_v14 = vadd.f32 %v6938_v8, %v7670_v59  ;;  %v927_v35 = vpop.f32.mrb[55].mxu0  ;;  %7008 = vmatmul.mubr.msk.bf16.gmra.mrb[108].mxu0 %vm8026_vm15, %v6562_v0  ;;  %v2712_v61 = vpack.c.bf16 %v2395_v20, %v2396_v22  ;;  %v8041_v40 = vmax.f32 %v933_v62, 0.0  ;;  %v2394_v0 = vsel %vm11695_vm2, %v2367_v60, %v2368_v15 }
 0x15d   : > { %v8043_v4 = vmax.f32 %v925_v63, 0.0  ;;  %v928_v2 = vadd.f32 %v7670_v59, %v927_v35 }
 0x15e   : > { %12013 = vst [vmem:[#allocation63_spill] sm:$0xff] %v8041_v40  ;;  %7011 = vmatprep.mubr.bf16.mxu0 %v2712_v61  ;;  %v8051_v49 = vmax.f32 %v936_v14, 0.0  ;;  %v2371_v63 = vrot.slane %v8041_v40, 1 }
 0x15f   : > { %12014 = vst [vmem:[#allocation64_spill] sm:$0xff] %v8043_v4  ;;  %v8048_v13 = vmax.f32 %v928_v2, 0.0  ;;  %v2369_v34 = vrot.slane %v8043_v4, 1  ;;  %v1489_v2 = vand.u32 63, %v1091_v36 }
 0x160   : > { %12016 = vst [vmem:[#allocation66_spill] sm:$0xff] %v8051_v49  ;;  %v2372_v60 = vrot.slane %v8051_v49, 1  ;;  %v1997_v49 = vrot.slane %v7686_v9, 7 }
 0x161   : > { %12015 = vst [vmem:[#allocation65_spill] sm:$0xff] %v8048_v13  ;;  %v6941_v8 = vpop.f32.mrb[56].mxu0  ;;  %v2393_v62 = vsel %vm11695_vm2, %v2368_v15, %v2369_v34  ;;  %v2370_v35 = vrot.slane %v8048_v13, 1  ;;  %vm1987_vm0 = vcmp.lt.s32.totalorder %v1489_v2, 63 }
 0x162   : > { %v949_v61 = vadd.f32 %v6941_v8, %v7670_v59  ;;  %v940_v20 = vpop.f32.mrb[57].mxu0  ;;  %v2715_v22 = vpack.c.bf16 %v2393_v62, %v2394_v0  ;;  %vm8082_vm1 = vmpackc.low %vm1987_vm0, %vm7404_vm4 }
 0x163   : > { %v941_v44 = vadd.f32 %v7670_v59, %v940_v20  ;;  %v6942_v14 = vpop.f32.mrb[58].mxu0  ;;  %v2391_v4 = vsel %vm11695_vm2, %v2370_v35, %v2371_v63  ;;  %v2392_v11 = vsel %vm11695_vm2, %v2369_v34, %v2370_v35  ;;  %v2390_v34 = vsel %vm11695_vm2, %v2371_v63, %v2372_v60 }
 0x164   : > { %v943_v15 = vpop.f32.mrb[59].mxu0  ;;  %7012 = vmatmul.mubr.bf16.gmra.mrb[112].mxu0 %v2715_v22  ;;  %v2718_v13 = vpack.c.bf16 %v2391_v4, %v2392_v11  ;;  %v8066_v40 = vmax.f32 %v949_v61, 0.0  ;;  %v952_v36 = vadd.f32 %v6942_v14, %v7670_v59  ;;  %v12021_v4 = vmov 0 }
 0x165   : > { %v8068_v8 = vmax.f32 %v941_v44, 0.0  ;;  %v944_v62 = vadd.f32 %v7670_v59, %v943_v15  ;;  %v12022_v4 = vsel %vm8082_vm1, 4294967295, %v12021_v4 }
 0x166   : > { %12017 = vst [vmem:[#allocation67_spill] sm:$0xff] %v8066_v40  ;;  %7015 = vmatprep.mubr.bf16.mxu0 %v2718_v13  ;;  %v8077_v35 = vmax.f32 %v952_v36, 0.0  ;;  %12023 = vst [vmem:[#allocation71_spill] sm:$0xff] %v12022_v4  ;;  %v2375_v61 = vrot.slane %v8066_v40, 1  ;;  %v2642_v4 = vpack.c.bf16 %v7688_v10, %v7681_v6 }
 0x167   : > { %12018 = vst [vmem:[#allocation68_spill] sm:$0xff] %v8068_v8  ;;  %v2373_v0 = vrot.slane %v8068_v8, 1  ;;  %v8073_v20 = vmax.f32 %v944_v62, 0.0  ;;  %v1104_v62 = vand.u32 63, %v7679_v5 }
 0x168   : > { %12020 = vst [vmem:[#allocation70_spill] sm:$0xff] %v8077_v35 }
 0x169   : > { %12019 = vst [vmem:[#allocation69_spill] sm:$0xff] %v8073_v20  ;;  %v6945_v11 = vpop.f32.mrb[60].mxu0  ;;  %v2389_v44 = vsel %vm11695_vm2, %v2372_v60, %v2373_v0  ;;  %v2374_v13 = vrot.slane %v8073_v20, 1  ;;  %vm1868_vm3 = vcmp.ge.s32.totalorder %v1104_v62, 1 }
 0x16a   : > { %v965_v22 = vadd.f32 %v6945_v11, %v7670_v59  ;;  %v956_v2 = vpop.f32.mrb[61].mxu0  ;;  %v6565_v14 = vpack.c.bf16 %v2389_v44, %v2390_v34  ;;  %vm8127_vm8 = vmpackc.low %vm7404_vm4, %vm1868_vm3 }
 0x16b   : > { %v957_v63 = vadd.f32 %v7670_v59, %v956_v2  ;;  %v6946_v15 = vpop.f32.mrb[62].mxu0  ;;  %v2387_v36 = vsel %vm11695_vm2, %v2374_v13, %v2375_v61  ;;  %v2388_v60 = vsel %vm11695_vm2, %v2373_v0, %v2374_v13  ;;  %v2376_v2 = vrot.slane %v8077_v35, 1 }
 0x16c   : > { %v968_v8 = vadd.f32 %v6946_v15, %v7670_v59  ;;  %v959_v20 = vpop.f32.mrb[63].mxu0  ;;  %7016 = vmatmul.mubr.msk.bf16.gmra.mrb[116].mxu0 %vm8082_vm1, %v6565_v14  ;;  %v2724_v11 = vpack.c.bf16 %v2387_v36, %v2388_v60  ;;  %v8098_v40 = vmax.f32 %v965_v22, 0.0  ;;  %v1099_v13 = vadd.s32 504, %v7679_v5 }
 0x16d   : > { %v8100_v34 = vmax.f32 %v957_v63, 0.0  ;;  %v960_v44 = vadd.f32 %v7670_v59, %v959_v20  ;;  %v1996_v22 = vrot.slane %v7683_v7, 7 }
 0x16e   : > { %12024 = vst [vmem:[#allocation72_spill] sm:$0xff] %v8098_v40  ;;  %v8105_v0 = vmax.f32 %v968_v8, 0.0  ;;  %7019 = vmatprep.mubr.bf16.mxu0 %v2724_v11  ;;  %v2386_v8 = vsel %vm11695_vm2, %v2375_v61, %v2376_v2  ;;  %v2379_v36 = vrot.slane %v8098_v40, 1  ;;  %v1545_v9 = vand.u32 63, %v1099_v13 }
 0x16f   : > { %12025 = vst [vmem:[#allocation73_spill] sm:$0xff] %v8100_v34  ;;  %v8108_v15 = vmax.f32 %v960_v44, 0.0  ;;  %v2377_v14 = vrot.slane %v8100_v34, 1  ;;  %v2123_v62 = vsel %vm11853_vm6, %v1996_v22, %v1997_v49  ;;  %v12028_v44 = vmov 0 }
 0x170   : > { %12026 = vst [vmem:[#allocation74_spill] sm:$0xff] %v8105_v0  ;;  %v11682_v59 = vrot.slane %v8105_v0, 7  ;;  %v12029_v44 = vsel %vm8127_vm8, 4294967295, %v12028_v44  ;;  %v2380_v61 = vrot.slane %v8105_v0, 1  ;;  %vm1995_vm10 = vcmp.lt.s32.totalorder %v1545_v9, 63 }
 0x171   : > { %12027 = vst [vmem:[#allocation75_spill] sm:$0xff] %v8108_v15  ;;  %v2385_v20 = vsel %vm11695_vm2, %v2376_v2, %v2377_v14  ;;  %v2378_v63 = vrot.slane %v8108_v15, 1  ;;  %12030 = vst [vmem:[#allocation76_spill] sm:$0xff] %v12029_v44  ;;  %v1998_v13 = vrot.slane %v7681_v6, 7 }
 0x172   : > { %v2727_v60 = vpack.c.bf16 %v2385_v20, %v2386_v8  ;;  %v2124_v11 = vsel %vm11853_vm6, %v11682_v59, %v1996_v22  ;;  %v1999_v59 = vrot.slane %v7688_v10, 7  ;;  %vm8153_vm12 = vmpackc.low %vm1995_vm10, %vm7404_vm4 }
 0x173   : > { %v6523_v2 = vpack.c.bf16 %v2123_v62, %v2124_v11  ;;  %v2383_v20 = vsel %vm11695_vm2, %v2378_v63, %v2379_v36  ;;  %v2384_v8 = vsel %vm11695_vm2, %v2377_v14, %v2378_v63  ;;  %v2382_v62 = vsel %vm11695_vm2, %v2379_v36, %v2380_v61 }
 0x174   : > { %7020 = vmatmul.mubr.bf16.gmra.mrb[120].mxu0 %v2727_v60  ;;  %v2730_v22 = vpack.c.bf16 %v2383_v20, %v2384_v8  ;;  %v12031_v14 = vrot.slane %v7683_v7, 1  ;;  %v2121_v60 = vsel %vm11853_vm6, %v1998_v13, %v1999_v59  ;;  %v2122_v11 = vsel %vm11853_vm6, %v1997_v49, %v1998_v13 }
 0x175   : > { %6524 = vmatmul.mubr.msk.bf16.vlgmr.msra.gmra.mrb[0].mxu1 %vm8127_vm8, %v6523_v2  ;;  %v2641_v2 = vpack.c.bf16 %v2121_v60, %v2122_v11  ;;  %v2645_v36 = vpack.c.bf16 %v7713_v31, %v7708_v27  ;;  %v2000_v20 = vrot.slane %v7708_v27, 7  ;;  %v2648_v13 = vpack.c.bf16 %v7715_v32, %v7706_v26 }
 0x176   : > { %2973 = vmatprep.mubr.bf16.mxu1 %v2642_v4  ;;  %7023 = vmatprep.mubr.bf16.mxu0 %v2730_v22  ;;  %v2445_v63 = vsel %vm11695_vm2, %v2380_v61, %v12031_v14  ;;  %v12032_v4 = vmov 0  ;;  %v2001_v61 = vrot.slane %v7713_v31, 7  ;;  %v2002_v14 = vrot.slane %v7706_v26, 7  ;;  %v12053_v31 = vld [vmem:[#allocation55_spill] sm:$0xff] }
 0x177   : > { %v12033_v4 = vsel %vm8153_vm12, 4294967295, %v12032_v4  ;;  %v6568_v9 = vpack.c.bf16 %v2445_v63, %v2382_v62  ;;  %v2120_v8 = vsel %vm11853_vm6, %v1999_v59, %v2000_v20  ;;  %v2003_v62 = vrot.slane %v7715_v32, 7 }
 0x178   : > { %12034 = vst [vmem:[#allocation77_spill] sm:$0xff] %v12033_v4  ;;  %v2119_v49 = vsel %vm11853_vm6, %v2000_v20, %v2001_v61  ;;  %v1044_v63 = vadd.s32 64, %v7679_v5  ;;  %v2118_v11 = vsel %vm11853_vm6, %v2001_v61, %v2002_v14  ;;  %v2004_v20 = vrot.slane %v7732_v51, 7 }
 0x179   : > { %v2644_v22 = vpack.c.bf16 %v2119_v49, %v2120_v8  ;;  %v2117_v60 = vsel %vm11853_vm6, %v2002_v14, %v2003_v62  ;;  %v12035_v61 = vmov 0  ;;  %v2007_v14 = vrot.slane %v7741_v57, 7 }
 0x17a   : > { %v1160_v59 = vand.u32 63, %v1044_v63  ;;  %v2116_v8 = vsel %vm11853_vm6, %v2003_v62, %v2004_v20  ;;  %v2006_v63 = vrot.slane %v7730_v50, 7  ;;  %v2040_v27 = vrot.slane %v12053_v31, 7 }
 0x17c   : > { %7024 = vmatmul.mubr.msk.bf16.gmra.mrb[124].mxu0 %vm8153_vm12, %v6568_v9  ;;  %v2647_v9 = vpack.c.bf16 %v2117_v60, %v2118_v11  ;;  %vm1876_vm14 = vcmp.ge.s32.totalorder %v1160_v59, 1  ;;  %v2113_v62 = vsel %vm11853_vm6, %v2006_v63, %v2007_v14  ;;  %v2009_v59 = vrot.slane %v7768_v21, 7 }
 0x17d   : > { %2974 = vmatmul.mubr.bf16.gmra.mrb[4].mxu1 %v2641_v2  ;;  %v2005_v2 = vrot.slane %v7737_v55, 7  ;;  %vm8185_vm0 = vmpackc.low %vm7404_vm4, %vm1876_vm14 }
 0x17e   : > { %2981 = vmatprep.mubr.bf16.mxu1 %v2645_v36  ;;  %v2651_v36 = vpack.c.bf16 %v7737_v55, %v7732_v51  ;;  %v12036_v61 = vsel %vm8185_vm0, 4294967295, %v12035_v61 }
 0x17f   : > { %v2115_v49 = vsel %vm11853_vm6, %v2004_v20, %v2005_v2  ;;  %12037 = vst [vmem:[#allocation78_spill] sm:$0xff] %v12036_v61  ;;  %v2114_v60 = vsel %vm11853_vm6, %v2005_v2, %v2006_v63  ;;  %v2660_v2 = vpack.c.bf16 %v7771_v23, %v7761_v16  ;;  %v1052_v63 = vadd.s32 128, %v7679_v5 }
 0x180   : > { %v2653_v11 = vpack.c.bf16 %v2113_v62, %v2114_v60 }
 0x185   : > { %2982 = vmatmul.mubr.bf16.gmra.mrb[8].mxu1 %v2644_v22  ;;  %v6526_v22 = vpack.c.bf16 %v2115_v49, %v2116_v8 }
 0x186   : > { %2989 = vmatprep.mubr.bf16.mxu1 %v2648_v13  ;;  %v2654_v13 = vpack.c.bf16 %v7741_v57, %v7730_v50 }
 0x18d   : > { %2990 = vmatmul.mubr.bf16.gmra.mrb[12].mxu1 %v2647_v9  ;;  %v2657_v9 = vpack.c.bf16 %v7768_v21, %v7763_v17  ;;  %v1076_v21 = vadd.s32 320, %v7679_v5 }
 0x18e   : > { %2997 = vmatprep.mubr.bf16.mxu1 %v2651_v36  ;;  %v2008_v36 = vrot.slane %v7763_v17, 7 }
 0x190   : > { %v2111_v20 = vsel %vm11853_vm6, %v2008_v36, %v2009_v59  ;;  %v2112_v49 = vsel %vm11853_vm6, %v2007_v14, %v2008_v36  ;;  %v1216_v14 = vand.u32 63, %v1052_v63  ;;  %v2663_v36 = vpack.c.bf16 %v7793_v52, %v7788_v46 }
 0x191   : > { %v2656_v8 = vpack.c.bf16 %v2111_v20, %v2112_v49  ;;  %v2012_v20 = vrot.slane %v7788_v46, 7  ;;  %v2015_v63 = vrot.slane %v7797_v54, 7 }
 0x192   : > { %vm1884_vm3 = vcmp.ge.s32.totalorder %v1216_v14, 1  ;;  %v2669_v14 = vpack.c.bf16 %v7824_v25, %v7819_v19 }
 0x193   : > { %vm8225_vm10 = vmpackc.low %vm7404_vm4, %vm1884_vm3 }
 0x195   : > { %6527 = vmatmul.mubr.msk.bf16.gmra.mrb[16].mxu1 %vm8185_vm0, %v6526_v22  ;;  %v2011_v22 = vrot.slane %v7771_v23, 7 }
 0x196   : > { %3005 = vmatprep.mubr.bf16.mxu1 %v2654_v13  ;;  %v2010_v13 = vrot.slane %v7761_v16, 7 }
 0x198   : > { %v2109_v62 = vsel %vm11853_vm6, %v2010_v13, %v2011_v22  ;;  %v2110_v60 = vsel %vm11853_vm6, %v2009_v59, %v2010_v13  ;;  %v12038_v59 = vmov 0  ;;  %v2666_v13 = vpack.c.bf16 %v7797_v54, %v7786_v45 }
 0x199   : > { %v12039_v59 = vsel %vm8225_vm10, 4294967295, %v12038_v59  ;;  %v2031_v54 = vrot.slane %v7909_v41, 7 }
 0x19a   : > { %12040 = vst [vmem:[#allocation79_spill] sm:$0xff] %v12039_v59 }
 0x19d   : > { %3006 = vmatmul.mubr.bf16.gmra.mrb[20].mxu1 %v2653_v11  ;;  %v2659_v11 = vpack.c.bf16 %v2109_v62, %v2110_v60  ;;  %v2014_v62 = vrot.slane %v7786_v45, 7 }
 0x19e   : > { %3013 = vmatprep.mubr.bf16.mxu1 %v2657_v9  ;;  %v2013_v9 = vrot.slane %v7793_v52, 7 }
 0x1a0   : > { %v2107_v49 = vsel %vm11853_vm6, %v2012_v20, %v2013_v9  ;;  %v2106_v60 = vsel %vm11853_vm6, %v2013_v9, %v2014_v62  ;;  %v2672_v9 = vpack.c.bf16 %v7827_v29, %v7817_v18 }
 0x1a5   : > { %3014 = vmatmul.mubr.bf16.gmra.mrb[24].mxu1 %v2656_v8  ;;  %v2108_v8 = vsel %vm11853_vm6, %v2011_v22, %v2012_v20  ;;  %v2105_v22 = vsel %vm11853_vm6, %v2014_v62, %v2015_v63  ;;  %v2016_v20 = vrot.slane %v7819_v19, 7  ;;  %v2018_v62 = vrot.slane %v7817_v18, 7 }
 0x1a6   : > { %3021 = vmatprep.mubr.bf16.mxu1 %v2660_v2  ;;  %v6529_v2 = vpack.c.bf16 %v2107_v49, %v2108_v8  ;;  %v2687_v19 = vpack.c.bf16 %v7905_v39, %v7900_v33 }
 0x1a7   : > { %v2104_v8 = vsel %vm11853_vm6, %v2015_v63, %v2016_v20 }
 0x1ad   : > { %3022 = vmatmul.mubr.bf16.gmra.mrb[28].mxu1 %v2659_v11  ;;  %v2665_v11 = vpack.c.bf16 %v2105_v22, %v2106_v60  ;;  %v1060_v22 = vadd.s32 192, %v7679_v5 }
 0x1ae   : > { %3029 = vmatprep.mubr.bf16.mxu1 %v2663_v36  ;;  %v2017_v36 = vrot.slane %v7824_v25, 7  ;;  %v2029_v25 = vrot.slane %v7905_v39, 7 }
 0x1af   : > { %v1272_v63 = vand.u32 63, %v1060_v22  ;;  %v2678_v22 = vpack.c.bf16 %v7853_v3, %v7842_v56 }
 0x1b0   : > { %v2103_v49 = vsel %vm11853_vm6, %v2016_v20, %v2017_v36  ;;  %v2021_v20 = vrot.slane %v7849_v1, 7 }
 0x1b1   : > { %vm1892_vm14 = vcmp.ge.s32.totalorder %v1272_v63, 1 }
 0x1b2   : > { %vm8265_vm3 = vmpackc.low %vm7404_vm4, %vm1892_vm14 }
 0x1b5   : > { %6530 = vmatmul.mubr.msk.bf16.gmra.mrb[32].mxu1 %vm8225_vm10, %v6529_v2  ;;  %v2668_v2 = vpack.c.bf16 %v2103_v49, %v2104_v8  ;;  %v2675_v49 = vpack.c.bf16 %v7849_v1, %v7844_v58  ;;  %v2020_v8 = vrot.slane %v7844_v58, 7  ;;  %v2027_v58 = vrot.slane %v7883_v47, 7 }
 0x1b6   : > { %3037 = vmatprep.mubr.bf16.mxu1 %v2666_v13  ;;  %v2019_v13 = vrot.slane %v7827_v29, 7  ;;  %v2026_v29 = vrot.slane %v7873_v37, 7 }
 0x1b8   : > { %v2101_v60 = vsel %vm11853_vm6, %v2018_v62, %v2019_v13 }
 0x1bd   : > { %3038 = vmatmul.mubr.bf16.gmra.mrb[36].mxu1 %v2665_v11  ;;  %v2102_v11 = vsel %vm11853_vm6, %v2017_v36, %v2018_v62  ;;  %v12041_v36 = vmov 0 }
 0x1be   : > { %3045 = vmatprep.mubr.bf16.mxu1 %v2669_v14  ;;  %v2671_v14 = vpack.c.bf16 %v2101_v60, %v2102_v11  ;;  %v12042_v36 = vsel %vm8265_vm3, 4294967295, %v12041_v36  ;;  %v2023_v60 = vrot.slane %v7853_v3, 7  ;;  %v2022_v11 = vrot.slane %v7842_v56, 7 }
 0x1bf   : > { %12043 = vst [vmem:[#allocation80_spill] sm:$0xff] %v12042_v36  ;;  %v2681_v3 = vpack.c.bf16 %v7880_v42, %v7875_v38  ;;  %v2025_v56 = vrot.slane %v7880_v42, 7  ;;  %v1084_v36 = vadd.s32 384, %v7679_v5 }
 0x1c5   : > { %3046 = vmatmul.mubr.bf16.gmra.mrb[40].mxu1 %v2668_v2  ;;  %v2099_v2 = vsel %vm11853_vm6, %v2020_v8, %v2021_v20 }
 0x1c6   : > { %3053 = vmatprep.mubr.bf16.mxu1 %v2672_v9  ;;  %v2100_v9 = vsel %vm11853_vm6, %v2019_v13, %v2020_v8  ;;  %v7289_v13 = vld [vmem:[%s11625_s5 + $0x80] sm:$0xff]   ;;  %v2098_v8 = vsel %vm11853_vm6, %v2021_v20, %v2022_v11  ;;  %v2024_v20 = vrot.slane %v7875_v38, 7  ;;  %v2684_v38 = vpack.c.bf16 %v7883_v47, %v7873_v37  ;;  %v7294_v47 = vld [vmem:[%s11625_s5 + $0xa8] sm:$0xff]  }
 0x1c7   : > { %v6532_v62 = vpack.c.bf16 %v2099_v2, %v2100_v9  ;;  %7027 = vmatprep.subr.bf16.mxu1 %v7289_v13 }
 0x1c8   : > { %7028 = vmatpush3.bf16.msra.mxu1 %v7289_v13 }
 0x1cd   : > { %3054 = vmatmul.mubr.bf16.gmra.mrb[44].mxu1 %v2671_v14 }
 0x1ce   : > { %3061 = vmatprep.mubr.bf16.mxu1 %v2675_v49  ;;  %v2097_v49 = vsel %vm11853_vm6, %v2022_v11, %v2023_v60  ;;  %v7291_v11 = vld [vmem:[%s11625_s5 + $0x90] sm:$0xff]  }
 0x1d5   : > { %6533 = vmatmul.mubr.msk.bf16.gmra.mrb[48].mxu1 %vm8265_vm3, %v6532_v62  ;;  %v7290_v62 = vld [vmem:[%s11625_s5 + $0x88] sm:$0xff]  }
 0x1d6   : > { %3069 = vmatprep.mubr.bf16.mxu1 %v2678_v22  ;;  %v2677_v22 = vpack.c.bf16 %v2097_v49, %v2098_v8  ;;  %7029 = vmatprep.subr.bf16.mxu1 %v7290_v62  ;;  %v2095_v49 = vsel %vm11853_vm6, %v2024_v20, %v2025_v56 }
 0x1d7   : > { %v8278_v14 = vpop.f32.mrb[64].mxu0  ;;  %7030 = vmatpush3.bf16.msra.mxu1 %v7290_v62  ;;  %v7292_v62 = vld [vmem:[%s11625_s5 + $0x98] sm:$0xff]  }
 0x1d8   : > { %v8280_v63 = vpop.f32.mrb[65].mxu0  ;;  %7031 = vmatprep.subr.bf16.mxu1 %v7291_v11 }
 0x1d9   : > { %v8286_v2 = vpop.f32.mrb[66].mxu0 }
 0x1da   : > { %v8288_v9 = vpop.f32.mrb[67].mxu0 }
 0x1db   : > { %7032 = vmatpush3.bf16.msra.mxu1 %v7291_v11  ;;  %v1068_v11 = vadd.s32 256, %v7679_v5 }
 0x1dc   : > { %7033 = vmatprep.subr.bf16.mxu1 %v7292_v62 }
 0x1dd   : > { %3070 = vmatmul.mubr.bf16.gmra.mrb[52].mxu1 %v2677_v22  ;;  %v1328_v18 = vand.u32 63, %v1068_v11 }
 0x1de   : > { %3077 = vmatprep.mubr.bf16.mxu1 %v2681_v3  ;;  %v2096_v3 = vsel %vm11853_vm6, %v2023_v60, %v2024_v20  ;;  %v7293_v60 = vld [vmem:[%s11625_s5 + $0xa0] sm:$0xff]  }
 0x1df   : > { %v8300_v13 = vpop.f32.mrb[68].mxu0  ;;  %v2680_v22 = vpack.c.bf16 %v2095_v49, %v2096_v3  ;;  %7034 = vmatpush3.bf16.msra.mxu1 %v7292_v62  ;;  %v2093_v3 = vsel %vm11853_vm6, %v2026_v29, %v2027_v58  ;;  %vm1900_vm14 = vcmp.ge.s32.totalorder %v1328_v18, 1  ;;  %v7296_v18 = vld [vmem:[%s11625_s5 + $0xb8] sm:$0xff]  }
 0x1e0   : > { %v8302_v1 = vpop.f32.mrb[69].mxu0  ;;  %7035 = vmatprep.subr.bf16.mxu1 %v7293_v60  ;;  %vm8358_vm2 = vmpackc.low %vm7404_vm4, %vm1900_vm14 }
 0x1e1   : > { %v8306_v8 = vpop.f32.mrb[70].mxu0 }
 0x1e2   : > { %v8308_v42 = vpop.f32.mrb[71].mxu0 }
 0x1e3   : > { %7036 = vmatpush3.bf16.msra.mxu1 %v7293_v60 }
 0x1e4   : > { %7037 = vmatprep.subr.bf16.mxu1 %v7294_v47 }
 0x1e5   : > { %3078 = vmatmul.mubr.bf16.gmra.mrb[56].mxu1 %v2680_v22  ;;  %v2094_v22 = vsel %vm11853_vm6, %v2025_v56, %v2026_v29  ;;  %v2028_v29 = vrot.slane %v7900_v33, 7  ;;  %v7295_v56 = vld [vmem:[%s11625_s5 + $0xb0] sm:$0xff]   ;;  %v2690_v33 = vpack.c.bf16 %v7909_v41, %v7898_v30 }
 0x1e6   : > { %3085 = vmatprep.mubr.bf16.mxu1 %v2684_v38  ;;  %v2683_v37 = vpack.c.bf16 %v2093_v3, %v2094_v22 }
 0x1e7   : > { %v8322_v20 = vpop.f32.mrb[72].mxu0  ;;  %7038 = vmatpush3.bf16.msra.mxu1 %v7294_v47  ;;  %v2091_v11 = vsel %vm11853_vm6, %v2028_v29, %v2029_v25  ;;  %v12044_v47 = vmov 0 }
 0x1e8   : > { %v8325_v49 = vpop.f32.mrb[73].mxu0  ;;  %7039 = vmatprep.subr.bf16.mxu1 %v7295_v56  ;;  %v12045_v47 = vsel %vm8358_vm2, 4294967295, %v12044_v47 }
 0x1e9   : > { %v8331_v38 = vpop.f32.mrb[74].mxu0  ;;  %12046 = vst [vmem:[#allocation81_spill] sm:$0xff] %v12045_v47 }
 0x1ea   : > { %v8333_v62 = vpop.f32.mrb[75].mxu0 }
 0x1eb   : > { %7040 = vmatpush3.bf16.msra.mxu1 %v7295_v56  ;;  %v12047_v56 = vmov 0  }
 0x1ec   : > { %7041 = vmatprep.subr.bf16.mxu1 %v7296_v18 }
 0x1ed   : > { %3086 = vmatmul.mubr.bf16.gmra.mrb[60].mxu1 %v2683_v37 }
 0x1ee   : > { %3093 = vmatprep.mubr.bf16.mxu1 %v2687_v19  ;;  %v2092_v19 = vsel %vm11853_vm6, %v2027_v58, %v2028_v29  ;;  %v2030_v58 = vrot.slane %v7898_v30, 7  ;;  %v2032_v30 = vrot.slane %v7931_v28, 7 }
 0x1ef   : > { %v8345_v60 = vpop.f32.mrb[76].mxu0  ;;  %v6535_v39 = vpack.c.bf16 %v2091_v11, %v2092_v19  ;;  %7042 = vmatpush3.bf16.msra.mxu1 %v7296_v18  ;;  %v2033_v18 = vrot.slane %v7936_v43, 7 }
 0x1f0   : > { %v8347_v3 = vpop.f32.mrb[77].mxu0  ;;  %5575 = vmatprep.subr.bf16.mxu1 %v12047_v56  ;;  %v2089_v11 = vsel %vm11853_vm6, %v2030_v58, %v2031_v54  ;;  %v2090_v19 = vsel %vm11853_vm6, %v2029_v25, %v2030_v58 }
 0x1f1   : > { %v8351_v22 = vpop.f32.mrb[78].mxu0  ;;  %v2087_v25 = vsel %vm11853_vm6, %v2032_v30, %v2033_v18 }
 0x1f2   : > { %v8353_v37 = vpop.f32.mrb[79].mxu0 }
 0x1f5   : > { %6536 = vmatmul.mubr.msk.bf16.gmra.mrb[64].mxu1 %vm8358_vm2, %v6535_v39  ;;  %v2693_v39 = vpack.c.bf16 %v7936_v43, %v7931_v28  ;;  %v2034_v43 = vrot.slane %v7929_v24, 7 }
 0x1f6   : > { %3101 = vmatprep.mubr.bf16.mxu1 %v2690_v33  ;;  %v2689_v33 = vpack.c.bf16 %v2089_v11, %v2090_v19  ;;  %v2088_v11 = vsel %vm11853_vm6, %v2031_v54, %v2032_v30 }
 0x1f7   : > { %v8371_v29 = vpop.f32.mrb[80].mxu0  ;;  %v2692_v19 = vpack.c.bf16 %v2087_v25, %v2088_v11  ;;  %v2086_v54 = vsel %vm11853_vm6, %v2033_v18, %v2034_v43 }
 0x1f8   : > { %v8374_v45 = vpop.f32.mrb[81].mxu0 }
 0x1f9   : > { %v8380_v41 = vpop.f32.mrb[82].mxu0 }
 0x1fa   : > { %v8382_v52 = vpop.f32.mrb[83].mxu0 }
 0x1fd   : > { %3102 = vmatmul.mubr.bf16.gmra.mrb[68].mxu1 %v2689_v33  ;;  %v2696_v33 = vpack.c.bf16 %v7939_v48, %v7929_v24  ;;  %v2036_v24 = vrot.slane %v7956_v53, 7 }
 0x1fe   : > { %3109 = vmatprep.mubr.bf16.mxu1 %v2693_v39  ;;  %v2035_v39 = vrot.slane %v7939_v48, 7  ;;  %v2699_v48 = vpack.c.bf16 %v7961_v12, %v7956_v53 }
 0x1ff   : > { %v8388_v46 = vpop.f32.mrb[84].mxu0 }
 0x200   : > { %v8390_v23 = vpop.f32.mrb[85].mxu0  ;;  %v2085_v57 = vsel %vm11853_vm6, %v2034_v43, %v2035_v39 }
 0x201   : > { %v8394_v58 = vpop.f32.mrb[86].mxu0  ;;  %v2695_v11 = vpack.c.bf16 %v2085_v57, %v2086_v54  ;;  %v12048_v54 = vmov 0 }
 0x202   : > { %v8396_v16 = vpop.f32.mrb[87].mxu0 }
 0x205   : > { %3110 = vmatmul.mubr.bf16.gmra.mrb[72].mxu1 %v2692_v19  ;;  %v1384_v19 = vand.u32 63, %v1076_v21  ;;  %v2084_v21 = vsel %vm11853_vm6, %v2035_v39, %v2036_v24 }
 0x206   : > { %3117 = vmatprep.mubr.bf16.mxu1 %v2696_v33  ;;  %v2037_v33 = vrot.slane %v7961_v12, 7 }
 0x207   : > { %v8404_v28 = vpop.f32.mrb[88].mxu0  ;;  %vm1908_vm14 = vcmp.ge.s32.totalorder %v1384_v19, 1  ;;  %v12052_v19 = vld [vmem:[#allocation52_spill] sm:$0xff] }
 0x208   : > { %v8407_v17 = vpop.f32.mrb[89].mxu0  ;;  %v2083_v43 = vsel %vm11853_vm6, %v2036_v24, %v2037_v33  ;;  %vm8434_vm2 = vmpackc.low %vm7404_vm4, %vm1908_vm14  ;;  %v2039_v53 = vrot.slane %v12052_v19, 7 }
 0x209   : > { %v8413_v30 = vpop.f32.mrb[90].mxu0  ;;  %v12049_v54 = vsel %vm8434_vm2, 4294967295, %v12048_v54 }
 0x20a   : > { %v8415_v25 = vpop.f32.mrb[91].mxu0  ;;  %12050 = vst [vmem:[#allocation82_spill] sm:$0xff] %v12049_v54 }
 0x20d   : > { %3118 = vmatmul.mubr.bf16.gmra.mrb[76].mxu1 %v2695_v11  ;;  %v12051_v11 = vld [vmem:[#allocation49_spill] sm:$0xff] }
 0x20e   : > { %3125 = vmatprep.mubr.bf16.mxu1 %v2699_v48  ;;  %v6538_v48 = vpack.c.bf16 %v2083_v43, %v2084_v21  ;;  %v2702_v12 = vpack.c.bf16 %v12052_v19, %v12051_v11  ;;  %v2038_v51 = vrot.slane %v12051_v11, 7 }
 0x20f   : > { %v8421_v50 = vpop.f32.mrb[92].mxu0 }
 0x210   : > { %v8423_v55 = vpop.f32.mrb[93].mxu0  ;;  %v2081_v39 = vsel %vm11853_vm6, %v2038_v51, %v2039_v53  ;;  %v2082_v43 = vsel %vm11853_vm6, %v2037_v33, %v2038_v51 }
 0x211   : > { %v8427_v18 = vpop.f32.mrb[94].mxu0  ;;  %v2701_v19 = vpack.c.bf16 %v2081_v39, %v2082_v43  ;;  %v2080_v39 = vsel %vm11853_vm6, %v2039_v53, %v2040_v27 }
 0x212   : > { %v8429_v57 = vpop.f32.mrb[95].mxu0 }
 0x215   : > { %6539 = vmatmul.mubr.msk.bf16.gmra.mrb[80].mxu1 %vm8434_vm2, %v6538_v48  ;;  %v12054_v48 = vld [vmem:[#allocation56_spill] sm:$0xff] }
 0x216   : > { %3133 = vmatprep.mubr.bf16.mxu1 %v2702_v12  ;;  %v2705_v12 = vpack.c.bf16 %v12054_v48, %v12053_v31  ;;  %v2041_v11 = vrot.slane %v12054_v48, 7  ;;  %v12059_v48 = vld [vmem:[#allocation54_spill] sm:$0xff] }
 0x217   : > { %v8444_v32 = vpop.f32.mrb[96].mxu0  ;;  %v2042_v54 = vrot.slane %v12059_v48, 7 }
 0x218   : > { %v8446_v24 = vpop.f32.mrb[97].mxu0  ;;  %v2079_v51 = vsel %vm11853_vm6, %v2040_v27, %v2041_v11 }
 0x219   : > { %v8452_v21 = vpop.f32.mrb[98].mxu0  ;;  %v2704_v43 = vpack.c.bf16 %v2079_v51, %v2080_v39  ;;  %v2078_v27 = vsel %vm11853_vm6, %v2041_v11, %v2042_v54 }
 0x21a   : > { %v8454_v26 = vpop.f32.mrb[99].mxu0 }
 0x21d   : > { %3134 = vmatmul.mubr.bf16.gmra.mrb[84].mxu1 %v2701_v19  ;;  %v12060_v19 = vld [vmem:[#allocation57_spill] sm:$0xff] }
 0x21e   : > { %3141 = vmatprep.mubr.bf16.mxu1 %v2705_v12  ;;  %v2708_v12 = vpack.c.bf16 %v12060_v19, %v12059_v48  ;;  %v2043_v31 = vrot.slane %v12060_v19, 7  ;;  %v12066_v48 = vld [vmem:[#allocation59_spill] sm:$0xff] }
 0x21f   : > { %v8460_v10 = vpop.f32.mrb[100].mxu0  ;;  %v2044_v44 = vrot.slane %v12066_v48, 7 }
 0x220   : > { %12055 = vst [vmem:[#allocation83_spill] sm:$0xff] %v8460_v10  ;;  %v8462_v6 = vpop.f32.mrb[101].mxu0  ;;  %v2077_v61 = vsel %vm11853_vm6, %v2042_v54, %v2043_v31  ;;  %v12091_v10 = vld [vmem:[#allocation69_spill] sm:$0xff] }
 0x221   : > { %12056 = vst [vmem:[#allocation84_spill] sm:$0xff] %v8462_v6  ;;  %v8466_v33 = vpop.f32.mrb[102].mxu0  ;;  %v2707_v39 = vpack.c.bf16 %v2077_v61, %v2078_v27  ;;  %v12071_v27 = vmov 0  ;;  %v12092_v6 = vld [vmem:[#allocation68_spill] sm:$0xff] }
 0x222   : > { %12057 = vst [vmem:[#allocation85_spill] sm:$0xff] %v8466_v33  ;;  %v8468_v7 = vpop.f32.mrb[103].mxu0 }
 0x223   : > { %12058 = vst [vmem:[#allocation86_spill] sm:$0xff] %v8468_v7  ;;  %v2053_v7 = vrot.slane %v12091_v10, 7 }
 0x225   : > { %3142 = vmatmul.mubr.bf16.gmra.mrb[88].mxu1 %v2704_v43  ;;  %v1440_v43 = vand.u32 63, %v1084_v36  ;;  %v2076_v36 = vsel %vm11853_vm6, %v2043_v31, %v2044_v44 }
 0x226   : > { %3149 = vmatprep.mubr.bf16.mxu1 %v2708_v12  ;;  %v12065_v12 = vld [vmem:[#allocation60_spill] sm:$0xff] }
 0x227   : > { %v8476_v47 = vpop.f32.mrb[104].mxu0  ;;  %v2045_v19 = vrot.slane %v12065_v12, 7  ;;  %v2711_v4 = vpack.c.bf16 %v12065_v12, %v12066_v48  ;;  %vm1916_vm14 = vcmp.ge.s32.totalorder %v1440_v43, 1  ;;  %v12075_v43 = vld [vmem:[#allocation61_spill] sm:$0xff] }
 0x228   : > { %12061 = vst [vmem:[#allocation87_spill] sm:$0xff] %v8476_v47  ;;  %v8479_v59 = vpop.f32.mrb[105].mxu0  ;;  %vm8506_vm2 = vmpackc.low %vm7404_vm4, %vm1916_vm14  ;;  %v2047_v48 = vrot.slane %v12075_v43, 7 }
 0x229   : > { %12062 = vst [vmem:[#allocation88_spill] sm:$0xff] %v8479_v59  ;;  %v8485_v53 = vpop.f32.mrb[106].mxu0  ;;  %v2075_v54 = vsel %vm11853_vm6, %v2044_v44, %v2045_v19  ;;  %v12072_v27 = vsel %vm8506_vm2, 4294967295, %v12071_v27 }
 0x22a   : > { %12063 = vst [vmem:[#allocation89_spill] sm:$0xff] %v8485_v53  ;;  %v8487_v51 = vpop.f32.mrb[107].mxu0  ;;  %12073 = vst [vmem:[#allocation95_spill] sm:$0xff] %v12072_v27  ;;  %v12080_v27 = vld [vmem:[#allocation64_spill] sm:$0xff] }
 0x22b   : > { %12064 = vst [vmem:[#allocation90_spill] sm:$0xff] %v8487_v51 }
 0x22d   : > { %3150 = vmatmul.mubr.bf16.gmra.mrb[92].mxu1 %v2707_v39  ;;  %v12074_v39 = vld [vmem:[#allocation58_spill] sm:$0xff] }
 0x22e   : > { %3157 = vmatprep.mubr.bf16.mxu1 %v2711_v4  ;;  %v6541_v4 = vpack.c.bf16 %v2075_v54, %v2076_v36  ;;  %v2714_v12 = vpack.c.bf16 %v12075_v43, %v12074_v39 }
 0x22f   : > { %v8493_v47 = vpop.f32.mrb[108].mxu0 }
 0x230   : > { %12067 = vst [vmem:[#allocation91_spill] sm:$0xff] %v8493_v47  ;;  %v8495_v59 = vpop.f32.mrb[109].mxu0 }
 0x231   : > { %12068 = vst [vmem:[#allocation92_spill] sm:$0xff] %v8495_v59  ;;  %v8499_v11 = vpop.f32.mrb[110].mxu0 }
 0x232   : > { %12069 = vst [vmem:[#allocation93_spill] sm:$0xff] %v8499_v11  ;;  %v8501_v61 = vpop.f32.mrb[111].mxu0  ;;  %v2046_v11 = vrot.slane %v12074_v39, 7 }
 0x233   : > { %12070 = vst [vmem:[#allocation94_spill] sm:$0xff] %v8501_v61 }
 0x234   : > { %v2073_v44 = vsel %vm11853_vm6, %v2046_v11, %v2047_v48  ;;  %v2074_v54 = vsel %vm11853_vm6, %v2045_v19, %v2046_v11 }
 0x235   : > { %6542 = vmatmul.mubr.msk.bf16.gmra.mrb[96].mxu1 %vm8506_vm2, %v6541_v4  ;;  %v2713_v43 = vpack.c.bf16 %v2073_v44, %v2074_v54  ;;  %v12081_v4 = vld [vmem:[#allocation65_spill] sm:$0xff] }
 0x236   : > { %3165 = vmatprep.mubr.bf16.mxu1 %v2714_v12  ;;  %v2717_v12 = vpack.c.bf16 %v12081_v4, %v12080_v27  ;;  %v2049_v39 = vrot.slane %v12081_v4, 7  ;;  %v12086_v4 = vld [vmem:[#allocation63_spill] sm:$0xff] }
 0x237   : > { %v8516_v47 = vpop.f32.mrb[112].mxu0 }
 0x238   : > { %12076 = vst [vmem:[#allocation96_spill] sm:$0xff] %v8516_v47  ;;  %v8518_v31 = vpop.f32.mrb[113].mxu0  ;;  %v2048_v47 = vrot.slane %v12080_v27, 7 }
 0x239   : > { %12077 = vst [vmem:[#allocation97_spill] sm:$0xff] %v8518_v31  ;;  %v8524_v36 = vpop.f32.mrb[114].mxu0 }
 0x23a   : > { %12078 = vst [vmem:[#allocation98_spill] sm:$0xff] %v8524_v36  ;;  %v8526_v61 = vpop.f32.mrb[115].mxu0  ;;  %v2071_v19 = vsel %vm11853_vm6, %v2048_v47, %v2049_v39  ;;  %v2072_v44 = vsel %vm11853_vm6, %v2047_v48, %v2048_v47 }
 0x23b   : > { %12079 = vst [vmem:[#allocation99_spill] sm:$0xff] %v8526_v61  ;;  %v2716_v54 = vpack.c.bf16 %v2071_v19, %v2072_v44 }
 0x23d   : > { %3166 = vmatmul.mubr.bf16.gmra.mrb[100].mxu1 %v2713_v43  ;;  %v12087_v43 = vld [vmem:[#allocation66_spill] sm:$0xff] }
 0x23e   : > { %3173 = vmatprep.mubr.bf16.mxu1 %v2717_v12  ;;  %v2720_v12 = vpack.c.bf16 %v12087_v43, %v12086_v4  ;;  %v2051_v27 = vrot.slane %v12087_v43, 7 }
 0x23f   : > { %v8532_v31 = vpop.f32.mrb[116].mxu0 }
 0x240   : > { %12082 = vst [vmem:[#allocation100_spill] sm:$0xff] %v8532_v31  ;;  %v8534_v59 = vpop.f32.mrb[117].mxu0  ;;  %v8550_v31 = vld [vmem:[%s11624_s4] ss:$0 sm:$0xff] }
 0x241   : > { %12083 = vst [vmem:[#allocation101_spill] sm:$0xff] %v8534_v59  ;;  %v8538_v11 = vpop.f32.mrb[118].mxu0 }
 0x242   : > { %12084 = vst [vmem:[#allocation102_spill] sm:$0xff] %v8538_v11  ;;  %v8540_v36 = vpop.f32.mrb[119].mxu0  ;;  %v2050_v11 = vrot.slane %v12086_v4, 7 }
 0x243   : > { %12085 = vst [vmem:[#allocation103_spill] sm:$0xff] %v8540_v36  ;;  %v1092_v36 = vadd.s32 448, %v7679_v5 }
 0x244   : > { %v2069_v19 = vsel %vm11853_vm6, %v2050_v11, %v2051_v27  ;;  %v2070_v44 = vsel %vm11853_vm6, %v2049_v39, %v2050_v11  ;;  %v2723_v39 = vpack.c.bf16 %v12091_v10, %v12092_v6 }
 0x245   : > { %3174 = vmatmul.mubr.bf16.gmra.mrb[104].mxu1 %v2716_v54  ;;  %v1496_v33 = vand.u32 63, %v1092_v36 }
 0x246   : > { %3181 = vmatprep.mubr.bf16.mxu1 %v2720_v12 }
 0x247   : > { %v8553_v59 = vpop.f32.mrb[120].mxu0  ;;  %vm1924_vm14 = vcmp.ge.s32.totalorder %v1496_v33, 1  ;;  %v12100_v33 = vld [vmem:[#allocation67_spill] sm:$0xff] }
 0x248   : > { %12088 = vst [vmem:[#allocation104_spill] sm:$0xff] %v8553_v59  ;;  %v2967_v47 = vpop.f32.mrb[0].mxu1  ;;  %v8556_v48 = vpop.f32.mrb[121].mxu0  ;;  %vm8595_vm2 = vmpackc.low %vm7404_vm4, %vm1924_vm14  ;;  %vm12104_vm4 = vcmp.lt.s32.totalorder %v7679_v5, 7 }
 0x249   : > { %12089 = vst [vmem:[#allocation105_spill] sm:$0xff] %v8556_v48  ;;  %v2968_v54 = vadd.f32 %v8550_v31, %v2967_v47  ;;  %v2969_v12 = vpop.f32.mrb[1].mxu1  ;;  %v8563_v43 = vpop.f32.mrb[122].mxu0  ;;  %v2719_v48 = vpack.c.bf16 %v2069_v19, %v2070_v44  ;;  %v2052_v47 = vrot.slane %v12092_v6, 7  ;;  %vm12105_vm14 = vmmov %vm12104_vm4 }
 0x24a   : > { %12090 = vst [vmem:[#allocation106_spill] sm:$0xff] %v8563_v43  ;;  %v2970_v61 = vpop.f32.mrb[2].mxu1  ;;  %v8565_v4 = vpop.f32.mrb[123].mxu0 }
 0x24b   : > { %v3257_v59 = vadd.f32 %v8280_v63, %v2968_v54  ;;  %v2971_v53 = vadd.f32 %v8550_v31, %v2970_v61  ;;  %v2972_v51 = vpop.f32.mrb[3].mxu1  ;;  %v2067_v36 = vsel %vm11853_vm6, %v2052_v47, %v2053_v7 }
 0x24d   : > { %v3260_v11 = vadd.f32 %v8288_v9, %v2971_v53  ;;  %3182 = vmatmul.mubr.bf16.gmra.mrb[108].mxu1 %v2719_v48  ;;  %v8574_v12 = vmax.f32 %v3257_v59, 0.0  ;;  %v7297_v48 = vld [vmem:[%s11625_s5] sm:$0xff]  }
 0x24e   : > { %3189 = vmatprep.mubr.bf16.mxu1 %v2723_v39  ;;  %4255 = vmatpush1.bf16.msra.mxu0 %v7297_v48 }
 0x24f   : > { %v3512_v43 = vmax.f32 %v3260_v11, 0.0  ;;  %v8576_v63 = vpop.f32.mrb[124].mxu0  ;;  %v2068_v11 = vsel %vm11853_vm6, %v2051_v27, %v2052_v47  ;;  %4256 = vmatprep.subr.bf16.mxu0 %v12047_v56  ;;  %v12101_v27 = vrot.slane %v8574_v12, 7 }
 0x250   : > { %12093 = vst [vmem:[#allocation107_spill] sm:$0xff] %v8576_v63  ;;  %v2975_v51 = vpop.f32.mrb[4].mxu1  ;;  %v8578_v61 = vpop.f32.mrb[125].mxu0  ;;  %v2726_v63 = vpack.c.bf16 %v8077_v35, %v12100_v33 }
 0x251   : > { %12094 = vst [vmem:[#allocation108_spill] sm:$0xff] %v8578_v61  ;;  %v3576_v19 = vrot.slane %v3512_v43, 7  ;;  %v2976_v44 = vadd.f32 %v8550_v31, %v2975_v51  ;;  %v2977_v9 = vpop.f32.mrb[5].mxu1  ;;  %v8583_v53 = vpop.f32.mrb[126].mxu0  ;;  %v3960_v59 = vpack.c.bf16 %v3512_v43, %v8574_v12  ;;  %v12097_v51 = vmov 0 }
 0x252   : > { %12095 = vst [vmem:[#allocation109_spill] sm:$0xff] %v8583_v53  ;;  %v2978_v54 = vpop.f32.mrb[6].mxu1  ;;  %v8590_v39 = vpop.f32.mrb[127].mxu0  ;;  %v12098_v51 = vsel %vm8595_vm2, 4294967295, %v12097_v51  ;;  %v6544_v53 = vpack.c.bf16 %v2067_v36, %v2068_v11  ;;  %v3768_v61 = vrot.slane %v3512_v43, 1  ;;  %v2054_v36 = vrot.slane %v12100_v33, 7 }
 0x253   : > { %12096 = vst [vmem:[#allocation110_spill] sm:$0xff] %v8590_v39  ;;  %12099 = vst [vmem:[#allocation111_spill] sm:$0xff] %v12098_v51  ;;  %v3265_v9 = vadd.f32 %v8278_v14, %v2976_v44  ;;  %v2979_v10 = vadd.f32 %v8550_v31, %v2978_v54  ;;  %v2980_v6 = vpop.f32.mrb[7].mxu1  ;;  %4286 = vmatprep.mubr.bf16.mxu0 %v3960_v59  ;;  %v2055_v39 = vrot.slane %v8077_v35, 7  ;;  %v11763_v43 = vrot.slane %v8574_v12, 1 }
 0x254   : > { %v8609_v47 = vsel %vm11853_vm6, %v12101_v27, %v3576_v19 }
 0x255   : > { %12102 = vst [vmem:[#allocation112_spill] sm:$0xff] %v8609_v47  ;;  %v8611_v14 = vmax.f32 %v3265_v9, 0.0  ;;  %v3268_v6 = vadd.f32 %v8286_v2, %v2979_v10  ;;  %6545 = vmatmul.mubr.msk.bf16.gmra.mrb[112].mxu1 %vm8595_vm2, %v6544_v53  ;;  %v2065_v11 = vsel %vm11853_vm6, %v2054_v36, %v2055_v39  ;;  %v2066_v10 = vsel %vm11853_vm6, %v2053_v7, %v2054_v36 }
 0x256   : > { %3197 = vmatprep.mubr.bf16.mxu1 %v2726_v63  ;;  %v8630_v2 = vsel %vm12104_vm4, %v11763_v43, %v3768_v61  ;;  %v2725_v51 = vpack.c.bf16 %v2065_v11, %v2066_v10  ;;  %v2729_v7 = vpack.c.bf16 %v8108_v15, %v8100_v34  ;;  %v2057_v43 = vrot.slane %v8108_v15, 7 }
 0x257   : > { %12103 = vst [vmem:[#allocation113_spill] sm:$0xff] %v8611_v14  ;;  %v8618_v44 = vmax.f32 %v3268_v6, 0.0  ;;  %v3769_v59 = vrot.slane %v8611_v14, 1  ;;  %v3577_v48 = vrot.slane %v8611_v14, 7  ;;  %v7298_v6 = vld [vmem:[%s11625_s5 + $0x8] sm:$0xff]   ;;  %v2056_v11 = vrot.slane %v8100_v34, 7 }
 0x258   : > { %v2983_v54 = vpop.f32.mrb[8].mxu1  ;;  %4257 = vmatpush1.bf16.msra.mxu0 %v7298_v6 }
 0x259   : > { %v3770_v63 = vrot.slane %v8618_v44, 1  ;;  %v2984_v53 = vadd.f32 %v8550_v31, %v2983_v54  ;;  %v2985_v9 = vpop.f32.mrb[9].mxu1  ;;  %v8636_v27 = vsel %vm12105_vm14, %v3768_v61, %v3769_v59  ;;  %v3578_v35 = vrot.slane %v8618_v44, 7  ;;  %4258 = vmatprep.subr.bf16.mxu0 %v12047_v56  ;;  %vm12108_vm14 = vmmov %vm12104_vm4 }
 0x25a   : > { %v2986_v36 = vpop.f32.mrb[10].mxu1  ;;  %v8648_v54 = vsel %vm11853_vm6, %v3576_v19, %v3577_v48  ;;  %v2064_v15 = vsel %vm11853_vm6, %v2055_v39, %v2056_v11  ;;  %v2732_v39 = vpack.c.bf16 %v8105_v0, %v8098_v40 }
 0x25b   : > { %12106 = vst [vmem:[#allocation114_spill] sm:$0xff] %v8648_v54  ;;  %v3273_v61 = vadd.f32 %v8302_v1, %v2984_v53  ;;  %v2987_v9 = vadd.f32 %v8550_v31, %v2986_v36  ;;  %v2988_v33 = vpop.f32.mrb[11].mxu1  ;;  %v8654_v47 = vsel %vm12104_vm4, %v3769_v59, %v3770_v63  ;;  %v8662_v19 = vsel %vm11853_vm6, %v3577_v48, %v3578_v35 }
 0x25c   : > { %12107 = vst [vmem:[#allocation115_spill] sm:$0xff] %v8662_v19  ;;  %v2063_v48 = vsel %vm11853_vm6, %v2056_v11, %v2057_v43 }
 0x25d   : > { %v8664_v1 = vmax.f32 %v3273_v61, 0.0  ;;  %v3276_v33 = vadd.f32 %v8308_v42, %v2987_v9  ;;  %3198 = vmatmul.mubr.bf16.gmra.mrb[116].mxu1 %v2725_v51  ;;  %v7299_v9 = vld [vmem:[%s11625_s5 + $0x10] sm:$0xff]   ;;  %v2728_v14 = vpack.c.bf16 %v2063_v48, %v2064_v15 }
 0x25e   : > { %3205 = vmatprep.mubr.bf16.mxu1 %v2729_v7  ;;  %4259 = vmatpush1.bf16.msra.mxu0 %v7299_v9 }
 0x25f   : > { %v3771_v10 = vrot.slane %v8664_v1, 1  ;;  %v8671_v53 = vmax.f32 %v3276_v33, 0.0  ;;  %v3579_v6 = vrot.slane %v8664_v1, 7  ;;  %4260 = vmatprep.subr.bf16.mxu0 %v12047_v56 }
 0x260   : > { %v2991_v36 = vpop.f32.mrb[12].mxu1 }
 0x261   : > { %v2992_v61 = vadd.f32 %v8550_v31, %v2991_v36  ;;  %v2993_v42 = vpop.f32.mrb[13].mxu1  ;;  %v8679_v51 = vsel %vm12108_vm14, %v3770_v63, %v3771_v10  ;;  %v3772_v7 = vrot.slane %v8671_v53, 1  ;;  %v8694_v63 = vsel %vm11853_vm6, %v3578_v35, %v3579_v6  ;;  %vm12110_vm14 = vmmov %vm12104_vm4 }
 0x262   : > { %v2994_v59 = vpop.f32.mrb[14].mxu1  ;;  %v3580_v42 = vrot.slane %v8671_v53, 7 }
 0x263   : > { %v3281_v34 = vadd.f32 %v8300_v13, %v2992_v61  ;;  %v2995_v54 = vadd.f32 %v8550_v31, %v2994_v59  ;;  %v2996_v19 = vpop.f32.mrb[15].mxu1  ;;  %v8700_v33 = vsel %vm12104_vm4, %v3771_v10, %v3772_v7 }
 0x264   : > { %v8707_v35 = vsel %vm11853_vm6, %v3579_v6, %v3580_v42  ;;  %v2058_v19 = vrot.slane %v8098_v40, 7  ;;  %v12109_v6 = vrot.slane %v8105_v0, 7 }
 0x265   : > { %v8709_v11 = vmax.f32 %v3281_v34, 0.0  ;;  %v3284_v13 = vadd.f32 %v8306_v8, %v2995_v54  ;;  %3206 = vmatmul.mubr.bf16.gmra.mrb[120].mxu1 %v2728_v14 }
 0x266   : > { %3213 = vmatprep.mubr.bf16.mxu1 %v2732_v39  ;;  %v2061_v34 = vsel %vm11853_vm6, %v2058_v19, %v12109_v6  ;;  %v2062_v8 = vsel %vm11853_vm6, %v2057_v43, %v2058_v19 }
 0x267   : > { %v8715_v59 = vmax.f32 %v3284_v13, 0.0  ;;  %v3773_v10 = vrot.slane %v8709_v11, 1  ;;  %v3581_v48 = vrot.slane %v8709_v11, 7  ;;  %v7300_v13 = vld [vmem:[%s11625_s5 + $0x18] sm:$0xff]   ;;  %v2731_v0 = vpack.c.bf16 %v2061_v34, %v2062_v8 }
 0x268   : > { %v2999_v61 = vpop.f32.mrb[16].mxu1  ;;  %4261 = vmatpush1.bf16.msra.mxu0 %v7300_v13 }
 0x269   : > { %v3774_v14 = vrot.slane %v8715_v59, 1  ;;  %v3000_v54 = vadd.f32 %v8550_v31, %v2999_v61  ;;  %v3001_v9 = vpop.f32.mrb[17].mxu1  ;;  %v3888_v39 = vsel %vm12110_vm14, %v3772_v7, %v3773_v10  ;;  %v3582_v43 = vrot.slane %v8715_v59, 7  ;;  %4262 = vmatprep.subr.bf16.mxu0 %v12047_v56  ;;  %vm12112_vm14 = vmmov %vm12104_vm4 }
 0x26a   : > { %v3002_v36 = vpop.f32.mrb[18].mxu1  ;;  %v3967_v6 = vpack.c.bf16 %v3888_v39, %v8700_v33  ;;  %v8738_v19 = vsel %vm11853_vm6, %v3580_v42, %v3581_v48 }
 0x26b   : > { %v3289_v61 = vadd.f32 %v8325_v49, %v3000_v54  ;;  %v3003_v7 = vadd.f32 %v8550_v31, %v3002_v36  ;;  %v3004_v9 = vpop.f32.mrb[19].mxu1  ;;  %v3887_v40 = vsel %vm12104_vm4, %v3773_v10, %v3774_v14  ;;  %v8747_v33 = vsel %vm11853_vm6, %v3581_v48, %v3582_v43 }
 0x26c   : > { %v12111_v36 = vpack.c.bf16 %v8636_v27, %v8630_v2  ;;  %v7301_v2 = vld [vmem:[%s11625_s5 + $0x20] sm:$0xff]  }
 0x26d   : > { %v8749_v39 = vmax.f32 %v3289_v61, 0.0  ;;  %v3292_v42 = vadd.f32 %v8333_v62, %v3003_v7  ;;  %3214 = vmatmul.mubr.bf16.gmra.mrb[124].mxu1 %v2731_v0  ;;  %4263 = vmatpush1.bf16.msra.mxu0 %v7301_v2 }
 0x26e   : > { %7043 = vmatprep.mubr.bf16.mxu1 %v12111_v36  ;;  %4264 = vmatprep.subr.bf16.mxu0 %v12047_v56 }
 0x26f   : > { %v3583_v10 = vrot.slane %v8749_v39, 7  ;;  %v3775_v34 = vrot.slane %v8749_v39, 1  ;;  %v8759_v8 = vmax.f32 %v3292_v42, 0.0 }
 0x270   : > { %v3007_v48 = vpop.f32.mrb[20].mxu1 }
 0x271   : > { %v3584_v54 = vrot.slane %v8759_v8, 7  ;;  %v3008_v13 = vadd.f32 %v8550_v31, %v3007_v48  ;;  %v3009_v62 = vpop.f32.mrb[21].mxu1  ;;  %v3886_v0 = vsel %vm12112_vm14, %v3774_v14, %v3775_v34  ;;  %v3776_v61 = vrot.slane %v8759_v8, 1  ;;  %vm12114_vm14 = vmmov %vm12104_vm4 }
 0x272   : > { %v3010_v27 = vpop.f32.mrb[22].mxu1  ;;  %v6620_v7 = vpack.c.bf16 %v3886_v0, %v3887_v40  ;;  %v8773_v42 = vsel %vm11853_vm6, %v3582_v43, %v3583_v10 }
 0x273   : > { %v3297_v36 = vadd.f32 %v8322_v20, %v3008_v13  ;;  %v3011_v48 = vadd.f32 %v8550_v31, %v3010_v27  ;;  %v3012_v14 = vpop.f32.mrb[23].mxu1  ;;  %v3885_v62 = vsel %vm12104_vm4, %v3775_v34, %v3776_v61  ;;  %v8781_v49 = vsel %vm11853_vm6, %v3583_v10, %v3584_v54 }
 0x274   : > { %v12113_v13 = vpack.c.bf16 %v8679_v51, %v8654_v47  ;;  %v7302_v47 = vld [vmem:[%s11625_s5 + $0x28] sm:$0xff]  }
 0x275   : > { %v8786_v43 = vmax.f32 %v3297_v36, 0.0  ;;  %v3300_v20 = vadd.f32 %v8331_v38, %v3011_v48  ;;  %4265 = vmatpush1.bf16.msra.mxu0 %v7302_v47 }
 0x276   : > { %7044 = vmatmul.mubr.bf16.vlgmr.msra.gmra.mrb[128].mxu1 %v12113_v13  ;;  %4266 = vmatprep.subr.bf16.mxu0 %v12047_v56 }
 0x277   : > { %7047 = vmatprep.mubr.bf16.mxu1 %v3967_v6  ;;  %v8792_v34 = vmax.f32 %v3300_v20, 0.0  ;;  %v3777_v0 = vrot.slane %v8786_v43, 1  ;;  %v3585_v10 = vrot.slane %v8786_v43, 7 }
 0x278   : > { %v3015_v2 = vpop.f32.mrb[24].mxu1 }
 0x279   : > { %v3016_v27 = vadd.f32 %v8550_v31, %v3015_v2  ;;  %v3017_v14 = vpop.f32.mrb[25].mxu1  ;;  %v3884_v36 = vsel %vm12114_vm14, %v3776_v61, %v3777_v0  ;;  %v3778_v38 = vrot.slane %v8792_v34, 1  ;;  %v3586_v20 = vrot.slane %v8792_v34, 7  ;;  %vm12116_vm14 = vmmov %vm12104_vm4 }
 0x27a   : > { %v3018_v6 = vpop.f32.mrb[26].mxu1  ;;  %v3973_v48 = vpack.c.bf16 %v3884_v36, %v3885_v62  ;;  %v8808_v13 = vsel %vm11853_vm6, %v3584_v54, %v3585_v10 }
 0x27b   : > { %v3305_v2 = vadd.f32 %v8347_v3, %v3016_v27  ;;  %v3019_v61 = vadd.f32 %v8550_v31, %v3018_v6  ;;  %v3020_v14 = vpop.f32.mrb[27].mxu1  ;;  %v3883_v40 = vsel %vm12104_vm4, %v3777_v0, %v3778_v38  ;;  %v8817_v62 = vsel %vm11853_vm6, %v3585_v10, %v3586_v20 }
 0x27d   : > { %v8819_v36 = vmax.f32 %v3305_v2, 0.0  ;;  %v3308_v54 = vadd.f32 %v8353_v37, %v3019_v61 }
 0x27e   : > { %7048 = vmatmul.mubr.msk.bf16.gmra.mrb[132].mxu1 %vm7746_vm5, %v6620_v7  ;;  %v7303_v7 = vld [vmem:[%s11625_s5 + $0x30] sm:$0xff]  }
 0x27f   : > { %7051 = vmatprep.mubr.bf16.mxu1 %v3973_v48  ;;  %v8826_v27 = vmax.f32 %v3308_v54, 0.0  ;;  %v3779_v0 = vrot.slane %v8819_v36, 1  ;;  %v3587_v47 = vrot.slane %v8819_v36, 7  ;;  %4267 = vmatpush1.bf16.msra.mxu0 %v7303_v7 }
 0x280   : > { %v3023_v6 = vpop.f32.mrb[28].mxu1  ;;  %4268 = vmatprep.subr.bf16.mxu0 %v12047_v56 }
 0x281   : > { %v3024_v10 = vadd.f32 %v8550_v31, %v3023_v6  ;;  %v3025_v2 = vpop.f32.mrb[29].mxu1  ;;  %v3882_v37 = vsel %vm12116_vm14, %v3778_v38, %v3779_v0  ;;  %v3780_v61 = vrot.slane %v8826_v27, 1  ;;  %v3588_v3 = vrot.slane %v8826_v27, 7  ;;  %vm12119_vm14 = vmmov %vm12104_vm4 }
 0x282   : > { %v3026_v14 = vpop.f32.mrb[30].mxu1  ;;  %v3976_v54 = vpack.c.bf16 %v3882_v37, %v3883_v40  ;;  %v8842_v6 = vsel %vm11853_vm6, %v3586_v20, %v3587_v47 }
 0x283   : > { %12117 = vst [vmem:[#allocation116_spill] sm:$0xff] %v8842_v6  ;;  %v3313_v2 = vadd.f32 %v8345_v60, %v3024_v10  ;;  %v3027_v38 = vadd.f32 %v8550_v31, %v3026_v14  ;;  %v3028_v9 = vpop.f32.mrb[31].mxu1  ;;  %v3881_v15 = vsel %vm12104_vm4, %v3779_v0, %v3780_v61  ;;  %v8851_v40 = vsel %vm11853_vm6, %v3587_v47, %v3588_v3 }
 0x285   : > { %v8853_v37 = vmax.f32 %v3313_v2, 0.0  ;;  %v3316_v20 = vadd.f32 %v8351_v22, %v3027_v38  ;;  %v7304_v22 = vld [vmem:[%s11625_s5 + $0x38] sm:$0xff]  }
 0x286   : > { %7052 = vmatmul.mubr.bf16.gmra.mrb[136].mxu1 %v3976_v54  ;;  %4269 = vmatpush1.bf16.msra.mxu0 %v7304_v22 }
 0x287   : > { %12118 = vst [vmem:[#allocation117_spill] sm:$0xff] %v8853_v37  ;;  %v8858_v10 = vmax.f32 %v3316_v20, 0.0  ;;  %v3781_v9 = vrot.slane %v8853_v37, 1  ;;  %v3589_v0 = vrot.slane %v8853_v37, 7  ;;  %4270 = vmatprep.subr.bf16.mxu0 %v12047_v56 }
 0x288   : > { %v3031_v7 = vpop.f32.mrb[32].mxu1 }
 0x289   : > { %v3782_v14 = vrot.slane %v8858_v10, 1  ;;  %v3032_v47 = vadd.f32 %v8550_v31, %v3031_v7  ;;  %v3033_v48 = vpop.f32.mrb[33].mxu1  ;;  %v3880_v2 = vsel %vm12119_vm14, %v3780_v61, %v3781_v9  ;;  %v3590_v60 = vrot.slane %v8858_v10, 7  ;;  %vm12122_vm14 = vmmov %vm12104_vm4 }
 0x28a   : > { %v3034_v38 = vpop.f32.mrb[34].mxu1  ;;  %v3979_v20 = vpack.c.bf16 %v3880_v2, %v3881_v15  ;;  %v8874_v51 = vsel %vm11853_vm6, %v3588_v3, %v3589_v0 }
 0x28b   : > { %12120 = vst [vmem:[#allocation118_spill] sm:$0xff] %v8874_v51  ;;  %v3321_v48 = vadd.f32 %v8374_v45, %v3032_v47  ;;  %v3035_v7 = vadd.f32 %v8550_v31, %v3034_v38  ;;  %v3036_v61 = vpop.f32.mrb[35].mxu1  ;;  %v3879_v6 = vsel %vm12104_vm4, %v3781_v9, %v3782_v14  ;;  %v8883_v15 = vsel %vm11853_vm6, %v3589_v0, %v3590_v60 }
 0x28c   : > { %7055 = vmatprep.mubr.bf16.mxu1 %v3979_v20  ;;  %12121 = vst [vmem:[#allocation119_spill] sm:$0xff] %v8883_v15 }
 0x28d   : > { %v8885_v2 = vmax.f32 %v3321_v48, 0.0  ;;  %v3324_v3 = vadd.f32 %v8382_v52, %v3035_v7  ;;  %v7305_v7 = vld [vmem:[%s11625_s5 + $0x40] sm:$0xff]  }
 0x28e   : > { %4271 = vmatpush1.bf16.msra.mxu0 %v7305_v7 }
 0x28f   : > { %v3591_v47 = vrot.slane %v8885_v2, 7  ;;  %v3783_v38 = vrot.slane %v8885_v2, 1  ;;  %v8892_v9 = vmax.f32 %v3324_v3, 0.0  ;;  %4272 = vmatprep.subr.bf16.mxu0 %v12047_v56 }
 0x290   : > { %v3039_v22 = vpop.f32.mrb[36].mxu1 }
 0x291   : > { %v3592_v20 = vrot.slane %v8892_v9, 7  ;;  %v3040_v61 = vadd.f32 %v8550_v31, %v3039_v22  ;;  %v3041_v0 = vpop.f32.mrb[37].mxu1  ;;  %v3878_v48 = vsel %vm12122_vm14, %v3782_v14, %v3783_v38  ;;  %v3784_v52 = vrot.slane %v8892_v9, 1  ;;  %vm12125_vm14 = vmmov %vm12104_vm4 }
 0x292   : > { %v3042_v45 = vpop.f32.mrb[38].mxu1  ;;  %v6623_v54 = vpack.c.bf16 %v3878_v48, %v3879_v6  ;;  %v8906_v51 = vsel %vm11853_vm6, %v3590_v60, %v3591_v47 }
 0x293   : > { %12123 = vst [vmem:[#allocation120_spill] sm:$0xff] %v8906_v51  ;;  %v3329_v22 = vadd.f32 %v8371_v29, %v3040_v61  ;;  %v3043_v0 = vadd.f32 %v8550_v31, %v3042_v45  ;;  %v3044_v14 = vpop.f32.mrb[39].mxu1  ;;  %v3877_v15 = vsel %vm12104_vm4, %v3783_v38, %v3784_v52  ;;  %v8914_v37 = vsel %vm11853_vm6, %v3591_v47, %v3592_v20 }
 0x294   : > { %7056 = vmatmul.mubr.msk.bf16.gmra.mrb[140].mxu1 %vm7802_vm7, %v6623_v54 }
 0x295   : > { %v8921_v29 = vmax.f32 %v3329_v22, 0.0  ;;  %v3332_v45 = vadd.f32 %v8380_v41, %v3043_v0  ;;  %v7306_v22 = vld [vmem:[%s11625_s5 + $0x48] sm:$0xff]  }
 0x296   : > { %4273 = vmatpush1.bf16.msra.mxu0 %v7306_v22 }
 0x297   : > { %v8924_v61 = vmax.f32 %v3332_v45, 0.0  ;;  %v3785_v38 = vrot.slane %v8921_v29, 1  ;;  %v3593_v48 = vrot.slane %v8921_v29, 7  ;;  %4274 = vmatprep.subr.bf16.mxu0 %v12047_v56 }
 0x298   : > { %v3047_v47 = vpop.f32.mrb[40].mxu1 }
 0x299   : > { %v3048_v7 = vadd.f32 %v8550_v31, %v3047_v47  ;;  %v3049_v14 = vpop.f32.mrb[41].mxu1  ;;  %v3876_v54 = vsel %vm12125_vm14, %v3784_v52, %v3785_v38  ;;  %v3786_v3 = vrot.slane %v8924_v61, 1  ;;  %v3594_v60 = vrot.slane %v8924_v61, 7  ;;  %vm12128_vm14 = vmmov %vm12104_vm4 }
 0x29a   : > { %v3050_v0 = vpop.f32.mrb[42].mxu1  ;;  %v3985_v45 = vpack.c.bf16 %v3876_v54, %v3877_v15  ;;  %v8940_v47 = vsel %vm11853_vm6, %v3592_v20, %v3593_v48 }
 0x29b   : > { %12126 = vst [vmem:[#allocation121_spill] sm:$0xff] %v8940_v47  ;;  %v3337_v14 = vadd.f32 %v8390_v23, %v3048_v7  ;;  %v3051_v52 = vadd.f32 %v8550_v31, %v3050_v0  ;;  %v3052_v6 = vpop.f32.mrb[43].mxu1  ;;  %v3875_v51 = vsel %vm12104_vm4, %v3785_v38, %v3786_v3  ;;  %v8949_v15 = vsel %vm11853_vm6, %v3593_v48, %v3594_v60 }
 0x29c   : > { %7059 = vmatprep.mubr.bf16.mxu1 %v3985_v45  ;;  %12127 = vst [vmem:[#allocation122_spill] sm:$0xff] %v8949_v15 }
 0x29d   : > { %v8951_v54 = vmax.f32 %v3337_v14, 0.0  ;;  %v3340_v20 = vadd.f32 %v8396_v16, %v3051_v52  ;;  %v7307_v16 = vld [vmem:[%s11625_s5 + $0x50] sm:$0xff]  }
 0x29e   : > { %4275 = vmatpush1.bf16.msra.mxu0 %v7307_v16 }
 0x29f   : > { %v8956_v7 = vmax.f32 %v3340_v20, 0.0  ;;  %v3787_v6 = vrot.slane %v8951_v54, 1  ;;  %v3595_v38 = vrot.slane %v8951_v54, 7  ;;  %4276 = vmatprep.subr.bf16.mxu0 %v12047_v56 }
 0x2a0   : > { %v3055_v22 = vpop.f32.mrb[44].mxu1 }
 0x2a1   : > { %v3056_v0 = vadd.f32 %v8550_v31, %v3055_v22  ;;  %v3057_v45 = vpop.f32.mrb[45].mxu1  ;;  %v3874_v48 = vsel %vm12128_vm14, %v3786_v3, %v3787_v6  ;;  %v3788_v14 = vrot.slane %v8956_v7, 1  ;;  %v3596_v41 = vrot.slane %v8956_v7, 7  ;;  %vm12132_vm14 = vmmov %vm12104_vm4 }
 0x2a2   : > { %v3058_v20 = vpop.f32.mrb[46].mxu1  ;;  %v3988_v23 = vpack.c.bf16 %v3874_v48, %v3875_v51  ;;  %v8972_v22 = vsel %vm11853_vm6, %v3594_v60, %v3595_v38 }
 0x2a3   : > { %12129 = vst [vmem:[#allocation123_spill] sm:$0xff] %v8972_v22  ;;  %v3345_v45 = vadd.f32 %v8388_v46, %v3056_v0  ;;  %v3059_v3 = vadd.f32 %v8550_v31, %v3058_v20  ;;  %v3060_v47 = vpop.f32.mrb[47].mxu1  ;;  %v3873_v15 = vsel %vm12104_vm4, %v3787_v6, %v3788_v14  ;;  %v8981_v51 = vsel %vm11853_vm6, %v3595_v38, %v3596_v41 }
 0x2a4   : > { %7060 = vmatmul.mubr.bf16.gmra.mrb[144].mxu1 %v3988_v23  ;;  %12130 = vst [vmem:[#allocation124_spill] sm:$0xff] %v8981_v51 }
 0x2a5   : > { %v8983_v48 = vmax.f32 %v3345_v45, 0.0  ;;  %v3348_v60 = vadd.f32 %v8394_v58, %v3059_v3  ;;  %v7308_v58 = vld [vmem:[%s11625_s5 + $0x58] sm:$0xff]  }
 0x2a6   : > { %4277 = vmatpush1.bf16.msra.mxu0 %v7308_v58 }
 0x2a7   : > { %12131 = vst [vmem:[#allocation125_spill] sm:$0xff] %v8983_v48  ;;  %v8988_v0 = vmax.f32 %v3348_v60, 0.0  ;;  %v3789_v47 = vrot.slane %v8983_v48, 1  ;;  %v3597_v6 = vrot.slane %v8983_v48, 7  ;;  %4278 = vmatprep.subr.bf16.mxu0 %v12047_v56 }
 0x2a8   : > { %v3063_v23 = vpop.f32.mrb[48].mxu1 }
 0x2a9   : > { %v3790_v16 = vrot.slane %v8988_v0, 1  ;;  %v3064_v20 = vadd.f32 %v8550_v31, %v3063_v23  ;;  %v3065_v38 = vpop.f32.mrb[49].mxu1  ;;  %v3872_v45 = vsel %vm12132_vm14, %v3788_v14, %v3789_v47  ;;  %v3598_v52 = vrot.slane %v8988_v0, 7  ;;  %vm12135_vm14 = vmmov %vm12104_vm4 }
 0x2aa   : > { %v3066_v60 = vpop.f32.mrb[50].mxu1  ;;  %v3991_v46 = vpack.c.bf16 %v3872_v45, %v3873_v15  ;;  %v9004_v22 = vsel %vm11853_vm6, %v3596_v41, %v3597_v6 }
 0x2ab   : > { %12133 = vst [vmem:[#allocation126_spill] sm:$0xff] %v9004_v22  ;;  %v3353_v23 = vadd.f32 %v8407_v17, %v3064_v20  ;;  %v3067_v38 = vadd.f32 %v8550_v31, %v3066_v60  ;;  %v3068_v14 = vpop.f32.mrb[51].mxu1  ;;  %v3871_v51 = vsel %vm12104_vm4, %v3789_v47, %v3790_v16  ;;  %v9013_v15 = vsel %vm11853_vm6, %v3597_v6, %v3598_v52 }
 0x2ac   : > { %7063 = vmatprep.mubr.bf16.mxu1 %v3991_v46  ;;  %12134 = vst [vmem:[#allocation127_spill] sm:$0xff] %v9013_v15 }
 0x2ad   : > { %v9015_v45 = vmax.f32 %v3353_v23, 0.0  ;;  %v3356_v41 = vadd.f32 %v8415_v25, %v3067_v38  ;;  %v7309_v38 = vld [vmem:[%s11625_s5 + $0x60] sm:$0xff]  }
 0x2ae   : > { %4279 = vmatpush1.bf16.msra.mxu0 %v7309_v38 }
 0x2af   : > { %v3599_v20 = vrot.slane %v9015_v45, 7  ;;  %v3791_v60 = vrot.slane %v9015_v45, 1  ;;  %v9022_v47 = vmax.f32 %v3356_v41, 0.0  ;;  %4280 = vmatprep.subr.bf16.mxu0 %v12047_v56 }
 0x2b0   : > { %v3071_v46 = vpop.f32.mrb[52].mxu1 }
 0x2b1   : > { %v3600_v58 = vrot.slane %v9022_v47, 7  ;;  %v3072_v14 = vadd.f32 %v8550_v31, %v3071_v46  ;;  %v3073_v6 = vpop.f32.mrb[53].mxu1  ;;  %v3870_v23 = vsel %vm12135_vm14, %v3790_v16, %v3791_v60  ;;  %v3792_v25 = vrot.slane %v9022_v47, 1  ;;  %vm12138_vm14 = vmmov %vm12104_vm4 }
 0x2b2   : > { %v3074_v17 = vpop.f32.mrb[54].mxu1  ;;  %v6626_v3 = vpack.c.bf16 %v3870_v23, %v3871_v51  ;;  %v9036_v22 = vsel %vm11853_vm6, %v3598_v52, %v3599_v20 }
 0x2b3   : > { %12136 = vst [vmem:[#allocation128_spill] sm:$0xff] %v9036_v22  ;;  %v3361_v46 = vadd.f32 %v8404_v28, %v3072_v14  ;;  %v3075_v6 = vadd.f32 %v8550_v31, %v3074_v17  ;;  %v3076_v16 = vpop.f32.mrb[55].mxu1  ;;  %v3869_v15 = vsel %vm12104_vm4, %v3791_v60, %v3792_v25  ;;  %v9044_v48 = vsel %vm11853_vm6, %v3599_v20, %v3600_v58 }
 0x2b4   : > { %7064 = vmatmul.mubr.msk.bf16.gmra.mrb[148].mxu1 %vm7858_vm9, %v6626_v3 }
 0x2b5   : > { %v9051_v28 = vmax.f32 %v3361_v46, 0.0  ;;  %v3364_v17 = vadd.f32 %v8413_v30, %v3075_v6  ;;  %v7310_v46 = vld [vmem:[%s11625_s5 + $0x68] sm:$0xff]  }
 0x2b6   : > { %4281 = vmatpush1.bf16.msra.mxu0 %v7310_v46 }
 0x2b7   : > { %v9054_v14 = vmax.f32 %v3364_v17, 0.0  ;;  %v3793_v60 = vrot.slane %v9051_v28, 1  ;;  %v3601_v23 = vrot.slane %v9051_v28, 7  ;;  %4282 = vmatprep.subr.bf16.mxu0 %v12047_v56 }
 0x2b8   : > { %v3079_v20 = vpop.f32.mrb[56].mxu1 }
 0x2b9   : > { %v3080_v38 = vadd.f32 %v8550_v31, %v3079_v20  ;;  %v3081_v16 = vpop.f32.mrb[57].mxu1  ;;  %v3868_v3 = vsel %vm12138_vm14, %v3792_v25, %v3793_v60  ;;  %v3794_v41 = vrot.slane %v9054_v14, 1  ;;  %v3602_v52 = vrot.slane %v9054_v14, 7  ;;  %vm12141_vm14 = vmmov %vm12104_vm4 }
 0x2ba   : > { %v3082_v6 = vpop.f32.mrb[58].mxu1  ;;  %v3997_v17 = vpack.c.bf16 %v3868_v3, %v3869_v15  ;;  %v9070_v20 = vsel %vm11853_vm6, %v3600_v58, %v3601_v23 }
 0x2bb   : > { %12139 = vst [vmem:[#allocation129_spill] sm:$0xff] %v9070_v20  ;;  %v3369_v16 = vadd.f32 %v8423_v55, %v3080_v38  ;;  %v3083_v25 = vadd.f32 %v8550_v31, %v3082_v6  ;;  %v3084_v51 = vpop.f32.mrb[59].mxu1  ;;  %v3867_v22 = vsel %vm12104_vm4, %v3793_v60, %v3794_v41  ;;  %v9079_v15 = vsel %vm11853_vm6, %v3601_v23, %v3602_v52 }
 0x2bc   : > { %7067 = vmatprep.mubr.bf16.mxu1 %v3997_v17  ;;  %12140 = vst [vmem:[#allocation130_spill] sm:$0xff] %v9079_v15 }
 0x2bd   : > { %v9081_v3 = vmax.f32 %v3369_v16, 0.0  ;;  %v3372_v58 = vadd.f32 %v8429_v57, %v3083_v25  ;;  %v7311_v57 = vld [vmem:[%s11625_s5 + $0x70] sm:$0xff]  }
 0x2be   : > { %4283 = vmatpush1.bf16.msra.mxu0 %v7311_v57 }
 0x2bf   : > { %v9086_v38 = vmax.f32 %v3372_v58, 0.0  ;;  %v3795_v51 = vrot.slane %v9081_v3, 1  ;;  %v3603_v60 = vrot.slane %v9081_v3, 7  ;;  %4284 = vmatprep.subr.bf16.mxu0 %v12047_v56 }
 0x2c0   : > { %v3087_v46 = vpop.f32.mrb[60].mxu1 }
 0x2c1   : > { %v3088_v6 = vadd.f32 %v8550_v31, %v3087_v46  ;;  %v3089_v17 = vpop.f32.mrb[61].mxu1  ;;  %v3866_v23 = vsel %vm12141_vm14, %v3794_v41, %v3795_v51  ;;  %v3796_v16 = vrot.slane %v9086_v38, 1  ;;  %v3604_v30 = vrot.slane %v9086_v38, 7  ;;  %vm12144_vm14 = vmmov %vm12104_vm4 }
 0x2c2   : > { %v3090_v58 = vpop.f32.mrb[62].mxu1  ;;  %v4000_v55 = vpack.c.bf16 %v3866_v23, %v3867_v22  ;;  %v9102_v46 = vsel %vm11853_vm6, %v3602_v52, %v3603_v60 }
 0x2c3   : > { %12142 = vst [vmem:[#allocation131_spill] sm:$0xff] %v9102_v46  ;;  %v3377_v17 = vadd.f32 %v8421_v50, %v3088_v6  ;;  %v3091_v41 = vadd.f32 %v8550_v31, %v3090_v58  ;;  %v3092_v20 = vpop.f32.mrb[63].mxu1  ;;  %v3865_v15 = vsel %vm12104_vm4, %v3795_v51, %v3796_v16  ;;  %v9111_v22 = vsel %vm11853_vm6, %v3603_v60, %v3604_v30 }
 0x2c4   : > { %7068 = vmatmul.mubr.bf16.gmra.mrb[152].mxu1 %v4000_v55 }
 0x2c5   : > { %v9113_v23 = vmax.f32 %v3377_v17, 0.0  ;;  %v3380_v52 = vadd.f32 %v8427_v18, %v3091_v41 }
 0x2c7   : > { %12143 = vst [vmem:[#allocation132_spill] sm:$0xff] %v9113_v23  ;;  %v9118_v6 = vmax.f32 %v3380_v52, 0.0  ;;  %v3797_v20 = vrot.slane %v9113_v23, 1  ;;  %v3605_v51 = vrot.slane %v9113_v23, 7 }
 0x2c8   : > { %v3095_v55 = vpop.f32.mrb[64].mxu1 }
 0x2c9   : > { %v3798_v57 = vrot.slane %v9118_v6, 1  ;;  %v3096_v58 = vadd.f32 %v8550_v31, %v3095_v55  ;;  %v3097_v60 = vpop.f32.mrb[65].mxu1  ;;  %v3864_v17 = vsel %vm12144_vm14, %v3796_v16, %v3797_v20  ;;  %v3606_v52 = vrot.slane %v9118_v6, 7  ;;  %v7312_v16 = vld [vmem:[%s11625_s5 + $0x78] sm:$0xff]   ;;  %vm12148_vm14 = vmmov %vm12104_vm4 }
 0x2ca   : > { %v3098_v41 = vpop.f32.mrb[66].mxu1  ;;  %v4003_v50 = vpack.c.bf16 %v3864_v17, %v3865_v15  ;;  %v9131_v25 = vsel %vm11853_vm6, %v3604_v30, %v3605_v51  ;;  %4285 = vmatpush1.bf16.msra.mxu0 %v7312_v16 }
 0x2cb   : > { %12145 = vst [vmem:[#allocation133_spill] sm:$0xff] %v9131_v25  ;;  %v3385_v56 = vadd.f32 %v8446_v24, %v3096_v58  ;;  %v3099_v46 = vadd.f32 %v8550_v31, %v3098_v41  ;;  %v3100_v55 = vpop.f32.mrb[67].mxu1  ;;  %v3863_v60 = vsel %vm12104_vm4, %v3797_v20, %v3798_v57  ;;  %v9142_v15 = vsel %vm11853_vm6, %v3605_v51, %v3606_v52 }
 0x2cc   : > { %7071 = vmatprep.mubr.bf16.mxu1 %v4003_v50  ;;  %12146 = vst [vmem:[#allocation134_spill] sm:$0xff] %v9142_v15 }
 0x2cd   : > { %v9144_v17 = vmax.f32 %v3385_v56, 0.0  ;;  %v3388_v30 = vadd.f32 %v8454_v26, %v3099_v46 }
 0x2cf   : > { %12147 = vst [vmem:[#allocation135_spill] sm:$0xff] %v9144_v17  ;;  %v3607_v58 = vrot.slane %v9144_v17, 7  ;;  %v3799_v50 = vrot.slane %v9144_v17, 1  ;;  %v9151_v20 = vmax.f32 %v3388_v30, 0.0 }
 0x2d0   : > { %v3103_v41 = vpop.f32.mrb[68].mxu1 }
 0x2d1   : > { %v3608_v55 = vrot.slane %v9151_v20, 7  ;;  %v3800_v51 = vrot.slane %v9151_v20, 1  ;;  %v3104_v56 = vadd.f32 %v8550_v31, %v3103_v41  ;;  %v3105_v18 = vpop.f32.mrb[69].mxu1  ;;  %v3862_v26 = vsel %vm12148_vm14, %v3798_v57, %v3799_v50  ;;  %vm12154_vm14 = vmmov %vm12104_vm4 }
 0x2d2   : > { %v3106_v46 = vpop.f32.mrb[70].mxu1  ;;  %v6629_v24 = vpack.c.bf16 %v3862_v26, %v3863_v60  ;;  %v9162_v30 = vsel %vm11853_vm6, %v3606_v52, %v3607_v58 }
 0x2d3   : > { %12149 = vst [vmem:[#allocation136_spill] sm:$0xff] %v9162_v30  ;;  %v3393_v25 = vadd.f32 %v8444_v32, %v3104_v56  ;;  %v3107_v15 = vadd.f32 %v8550_v31, %v3106_v46  ;;  %v3108_v23 = vpop.f32.mrb[71].mxu1  ;;  %v3861_v18 = vsel %vm12104_vm4, %v3799_v50, %v3800_v51  ;;  %v9170_v57 = vsel %vm11853_vm6, %v3607_v58, %v3608_v55 }
 0x2d4   : > { %12150 = vst [vmem:[#allocation137_spill] sm:$0xff] %v9170_v57  ;;  %7072 = vmatmul.mubr.msk.bf16.gmra.mrb[156].mxu1 %vm7914_vm11, %v6629_v24 }
 0x2d5   : > { %v9176_v52 = vmax.f32 %v3393_v25, 0.0  ;;  %v3396_v32 = vadd.f32 %v8452_v21, %v3107_v15 }
 0x2d7   : > { %12152 = vst [vmem:[#allocation138_spill] sm:$0xff] %v9176_v52  ;;  %v3609_v56 = vrot.slane %v9176_v52, 7  ;;  %v3801_v23 = vrot.slane %v9176_v52, 1  ;;  %v9181_v26 = vmax.f32 %v3396_v32, 0.0  ;;  %v12156_v32 = vld [vmem:[#allocation84_spill] sm:$0xff] }
 0x2d8   : > { %v3111_v50 = vpop.f32.mrb[72].mxu1 }
 0x2d9   : > { %12153 = vst [vmem:[#allocation139_spill] sm:$0xff] %v9181_v26  ;;  %v3610_v58 = vrot.slane %v9181_v26, 7  ;;  %v3802_v46 = vrot.slane %v9181_v26, 1  ;;  %v3112_v24 = vadd.f32 %v8550_v31, %v3111_v50  ;;  %v3113_v16 = vpop.f32.mrb[73].mxu1  ;;  %v3860_v25 = vsel %vm12154_vm14, %v3800_v51, %v3801_v23  ;;  %vm12161_vm14 = vmmov %vm12104_vm4 }
 0x2da   : > { %v3114_v41 = vpop.f32.mrb[74].mxu1  ;;  %v4009_v60 = vpack.c.bf16 %v3860_v25, %v3861_v18  ;;  %v9192_v15 = vsel %vm11853_vm6, %v3608_v55, %v3609_v56  ;;  %v12159_v55 = vld [vmem:[#allocation86_spill] sm:$0xff] }
 0x2db   : > { %12155 = vst [vmem:[#allocation140_spill] sm:$0xff] %v9192_v15  ;;  %v3401_v30 = vadd.f32 %v12156_v32, %v3112_v24  ;;  %v3115_v57 = vadd.f32 %v8550_v31, %v3114_v41  ;;  %v3116_v17 = vpop.f32.mrb[75].mxu1  ;;  %v3859_v16 = vsel %vm12104_vm4, %v3801_v23, %v3802_v46  ;;  %v9200_v51 = vsel %vm11853_vm6, %v3609_v56, %v3610_v58 }
 0x2dc   : > { %12157 = vst [vmem:[#allocation84_spill] sm:$0xff] %v9200_v51  ;;  %7075 = vmatprep.mubr.bf16.mxu1 %v4009_v60 }
 0x2dd   : > { %v9204_v50 = vmax.f32 %v3401_v30, 0.0  ;;  %v3404_v25 = vadd.f32 %v12159_v55, %v3115_v57 }
 0x2df   : > { %12158 = vst [vmem:[#allocation141_spill] sm:$0xff] %v9204_v50  ;;  %v3611_v24 = vrot.slane %v9204_v50, 7  ;;  %v3803_v41 = vrot.slane %v9204_v50, 1  ;;  %v9209_v17 = vmax.f32 %v3404_v25, 0.0  ;;  %v12163_v25 = vld [vmem:[#allocation83_spill] sm:$0xff] }
 0x2e0   : > { %v3119_v32 = vpop.f32.mrb[76].mxu1 }
 0x2e1   : > { %12160 = vst [vmem:[#allocation86_spill] sm:$0xff] %v9209_v17  ;;  %v3612_v23 = vrot.slane %v9209_v17, 7  ;;  %v3804_v56 = vrot.slane %v9209_v17, 1  ;;  %v3120_v60 = vadd.f32 %v8550_v31, %v3119_v32  ;;  %v3121_v21 = vpop.f32.mrb[77].mxu1  ;;  %v3858_v30 = vsel %vm12161_vm14, %v3802_v46, %v3803_v41  ;;  %vm12168_vm14 = vmmov %vm12104_vm4 }
 0x2e2   : > { %v3122_v18 = vpop.f32.mrb[78].mxu1  ;;  %v4012_v15 = vpack.c.bf16 %v3858_v30, %v3859_v16  ;;  %v9220_v55 = vsel %vm11853_vm6, %v3610_v58, %v3611_v24  ;;  %v12166_v58 = vld [vmem:[#allocation85_spill] sm:$0xff] }
 0x2e3   : > { %12162 = vst [vmem:[#allocation142_spill] sm:$0xff] %v9220_v55  ;;  %v3409_v51 = vadd.f32 %v12163_v25, %v3120_v60  ;;  %v3123_v52 = vadd.f32 %v8550_v31, %v3122_v18  ;;  %v3124_v26 = vpop.f32.mrb[79].mxu1  ;;  %v3857_v21 = vsel %vm12104_vm4, %v3803_v41, %v3804_v56  ;;  %v9228_v46 = vsel %vm11853_vm6, %v3611_v24, %v3612_v23  ;;  %v12170_v55 = vld [vmem:[#allocation88_spill] sm:$0xff] }
 0x2e4   : > { %12164 = vst [vmem:[#allocation83_spill] sm:$0xff] %v9228_v46  ;;  %7076 = vmatmul.mubr.bf16.gmra.mrb[160].mxu1 %v4012_v15  ;;  %v9244_v15 = vld [vmem:[%s11624_s4] ss:$0 sm:$0xff] }
 0x2e5   : > { %v9232_v32 = vmax.f32 %v3409_v51, 0.0  ;;  %v3412_v30 = vadd.f32 %v12166_v58, %v3123_v52 }
 0x2e7   : > { %12165 = vst [vmem:[#allocation143_spill] sm:$0xff] %v9232_v32  ;;  %v3613_v60 = vrot.slane %v9232_v32, 7  ;;  %v3805_v31 = vrot.slane %v9232_v32, 1  ;;  %v9237_v26 = vmax.f32 %v3412_v30, 0.0 }
 0x2e8   : > { %v3127_v18 = vpop.f32.mrb[80].mxu1 }
 0x2e9   : > { %12167 = vst [vmem:[#allocation85_spill] sm:$0xff] %v9237_v26  ;;  %v3614_v41 = vrot.slane %v9237_v26, 7  ;;  %v3806_v24 = vrot.slane %v9237_v26, 1  ;;  %v3128_v51 = vadd.f32 %v9244_v15, %v3127_v18  ;;  %v3129_v25 = vpop.f32.mrb[81].mxu1  ;;  %v3856_v52 = vsel %vm12168_vm14, %v3804_v56, %v3805_v31  ;;  %vm12175_vm14 = vmmov %vm12104_vm4 }
 0x2ea   : > { %v3130_v58 = vpop.f32.mrb[82].mxu1  ;;  %v4015_v16 = vpack.c.bf16 %v3856_v52, %v3857_v21  ;;  %v9253_v57 = vsel %vm11853_vm6, %v3612_v23, %v3613_v60  ;;  %v12173_v23 = vld [vmem:[#allocation90_spill] sm:$0xff] }
 0x2eb   : > { %12169 = vst [vmem:[#allocation144_spill] sm:$0xff] %v9253_v57  ;;  %v3417_v46 = vadd.f32 %v12170_v55, %v3128_v51  ;;  %v3131_v50 = vadd.f32 %v9244_v15, %v3130_v58  ;;  %v3132_v17 = vpop.f32.mrb[83].mxu1  ;;  %v3855_v18 = vsel %vm12104_vm4, %v3805_v31, %v3806_v24  ;;  %v9261_v56 = vsel %vm11853_vm6, %v3613_v60, %v3614_v41 }
 0x2ec   : > { %12171 = vst [vmem:[#allocation88_spill] sm:$0xff] %v9261_v56  ;;  %7079 = vmatprep.mubr.bf16.mxu1 %v4015_v16 }
 0x2ed   : > { %v9265_v25 = vmax.f32 %v3417_v46, 0.0  ;;  %v3420_v52 = vadd.f32 %v12173_v23, %v3131_v50 }
 0x2ef   : > { %12172 = vst [vmem:[#allocation145_spill] sm:$0xff] %v9265_v25  ;;  %v3615_v55 = vrot.slane %v9265_v25, 7  ;;  %v3807_v51 = vrot.slane %v9265_v25, 1  ;;  %v9270_v17 = vmax.f32 %v3420_v52, 0.0  ;;  %v12177_v52 = vld [vmem:[#allocation87_spill] sm:$0xff] }
 0x2f0   : > { %v3135_v58 = vpop.f32.mrb[84].mxu1 }
 0x2f1   : > { %12174 = vst [vmem:[#allocation90_spill] sm:$0xff] %v9270_v17  ;;  %v3616_v31 = vrot.slane %v9270_v17, 7  ;;  %v3808_v60 = vrot.slane %v9270_v17, 1  ;;  %v3136_v16 = vadd.f32 %v9244_v15, %v3135_v58  ;;  %v3137_v30 = vpop.f32.mrb[85].mxu1  ;;  %v3854_v46 = vsel %vm12175_vm14, %v3806_v24, %v3807_v51  ;;  %vm12183_vm14 = vmmov %vm12104_vm4 }
 0x2f2   : > { %v3138_v21 = vpop.f32.mrb[86].mxu1  ;;  %v6632_v57 = vpack.c.bf16 %v3854_v46, %v3855_v18  ;;  %v9281_v23 = vsel %vm11853_vm6, %v3614_v41, %v3615_v55  ;;  %v12181_v46 = vld [vmem:[#allocation89_spill] sm:$0xff] }
 0x2f3   : > { %12176 = vst [vmem:[#allocation146_spill] sm:$0xff] %v9281_v23  ;;  %v3425_v56 = vadd.f32 %v12177_v52, %v3136_v16  ;;  %v3139_v32 = vadd.f32 %v9244_v15, %v3138_v21  ;;  %v3140_v26 = vpop.f32.mrb[87].mxu1  ;;  %v3853_v30 = vsel %vm12104_vm4, %v3807_v51, %v3808_v60  ;;  %v9289_v24 = vsel %vm11853_vm6, %v3615_v55, %v3616_v31 }
 0x2f4   : > { %12178 = vst [vmem:[#allocation87_spill] sm:$0xff] %v9289_v24  ;;  %7080 = vmatmul.mubr.msk.bf16.gmra.mrb[164].mxu1 %vm7970_vm13, %v6632_v57 }
 0x2f5   : > { %v9295_v41 = vmax.f32 %v3425_v56, 0.0  ;;  %v3428_v16 = vadd.f32 %v12181_v46, %v3139_v32 }
 0x2f7   : > { %12180 = vst [vmem:[#allocation147_spill] sm:$0xff] %v9295_v41  ;;  %v3617_v21 = vrot.slane %v9295_v41, 7  ;;  %v3809_v26 = vrot.slane %v9295_v41, 1  ;;  %v9300_v52 = vmax.f32 %v3428_v16, 0.0  ;;  %v12185_v16 = vld [vmem:[#allocation92_spill] sm:$0xff] }
 0x2f8   : > { %v3143_v51 = vpop.f32.mrb[88].mxu1 }
 0x2f9   : > { %12182 = vst [vmem:[#allocation89_spill] sm:$0xff] %v9300_v52  ;;  %v3618_v55 = vrot.slane %v9300_v52, 7  ;;  %v3810_v50 = vrot.slane %v9300_v52, 1  ;;  %v3144_v57 = vadd.f32 %v9244_v15, %v3143_v51  ;;  %v3145_v18 = vpop.f32.mrb[89].mxu1  ;;  %v3852_v56 = vsel %vm12183_vm14, %v3808_v60, %v3809_v26  ;;  %vm12190_vm14 = vmmov %vm12104_vm4 }
 0x2fa   : > { %v3146_v58 = vpop.f32.mrb[90].mxu1  ;;  %v4021_v23 = vpack.c.bf16 %v3852_v56, %v3853_v30  ;;  %v9311_v46 = vsel %vm11853_vm6, %v3616_v31, %v3617_v21  ;;  %v12188_v31 = vld [vmem:[#allocation94_spill] sm:$0xff] }
 0x2fb   : > { %12184 = vst [vmem:[#allocation148_spill] sm:$0xff] %v9311_v46  ;;  %v3433_v24 = vadd.f32 %v12185_v16, %v3144_v57  ;;  %v3147_v25 = vadd.f32 %v9244_v15, %v3146_v58  ;;  %v3148_v17 = vpop.f32.mrb[91].mxu1  ;;  %v3851_v18 = vsel %vm12104_vm4, %v3809_v26, %v3810_v50  ;;  %v9319_v60 = vsel %vm11853_vm6, %v3617_v21, %v3618_v55 }
 0x2fc   : > { %12186 = vst [vmem:[#allocation92_spill] sm:$0xff] %v9319_v60  ;;  %7083 = vmatprep.mubr.bf16.mxu1 %v4021_v23 }
 0x2fd   : > { %v9323_v51 = vmax.f32 %v3433_v24, 0.0  ;;  %v3436_v56 = vadd.f32 %v12188_v31, %v3147_v25 }
 0x2ff   : > { %12187 = vst [vmem:[#allocation149_spill] sm:$0xff] %v9323_v51  ;;  %v3619_v57 = vrot.slane %v9323_v51, 7  ;;  %v3811_v58 = vrot.slane %v9323_v51, 1  ;;  %v9328_v17 = vmax.f32 %v3436_v56, 0.0  ;;  %v12192_v56 = vld [vmem:[#allocation91_spill] sm:$0xff] }
 0x300   : > { %v3151_v16 = vpop.f32.mrb[92].mxu1 }
 0x301   : > { %12189 = vst [vmem:[#allocation94_spill] sm:$0xff] %v9328_v17  ;;  %v3620_v26 = vrot.slane %v9328_v17, 7  ;;  %v3812_v21 = vrot.slane %v9328_v17, 1  ;;  %v3152_v23 = vadd.f32 %v9244_v15, %v3151_v16  ;;  %v3153_v32 = vpop.f32.mrb[93].mxu1  ;;  %v3850_v24 = vsel %vm12190_vm14, %v3810_v50, %v3811_v58  ;;  %vm12197_vm14 = vmmov %vm12104_vm4 }
 0x302   : > { %v3154_v30 = vpop.f32.mrb[94].mxu1  ;;  %v4024_v46 = vpack.c.bf16 %v3850_v24, %v3851_v18  ;;  %v9339_v31 = vsel %vm11853_vm6, %v3618_v55, %v3619_v57  ;;  %v12195_v55 = vld [vmem:[#allocation93_spill] sm:$0xff] }
 0x303   : > { %12191 = vst [vmem:[#allocation150_spill] sm:$0xff] %v9339_v31  ;;  %v3441_v60 = vadd.f32 %v12192_v56, %v3152_v23  ;;  %v3155_v41 = vadd.f32 %v9244_v15, %v3154_v30  ;;  %v3156_v52 = vpop.f32.mrb[95].mxu1  ;;  %v3849_v32 = vsel %vm12104_vm4, %v3811_v58, %v3812_v21  ;;  %v9347_v50 = vsel %vm11853_vm6, %v3619_v57, %v3620_v26 }
 0x304   : > { %12193 = vst [vmem:[#allocation91_spill] sm:$0xff] %v9347_v50  ;;  %7084 = vmatmul.mubr.bf16.gmra.mrb[168].mxu1 %v4024_v46 }
 0x305   : > { %v9351_v16 = vmax.f32 %v3441_v60, 0.0  ;;  %v3444_v24 = vadd.f32 %v12195_v55, %v3155_v41 }
 0x307   : > { %12194 = vst [vmem:[#allocation151_spill] sm:$0xff] %v9351_v16  ;;  %v3621_v23 = vrot.slane %v9351_v16, 7  ;;  %v3813_v30 = vrot.slane %v9351_v16, 1  ;;  %v9356_v52 = vmax.f32 %v3444_v24, 0.0  ;;  %v12199_v24 = vld [vmem:[#allocation97_spill] sm:$0xff] }
 0x308   : > { %v3159_v56 = vpop.f32.mrb[96].mxu1 }
 0x309   : > { %12196 = vst [vmem:[#allocation93_spill] sm:$0xff] %v9356_v52  ;;  %v3622_v58 = vrot.slane %v9356_v52, 7  ;;  %v3814_v57 = vrot.slane %v9356_v52, 1  ;;  %v3160_v46 = vadd.f32 %v9244_v15, %v3159_v56  ;;  %v3161_v25 = vpop.f32.mrb[97].mxu1  ;;  %v3848_v60 = vsel %vm12197_vm14, %v3812_v21, %v3813_v30  ;;  %vm12204_vm14 = vmmov %vm12104_vm4 }
 0x30a   : > { %v3162_v18 = vpop.f32.mrb[98].mxu1  ;;  %v4027_v31 = vpack.c.bf16 %v3848_v60, %v3849_v32  ;;  %v9367_v55 = vsel %vm11853_vm6, %v3620_v26, %v3621_v23  ;;  %v12202_v26 = vld [vmem:[#allocation99_spill] sm:$0xff] }
 0x30b   : > { %12198 = vst [vmem:[#allocation152_spill] sm:$0xff] %v9367_v55  ;;  %v3449_v50 = vadd.f32 %v12199_v24, %v3160_v46  ;;  %v3163_v51 = vadd.f32 %v9244_v15, %v3162_v18  ;;  %v3164_v17 = vpop.f32.mrb[99].mxu1  ;;  %v3847_v25 = vsel %vm12104_vm4, %v3813_v30, %v3814_v57  ;;  %v9375_v21 = vsel %vm11853_vm6, %v3621_v23, %v3622_v58 }
 0x30c   : > { %12200 = vst [vmem:[#allocation97_spill] sm:$0xff] %v9375_v21  ;;  %7087 = vmatprep.mubr.bf16.mxu1 %v4027_v31 }
 0x30d   : > { %v9379_v56 = vmax.f32 %v3449_v50, 0.0  ;;  %v3452_v60 = vadd.f32 %v12202_v26, %v3163_v51 }
 0x30f   : > { %12201 = vst [vmem:[#allocation153_spill] sm:$0xff] %v9379_v56  ;;  %v3623_v46 = vrot.slane %v9379_v56, 7  ;;  %v3815_v18 = vrot.slane %v9379_v56, 1  ;;  %v9384_v17 = vmax.f32 %v3452_v60, 0.0  ;;  %v12206_v60 = vld [vmem:[#allocation96_spill] sm:$0xff] }
 0x310   : > { %v3167_v24 = vpop.f32.mrb[100].mxu1 }
 0x311   : > { %12203 = vst [vmem:[#allocation99_spill] sm:$0xff] %v9384_v17  ;;  %v3624_v30 = vrot.slane %v9384_v17, 7  ;;  %v3816_v23 = vrot.slane %v9384_v17, 1  ;;  %v3168_v31 = vadd.f32 %v9244_v15, %v3167_v24  ;;  %v3169_v41 = vpop.f32.mrb[101].mxu1  ;;  %v3846_v50 = vsel %vm12204_vm14, %v3814_v57, %v3815_v18  ;;  %vm12212_vm14 = vmmov %vm12104_vm4 }
 0x312   : > { %v3170_v32 = vpop.f32.mrb[102].mxu1  ;;  %v6635_v55 = vpack.c.bf16 %v3846_v50, %v3847_v25  ;;  %v9395_v26 = vsel %vm11853_vm6, %v3622_v58, %v3623_v46  ;;  %v12210_v50 = vld [vmem:[#allocation98_spill] sm:$0xff] }
 0x313   : > { %12205 = vst [vmem:[#allocation154_spill] sm:$0xff] %v9395_v26  ;;  %v3457_v21 = vadd.f32 %v12206_v60, %v3168_v31  ;;  %v3171_v16 = vadd.f32 %v9244_v15, %v3170_v32  ;;  %v3172_v52 = vpop.f32.mrb[103].mxu1  ;;  %v3845_v41 = vsel %vm12104_vm4, %v3815_v18, %v3816_v23  ;;  %v9403_v57 = vsel %vm11853_vm6, %v3623_v46, %v3624_v30 }
 0x314   : > { %12207 = vst [vmem:[#allocation96_spill] sm:$0xff] %v9403_v57  ;;  %7088 = vmatmul.mubr.msk.bf16.gmra.mrb[172].mxu1 %vm8026_vm15, %v6635_v55 }
 0x315   : > { %v9409_v58 = vmax.f32 %v3457_v21, 0.0  ;;  %v3460_v31 = vadd.f32 %v12210_v50, %v3171_v16 }
 0x317   : > { %12209 = vst [vmem:[#allocation155_spill] sm:$0xff] %v9409_v58  ;;  %v3625_v32 = vrot.slane %v9409_v58, 7  ;;  %v3817_v52 = vrot.slane %v9409_v58, 1  ;;  %v9414_v60 = vmax.f32 %v3460_v31, 0.0  ;;  %v12214_v31 = vld [vmem:[#allocation101_spill] sm:$0xff] }
 0x318   : > { %v3175_v18 = vpop.f32.mrb[104].mxu1 }
 0x319   : > { %12211 = vst [vmem:[#allocation98_spill] sm:$0xff] %v9414_v60  ;;  %v3626_v46 = vrot.slane %v9414_v60, 7  ;;  %v3818_v51 = vrot.slane %v9414_v60, 1  ;;  %v3176_v55 = vadd.f32 %v9244_v15, %v3175_v18  ;;  %v3177_v25 = vpop.f32.mrb[105].mxu1  ;;  %v3844_v21 = vsel %vm12212_vm14, %v3816_v23, %v3817_v52  ;;  %vm12219_vm14 = vmmov %vm12104_vm4 }
 0x31a   : > { %v3178_v24 = vpop.f32.mrb[106].mxu1  ;;  %v4033_v26 = vpack.c.bf16 %v3844_v21, %v3845_v41  ;;  %v9425_v50 = vsel %vm11853_vm6, %v3624_v30, %v3625_v32  ;;  %v12217_v30 = vld [vmem:[#allocation103_spill] sm:$0xff] }
 0x31b   : > { %12213 = vst [vmem:[#allocation156_spill] sm:$0xff] %v9425_v50  ;;  %v3465_v57 = vadd.f32 %v12214_v31, %v3176_v55  ;;  %v3179_v56 = vadd.f32 %v9244_v15, %v3178_v24  ;;  %v3180_v17 = vpop.f32.mrb[107].mxu1  ;;  %v3843_v25 = vsel %vm12104_vm4, %v3817_v52, %v3818_v51  ;;  %v9433_v23 = vsel %vm11853_vm6, %v3625_v32, %v3626_v46 }
 0x31c   : > { %12215 = vst [vmem:[#allocation101_spill] sm:$0xff] %v9433_v23  ;;  %7091 = vmatprep.mubr.bf16.mxu1 %v4033_v26 }
 0x31d   : > { %v9437_v18 = vmax.f32 %v3465_v57, 0.0  ;;  %v3468_v21 = vadd.f32 %v12217_v30, %v3179_v56 }
 0x31f   : > { %12216 = vst [vmem:[#allocation157_spill] sm:$0xff] %v9437_v18  ;;  %v3627_v55 = vrot.slane %v9437_v18, 7  ;;  %v3819_v24 = vrot.slane %v9437_v18, 1  ;;  %v9442_v17 = vmax.f32 %v3468_v21, 0.0  ;;  %v12221_v21 = vld [vmem:[#allocation100_spill] sm:$0xff] }
 0x320   : > { %v3183_v31 = vpop.f32.mrb[108].mxu1 }
 0x321   : > { %12218 = vst [vmem:[#allocation103_spill] sm:$0xff] %v9442_v17  ;;  %v3628_v52 = vrot.slane %v9442_v17, 7  ;;  %v3820_v32 = vrot.slane %v9442_v17, 1  ;;  %v3184_v26 = vadd.f32 %v9244_v15, %v3183_v31  ;;  %v3185_v16 = vpop.f32.mrb[109].mxu1  ;;  %v3842_v57 = vsel %vm12219_vm14, %v3818_v51, %v3819_v24  ;;  %vm12225_vm14 = vmmov %vm12104_vm4 }
 0x322   : > { %v3186_v41 = vpop.f32.mrb[110].mxu1  ;;  %v4036_v50 = vpack.c.bf16 %v3842_v57, %v3843_v25  ;;  %v9453_v30 = vsel %vm11853_vm6, %v3626_v46, %v3627_v55  ;;  %v12224_v46 = vld [vmem:[#allocation102_spill] sm:$0xff] }
 0x323   : > { %12220 = vst [vmem:[#allocation158_spill] sm:$0xff] %v9453_v30  ;;  %v3473_v23 = vadd.f32 %v12221_v21, %v3184_v26  ;;  %v3187_v58 = vadd.f32 %v9244_v15, %v3186_v41  ;;  %v3188_v60 = vpop.f32.mrb[111].mxu1  ;;  %v3841_v16 = vsel %vm12104_vm4, %v3819_v24, %v3820_v32  ;;  %v9461_v51 = vsel %vm11853_vm6, %v3627_v55, %v3628_v52 }
 0x324   : > { %12222 = vst [vmem:[#allocation100_spill] sm:$0xff] %v9461_v51  ;;  %7092 = vmatmul.mubr.bf16.gmra.mrb[176].mxu1 %v4036_v50 }
 0x325   : > { %v9465_v31 = vmax.f32 %v3473_v23, 0.0  ;;  %v3476_v57 = vadd.f32 %v12224_v46, %v3187_v58 }
 0x327   : > { %12223 = vst [vmem:[#allocation159_spill] sm:$0xff] %v9465_v31  ;;  %v3629_v26 = vrot.slane %v9465_v31, 7  ;;  %v3821_v41 = vrot.slane %v9465_v31, 1  ;;  %v9470_v60 = vmax.f32 %v3476_v57, 0.0  ;;  %v12227_v57 = vld [vmem:[#allocation105_spill] sm:$0xff] }
 0x328   : > { %v3191_v21 = vpop.f32.mrb[112].mxu1 }
 0x329   : > { %v3630_v24 = vrot.slane %v9470_v60, 7  ;;  %v3822_v55 = vrot.slane %v9470_v60, 1  ;;  %v3192_v50 = vadd.f32 %v9244_v15, %v3191_v21  ;;  %v3193_v56 = vpop.f32.mrb[113].mxu1  ;;  %v3840_v23 = vsel %vm12225_vm14, %v3820_v32, %v3821_v41  ;;  %vm12231_vm14 = vmmov %vm12104_vm4 }
 0x32a   : > { %v3194_v25 = vpop.f32.mrb[114].mxu1  ;;  %v4039_v30 = vpack.c.bf16 %v3840_v23, %v3841_v16  ;;  %v9481_v46 = vsel %vm11853_vm6, %v3628_v52, %v3629_v26 }
 0x32b   : > { %12226 = vst [vmem:[#allocation102_spill] sm:$0xff] %v9481_v46  ;;  %v3481_v51 = vadd.f32 %v12227_v57, %v3192_v50  ;;  %v3195_v18 = vadd.f32 %v9244_v15, %v3194_v25  ;;  %v3196_v17 = vpop.f32.mrb[115].mxu1  ;;  %v3839_v56 = vsel %vm12104_vm4, %v3821_v41, %v3822_v55  ;;  %v9489_v32 = vsel %vm11853_vm6, %v3629_v26, %v3630_v24 }
 0x32c   : > { %12228 = vst [vmem:[#allocation105_spill] sm:$0xff] %v9489_v32  ;;  %7095 = vmatprep.mubr.bf16.mxu1 %v4039_v30 }
 0x32d   : > { %v9493_v21 = vmax.f32 %v3481_v51, 0.0  ;;  %v3484_v52 = vadd.f32 %v8565_v4, %v3195_v18 }
 0x32f   : > { %12229 = vst [vmem:[#allocation160_spill] sm:$0xff] %v9493_v21  ;;  %v3631_v50 = vrot.slane %v9493_v21, 7  ;;  %v3823_v25 = vrot.slane %v9493_v21, 1  ;;  %v9498_v17 = vmax.f32 %v3484_v52, 0.0  ;;  %v12233_v52 = vld [vmem:[#allocation104_spill] sm:$0xff] }
 0x330   : > { %v3199_v23 = vpop.f32.mrb[116].mxu1 }
 0x331   : > { %12230 = vst [vmem:[#allocation161_spill] sm:$0xff] %v9498_v17  ;;  %v3632_v41 = vrot.slane %v9498_v17, 7  ;;  %v3824_v26 = vrot.slane %v9498_v17, 1  ;;  %v3200_v30 = vadd.f32 %v9244_v15, %v3199_v23  ;;  %v3201_v57 = vpop.f32.mrb[117].mxu1  ;;  %v3838_v51 = vsel %vm12231_vm14, %v3822_v55, %v3823_v25  ;;  %vm12239_vm14 = vmmov %vm12104_vm4 }
 0x332   : > { %v3202_v16 = vpop.f32.mrb[118].mxu1  ;;  %v6638_v58 = vpack.c.bf16 %v3838_v51, %v3839_v56  ;;  %v9509_v18 = vsel %vm11853_vm6, %v3630_v24, %v3631_v50  ;;  %v12237_v51 = vld [vmem:[#allocation106_spill] sm:$0xff] }
 0x333   : > { %12232 = vst [vmem:[#allocation162_spill] sm:$0xff] %v9509_v18  ;;  %v3489_v46 = vadd.f32 %v12233_v52, %v3200_v30  ;;  %v3203_v32 = vadd.f32 %v9244_v15, %v3202_v16  ;;  %v3204_v31 = vpop.f32.mrb[119].mxu1  ;;  %v3837_v23 = vsel %vm12104_vm4, %v3823_v25, %v3824_v26  ;;  %v9517_v55 = vsel %vm11853_vm6, %v3631_v50, %v3632_v41 }
 0x334   : > { %12234 = vst [vmem:[#allocation104_spill] sm:$0xff] %v9517_v55  ;;  %7096 = vmatmul.mubr.msk.bf16.gmra.mrb[180].mxu1 %vm8082_vm1, %v6638_v58 }
 0x335   : > { %v9523_v24 = vmax.f32 %v3489_v46, 0.0  ;;  %v3492_v30 = vadd.f32 %v12237_v51, %v3203_v32 }
 0x337   : > { %12236 = vst [vmem:[#allocation163_spill] sm:$0xff] %v9523_v24  ;;  %v3633_v16 = vrot.slane %v9523_v24, 7  ;;  %v3825_v31 = vrot.slane %v9523_v24, 1  ;;  %v9528_v52 = vmax.f32 %v3492_v30, 0.0  ;;  %v12241_v30 = vld [vmem:[#allocation108_spill] sm:$0xff] }
 0x338   : > { %v3207_v25 = vpop.f32.mrb[120].mxu1 }
 0x339   : > { %12238 = vst [vmem:[#allocation106_spill] sm:$0xff] %v9528_v52  ;;  %v3634_v50 = vrot.slane %v9528_v52, 7  ;;  %v3826_v4 = vrot.slane %v9528_v52, 1  ;;  %v3208_v58 = vadd.f32 %v9244_v15, %v3207_v25  ;;  %v3209_v56 = vpop.f32.mrb[121].mxu1  ;;  %v3836_v46 = vsel %vm12239_vm14, %v3824_v26, %v3825_v31  ;;  %vm12244_vm14 = vmmov %vm12104_vm4 }
 0x33a   : > { %v3210_v57 = vpop.f32.mrb[122].mxu1  ;;  %v4045_v18 = vpack.c.bf16 %v3836_v46, %v3837_v23  ;;  %v9539_v51 = vsel %vm11853_vm6, %v3632_v41, %v3633_v16  ;;  %v12243_v41 = vld [vmem:[#allocation110_spill] sm:$0xff] }
 0x33b   : > { %12240 = vst [vmem:[#allocation164_spill] sm:$0xff] %v9539_v51  ;;  %v3497_v55 = vadd.f32 %v12241_v30, %v3208_v58  ;;  %v3211_v21 = vadd.f32 %v9244_v15, %v3210_v57  ;;  %v3212_v17 = vpop.f32.mrb[123].mxu1  ;;  %v3835_v56 = vsel %vm12104_vm4, %v3825_v31, %v3826_v4  ;;  %v9547_v26 = vsel %vm11853_vm6, %v3633_v16, %v3634_v50 }
 0x33c   : > { %12242 = vst [vmem:[#allocation108_spill] sm:$0xff] %v9547_v26  ;;  %7099 = vmatprep.mubr.bf16.mxu1 %v4045_v18 }
 0x33d   : > { %v9551_v25 = vmax.f32 %v3497_v55, 0.0  ;;  %v3500_v46 = vadd.f32 %v12243_v41, %v3211_v21 }
 0x33f   : > { %v3635_v58 = vrot.slane %v9551_v25, 7  ;;  %v3827_v57 = vrot.slane %v9551_v25, 1  ;;  %v9556_v17 = vmax.f32 %v3500_v46, 0.0  ;;  %v12246_v46 = vld [vmem:[#allocation107_spill] sm:$0xff] }
 0x340   : > { %v3215_v30 = vpop.f32.mrb[124].mxu1 }
 0x341   : > { %v3636_v31 = vrot.slane %v9556_v17, 7  ;;  %v3828_v16 = vrot.slane %v9556_v17, 1  ;;  %v3216_v18 = vadd.f32 %v9244_v15, %v3215_v30  ;;  %v3217_v32 = vpop.f32.mrb[125].mxu1  ;;  %v3834_v55 = vsel %vm12244_vm14, %v3826_v4, %v3827_v57  ;;  %vm12251_vm14 = vmmov %vm12104_vm4 }
 0x342   : > { %v3218_v23 = vpop.f32.mrb[126].mxu1  ;;  %v4048_v51 = vpack.c.bf16 %v3834_v55, %v3835_v56  ;;  %v9567_v41 = vsel %vm11853_vm6, %v3634_v50, %v3635_v58  ;;  %v12249_v50 = vld [vmem:[#allocation109_spill] sm:$0xff]  ;;  %v12252_v56 = vrot.slane %v8574_v12, 7 }
 0x343   : > { %12245 = vst [vmem:[#allocation110_spill] sm:$0xff] %v9567_v41  ;;  %v3505_v26 = vadd.f32 %v12246_v46, %v3216_v18  ;;  %v3219_v24 = vadd.f32 %v9244_v15, %v3218_v23  ;;  %v3220_v52 = vpop.f32.mrb[127].mxu1  ;;  %v3833_v32 = vsel %vm12104_vm4, %v3827_v57, %v3828_v16  ;;  %v9575_v4 = vsel %vm11853_vm6, %v3635_v58, %v3636_v31 }
 0x344   : > { %12247 = vst [vmem:[#allocation107_spill] sm:$0xff] %v9575_v4  ;;  %7100 = vmatmul.mubr.bf16.gmra.mrb[184].mxu1 %v4048_v51  ;;  %v12253_v4 = vrot.slane %v8574_v12, 1  ;;  %v12258_v12 = vld [vmem:[#allocation113_spill] sm:$0xff] }
 0x345   : > { %v9579_v30 = vmax.f32 %v3505_v26, 0.0  ;;  %v3508_v55 = vadd.f32 %v12249_v50, %v3219_v24 }
 0x347   : > { %12248 = vst [vmem:[#allocation165_spill] sm:$0xff] %v9579_v30  ;;  %v3637_v18 = vrot.slane %v9579_v30, 7  ;;  %v3829_v15 = vrot.slane %v9579_v30, 1  ;;  %v9584_v52 = vmax.f32 %v3508_v55, 0.0 }
 0x349   : > { %12250 = vst [vmem:[#allocation109_spill] sm:$0xff] %v9584_v52  ;;  %v9586_v23 = vpop.f32.mrb[128].mxu1  ;;  %v3638_v57 = vrot.slane %v9584_v52, 7  ;;  %v3830_v58 = vrot.slane %v9584_v52, 1  ;;  %v3832_v26 = vsel %vm12251_vm14, %v3828_v16, %v3829_v15  ;;  %v9600_v55 = vsel %vm11853_vm6, %v3636_v31, %v3637_v18  ;;  %vm12254_vm14 = vmmov %vm12104_vm4  ;;  %v12255_v31 = vld [vmem:[#allocation112_spill] sm:$0xff] }
 0x34a   : > { %v9590_v51 = vpop.f32.mrb[129].mxu1  ;;  %v4051_v50 = vpack.c.bf16 %v3832_v26, %v3833_v32 }
 0x34b   : > { %v9596_v46 = vpop.f32.mrb[130].mxu1  ;;  %v3702_v21 = vsel %vm11853_vm6, %v3638_v57, %v12252_v56  ;;  %v3831_v16 = vsel %vm12104_vm4, %v3829_v15, %v3830_v58  ;;  %v3894_v24 = vsel %vm12254_vm14, %v3830_v58, %v12253_v4  ;;  %v9616_v32 = vsel %vm11853_vm6, %v3637_v18, %v3638_v57  ;;  %v12327_v56 = vld [vmem:[#allocation141_spill] sm:$0xff] }
 0x34c   : > { %v9606_v41 = vpop.f32.mrb[131].mxu1  ;;  %v6596_v26 = vpack.c.bf16 %v12255_v31, %v3702_v21  ;;  %7103 = vmatprep.mubr.bf16.mxu1 %v4051_v50  ;;  %v6641_v30 = vpack.c.bf16 %v3894_v24, %v3831_v16  ;;  %v12259_v4 = vpack.c.bf16 %v8618_v44, %v12258_v12  ;;  %v12260_v24 = vld [vmem:[#allocation115_spill] sm:$0xff]  ;;  %v12261_v50 = vld [vmem:[#allocation114_spill] sm:$0xff]  ;;  %v12263_v31 = vpack.c.bf16 %v8671_v53, %v8664_v1 }
 0x34d   : > { %v12262_v16 = vpack.c.bf16 %v12260_v24, %v12261_v50  ;;  %v12265_v24 = vpack.c.bf16 %v8715_v59, %v8709_v11  ;;  %v12266_v1 = vpack.c.bf16 %v8747_v33, %v8738_v19  ;;  %v12267_v53 = vpack.c.bf16 %v8759_v8, %v8749_v39 }
 0x34e   : > { %6597 = vmatmul.mubr.msk.bf16.vlgmr.msra.gmra.mrb[128].mxu0 %vm8127_vm8, %v6596_v26  ;;  %7104 = vmatmul.mubr.msk.bf16.gmra.mrb[188].mxu1 %vm8153_vm12, %v6641_v30  ;;  %v12270_v59 = vpack.c.bf16 %v8792_v34, %v8786_v43  ;;  %v12271_v19 = vpack.c.bf16 %v8817_v62, %v8808_v13  ;;  %v12272_v33 = vpack.c.bf16 %v8826_v27, %v8819_v36  ;;  %v12275_v34 = vld [vmem:[#allocation117_spill] sm:$0xff]  ;;  %v12277_v62 = vld [vmem:[#allocation119_spill] sm:$0xff] }
 0x34f   : > { %4294 = vmatprep.mubr.bf16.mxu0 %v12259_v4  ;;  %v12264_v4 = vpack.c.bf16 %v8707_v35, %v8694_v63  ;;  %v12268_v35 = vpack.c.bf16 %v8781_v49, %v8773_v42  ;;  %v12276_v13 = vpack.c.bf16 %v8858_v10, %v12275_v34  ;;  %v12280_v27 = vpack.c.bf16 %v8892_v9, %v8885_v2  ;;  %v12285_v2 = vld [vmem:[#allocation122_spill] sm:$0xff]  ;;  %v12286_v9 = vld [vmem:[#allocation121_spill] sm:$0xff] }
 0x351   : > { %v9628_v58 = vpop.f32.mrb[132].mxu1 }
 0x352   : > { %v9630_v18 = vpop.f32.mrb[133].mxu1 }
 0x353   : > { %v9632_v21 = vpop.f32.mrb[134].mxu1 }
 0x354   : > { %v9634_v57 = vpop.f32.mrb[135].mxu1 }
 0x356   : > { %4295 = vmatmul.mubr.bf16.gmra.mrb[132].mxu0 %v12262_v16 }
 0x357   : > { %4302 = vmatprep.mubr.bf16.mxu0 %v12263_v31 }
 0x359   : > { %v9642_v30 = vpop.f32.mrb[136].mxu1 }
 0x35a   : > { %v9644_v44 = vpop.f32.mrb[137].mxu1 }
 0x35b   : > { %v9646_v26 = vpop.f32.mrb[138].mxu1 }
 0x35c   : > { %v9648_v12 = vpop.f32.mrb[139].mxu1 }
 0x35e   : > { %4303 = vmatmul.mubr.bf16.gmra.mrb[136].mxu0 %v12264_v4  ;;  %v12273_v4 = vld [vmem:[#allocation116_spill] sm:$0xff] }
 0x35f   : > { %4310 = vmatprep.mubr.bf16.mxu0 %v12265_v24  ;;  %v12274_v43 = vpack.c.bf16 %v8851_v40, %v12273_v4  ;;  %v12278_v24 = vld [vmem:[#allocation118_spill] sm:$0xff]  ;;  %v12287_v4 = vpack.c.bf16 %v12285_v2, %v12286_v9 }
 0x360   : > { %v12279_v36 = vpack.c.bf16 %v12277_v62, %v12278_v24  ;;  %v12289_v24 = vld [vmem:[#allocation124_spill] sm:$0xff] }
 0x366   : > { %4311 = vmatmul.mubr.bf16.gmra.mrb[140].mxu0 %v12266_v1 }
 0x367   : > { %4318 = vmatprep.mubr.bf16.mxu0 %v12267_v53  ;;  %v9662_v50 = vpop.f32.mrb[140].mxu1 }
 0x368   : > { %v9664_v16 = vpop.f32.mrb[141].mxu1 }
 0x369   : > { %v9666_v31 = vpop.f32.mrb[142].mxu1 }
 0x36a   : > { %v9668_v63 = vpop.f32.mrb[143].mxu1 }
 0x36e   : > { %6600 = vmatmul.mubr.msk.bf16.gmra.mrb[144].mxu0 %vm8185_vm0, %v12268_v35 }
 0x36f   : > { %4326 = vmatprep.mubr.bf16.mxu0 %v12270_v59  ;;  %v12281_v59 = vld [vmem:[#allocation120_spill] sm:$0xff] }
 0x370   : > { %v12282_v10 = vpack.c.bf16 %v8914_v37, %v12281_v59  ;;  %v12294_v59 = vld [vmem:[#allocation127_spill] sm:$0xff] }
 0x376   : > { %4327 = vmatmul.mubr.bf16.gmra.mrb[148].mxu0 %v12271_v19 }
 0x377   : > { %4334 = vmatprep.mubr.bf16.mxu0 %v12272_v33  ;;  %v9684_v39 = vpop.f32.mrb[144].mxu1  ;;  %v12284_v33 = vpack.c.bf16 %v8924_v61, %v8921_v29  ;;  %v12292_v61 = vld [vmem:[#allocation125_spill] sm:$0xff] }
 0x378   : > { %v9686_v8 = vpop.f32.mrb[145].mxu1 }
 0x379   : > { %v9688_v49 = vpop.f32.mrb[146].mxu1 }
 0x37a   : > { %v9690_v42 = vpop.f32.mrb[147].mxu1 }
 0x37e   : > { %4335 = vmatmul.mubr.bf16.gmra.mrb[152].mxu0 %v12274_v43  ;;  %v12288_v43 = vpack.c.bf16 %v8956_v7, %v8951_v54  ;;  %v12297_v7 = vpack.c.bf16 %v9022_v47, %v9015_v45  ;;  %v7313_v45 = vld [vmem:[%s11627_s7 + $0x80] sm:$0xff]   ;;  %v7314_v47 = vld [vmem:[%s11627_s7 + $0x88] sm:$0xff]  }
 0x37f   : > { %4342 = vmatprep.mubr.bf16.mxu0 %v12276_v13  ;;  %7107 = vmatprep.subr.bf16.mxu0 %v7313_v45 }
 0x380   : > { %7108 = vmatpush3.bf16.msra.mxu0 %v7313_v45  ;;  %v7318_v45 = vld [vmem:[%s11627_s7 + $0xa8] sm:$0xff]  }
 0x381   : > { %7109 = vmatprep.subr.bf16.mxu0 %v7314_v47 }
 0x384   : > { %7110 = vmatpush3.bf16.msra.mxu0 %v7314_v47  ;;  %v12310_v47 = vld [vmem:[#allocation134_spill] sm:$0xff] }
 0x386   : > { %4343 = vmatmul.mubr.bf16.gmra.mrb[156].mxu0 %v12279_v36  ;;  %v12290_v36 = vld [vmem:[#allocation123_spill] sm:$0xff] }
 0x387   : > { %4350 = vmatprep.mubr.bf16.mxu0 %v12280_v27  ;;  %v9704_v1 = vpop.f32.mrb[148].mxu1  ;;  %v12291_v29 = vpack.c.bf16 %v12289_v24, %v12290_v36  ;;  %v12293_v27 = vpack.c.bf16 %v8988_v0, %v12292_v61  ;;  %v12301_v36 = vpack.c.bf16 %v9054_v14, %v9051_v28  ;;  %v7315_v14 = vld [vmem:[%s11627_s7 + $0x90] sm:$0xff]  }
 0x388   : > { %v9706_v53 = vpop.f32.mrb[149].mxu1  ;;  %7111 = vmatprep.subr.bf16.mxu0 %v7315_v14 }
 0x389   : > { %v9708_v35 = vpop.f32.mrb[150].mxu1  ;;  %7112 = vmatpush3.bf16.msra.mxu0 %v7315_v14 }
 0x38a   : > { %v9710_v40 = vpop.f32.mrb[151].mxu1 }
 0x38e   : > { %6603 = vmatmul.mubr.msk.bf16.gmra.mrb[160].mxu0 %vm8225_vm10, %v12282_v10  ;;  %v12295_v10 = vld [vmem:[#allocation126_spill] sm:$0xff] }
 0x38f   : > { %4358 = vmatprep.mubr.bf16.mxu0 %v12284_v33  ;;  %v12296_v54 = vpack.c.bf16 %v12294_v59, %v12295_v10 }
 0x396   : > { %4359 = vmatmul.mubr.bf16.gmra.mrb[164].mxu0 %v12287_v4 }
 0x397   : > { %4366 = vmatprep.mubr.bf16.mxu0 %v12288_v43  ;;  %v9726_v34 = vpop.f32.mrb[152].mxu1  ;;  %v12298_v43 = vld [vmem:[#allocation128_spill] sm:$0xff] }
 0x398   : > { %v9728_v13 = vpop.f32.mrb[153].mxu1  ;;  %v12299_v0 = vpack.c.bf16 %v9044_v48, %v12298_v43  ;;  %v12303_v48 = vld [vmem:[#allocation129_spill] sm:$0xff]  ;;  %v12308_v43 = vld [vmem:[#allocation132_spill] sm:$0xff] }
 0x399   : > { %v9730_v37 = vpop.f32.mrb[154].mxu1 }
 0x39a   : > { %v9732_v62 = vpop.f32.mrb[155].mxu1 }
 0x39e   : > { %4367 = vmatmul.mubr.bf16.gmra.mrb[168].mxu0 %v12291_v29  ;;  %v12302_v29 = vld [vmem:[#allocation130_spill] sm:$0xff] }
 0x39f   : > { %4374 = vmatprep.mubr.bf16.mxu0 %v12293_v27  ;;  %v12304_v61 = vpack.c.bf16 %v12302_v29, %v12303_v48  ;;  %v12305_v27 = vpack.c.bf16 %v9086_v38, %v9081_v3  ;;  %v7316_v3 = vld [vmem:[%s11627_s7 + $0x98] sm:$0xff]   ;;  %v12306_v38 = vld [vmem:[#allocation131_spill] sm:$0xff]  ;;  %v12311_v29 = vld [vmem:[#allocation133_spill] sm:$0xff] }
 0x3a0   : > { %7113 = vmatprep.subr.bf16.mxu0 %v7316_v3  ;;  %v12313_v48 = vld [vmem:[#allocation135_spill] sm:$0xff] }
 0x3a1   : > { %7114 = vmatpush3.bf16.msra.mxu0 %v7316_v3 }
 0x3a6   : > { %4375 = vmatmul.mubr.bf16.gmra.mrb[172].mxu0 %v12296_v54 }
 0x3a7   : > { %4382 = vmatprep.mubr.bf16.mxu0 %v12297_v7  ;;  %v9746_v33 = vpop.f32.mrb[156].mxu1  ;;  %v12307_v7 = vpack.c.bf16 %v9111_v22, %v12306_v38  ;;  %v12312_v22 = vpack.c.bf16 %v12310_v47, %v12311_v29  ;;  %v12321_v47 = vld [vmem:[#allocation138_spill] sm:$0xff] }
 0x3a8   : > { %v9748_v2 = vpop.f32.mrb[157].mxu1 }
 0x3a9   : > { %v9750_v9 = vpop.f32.mrb[158].mxu1 }
 0x3aa   : > { %v9752_v4 = vpop.f32.mrb[159].mxu1 }
 0x3ae   : > { %6606 = vmatmul.mubr.msk.bf16.gmra.mrb[176].mxu0 %vm8265_vm3, %v12299_v0  ;;  %v12309_v0 = vpack.c.bf16 %v9118_v6, %v12308_v43  ;;  %v12314_v6 = vpack.c.bf16 %v9151_v20, %v12313_v48  ;;  %v7320_v20 = vld [vmem:[%s11627_s7 + $0xb8] sm:$0xff]  }
 0x3af   : > { %4390 = vmatprep.mubr.bf16.mxu0 %v12301_v36  ;;  %v7317_v36 = vld [vmem:[%s11627_s7 + $0xa0] sm:$0xff]   ;;  %v12316_v43 = vld [vmem:[#allocation136_spill] sm:$0xff] }
 0x3b0   : > { %7115 = vmatprep.subr.bf16.mxu0 %v7317_v36  ;;  %v12324_v48 = vld [vmem:[#allocation140_spill] sm:$0xff] }
 0x3b1   : > { %7116 = vmatpush3.bf16.msra.mxu0 %v7317_v36  ;;  %v12318_v36 = vld [vmem:[#allocation81_spill] sm:$0xff] }
 0x3b2   : > { %7117 = vmatprep.subr.bf16.mxu0 %v7318_v45  ;;  %vm12319_vm4 = vnez %v12318_v36 }
 0x3b5   : > { %7118 = vmatpush3.bf16.msra.mxu0 %v7318_v45  ;;  %v12320_v45 = vld [vmem:[#allocation139_spill] sm:$0xff] }
 0x3b6   : > { %4391 = vmatmul.mubr.bf16.gmra.mrb[180].mxu0 %v12304_v61  ;;  %v12322_v29 = vpack.c.bf16 %v12320_v45, %v12321_v47  ;;  %v12332_v45 = vld [vmem:[#allocation142_spill] sm:$0xff] }
 0x3b7   : > { %4398 = vmatprep.mubr.bf16.mxu0 %v12305_v27  ;;  %v9774_v28 = vpop.f32.mrb[160].mxu1  ;;  %v7319_v27 = vld [vmem:[%s11627_s7 + $0xb0] sm:$0xff]  }
 0x3b8   : > { %v9779_v59 = vpop.f32.mrb[161].mxu1  ;;  %7119 = vmatprep.subr.bf16.mxu0 %v7319_v27 }
 0x3b9   : > { %v9781_v10 = vpop.f32.mrb[162].mxu1  ;;  %7120 = vmatpush3.bf16.msra.mxu0 %v7319_v27  ;;  %v12326_v27 = vld [vmem:[#allocation86_spill] sm:$0xff] }
 0x3ba   : > { %v9783_v54 = vpop.f32.mrb[163].mxu1  ;;  %7121 = vmatprep.subr.bf16.mxu0 %v7320_v20  ;;  %v12328_v24 = vpack.c.bf16 %v12326_v27, %v12327_v56  ;;  %v12341_v27 = vld [vmem:[#allocation145_spill] sm:$0xff] }
 0x3bd   : > { %7122 = vmatpush3.bf16.msra.mxu0 %v7320_v20  ;;  %v12334_v20 = vld [vmem:[#allocation85_spill] sm:$0xff] }
 0x3be   : > { %4399 = vmatmul.mubr.bf16.gmra.mrb[184].mxu0 %v12307_v7  ;;  %v12315_v7 = vld [vmem:[#allocation137_spill] sm:$0xff] }
 0x3bf   : > { %4406 = vmatprep.mubr.bf16.mxu0 %v12309_v0  ;;  %v12317_v0 = vpack.c.bf16 %v12315_v7, %v12316_v43 }
 0x3c6   : > { %4407 = vmatmul.mubr.bf16.gmra.mrb[188].mxu0 %v12312_v22  ;;  %v12323_v22 = vld [vmem:[#allocation84_spill] sm:$0xff] }
 0x3c7   : > { %4414 = vmatprep.mubr.bf16.mxu0 %v12314_v6  ;;  %v9806_v61 = vpop.f32.mrb[164].mxu1  ;;  %v12325_v6 = vpack.c.bf16 %v12323_v22, %v12324_v48  ;;  %v12337_v48 = vld [vmem:[#allocation88_spill] sm:$0xff] }
 0x3c8   : > { %v9811_v14 = vpop.f32.mrb[165].mxu1 }
 0x3c9   : > { %v9813_v3 = vpop.f32.mrb[166].mxu1 }
 0x3ca   : > { %v9815_v38 = vpop.f32.mrb[167].mxu1 }
 0x3ce   : > { %6609 = vmatmul.mubr.msk.bf16.gmra.mrb[192].mxu0 %vm12319_vm4, %v12317_v0  ;;  %v12331_v0 = vld [vmem:[#allocation83_spill] sm:$0xff] }
 0x3cf   : > { %4422 = vmatprep.mubr.bf16.mxu0 %v12322_v29  ;;  %v12333_v47 = vpack.c.bf16 %v12331_v0, %v12332_v45  ;;  %v12335_v29 = vld [vmem:[#allocation143_spill] sm:$0xff] }
 0x3d0   : > { %v12336_v22 = vpack.c.bf16 %v12334_v20, %v12335_v29  ;;  %v12347_v45 = vld [vmem:[#allocation87_spill] sm:$0xff]  ;;  %v12350_v29 = vld [vmem:[#allocation82_spill] sm:$0xff] }
 0x3d1   : > { %vm12351_vm14 = vnez %v12350_v29  ;;  %v12366_v29 = vld [vmem:[#allocation150_spill] sm:$0xff] }
 0x3d6   : > { %4423 = vmatmul.mubr.bf16.gmra.mrb[196].mxu0 %v12325_v6  ;;  %v12338_v6 = vld [vmem:[#allocation144_spill] sm:$0xff] }
 0x3d7   : > { %4430 = vmatprep.mubr.bf16.mxu0 %v12328_v24  ;;  %v9834_v19 = vpop.f32.mrb[168].mxu1  ;;  %v12339_v56 = vpack.c.bf16 %v12337_v48, %v12338_v6  ;;  %v12340_v24 = vld [vmem:[#allocation90_spill] sm:$0xff]  ;;  %v12353_v48 = vld [vmem:[#allocation147_spill] sm:$0xff] }
 0x3d8   : > { %12329 = vst [vmem:[#allocation112_spill] sm:$0xff] %v9834_v19  ;;  %v9836_v11 = vpop.f32.mrb[169].mxu1  ;;  %v12342_v36 = vpack.c.bf16 %v12340_v24, %v12341_v27  ;;  %v12358_v27 = vld [vmem:[#allocation94_spill] sm:$0xff] }
 0x3d9   : > { %v9838_v7 = vpop.f32.mrb[170].mxu1 }
 0x3da   : > { %12330 = vst [vmem:[#allocation113_spill] sm:$0xff] %v9838_v7  ;;  %v9840_v43 = vpop.f32.mrb[171].mxu1 }
 0x3de   : > { %4431 = vmatmul.mubr.bf16.gmra.mrb[200].mxu0 %v12333_v47  ;;  %v12348_v47 = vld [vmem:[#allocation146_spill] sm:$0xff] }
 0x3df   : > { %4438 = vmatprep.mubr.bf16.mxu0 %v12336_v22  ;;  %v12349_v20 = vpack.c.bf16 %v12347_v45, %v12348_v47  ;;  %v12352_v22 = vld [vmem:[#allocation89_spill] sm:$0xff] }
 0x3e0   : > { %v12354_v6 = vpack.c.bf16 %v12352_v22, %v12353_v48  ;;  %v12368_v48 = vld [vmem:[#allocation93_spill] sm:$0xff] }
 0x3e6   : > { %4439 = vmatmul.mubr.bf16.gmra.mrb[204].mxu0 %v12339_v56  ;;  %v12355_v56 = vld [vmem:[#allocation92_spill] sm:$0xff] }
 0x3e7   : > { %4446 = vmatprep.mubr.bf16.mxu0 %v12342_v36  ;;  %v9854_v15 = vpop.f32.mrb[172].mxu1  ;;  %v12356_v36 = vld [vmem:[#allocation148_spill] sm:$0xff] }
 0x3e8   : > { %12343 = vst [vmem:[#allocation115_spill] sm:$0xff] %v9854_v15  ;;  %v9856_v52 = vpop.f32.mrb[173].mxu1  ;;  %v12357_v24 = vpack.c.bf16 %v12355_v56, %v12356_v36  ;;  %v12359_v15 = vld [vmem:[#allocation149_spill] sm:$0xff] }
 0x3e9   : > { %12344 = vst [vmem:[#allocation114_spill] sm:$0xff] %v9856_v52  ;;  %v9858_v7 = vpop.f32.mrb[174].mxu1  ;;  %v12360_v52 = vpack.c.bf16 %v12358_v27, %v12359_v15  ;;  %v12371_v36 = vld [vmem:[#allocation97_spill] sm:$0xff] }
 0x3ea   : > { %12345 = vst [vmem:[#allocation116_spill] sm:$0xff] %v9858_v7  ;;  %v9860_v0 = vpop.f32.mrb[175].mxu1  ;;  %v12375_v27 = vld [vmem:[#allocation153_spill] sm:$0xff] }
 0x3eb   : > { %12346 = vst [vmem:[#allocation117_spill] sm:$0xff] %v9860_v0 }
 0x3ee   : > { %6612 = vmatmul.mubr.msk.bf16.gmra.mrb[208].mxu0 %vm12351_vm14, %v12349_v20  ;;  %v12365_v20 = vld [vmem:[#allocation91_spill] sm:$0xff] }
 0x3ef   : > { %4454 = vmatprep.mubr.bf16.mxu0 %v12354_v6  ;;  %v12367_v22 = vpack.c.bf16 %v12365_v20, %v12366_v29  ;;  %v12369_v6 = vld [vmem:[#allocation151_spill] sm:$0xff]  ;;  %v12381_v20 = vld [vmem:[#allocation96_spill] sm:$0xff] }
 0x3f0   : > { %v12370_v56 = vpack.c.bf16 %v12368_v48, %v12369_v6  ;;  %v12384_v6 = vld [vmem:[#allocation95_spill] sm:$0xff] }
 0x3f1   : > { %vm12385_vm6 = vnez %v12384_v6  ;;  %v12400_v6 = vld [vmem:[#allocation158_spill] sm:$0xff] }
 0x3f6   : > { %4455 = vmatmul.mubr.bf16.gmra.mrb[212].mxu0 %v12357_v24  ;;  %v12372_v24 = vld [vmem:[#allocation152_spill] sm:$0xff] }
 0x3f7   : > { %4462 = vmatprep.mubr.bf16.mxu0 %v12360_v52  ;;  %v9876_v7 = vpop.f32.mrb[176].mxu1  ;;  %v12373_v15 = vpack.c.bf16 %v12371_v36, %v12372_v24  ;;  %v12374_v52 = vld [vmem:[#allocation99_spill] sm:$0xff] }
 0x3f8   : > { %12361 = vst [vmem:[#allocation119_spill] sm:$0xff] %v9876_v7  ;;  %v9878_v0 = vpop.f32.mrb[177].mxu1  ;;  %v12376_v7 = vpack.c.bf16 %v12374_v52, %v12375_v27  ;;  %v12387_v36 = vld [vmem:[#allocation155_spill] sm:$0xff] }
 0x3f9   : > { %12362 = vst [vmem:[#allocation118_spill] sm:$0xff] %v9878_v0  ;;  %v9880_v45 = vpop.f32.mrb[178].mxu1  ;;  %v12392_v27 = vld [vmem:[#allocation103_spill] sm:$0xff] }
 0x3fa   : > { %12363 = vst [vmem:[#allocation120_spill] sm:$0xff] %v9880_v45  ;;  %v9882_v47 = vpop.f32.mrb[179].mxu1 }
 0x3fb   : > { %12364 = vst [vmem:[#allocation122_spill] sm:$0xff] %v9882_v47 }
 0x3fe   : > { %4463 = vmatmul.mubr.bf16.gmra.mrb[216].mxu0 %v12367_v22  ;;  %v12382_v22 = vld [vmem:[#allocation154_spill] sm:$0xff] }
 0x3ff   : > { %4470 = vmatprep.mubr.bf16.mxu0 %v12370_v56  ;;  %v12383_v48 = vpack.c.bf16 %v12381_v20, %v12382_v22  ;;  %v12386_v56 = vld [vmem:[#allocation98_spill] sm:$0xff] }
 0x400   : > { %v12388_v24 = vpack.c.bf16 %v12386_v56, %v12387_v36  ;;  %v12402_v36 = vld [vmem:[#allocation159_spill] sm:$0xff] }
 0x406   : > { %4471 = vmatmul.mubr.bf16.gmra.mrb[220].mxu0 %v12373_v15  ;;  %v12389_v15 = vld [vmem:[#allocation101_spill] sm:$0xff] }
 0x407   : > { %4478 = vmatprep.mubr.bf16.mxu0 %v12376_v7  ;;  %v9896_v0 = vpop.f32.mrb[180].mxu1  ;;  %v12390_v7 = vld [vmem:[#allocation156_spill] sm:$0xff] }
 0x408   : > { %12377 = vst [vmem:[#allocation121_spill] sm:$0xff] %v9896_v0  ;;  %v9898_v45 = vpop.f32.mrb[181].mxu1  ;;  %v12391_v52 = vpack.c.bf16 %v12389_v15, %v12390_v7  ;;  %v12393_v0 = vld [vmem:[#allocation157_spill] sm:$0xff] }
 0x409   : > { %12378 = vst [vmem:[#allocation124_spill] sm:$0xff] %v9898_v45  ;;  %v9900_v47 = vpop.f32.mrb[182].mxu1  ;;  %v12394_v45 = vpack.c.bf16 %v12392_v27, %v12393_v0  ;;  %v9935_v0 = vld [vmem:[%s11626_s6] ss:$0 sm:$0xff] }
 0x40a   : > { %12379 = vst [vmem:[#allocation123_spill] sm:$0xff] %v9900_v47  ;;  %v9902_v29 = vpop.f32.mrb[183].mxu1 }
 0x40b   : > { %12380 = vst [vmem:[#allocation125_spill] sm:$0xff] %v9902_v29 }
 0x40e   : > { %6615 = vmatmul.mubr.msk.bf16.gmra.mrb[224].mxu0 %vm12385_vm6, %v12383_v48  ;;  %v12399_v48 = vld [vmem:[#allocation100_spill] sm:$0xff]  ;;  %vm12415_vm6 = vcmp.lt.s32.totalorder %v7679_v5, 1 }
 0x40f   : > { %4486 = vmatprep.mubr.bf16.mxu0 %v12388_v24  ;;  %v12401_v56 = vpack.c.bf16 %v12399_v48, %v12400_v6  ;;  %v12403_v24 = vpack.c.bf16 %v9470_v60, %v12402_v36 }
 0x416   : > { %4487 = vmatmul.mubr.bf16.gmra.mrb[228].mxu0 %v12391_v52 }
 0x417   : > { %4494 = vmatprep.mubr.bf16.mxu0 %v12394_v45  ;;  %v9918_v47 = vpop.f32.mrb[184].mxu1 }
 0x418   : > { %12395 = vst [vmem:[#allocation127_spill] sm:$0xff] %v9918_v47  ;;  %v9920_v29 = vpop.f32.mrb[185].mxu1 }
 0x419   : > { %12396 = vst [vmem:[#allocation126_spill] sm:$0xff] %v9920_v29  ;;  %v9922_v20 = vpop.f32.mrb[186].mxu1 }
 0x41a   : > { %12397 = vst [vmem:[#allocation128_spill] sm:$0xff] %v9922_v20  ;;  %v9924_v22 = vpop.f32.mrb[187].mxu1 }
 0x41b   : > { %12398 = vst [vmem:[#allocation130_spill] sm:$0xff] %v9924_v22  ;;  %v12410_v22 = vld [vmem:[#allocation102_spill] sm:$0xff] }
 0x41e   : > { %4495 = vmatmul.mubr.bf16.gmra.mrb[232].mxu0 %v12401_v56 }
 0x41f   : > { %4502 = vmatprep.mubr.bf16.mxu0 %v12403_v24 }
 0x421   : > { %v4288_v45 = vpop.f32.mrb[128].mxu0  ;;  %v9937_v15 = vpop.f32.mrb[188].mxu1 }
 0x422   : > { %12404 = vst [vmem:[#allocation129_spill] sm:$0xff] %v9937_v15  ;;  %v4289_v7 = vadd.f32 %v9935_v0, %v4288_v45  ;;  %v4290_v52 = vpop.f32.mrb[129].mxu0  ;;  %v9940_v27 = vpop.f32.mrb[189].mxu1  ;;  %v12409_v15 = vld [vmem:[#allocation105_spill] sm:$0xff] }
 0x423   : > { %12405 = vst [vmem:[#allocation131_spill] sm:$0xff] %v9940_v27  ;;  %v4291_v20 = vpop.f32.mrb[130].mxu0  ;;  %v9942_v6 = vpop.f32.mrb[190].mxu1  ;;  %v12411_v45 = vpack.c.bf16 %v12409_v15, %v12410_v22  ;;  %v12412_v52 = vld [vmem:[#allocation161_spill] sm:$0xff]  ;;  %v12413_v27 = vld [vmem:[#allocation160_spill] sm:$0xff] }
 0x424   : > { %12406 = vst [vmem:[#allocation132_spill] sm:$0xff] %v9942_v6  ;;  %v4578_v48 = vadd.f32 %v9590_v51, %v4289_v7  ;;  %v4292_v60 = vadd.f32 %v9935_v0, %v4291_v20  ;;  %v4293_v56 = vpop.f32.mrb[131].mxu0  ;;  %v9946_v36 = vpop.f32.mrb[191].mxu1  ;;  %v12414_v29 = vpack.c.bf16 %v12412_v52, %v12413_v27  ;;  %v12419_v52 = vld [vmem:[#allocation162_spill] sm:$0xff] }
 0x425   : > { %12407 = vst [vmem:[#allocation134_spill] sm:$0xff] %v9946_v36 }
 0x426   : > { %v9948_v24 = vmax.f32 %v4578_v48, 0.0  ;;  %v4581_v47 = vadd.f32 %v9606_v41, %v4292_v60  ;;  %4503 = vmatmul.mubr.bf16.gmra.mrb[236].mxu0 %v12411_v45  ;;  %v12418_v45 = vld [vmem:[#allocation104_spill] sm:$0xff] }
 0x427   : > { %4510 = vmatprep.mubr.bf16.mxu0 %v12414_v29 }
 0x428   : > { %12408 = vst [vmem:[#allocation133_spill] sm:$0xff] %v9948_v24  ;;  %v4833_v6 = vmax.f32 %v4581_v47, 0.0  ;;  %v11854_v51 = vrot.slane %v9948_v24, 7 }
 0x429   : > { %v4296_v19 = vpop.f32.mrb[132].mxu0 }
 0x42a   : > { %v4897_v20 = vrot.slane %v4833_v6, 7  ;;  %v4297_v7 = vadd.f32 %v9935_v0, %v4296_v19  ;;  %v4298_v56 = vpop.f32.mrb[133].mxu0  ;;  %v5281_v48 = vpack.c.bf16 %v4833_v6, %v9948_v24  ;;  %v5089_v15 = vrot.slane %v4833_v6, 1  ;;  %v7321_v19 = vld [vmem:[%s11627_s7] sm:$0xff]  }
 0x42b   : > { %v4299_v36 = vpop.f32.mrb[134].mxu0  ;;  %v12420_v56 = vpack.c.bf16 %v12418_v45, %v12419_v52  ;;  %5576 = vmatpush1.bf16.msra.mxu1 %v7321_v19 }
 0x42c   : > { %v9964_v41 = vsel %vm12415_vm6, %v11854_v51, %v4897_v20  ;;  %v4586_v22 = vadd.f32 %v9586_v23, %v4297_v7  ;;  %v4300_v47 = vadd.f32 %v9935_v0, %v4299_v36  ;;  %v4301_v29 = vpop.f32.mrb[135].mxu0  ;;  %5607 = vmatprep.mubr.bf16.mxu1 %v5281_v48  ;;  %v11856_v23 = vrot.slane %v9948_v24, 1  ;;  %v12422_v36 = vld [vmem:[#allocation106_spill] sm:$0xff]  ;;  %v12423_v7 = vld [vmem:[#allocation163_spill] sm:$0xff] }
 0x42d   : > { %12416 = vst [vmem:[#allocation135_spill] sm:$0xff] %v9964_v41  ;;  %v12424_v48 = vpack.c.bf16 %v12422_v36, %v12423_v7  ;;  %vm12427_vm6 = vcmp.lt.s32.totalorder %v7679_v5, 7  ;;  %v7322_v51 = vld [vmem:[%s11627_s7 + $0x8] sm:$0xff]  }
 0x42e   : > { %v9971_v27 = vmax.f32 %v4586_v22, 0.0  ;;  %v4589_v60 = vadd.f32 %v9596_v46, %v4300_v47  ;;  %6618 = vmatmul.mubr.msk.bf16.gmra.mrb[240].mxu0 %vm8595_vm2, %v12420_v56  ;;  %v12426_v46 = vmov 0   ;;  %v9992_v45 = vsel %vm12427_vm6, %v11856_v23, %v5089_v15  ;;  %vm12428_vm2 = vmmov %vm12427_vm6 }
 0x42f   : > { %4518 = vmatprep.mubr.bf16.mxu0 %v12424_v48  ;;  %5577 = vmatprep.subr.bf16.mxu1 %v12426_v46  ;;  %vm12429_vm6 = vcmp.lt.s32.totalorder %v7679_v5, 1  ;;  %vm12431_vm14 = vmmov %vm12428_vm2 }
 0x430   : > { %12417 = vst [vmem:[#allocation137_spill] sm:$0xff] %v9971_v27  ;;  %v4898_v6 = vrot.slane %v9971_v27, 7  ;;  %v5090_v22 = vrot.slane %v9971_v27, 1  ;;  %v9985_v29 = vmax.f32 %v4589_v60, 0.0  ;;  %v12435_v27 = vld [vmem:[#allocation108_spill] sm:$0xff]  ;;  %5578 = vmatpush1.bf16.msra.mxu1 %v7322_v51 }
 0x431   : > { %v4304_v47 = vpop.f32.mrb[136].mxu0  ;;  %5579 = vmatprep.subr.bf16.mxu1 %v12426_v46 }
 0x432   : > { %12425 = vst [vmem:[#allocation136_spill] sm:$0xff] %v9985_v29  ;;  %v4899_v52 = vrot.slane %v9985_v29, 7  ;;  %v5091_v56 = vrot.slane %v9985_v29, 1  ;;  %v4305_v19 = vadd.f32 %v9935_v0, %v4304_v47  ;;  %v4306_v36 = vpop.f32.mrb[137].mxu0  ;;  %v9999_v60 = vsel %vm12428_vm2, %v5089_v15, %v5090_v22  ;;  %vm12432_vm2 = vmmov %vm12429_vm6 }
 0x433   : > { %v4307_v7 = vpop.f32.mrb[138].mxu0  ;;  %v10007_v23 = vsel %vm12429_vm6, %v4897_v20, %v4898_v6  ;;  %vm12440_vm6 = vmmov %vm12432_vm2 }
 0x434   : > { %12430 = vst [vmem:[#allocation139_spill] sm:$0xff] %v10007_v23  ;;  %v10011_v41 = vsel %vm12431_vm14, %v5090_v22, %v5091_v56  ;;  %v4594_v47 = vadd.f32 %v9630_v18, %v4305_v19  ;;  %v4308_v15 = vadd.f32 %v9935_v0, %v4307_v7  ;;  %v4309_v36 = vpop.f32.mrb[139].mxu0  ;;  %v10017_v24 = vsel %vm12432_vm2, %v4898_v6, %v4899_v52  ;;  %v12436_v18 = vld [vmem:[#allocation164_spill] sm:$0xff]  ;;  %vm12441_vm2 = vmmov %vm12431_vm14 }
 0x435   : > { %12433 = vst [vmem:[#allocation138_spill] sm:$0xff] %v10017_v24  ;;  %v12437_v19 = vpack.c.bf16 %v12435_v27, %v12436_v18  ;;  %v12438_v7 = vpack.c.bf16 %v9556_v17, %v9551_v25 }
 0x436   : > { %v10024_v48 = vmax.f32 %v4594_v47, 0.0  ;;  %v4597_v22 = vadd.f32 %v9634_v57, %v4308_v15 }
 0x437   : > { %4519 = vmatmul.mubr.bf16.gmra.mrb[244].mxu0 %v12437_v19 }
 0x438   : > { %12434 = vst [vmem:[#allocation84_spill] sm:$0xff] %v10024_v48  ;;  %4526 = vmatprep.mubr.bf16.mxu0 %v12438_v7  ;;  %v4900_v6 = vrot.slane %v10024_v48, 7  ;;  %v5092_v36 = vrot.slane %v10024_v48, 1  ;;  %v10035_v29 = vmax.f32 %v4597_v22, 0.0  ;;  %v7323_v22 = vld [vmem:[%s11627_s7 + $0x10] sm:$0xff]   ;;  %v12447_v48 = vld [vmem:[#allocation165_spill] sm:$0xff] }
 0x439   : > { %v4312_v47 = vpop.f32.mrb[140].mxu0  ;;  %5580 = vmatpush1.bf16.msra.mxu1 %v7323_v22 }
 0x43a   : > { %12439 = vst [vmem:[#allocation140_spill] sm:$0xff] %v10035_v29  ;;  %v10040_v57 = vsel %vm12431_vm14, %v5091_v56, %v5092_v36  ;;  %v4901_v27 = vrot.slane %v10035_v29, 7  ;;  %v5093_v15 = vrot.slane %v10035_v29, 1  ;;  %v4313_v25 = vadd.f32 %v9935_v0, %v4312_v47  ;;  %v4314_v17 = vpop.f32.mrb[141].mxu0  ;;  %vm12442_vm14 = vmmov %vm12440_vm6  ;;  %5581 = vmatprep.subr.bf16.mxu1 %v12426_v46 }
 0x43b   : > { %v4315_v18 = vpop.f32.mrb[142].mxu0  ;;  %v10051_v19 = vsel %vm12440_vm6, %v4899_v52, %v4900_v6  ;;  %vm12449_vm6 = vmmov %vm12441_vm2 }
 0x43c   : > { %v4602_v56 = vadd.f32 %v9628_v58, %v4313_v25  ;;  %v4316_v7 = vadd.f32 %v9935_v0, %v4315_v18  ;;  %v4317_v20 = vpop.f32.mrb[143].mxu0  ;;  %v5210_v47 = vsel %vm12441_vm2, %v5092_v36, %v5093_v15  ;;  %v10059_v17 = vsel %vm12442_vm14, %v4900_v6, %v4901_v27  ;;  %v12443_v25 = vld [vmem:[#allocation107_spill] sm:$0xff]  ;;  %v12446_v36 = vld [vmem:[#allocation109_spill] sm:$0xff]  ;;  %vm12450_vm2 = vmmov %vm12442_vm14 }
 0x43d   : > { %v12444_v20 = vld [vmem:[#allocation110_spill] sm:$0xff]  ;;  %v12448_v29 = vpack.c.bf16 %v12446_v36, %v12447_v48  ;;  %vm12451_vm14 = vmmov %vm12449_vm6 }
 0x43e   : > { %v10066_v51 = vmax.f32 %v4602_v56, 0.0  ;;  %v4605_v58 = vadd.f32 %v9632_v21, %v4316_v7  ;;  %v12445_v18 = vpack.c.bf16 %v12443_v25, %v12444_v20  ;;  %vm12452_vm4 = vmmov %vm12450_vm2 }
 0x440   : > { %4527 = vmatmul.mubr.bf16.gmra.mrb[248].mxu0 %v12445_v18  ;;  %v4902_v6 = vrot.slane %v10066_v51, 7  ;;  %v5094_v23 = vrot.slane %v10066_v51, 1  ;;  %v10077_v24 = vmax.f32 %v4605_v58, 0.0 }
 0x441   : > { %4534 = vmatprep.mubr.bf16.mxu0 %v12448_v29  ;;  %v4320_v56 = vpop.f32.mrb[144].mxu0 }
 0x442   : > { %v4903_v21 = vrot.slane %v10077_v24, 7  ;;  %v5095_v7 = vrot.slane %v10077_v24, 1  ;;  %v4321_v25 = vadd.f32 %v9935_v0, %v4320_v56  ;;  %v4322_v20 = vpop.f32.mrb[145].mxu0  ;;  %v5209_v29 = vsel %vm12449_vm6, %v5093_v15, %v5094_v23 }
 0x443   : > { %v4323_v48 = vpop.f32.mrb[146].mxu0  ;;  %v5288_v22 = vpack.c.bf16 %v5209_v29, %v5210_v47  ;;  %v10089_v58 = vsel %vm12450_vm2, %v4901_v27, %v4902_v6  ;;  %v7324_v47 = vld [vmem:[%s11627_s7 + $0x18] sm:$0xff]  }
 0x444   : > { %v5208_v36 = vsel %vm12451_vm14, %v5094_v23, %v5095_v7  ;;  %v4610_v52 = vadd.f32 %v9644_v44, %v4321_v25  ;;  %v4324_v56 = vadd.f32 %v9935_v0, %v4323_v48  ;;  %v4325_v20 = vpop.f32.mrb[147].mxu0  ;;  %v10097_v15 = vsel %vm12452_vm4, %v4902_v6, %v4903_v21  ;;  %5582 = vmatpush1.bf16.msra.mxu1 %v7324_v47  ;;  %vm12455_vm4 = vmmov %vm12449_vm6 }
 0x445   : > { %v12453_v44 = vpack.c.bf16 %v9616_v32, %v9600_v55  ;;  %v12454_v25 = vpack.c.bf16 %v9999_v60, %v9992_v45  ;;  %5583 = vmatprep.subr.bf16.mxu1 %v12426_v46  ;;  %vm12456_vm6 = vmmov %vm12450_vm2 }
 0x446   : > { %v10104_v29 = vmax.f32 %v4610_v52, 0.0  ;;  %v4613_v23 = vadd.f32 %v9648_v12, %v4324_v56  ;;  %vm12457_vm2 = vmmov %vm12455_vm4 }
 0x447   : > { %vm12458_vm14 = vmmov %vm12456_vm6 }
 0x448   : > { %4535 = vmatmul.mubr.bf16.gmra.mrb[252].mxu0 %v12453_v44  ;;  %v4904_v6 = vrot.slane %v10104_v29, 7  ;;  %v5096_v48 = vrot.slane %v10104_v29, 1  ;;  %v10115_v20 = vmax.f32 %v4613_v23, 0.0 }
 0x449   : > { %7123 = vmatprep.mubr.bf16.mxu0 %v12454_v25  ;;  %v4328_v52 = vpop.f32.mrb[148].mxu0 }
 0x44a   : > { %v5207_v12 = vsel %vm12455_vm4, %v5095_v7, %v5096_v48  ;;  %v4905_v55 = vrot.slane %v10115_v20, 7  ;;  %v5097_v32 = vrot.slane %v10115_v20, 1  ;;  %v4329_v45 = vadd.f32 %v9935_v0, %v4328_v52  ;;  %v4330_v60 = vpop.f32.mrb[149].mxu0  ;;  %vm12460_vm4 = vmmov %vm12457_vm2 }
 0x44b   : > { %v6693_v56 = vpack.c.bf16 %v5207_v12, %v5208_v36  ;;  %v4331_v47 = vpop.f32.mrb[150].mxu0  ;;  %v10127_v23 = vsel %vm12456_vm6, %v4903_v21, %v4904_v6  ;;  %v7325_v36 = vld [vmem:[%s11627_s7 + $0x20] sm:$0xff]  }
 0x44c   : > { %v4618_v25 = vadd.f32 %v9642_v30, %v4329_v45  ;;  %v4332_v7 = vadd.f32 %v9935_v0, %v4331_v47  ;;  %v4333_v27 = vpop.f32.mrb[151].mxu0  ;;  %v5206_v18 = vsel %vm12457_vm2, %v5096_v48, %v5097_v32  ;;  %v10135_v52 = vsel %vm12458_vm14, %v4904_v6, %v4905_v55  ;;  %5584 = vmatpush1.bf16.msra.mxu1 %v7325_v36  ;;  %vm12462_vm14 = vmmov %vm12456_vm6 }
 0x44d   : > { %v12459_v27 = vpack.c.bf16 %v10040_v57, %v10011_v41  ;;  %5585 = vmatprep.subr.bf16.mxu1 %v12426_v46 }
 0x44e   : > { %v10142_v12 = vmax.f32 %v4618_v25, 0.0  ;;  %v4621_v30 = vadd.f32 %v9646_v26, %v4332_v7 }
 0x450   : > { %7124 = vmatmul.mubr.bf16.vlgmr.msra.gmra.mrb[0].mxu0 %v12459_v27  ;;  %v4906_v6 = vrot.slane %v10142_v12, 7  ;;  %v5098_v48 = vrot.slane %v10142_v12, 1  ;;  %v10150_v45 = vmax.f32 %v4621_v30, 0.0 }
 0x451   : > { %7127 = vmatprep.mubr.bf16.mxu0 %v5288_v22  ;;  %v4336_v60 = vpop.f32.mrb[152].mxu0 }
 0x452   : > { %v4907_v47 = vrot.slane %v10150_v45, 7  ;;  %v5099_v25 = vrot.slane %v10150_v45, 1  ;;  %v4337_v26 = vadd.f32 %v9935_v0, %v4336_v60  ;;  %v4338_v7 = vpop.f32.mrb[153].mxu0  ;;  %v5205_v41 = vsel %vm12460_vm4, %v5097_v32, %v5098_v48  ;;  %vm12464_vm4 = vmmov %vm12457_vm2 }
 0x453   : > { %v4339_v57 = vpop.f32.mrb[154].mxu0  ;;  %v5294_v22 = vpack.c.bf16 %v5205_v41, %v5206_v18  ;;  %v10162_v30 = vsel %vm12456_vm6, %v4905_v55, %v4906_v6  ;;  %v7326_v18 = vld [vmem:[%s11627_s7 + $0x28] sm:$0xff]  }
 0x454   : > { %12461 = vst [vmem:[#allocation86_spill] sm:$0xff] %v10162_v30  ;;  %v5204_v27 = vsel %vm12457_vm2, %v5098_v48, %v5099_v25  ;;  %v4626_v21 = vadd.f32 %v9664_v16, %v4337_v26  ;;  %v4340_v60 = vadd.f32 %v9935_v0, %v4339_v57  ;;  %v4341_v7 = vpop.f32.mrb[155].mxu0  ;;  %v10170_v32 = vsel %vm12462_vm14, %v4906_v6, %v4907_v47  ;;  %vm12470_vm14 = vmmov %vm12464_vm4 }
 0x455   : > { %5586 = vmatpush1.bf16.msra.mxu1 %v7326_v18 }
 0x456   : > { %v10177_v41 = vmax.f32 %v4626_v21, 0.0  ;;  %v4629_v48 = vadd.f32 %v9668_v63, %v4340_v60  ;;  %5587 = vmatprep.subr.bf16.mxu1 %v12426_v46 }
 0x458   : > { %7128 = vmatmul.mubr.msk.bf16.gmra.mrb[4].mxu0 %vm7746_vm5, %v6693_v56  ;;  %v4908_v16 = vrot.slane %v10177_v41, 7  ;;  %v5100_v6 = vrot.slane %v10177_v41, 1  ;;  %v10184_v26 = vmax.f32 %v4629_v48, 0.0  ;;  %vm12465_vm5 = vmmov %vm12456_vm6 }
 0x459   : > { %7131 = vmatprep.mubr.bf16.mxu0 %v5294_v22  ;;  %v4344_v57 = vpop.f32.mrb[156].mxu0  ;;  %vm12467_vm6 = vmmov %vm12457_vm2 }
 0x45a   : > { %v5203_v21 = vsel %vm12464_vm4, %v5099_v25, %v5100_v6  ;;  %v4909_v7 = vrot.slane %v10184_v26, 7  ;;  %v5101_v63 = vrot.slane %v10184_v26, 1  ;;  %v4345_v56 = vadd.f32 %v9935_v0, %v4344_v57  ;;  %v4346_v22 = vpop.f32.mrb[157].mxu0  ;;  %vm12468_vm2 = vmmov %vm12465_vm5 }
 0x45b   : > { %v5297_v36 = vpack.c.bf16 %v5203_v21, %v5204_v27  ;;  %v4347_v60 = vpop.f32.mrb[158].mxu0  ;;  %v10196_v48 = vsel %vm12465_vm5, %v4907_v47, %v4908_v16  ;;  %v7327_v27 = vld [vmem:[%s11627_s7 + $0x30] sm:$0xff]   ;;  %vm12471_vm4 = vmmov %vm12468_vm2 }
 0x45c   : > { %12466 = vst [vmem:[#allocation141_spill] sm:$0xff] %v10196_v48  ;;  %v4634_v55 = vadd.f32 %v9662_v50, %v4345_v56  ;;  %v4348_v25 = vadd.f32 %v9935_v0, %v4347_v60  ;;  %v4349_v44 = vpop.f32.mrb[159].mxu0  ;;  %v5202_v30 = vsel %vm12467_vm6, %v5100_v6, %v5101_v63  ;;  %v10204_v57 = vsel %vm12468_vm2, %v4908_v16, %v4909_v7  ;;  %vm12473_vm5 = vmmov %vm12467_vm6 }
 0x45d   : > { %5588 = vmatpush1.bf16.msra.mxu1 %v7327_v27  ;;  %vm12474_vm6 = vmmov %vm12468_vm2 }
 0x45e   : > { %v10211_v21 = vmax.f32 %v4634_v55, 0.0  ;;  %v4637_v50 = vadd.f32 %v9666_v31, %v4348_v25  ;;  %5589 = vmatprep.subr.bf16.mxu1 %v12426_v46  ;;  %vm12476_vm2 = vmmov %vm12473_vm5 }
 0x460   : > { %12469 = vst [vmem:[#allocation83_spill] sm:$0xff] %v10211_v21  ;;  %7132 = vmatmul.mubr.bf16.gmra.mrb[8].mxu0 %v5297_v36  ;;  %v4910_v44 = vrot.slane %v10211_v21, 7  ;;  %v5102_v6 = vrot.slane %v10211_v21, 1  ;;  %v10216_v56 = vmax.f32 %v4637_v50, 0.0 }
 0x461   : > { %v4352_v16 = vpop.f32.mrb[160].mxu0 }
 0x462   : > { %v4911_v22 = vrot.slane %v10216_v56, 7  ;;  %v5103_v60 = vrot.slane %v10216_v56, 1  ;;  %v4353_v55 = vadd.f32 %v9935_v0, %v4352_v16  ;;  %v4354_v47 = vpop.f32.mrb[161].mxu0  ;;  %v5201_v31 = vsel %vm12470_vm14, %v5101_v63, %v5102_v6  ;;  %vm12477_vm14 = vmmov %vm12471_vm4 }
 0x463   : > { %v4355_v36 = vpop.f32.mrb[162].mxu0  ;;  %v5300_v25 = vpack.c.bf16 %v5201_v31, %v5202_v30  ;;  %v10228_v50 = vsel %vm12471_vm4, %v4909_v7, %v4910_v44  ;;  %v7328_v30 = vld [vmem:[%s11627_s7 + $0x38] sm:$0xff]   ;;  %vm12479_vm4 = vmmov %vm12476_vm2 }
 0x464   : > { %12472 = vst [vmem:[#allocation142_spill] sm:$0xff] %v10228_v50  ;;  %v5200_v18 = vsel %vm12473_vm5, %v5102_v6, %v5103_v60  ;;  %v4642_v48 = vadd.f32 %v9686_v8, %v4353_v55  ;;  %v4356_v16 = vadd.f32 %v9935_v0, %v4355_v36  ;;  %v4357_v47 = vpop.f32.mrb[163].mxu0  ;;  %v10236_v63 = vsel %vm12474_vm6, %v4910_v44, %v4911_v22  ;;  %vm12480_vm5 = vmmov %vm12474_vm6 }
 0x465   : > { %12475 = vst [vmem:[#allocation85_spill] sm:$0xff] %v10236_v63  ;;  %7135 = vmatprep.mubr.bf16.mxu0 %v5300_v25  ;;  %5590 = vmatpush1.bf16.msra.mxu1 %v7328_v30  ;;  %vm12484_vm6 = vmmov %vm12480_vm5 }
 0x466   : > { %v10243_v31 = vmax.f32 %v4642_v48, 0.0  ;;  %v4645_v6 = vadd.f32 %v9690_v42, %v4356_v16  ;;  %5591 = vmatprep.subr.bf16.mxu1 %v12426_v46 }
 0x468   : > { %v4912_v8 = vrot.slane %v10243_v31, 7  ;;  %v5104_v55 = vrot.slane %v10243_v31, 1  ;;  %v10248_v36 = vmax.f32 %v4645_v6, 0.0 }
 0x469   : > { %v4360_v44 = vpop.f32.mrb[164].mxu0 }
 0x46a   : > { %v5199_v25 = vsel %vm12476_vm2, %v5103_v60, %v5104_v55  ;;  %v4913_v47 = vrot.slane %v10248_v36, 7  ;;  %v5105_v48 = vrot.slane %v10248_v36, 1  ;;  %v4361_v7 = vadd.f32 %v9935_v0, %v4360_v44  ;;  %v4362_v42 = vpop.f32.mrb[165].mxu0 }
 0x46b   : > { %v6696_v16 = vpack.c.bf16 %v5199_v25, %v5200_v18  ;;  %v4363_v30 = vpop.f32.mrb[166].mxu0  ;;  %v10260_v6 = vsel %vm12477_vm14, %v4911_v22, %v4912_v8  ;;  %v7329_v22 = vld [vmem:[%s11627_s7 + $0x40] sm:$0xff]   ;;  %vm12486_vm14 = vmmov %vm12480_vm5 }
 0x46c   : > { %12478 = vst [vmem:[#allocation143_spill] sm:$0xff] %v10260_v6  ;;  %v4650_v50 = vadd.f32 %v9684_v39, %v4361_v7  ;;  %v4364_v60 = vadd.f32 %v9935_v0, %v4363_v30  ;;  %v4365_v63 = vpop.f32.mrb[167].mxu0  ;;  %v5198_v21 = vsel %vm12479_vm4, %v5104_v55, %v5105_v48  ;;  %v10268_v44 = vsel %vm12480_vm5, %v4912_v8, %v4913_v47  ;;  %vm12488_vm4 = vmmov %vm12476_vm2 }
 0x46d   : > { %7136 = vmatmul.mubr.msk.bf16.gmra.mrb[12].mxu0 %vm7802_vm7, %v6696_v16  ;;  %5592 = vmatpush1.bf16.msra.mxu1 %v7329_v22  ;;  %vm12483_vm7 = vmmov %vm12476_vm2 }
 0x46e   : > { %v10277_v7 = vmax.f32 %v4650_v50, 0.0  ;;  %v4653_v63 = vadd.f32 %v9688_v49, %v4364_v60  ;;  %5593 = vmatprep.subr.bf16.mxu1 %v12426_v46 }
 0x470   : > { %12482 = vst [vmem:[#allocation88_spill] sm:$0xff] %v10277_v7  ;;  %v4914_v55 = vrot.slane %v10277_v7, 7  ;;  %v5106_v8 = vrot.slane %v10277_v7, 1  ;;  %v10282_v25 = vmax.f32 %v4653_v63, 0.0 }
 0x471   : > { %v4368_v42 = vpop.f32.mrb[168].mxu0 }
 0x472   : > { %v4915_v16 = vrot.slane %v10282_v25, 7  ;;  %v5107_v30 = vrot.slane %v10282_v25, 1  ;;  %v4369_v18 = vadd.f32 %v9935_v0, %v4368_v42  ;;  %v4370_v50 = vpop.f32.mrb[169].mxu0  ;;  %v5197_v49 = vsel %vm12483_vm7, %v5105_v48, %v5106_v8  ;;  %vm12490_vm7 = vmmov %vm12476_vm2 }
 0x473   : > { %v4371_v60 = vpop.f32.mrb[170].mxu0  ;;  %v5306_v22 = vpack.c.bf16 %v5197_v49, %v5198_v21  ;;  %v10294_v63 = vsel %vm12484_vm6, %v4913_v47, %v4914_v55  ;;  %v7330_v21 = vld [vmem:[%s11627_s7 + $0x48] sm:$0xff]   ;;  %vm12491_vm6 = vmmov %vm12480_vm5 }
 0x474   : > { %12485 = vst [vmem:[#allocation144_spill] sm:$0xff] %v10294_v63  ;;  %v5196_v27 = vsel %vm12476_vm2, %v5106_v8, %v5107_v30  ;;  %v4658_v6 = vadd.f32 %v9706_v53, %v4369_v18  ;;  %v4372_v42 = vadd.f32 %v9935_v0, %v4371_v60  ;;  %v4373_v50 = vpop.f32.mrb[171].mxu0  ;;  %v10302_v48 = vsel %vm12486_vm14, %v4914_v55, %v4915_v16  ;;  %vm12493_vm14 = vmmov %vm12480_vm5 }
 0x475   : > { %12487 = vst [vmem:[#allocation90_spill] sm:$0xff] %v10302_v48  ;;  %7139 = vmatprep.mubr.bf16.mxu0 %v5306_v22  ;;  %5594 = vmatpush1.bf16.msra.mxu1 %v7330_v21 }
 0x476   : > { %v10309_v49 = vmax.f32 %v4658_v6, 0.0  ;;  %v4661_v8 = vadd.f32 %v9710_v40, %v4372_v42  ;;  %5595 = vmatprep.subr.bf16.mxu1 %v12426_v46 }
 0x478   : > { %v4916_v53 = vrot.slane %v10309_v49, 7  ;;  %v5108_v18 = vrot.slane %v10309_v49, 1  ;;  %v10314_v60 = vmax.f32 %v4661_v8, 0.0 }
 0x479   : > { %v4376_v55 = vpop.f32.mrb[172].mxu0 }
 0x47a   : > { %v5195_v22 = vsel %vm12488_vm4, %v5107_v30, %v5108_v18  ;;  %v4917_v50 = vrot.slane %v10314_v60, 7  ;;  %v5109_v6 = vrot.slane %v10314_v60, 1  ;;  %v4377_v47 = vadd.f32 %v9935_v0, %v4376_v55  ;;  %v4378_v40 = vpop.f32.mrb[173].mxu0  ;;  %vm12495_vm4 = vmmov %vm12476_vm2 }
 0x47b   : > { %v5309_v42 = vpack.c.bf16 %v5195_v22, %v5196_v27  ;;  %v4379_v21 = vpop.f32.mrb[174].mxu0  ;;  %v10326_v8 = vsel %vm12480_vm5, %v4915_v16, %v4916_v53  ;;  %v7331_v27 = vld [vmem:[%s11627_s7 + $0x50] sm:$0xff]  }
 0x47c   : > { %12489 = vst [vmem:[#allocation145_spill] sm:$0xff] %v10326_v8  ;;  %v4666_v63 = vadd.f32 %v9704_v1, %v4377_v47  ;;  %v4380_v30 = vadd.f32 %v9935_v0, %v4379_v21  ;;  %v4381_v48 = vpop.f32.mrb[175].mxu0  ;;  %v5194_v7 = vsel %vm12490_vm7, %v5108_v18, %v5109_v6  ;;  %v10334_v55 = vsel %vm12491_vm6, %v4916_v53, %v4917_v50  ;;  %vm12497_vm7 = vmmov %vm12476_vm2 }
 0x47d   : > { %7140 = vmatmul.mubr.bf16.gmra.mrb[16].mxu0 %v5309_v42  ;;  %5596 = vmatpush1.bf16.msra.mxu1 %v7331_v27  ;;  %vm12498_vm6 = vmmov %vm12480_vm5 }
 0x47e   : > { %v10341_v22 = vmax.f32 %v4666_v63, 0.0  ;;  %v4669_v1 = vadd.f32 %v9708_v35, %v4380_v30  ;;  %5597 = vmatprep.subr.bf16.mxu1 %v12426_v46 }
 0x480   : > { %12492 = vst [vmem:[#allocation87_spill] sm:$0xff] %v10341_v22  ;;  %v4918_v48 = vrot.slane %v10341_v22, 7  ;;  %v5110_v47 = vrot.slane %v10341_v22, 1  ;;  %v10346_v18 = vmax.f32 %v4669_v1, 0.0 }
 0x481   : > { %v4384_v53 = vpop.f32.mrb[176].mxu0 }
 0x482   : > { %v4919_v40 = vrot.slane %v10346_v18, 7  ;;  %v5111_v42 = vrot.slane %v10346_v18, 1  ;;  %v4385_v21 = vadd.f32 %v9935_v0, %v4384_v53  ;;  %v4386_v63 = vpop.f32.mrb[177].mxu0  ;;  %v5193_v35 = vsel %vm12476_vm2, %v5109_v6, %v5110_v47 }
 0x483   : > { %v4387_v30 = vpop.f32.mrb[178].mxu0  ;;  %v5312_v27 = vpack.c.bf16 %v5193_v35, %v5194_v7  ;;  %v10358_v1 = vsel %vm12493_vm14, %v4917_v50, %v4918_v48  ;;  %v7332_v7 = vld [vmem:[%s11627_s7 + $0x58] sm:$0xff]   ;;  %vm12500_vm14 = vmmov %vm12480_vm5 }
 0x484   : > { %12494 = vst [vmem:[#allocation146_spill] sm:$0xff] %v10358_v1  ;;  %v5192_v39 = vsel %vm12495_vm4, %v5110_v47, %v5111_v42  ;;  %v4674_v8 = vadd.f32 %v9728_v13, %v4385_v21  ;;  %v4388_v53 = vadd.f32 %v9935_v0, %v4387_v30  ;;  %v4389_v63 = vpop.f32.mrb[179].mxu0  ;;  %v10366_v6 = vsel %vm12480_vm5, %v4918_v48, %v4919_v40  ;;  %vm12504_vm4 = vmmov %vm12480_vm5 }
 0x485   : > { %12496 = vst [vmem:[#allocation89_spill] sm:$0xff] %v10366_v6  ;;  %7143 = vmatprep.mubr.bf16.mxu0 %v5312_v27  ;;  %5598 = vmatpush1.bf16.msra.mxu1 %v7332_v7  ;;  %vm12506_vm5 = vmmov %vm12476_vm2 }
 0x486   : > { %v10373_v35 = vmax.f32 %v4674_v8, 0.0  ;;  %v4677_v47 = vadd.f32 %v9732_v62, %v4388_v53  ;;  %5599 = vmatprep.subr.bf16.mxu1 %v12426_v46 }
 0x488   : > { %v4920_v13 = vrot.slane %v10373_v35, 7  ;;  %v5112_v21 = vrot.slane %v10373_v35, 1  ;;  %v10378_v30 = vmax.f32 %v4677_v47, 0.0 }
 0x489   : > { %v4392_v48 = vpop.f32.mrb[180].mxu0 }
 0x48a   : > { %v5191_v27 = vsel %vm12497_vm7, %v5111_v42, %v5112_v21  ;;  %v4921_v63 = vrot.slane %v10378_v30, 7  ;;  %v5113_v8 = vrot.slane %v10378_v30, 1  ;;  %v4393_v50 = vadd.f32 %v9935_v0, %v4392_v48  ;;  %v4394_v62 = vpop.f32.mrb[181].mxu0  ;;  %vm12507_vm7 = vmmov %vm12504_vm4 }
 0x48b   : > { %v6699_v53 = vpack.c.bf16 %v5191_v27, %v5192_v39  ;;  %v4395_v7 = vpop.f32.mrb[182].mxu0  ;;  %v10390_v47 = vsel %vm12498_vm6, %v4919_v40, %v4920_v13  ;;  %v7333_v40 = vld [vmem:[%s11627_s7 + $0x60] sm:$0xff]   ;;  %vm12509_vm6 = vmmov %vm12476_vm2 }
 0x48c   : > { %12499 = vst [vmem:[#allocation147_spill] sm:$0xff] %v10390_v47  ;;  %v4682_v1 = vadd.f32 %v9726_v34, %v4393_v50  ;;  %v4396_v42 = vadd.f32 %v9935_v0, %v4395_v7  ;;  %v4397_v6 = vpop.f32.mrb[183].mxu0  ;;  %v5190_v22 = vsel %vm12476_vm2, %v5112_v21, %v5113_v8  ;;  %v10398_v48 = vsel %vm12500_vm14, %v4920_v13, %v4921_v63  ;;  %vm12511_vm14 = vmmov %vm12506_vm5 }
 0x48d   : > { %7144 = vmatmul.mubr.msk.bf16.gmra.mrb[20].mxu0 %vm7858_vm9, %v6699_v53  ;;  %5600 = vmatpush1.bf16.msra.mxu1 %v7333_v40  ;;  %vm12503_vm9 = vmmov %vm12476_vm2 }
 0x48e   : > { %v10407_v50 = vmax.f32 %v4682_v1, 0.0  ;;  %v4685_v6 = vadd.f32 %v9730_v37, %v4396_v42  ;;  %5601 = vmatprep.subr.bf16.mxu1 %v12426_v46  ;;  %vm12510_vm2 = vmmov %vm12504_vm4 }
 0x490   : > { %12502 = vst [vmem:[#allocation92_spill] sm:$0xff] %v10407_v50  ;;  %v4922_v21 = vrot.slane %v10407_v50, 7  ;;  %v5114_v13 = vrot.slane %v10407_v50, 1  ;;  %v10412_v27 = vmax.f32 %v4685_v6, 0.0 }
 0x491   : > { %v4400_v62 = vpop.f32.mrb[184].mxu0 }
 0x492   : > { %v4923_v53 = vrot.slane %v10412_v27, 7  ;;  %v5115_v7 = vrot.slane %v10412_v27, 1  ;;  %v4401_v39 = vadd.f32 %v9935_v0, %v4400_v62  ;;  %v4402_v1 = vpop.f32.mrb[185].mxu0  ;;  %v5189_v37 = vsel %vm12503_vm9, %v5113_v8, %v5114_v13  ;;  %vm12512_vm9 = vmmov %vm12510_vm2 }
 0x493   : > { %v4403_v42 = vpop.f32.mrb[186].mxu0  ;;  %v5318_v40 = vpack.c.bf16 %v5189_v37, %v5190_v22  ;;  %v10424_v6 = vsel %vm12504_vm4, %v4921_v63, %v4922_v21  ;;  %v7334_v22 = vld [vmem:[%s11627_s7 + $0x68] sm:$0xff]   ;;  %vm12513_vm4 = vmmov %vm12506_vm5 }
 0x494   : > { %12505 = vst [vmem:[#allocation148_spill] sm:$0xff] %v10424_v6  ;;  %v5188_v16 = vsel %vm12506_vm5, %v5114_v13, %v5115_v7  ;;  %v4690_v47 = vadd.f32 %v9748_v2, %v4401_v39  ;;  %v4404_v62 = vadd.f32 %v9935_v0, %v4403_v42  ;;  %v4405_v1 = vpop.f32.mrb[187].mxu0  ;;  %v10432_v8 = vsel %vm12507_vm7, %v4922_v21, %v4923_v53  ;;  %vm12514_vm5 = vmmov %vm12510_vm2 }
 0x495   : > { %12508 = vst [vmem:[#allocation94_spill] sm:$0xff] %v10432_v8  ;;  %7147 = vmatprep.mubr.bf16.mxu0 %v5318_v40  ;;  %5602 = vmatpush1.bf16.msra.mxu1 %v7334_v22  ;;  %vm12516_vm7 = vmmov %vm12513_vm4 }
 0x496   : > { %v10439_v37 = vmax.f32 %v4690_v47, 0.0  ;;  %v4693_v13 = vadd.f32 %v9752_v4, %v4404_v62  ;;  %5603 = vmatprep.subr.bf16.mxu1 %v12426_v46 }
 0x498   : > { %v4924_v2 = vrot.slane %v10439_v37, 7  ;;  %v5116_v39 = vrot.slane %v10439_v37, 1  ;;  %v10444_v42 = vmax.f32 %v4693_v13, 0.0 }
 0x499   : > { %v4408_v21 = vpop.f32.mrb[188].mxu0 }
 0x49a   : > { %v5187_v40 = vsel %vm12509_vm6, %v5115_v7, %v5116_v39  ;;  %v4925_v1 = vrot.slane %v10444_v42, 7  ;;  %v5117_v47 = vrot.slane %v10444_v42, 1  ;;  %v4409_v63 = vadd.f32 %v9935_v0, %v4408_v21  ;;  %v4410_v4 = vpop.f32.mrb[189].mxu0  ;;  %vm12517_vm6 = vmmov %vm12510_vm2 }
 0x49b   : > { %v5321_v62 = vpack.c.bf16 %v5187_v40, %v5188_v16  ;;  %v4411_v22 = vpop.f32.mrb[190].mxu0  ;;  %v10456_v13 = vsel %vm12510_vm2, %v4923_v53, %v4924_v2  ;;  %v7335_v16 = vld [vmem:[%s11627_s7 + $0x70] sm:$0xff]  }
 0x49c   : > { %v4698_v6 = vadd.f32 %v9746_v33, %v4409_v63  ;;  %v4412_v7 = vadd.f32 %v9935_v0, %v4411_v22  ;;  %v4413_v8 = vpop.f32.mrb[191].mxu0  ;;  %v5186_v50 = vsel %vm12511_vm14, %v5116_v39, %v5117_v47  ;;  %v10464_v21 = vsel %vm12512_vm9, %v4924_v2, %v4925_v1  ;;  %5604 = vmatpush1.bf16.msra.mxu1 %v7335_v16  ;;  %vm12521_vm14 = vmmov %vm12513_vm4 }
 0x49d   : > { %7148 = vmatmul.mubr.bf16.gmra.mrb[24].mxu0 %v5321_v62  ;;  %5605 = vmatprep.subr.bf16.mxu1 %v12426_v46  ;;  %vm12522_vm9 = vmmov %vm12510_vm2 }
 0x49e   : > { %v10471_v40 = vmax.f32 %v4698_v6, 0.0  ;;  %v4701_v33 = vadd.f32 %v9750_v9, %v4412_v7 }
 0x4a0   : > { %v4926_v8 = vrot.slane %v10471_v40, 7  ;;  %v5118_v63 = vrot.slane %v10471_v40, 1  ;;  %v10476_v39 = vmax.f32 %v4701_v33, 0.0 }
 0x4a1   : > { %v4416_v2 = vpop.f32.mrb[192].mxu0 }
 0x4a2   : > { %v4927_v4 = vrot.slane %v10476_v39, 7  ;;  %v5119_v62 = vrot.slane %v10476_v39, 1  ;;  %v4417_v22 = vadd.f32 %v9935_v0, %v4416_v2  ;;  %v4418_v6 = vpop.f32.mrb[193].mxu0  ;;  %v5185_v9 = vsel %vm12513_vm4, %v5117_v47, %v5118_v63 }
 0x4a3   : > { %v4419_v7 = vpop.f32.mrb[194].mxu0  ;;  %v5324_v16 = vpack.c.bf16 %v5185_v9, %v5186_v50  ;;  %v10488_v33 = vsel %vm12514_vm5, %v4925_v1, %v4926_v8  ;;  %v7336_v50 = vld [vmem:[%s11627_s7 + $0x78] sm:$0xff]   ;;  %vm12528_vm5 = vmmov %vm12513_vm4 }
 0x4a4   : > { %12515 = vst [vmem:[#allocation149_spill] sm:$0xff] %v10488_v33  ;;  %v5184_v46 = vsel %vm12516_vm7, %v5118_v63, %v5119_v62  ;;  %v4706_v34 = vadd.f32 %v9779_v59, %v4417_v22  ;;  %v4420_v2 = vadd.f32 %v9935_v0, %v4419_v7  ;;  %v4421_v6 = vpop.f32.mrb[195].mxu0  ;;  %v10496_v47 = vsel %vm12517_vm6, %v4926_v8, %v4927_v4  ;;  %vm12529_vm7 = vmmov %vm12510_vm2 }
 0x4a5   : > { %12518 = vst [vmem:[#allocation91_spill] sm:$0xff] %v10496_v47  ;;  %7151 = vmatprep.mubr.bf16.mxu0 %v5324_v16  ;;  %5606 = vmatpush1.bf16.msra.mxu1 %v7336_v50  ;;  %vm12530_vm6 = vmmov %vm12513_vm4 }
 0x4a6   : > { %v10503_v9 = vmax.f32 %v4706_v34, 0.0  ;;  %v4709_v63 = vadd.f32 %v9783_v54, %v4420_v2 }
 0x4a8   : > { %12519 = vst [vmem:[#allocation150_spill] sm:$0xff] %v10503_v9  ;;  %v4928_v59 = vrot.slane %v10503_v9, 7  ;;  %v5120_v22 = vrot.slane %v10503_v9, 1  ;;  %v10508_v7 = vmax.f32 %v4709_v63, 0.0 }
 0x4a9   : > { %v4424_v8 = vpop.f32.mrb[196].mxu0 }
 0x4aa   : > { %v10512_v16 = vsel %vm12510_vm2, %v4927_v4, %v4928_v59  ;;  %v5183_v6 = vsel %vm12521_vm14, %v5119_v62, %v5120_v22  ;;  %v4929_v34 = vrot.slane %v10508_v7, 7  ;;  %v5121_v1 = vrot.slane %v10508_v7, 1  ;;  %v4426_v54 = vpop.f32.mrb[197].mxu0  ;;  %vm12532_vm14 = vmmov %vm12513_vm4 }
 0x4ab   : > { %12520 = vst [vmem:[#allocation93_spill] sm:$0xff] %v10512_v16  ;;  %v6702_v2 = vpack.c.bf16 %v5183_v6, %v5184_v46  ;;  %v4425_v50 = vadd.f32 %v9935_v0, %v4424_v8  ;;  %v4427_v53 = vpop.f32.mrb[198].mxu0 }
 0x4ac   : > { %v10523_v33 = vsel %vm12522_vm9, %v4928_v59, %v4929_v34  ;;  %v4428_v4 = vadd.f32 %v9935_v0, %v4427_v53  ;;  %v4429_v47 = vpop.f32.mrb[199].mxu0  ;;  %v5182_v62 = vsel %vm12513_vm4, %v5120_v22, %v5121_v1  ;;  %vm12533_vm9 = vmmov %vm12510_vm2 }
 0x4ad   : > { %12523 = vst [vmem:[#allocation151_spill] sm:$0xff] %v10523_v33  ;;  %v4714_v46 = vadd.f32 %v9774_v28, %v4425_v50  ;;  %7152 = vmatmul.mubr.msk.bf16.gmra.mrb[28].mxu0 %vm7914_vm11, %v6702_v2  ;;  %vm12527_vm11 = vmmov %vm12510_vm2 }
 0x4ae   : > { %v4717_v6 = vadd.f32 %v9781_v10, %v4428_v4 }
 0x4af   : > { %v10534_v63 = vmax.f32 %v4714_v46, 0.0 }
 0x4b0   : > { %v10536_v59 = vmax.f32 %v4717_v6, 0.0 }
 0x4b1   : > { %12525 = vst [vmem:[#allocation97_spill] sm:$0xff] %v10534_v63  ;;  %v4930_v53 = vrot.slane %v10534_v63, 7  ;;  %v5122_v47 = vrot.slane %v10534_v63, 1  ;;  %v4432_v9 = vpop.f32.mrb[200].mxu0 }
 0x4b2   : > { %12526 = vst [vmem:[#allocation152_spill] sm:$0xff] %v10536_v59  ;;  %v4931_v22 = vrot.slane %v10536_v59, 7  ;;  %v5123_v54 = vrot.slane %v10536_v59, 1  ;;  %v4433_v28 = vadd.f32 %v9935_v0, %v4432_v9  ;;  %v4434_v50 = vpop.f32.mrb[201].mxu0 }
 0x4b3   : > { %v10547_v10 = vsel %vm12527_vm11, %v4929_v34, %v4930_v53  ;;  %v4435_v4 = vpop.f32.mrb[202].mxu0  ;;  %v5181_v46 = vsel %vm12528_vm5, %v5121_v1, %v5122_v47  ;;  %vm12537_vm11 = vmmov %vm12510_vm2 }
 0x4b4   : > { %v10553_v8 = vsel %vm12529_vm7, %v4930_v53, %v4931_v22  ;;  %v5180_v6 = vsel %vm12530_vm6, %v5122_v47, %v5123_v54  ;;  %v4722_v9 = vadd.f32 %v9811_v14, %v4433_v28  ;;  %v4436_v50 = vadd.f32 %v9935_v0, %v4435_v4  ;;  %v4437_v2 = vpop.f32.mrb[203].mxu0  ;;  %vm12539_vm5 = vmmov %vm12513_vm4 }
 0x4b5   : > { %v5330_v63 = vpack.c.bf16 %v5181_v46, %v5182_v62  ;;  %vm12540_vm7 = vmmov %vm12510_vm2 }
 0x4b6   : > { %v10561_v59 = vmax.f32 %v4722_v9, 0.0  ;;  %v4725_v1 = vadd.f32 %v9815_v38, %v4436_v50  ;;  %vm12542_vm6 = vmmov %vm12513_vm4 }
 0x4b7   : > { %7155 = vmatprep.mubr.bf16.mxu0 %v5330_v63 }
 0x4b8   : > { %v4932_v53 = vrot.slane %v10561_v59, 7  ;;  %v5124_v16 = vrot.slane %v10561_v59, 1  ;;  %v10566_v33 = vmax.f32 %v4725_v1, 0.0 }
 0x4b9   : > { %v4440_v47 = vpop.f32.mrb[204].mxu0 }
 0x4ba   : > { %v10570_v14 = vsel %vm12510_vm2, %v4931_v22, %v4932_v53  ;;  %v5179_v28 = vsel %vm12532_vm14, %v5123_v54, %v5124_v16  ;;  %v4933_v62 = vrot.slane %v10566_v33, 7  ;;  %v5125_v2 = vrot.slane %v10566_v33, 1  ;;  %v4442_v38 = vpop.f32.mrb[205].mxu0  ;;  %vm12546_vm14 = vmmov %vm12513_vm4 }
 0x4bb   : > { %12531 = vst [vmem:[#allocation99_spill] sm:$0xff] %v10570_v14  ;;  %v5333_v63 = vpack.c.bf16 %v5179_v28, %v5180_v6  ;;  %v4441_v4 = vadd.f32 %v9935_v0, %v4440_v47  ;;  %v4443_v46 = vpop.f32.mrb[206].mxu0 }
 0x4bc   : > { %v10581_v50 = vsel %vm12533_vm9, %v4932_v53, %v4933_v62  ;;  %v4444_v22 = vadd.f32 %v9935_v0, %v4443_v46  ;;  %v4445_v1 = vpop.f32.mrb[207].mxu0  ;;  %v5178_v54 = vsel %vm12513_vm4, %v5124_v16, %v5125_v2  ;;  %vm12547_vm9 = vmmov %vm12510_vm2 }
 0x4bd   : > { %12534 = vst [vmem:[#allocation153_spill] sm:$0xff] %v10581_v50  ;;  %v4730_v6 = vadd.f32 %v9806_v61, %v4441_v4  ;;  %7156 = vmatmul.mubr.bf16.gmra.mrb[32].mxu0 %v5333_v63 }
 0x4be   : > { %v4733_v47 = vadd.f32 %v9813_v3, %v4444_v22 }
 0x4bf   : > { %v10590_v28 = vmax.f32 %v4730_v6, 0.0 }
 0x4c0   : > { %v10592_v9 = vmax.f32 %v4733_v47, 0.0 }
 0x4c1   : > { %12535 = vst [vmem:[#allocation96_spill] sm:$0xff] %v10590_v28  ;;  %v4934_v53 = vrot.slane %v10590_v28, 7  ;;  %v5126_v46 = vrot.slane %v10590_v28, 1  ;;  %v4448_v1 = vpop.f32.mrb[208].mxu0 }
 0x4c2   : > { %12536 = vst [vmem:[#allocation154_spill] sm:$0xff] %v10592_v9  ;;  %v4935_v34 = vrot.slane %v10592_v9, 7  ;;  %v5127_v16 = vrot.slane %v10592_v9, 1  ;;  %v4449_v38 = vadd.f32 %v9935_v0, %v4448_v1  ;;  %v4450_v14 = vpop.f32.mrb[209].mxu0 }
 0x4c3   : > { %v10603_v3 = vsel %vm12537_vm11, %v4933_v62, %v4934_v53  ;;  %v4451_v63 = vpop.f32.mrb[210].mxu0  ;;  %v5177_v4 = vsel %vm12539_vm5, %v5125_v2, %v5126_v46  ;;  %v12551_v62 = vld [vmem:[#allocation113_spill] sm:$0xff]  ;;  %vm12556_vm11 = vmmov %vm12513_vm4 }
 0x4c4   : > { %12538 = vst [vmem:[#allocation98_spill] sm:$0xff] %v10603_v3  ;;  %v10609_v22 = vsel %vm12540_vm7, %v4934_v53, %v4935_v34  ;;  %v5176_v6 = vsel %vm12542_vm6, %v5126_v46, %v5127_v16  ;;  %v4738_v14 = vadd.f32 %v9836_v11, %v4449_v38  ;;  %v4452_v47 = vadd.f32 %v9935_v0, %v4451_v63  ;;  %v4453_v1 = vpop.f32.mrb[211].mxu0  ;;  %v10635_v63 = vld [vmem:[%s11626_s6] ss:$0 sm:$0xff]  ;;  %vm12557_vm5 = vmmov %vm12510_vm2 }
 0x4c5   : > { %12541 = vst [vmem:[#allocation155_spill] sm:$0xff] %v10609_v22  ;;  %v5336_v61 = vpack.c.bf16 %v5177_v4, %v5178_v54  ;;  %vm12559_vm7 = vmmov %vm12513_vm4 }
 0x4c6   : > { %v10617_v28 = vmax.f32 %v4738_v14, 0.0  ;;  %v4741_v2 = vadd.f32 %v9840_v43, %v4452_v47  ;;  %vm12564_vm6 = vmmov %vm12510_vm2 }
 0x4c7   : > { %7159 = vmatprep.mubr.bf16.mxu0 %v5336_v61 }
 0x4c8   : > { %12543 = vst [vmem:[#allocation101_spill] sm:$0xff] %v10617_v28  ;;  %v4936_v53 = vrot.slane %v10617_v28, 7  ;;  %v5128_v9 = vrot.slane %v10617_v28, 1  ;;  %v10622_v50 = vmax.f32 %v4741_v2, 0.0 }
 0x4c9   : > { %v4456_v46 = vpop.f32.mrb[212].mxu0 }
 0x4ca   : > { %12544 = vst [vmem:[#allocation156_spill] sm:$0xff] %v10622_v50  ;;  %v10626_v11 = vsel %vm12510_vm2, %v4935_v34, %v4936_v53  ;;  %v5175_v0 = vsel %vm12546_vm14, %v5127_v16, %v5128_v9  ;;  %v4937_v54 = vrot.slane %v10622_v50, 7  ;;  %v5129_v38 = vrot.slane %v10622_v50, 1  ;;  %v4458_v43 = vpop.f32.mrb[213].mxu0  ;;  %vm12567_vm14 = vmmov %vm12557_vm5 }
 0x4cb   : > { %12545 = vst [vmem:[#allocation103_spill] sm:$0xff] %v10626_v11  ;;  %v6705_v61 = vpack.c.bf16 %v5175_v0, %v5176_v6  ;;  %v4457_v4 = vadd.f32 %v10635_v63, %v4456_v46  ;;  %v4459_v14 = vpop.f32.mrb[214].mxu0  ;;  %v12549_v0 = vld [vmem:[#allocation112_spill] sm:$0xff] }
 0x4cc   : > { %v10642_v16 = vsel %vm12547_vm9, %v4936_v53, %v4937_v54  ;;  %v4460_v47 = vadd.f32 %v10635_v63, %v4459_v14  ;;  %v4461_v1 = vpop.f32.mrb[215].mxu0  ;;  %v5174_v6 = vsel %vm12513_vm4, %v5128_v9, %v5129_v38 }
 0x4cd   : > { %12548 = vst [vmem:[#allocation157_spill] sm:$0xff] %v10642_v16  ;;  %v4746_v43 = vadd.f32 %v12549_v0, %v4457_v4  ;;  %7160 = vmatmul.mubr.msk.bf16.gmra.mrb[36].mxu0 %vm7970_vm13, %v6705_v61  ;;  %vm12554_vm13 = vmmov %vm12510_vm2  ;;  %v12562_v16 = vld [vmem:[#allocation117_spill] sm:$0xff] }
 0x4ce   : > { %v4749_v34 = vadd.f32 %v12551_v62, %v4460_v47  ;;  %vm12566_vm2 = vmmov %vm12513_vm4 }
 0x4cf   : > { %v10653_v28 = vmax.f32 %v4746_v43, 0.0  ;;  %vm12569_vm9 = vmmov %vm12566_vm2 }
 0x4d0   : > { %v10655_v53 = vmax.f32 %v4749_v34, 0.0  ;;  %vm12574_vm4 = vmmov %vm12557_vm5 }
 0x4d1   : > { %12552 = vst [vmem:[#allocation100_spill] sm:$0xff] %v10653_v28  ;;  %v4938_v14 = vrot.slane %v10653_v28, 7  ;;  %v5130_v1 = vrot.slane %v10653_v28, 1  ;;  %v4464_v50 = vpop.f32.mrb[216].mxu0 }
 0x4d2   : > { %12553 = vst [vmem:[#allocation158_spill] sm:$0xff] %v10655_v53  ;;  %v4939_v9 = vrot.slane %v10655_v53, 7  ;;  %v5131_v2 = vrot.slane %v10655_v53, 1  ;;  %v4465_v4 = vadd.f32 %v10635_v63, %v4464_v50  ;;  %v4466_v0 = vpop.f32.mrb[217].mxu0  ;;  %v12560_v50 = vld [vmem:[#allocation114_spill] sm:$0xff] }
 0x4d3   : > { %v10666_v62 = vsel %vm12554_vm13, %v4937_v54, %v4938_v14  ;;  %v4467_v34 = vpop.f32.mrb[218].mxu0  ;;  %v5173_v47 = vsel %vm12556_vm11, %v5129_v38, %v5130_v1  ;;  %vm12576_vm13 = vmmov %vm12566_vm2 }
 0x4d4   : > { %12555 = vst [vmem:[#allocation159_spill] sm:$0xff] %v10666_v62  ;;  %v10672_v43 = vsel %vm12557_vm5, %v4938_v14, %v4939_v9  ;;  %v5172_v46 = vsel %vm12559_vm7, %v5130_v1, %v5131_v2  ;;  %v4754_v0 = vadd.f32 %v12560_v50, %v4465_v4  ;;  %v4468_v11 = vadd.f32 %v10635_v63, %v4467_v34  ;;  %v4469_v61 = vpop.f32.mrb[219].mxu0  ;;  %vm12577_vm11 = vmmov %vm12574_vm4 }
 0x4d5   : > { %12558 = vst [vmem:[#allocation105_spill] sm:$0xff] %v10672_v43  ;;  %v5342_v28 = vpack.c.bf16 %v5173_v47, %v5174_v6  ;;  %vm12579_vm5 = vmmov %vm12566_vm2 }
 0x4d6   : > { %v10680_v53 = vmax.f32 %v4754_v0, 0.0  ;;  %v4757_v38 = vadd.f32 %v12562_v16, %v4468_v11  ;;  %vm12584_vm7 = vmmov %vm12574_vm4 }
 0x4d7   : > { %7163 = vmatprep.mubr.bf16.mxu0 %v5342_v28 }
 0x4d8   : > { %12561 = vst [vmem:[#allocation102_spill] sm:$0xff] %v10680_v53  ;;  %v4940_v14 = vrot.slane %v10680_v53, 7  ;;  %v5132_v3 = vrot.slane %v10680_v53, 1  ;;  %v10685_v22 = vmax.f32 %v4757_v38, 0.0 }
 0x4d9   : > { %v4472_v1 = vpop.f32.mrb[220].mxu0 }
 0x4da   : > { %12563 = vst [vmem:[#allocation161_spill] sm:$0xff] %v10685_v22  ;;  %v10689_v4 = vsel %vm12564_vm6, %v4939_v9, %v4940_v14  ;;  %v5171_v61 = vsel %vm12566_vm2, %v5131_v2, %v5132_v3  ;;  %v4941_v6 = vrot.slane %v10685_v22, 7  ;;  %v5133_v34 = vrot.slane %v10685_v22, 1  ;;  %v4474_v11 = vpop.f32.mrb[221].mxu0  ;;  %vm12586_vm6 = vmmov %vm12566_vm2 }
 0x4db   : > { %12565 = vst [vmem:[#allocation160_spill] sm:$0xff] %v10689_v4  ;;  %v5345_v28 = vpack.c.bf16 %v5171_v61, %v5172_v46  ;;  %v4473_v16 = vadd.f32 %v10635_v63, %v4472_v1  ;;  %v4475_v47 = vpop.f32.mrb[222].mxu0  ;;  %v12570_v46 = vld [vmem:[#allocation115_spill] sm:$0xff]  ;;  %v12571_v1 = vld [vmem:[#allocation116_spill] sm:$0xff]  ;;  %vm12587_vm2 = vmmov %vm12574_vm4 }
 0x4dc   : > { %v10700_v0 = vsel %vm12567_vm14, %v4940_v14, %v4941_v6  ;;  %v4476_v9 = vadd.f32 %v10635_v63, %v4475_v47  ;;  %v4477_v38 = vpop.f32.mrb[223].mxu0  ;;  %v5170_v2 = vsel %vm12569_vm9, %v5132_v3, %v5133_v34  ;;  %vm12589_vm14 = vmmov %vm12579_vm5 }
 0x4dd   : > { %12568 = vst [vmem:[#allocation104_spill] sm:$0xff] %v10700_v0  ;;  %v4762_v61 = vadd.f32 %v12570_v46, %v4473_v16  ;;  %7164 = vmatmul.mubr.bf16.gmra.mrb[40].mxu0 %v5345_v28  ;;  %v12582_v0 = vld [vmem:[#allocation122_spill] sm:$0xff]  ;;  %vm12597_vm9 = vmmov %vm12579_vm5 }
 0x4de   : > { %v4765_v54 = vadd.f32 %v12571_v1, %v4476_v9  ;;  %v12580_v1 = vld [vmem:[#allocation118_spill] sm:$0xff] }
 0x4df   : > { %v10709_v62 = vmax.f32 %v4762_v61, 0.0 }
 0x4e0   : > { %v10711_v50 = vmax.f32 %v4765_v54, 0.0 }
 0x4e1   : > { %12572 = vst [vmem:[#allocation162_spill] sm:$0xff] %v10709_v62  ;;  %v4942_v14 = vrot.slane %v10709_v62, 7  ;;  %v5134_v47 = vrot.slane %v10709_v62, 1  ;;  %v4480_v38 = vpop.f32.mrb[224].mxu0 }
 0x4e2   : > { %12573 = vst [vmem:[#allocation106_spill] sm:$0xff] %v10711_v50  ;;  %v4943_v53 = vrot.slane %v10711_v50, 7  ;;  %v5135_v3 = vrot.slane %v10711_v50, 1  ;;  %v4481_v11 = vadd.f32 %v10635_v63, %v4480_v38  ;;  %v4482_v4 = vpop.f32.mrb[225].mxu0 }
 0x4e3   : > { %v10722_v16 = vsel %vm12574_vm4, %v4941_v6, %v4942_v14  ;;  %v4483_v54 = vpop.f32.mrb[226].mxu0  ;;  %v5169_v9 = vsel %vm12576_vm13, %v5133_v34, %v5134_v47  ;;  %v12592_v6 = vld [vmem:[#allocation120_spill] sm:$0xff]  ;;  %vm12598_vm4 = vmmov %vm12587_vm2 }
 0x4e4   : > { %12575 = vst [vmem:[#allocation163_spill] sm:$0xff] %v10722_v16  ;;  %v10728_v46 = vsel %vm12577_vm11, %v4942_v14, %v4943_v53  ;;  %v5168_v61 = vsel %vm12579_vm5, %v5134_v47, %v5135_v3  ;;  %v4770_v4 = vadd.f32 %v12580_v1, %v4481_v11  ;;  %v4484_v38 = vadd.f32 %v10635_v63, %v4483_v54  ;;  %v4485_v28 = vpop.f32.mrb[227].mxu0  ;;  %vm12600_vm13 = vmmov %vm12579_vm5 }
 0x4e5   : > { %12578 = vst [vmem:[#allocation108_spill] sm:$0xff] %v10728_v46  ;;  %v5348_v62 = vpack.c.bf16 %v5169_v9, %v5170_v2  ;;  %vm12605_vm11 = vmmov %vm12587_vm2 }
 0x4e6   : > { %v10736_v50 = vmax.f32 %v4770_v4, 0.0  ;;  %v4773_v34 = vadd.f32 %v12582_v0, %v4484_v38 }
 0x4e7   : > { %7167 = vmatprep.mubr.bf16.mxu0 %v5348_v62 }
 0x4e8   : > { %12581 = vst [vmem:[#allocation164_spill] sm:$0xff] %v10736_v50  ;;  %v4944_v14 = vrot.slane %v10736_v50, 7  ;;  %v5136_v22 = vrot.slane %v10736_v50, 1  ;;  %v10741_v43 = vmax.f32 %v4773_v34, 0.0 }
 0x4e9   : > { %v4488_v47 = vpop.f32.mrb[228].mxu0 }
 0x4ea   : > { %12583 = vst [vmem:[#allocation107_spill] sm:$0xff] %v10741_v43  ;;  %v10745_v11 = vsel %vm12584_vm7, %v4943_v53, %v4944_v14  ;;  %v5167_v28 = vsel %vm12586_vm6, %v5135_v3, %v5136_v22  ;;  %v4945_v2 = vrot.slane %v10741_v43, 7  ;;  %v5137_v54 = vrot.slane %v10741_v43, 1  ;;  %v4490_v0 = vpop.f32.mrb[229].mxu0  ;;  %vm12607_vm7 = vmmov %vm12587_vm2 }
 0x4eb   : > { %12585 = vst [vmem:[#allocation110_spill] sm:$0xff] %v10745_v11  ;;  %v6708_v62 = vpack.c.bf16 %v5167_v28, %v5168_v61  ;;  %v4489_v9 = vadd.f32 %v10635_v63, %v4488_v47  ;;  %v4491_v1 = vpop.f32.mrb[230].mxu0  ;;  %v12590_v61 = vld [vmem:[#allocation119_spill] sm:$0xff]  ;;  %vm12609_vm6 = vmmov %vm12579_vm5 }
 0x4ec   : > { %v10756_v38 = vsel %vm12587_vm2, %v4944_v14, %v4945_v2  ;;  %v4492_v53 = vadd.f32 %v10635_v63, %v4491_v1  ;;  %v4493_v34 = vpop.f32.mrb[231].mxu0  ;;  %v5166_v3 = vsel %vm12589_vm14, %v5136_v22, %v5137_v54  ;;  %vm12615_vm14 = vmmov %vm12579_vm5 }
 0x4ed   : > { %12588 = vst [vmem:[#allocation109_spill] sm:$0xff] %v10756_v38  ;;  %v4778_v28 = vadd.f32 %v12590_v61, %v4489_v9  ;;  %7168 = vmatmul.mubr.msk.bf16.gmra.mrb[44].mxu0 %vm8026_vm15, %v6708_v62  ;;  %vm12595_vm15 = vmmov %vm12587_vm2  ;;  %v12603_v38 = vld [vmem:[#allocation125_spill] sm:$0xff] }
 0x4ee   : > { %v4781_v4 = vadd.f32 %v12592_v6, %v4492_v53 }
 0x4ef   : > { %v10767_v50 = vmax.f32 %v4778_v28, 0.0 }
 0x4f0   : > { %v10769_v14 = vmax.f32 %v4781_v4, 0.0 }
 0x4f1   : > { %12593 = vst [vmem:[#allocation165_spill] sm:$0xff] %v10767_v50  ;;  %v4946_v1 = vrot.slane %v10767_v50, 7  ;;  %v5138_v34 = vrot.slane %v10767_v50, 1  ;;  %v4496_v43 = vpop.f32.mrb[232].mxu0 }
 0x4f2   : > { %12594 = vst [vmem:[#allocation17_spill] sm:$0xff] %v10769_v14  ;;  %v4947_v22 = vrot.slane %v10769_v14, 7  ;;  %v5139_v0 = vrot.slane %v10769_v14, 1  ;;  %v4497_v9 = vadd.f32 %v10635_v63, %v4496_v43  ;;  %v4498_v61 = vpop.f32.mrb[233].mxu0  ;;  %v12601_v43 = vld [vmem:[#allocation124_spill] sm:$0xff] }
 0x4f3   : > { %v10780_v6 = vsel %vm12595_vm15, %v4945_v2, %v4946_v1  ;;  %v4499_v4 = vpop.f32.mrb[234].mxu0  ;;  %v5165_v53 = vsel %vm12597_vm9, %v5137_v54, %v5138_v34  ;;  %vm12616_vm15 = vmmov %vm12587_vm2 }
 0x4f4   : > { %12596 = vst [vmem:[#allocation26_spill] sm:$0xff] %v10780_v6  ;;  %v10786_v28 = vsel %vm12598_vm4, %v4946_v1, %v4947_v22  ;;  %v5164_v47 = vsel %vm12600_vm13, %v5138_v34, %v5139_v0  ;;  %v4786_v61 = vadd.f32 %v12601_v43, %v4497_v9  ;;  %v4500_v11 = vadd.f32 %v10635_v63, %v4499_v4  ;;  %v4501_v62 = vpop.f32.mrb[235].mxu0  ;;  %vm12618_vm9 = vmmov %vm12579_vm5 }
 0x4f5   : > { %12599 = vst [vmem:[#allocation35_spill] sm:$0xff] %v10786_v28  ;;  %v5354_v50 = vpack.c.bf16 %v5165_v53, %v5166_v3  ;;  %vm12623_vm4 = vmmov %vm12587_vm2 }
 0x4f6   : > { %v10794_v14 = vmax.f32 %v4786_v61, 0.0  ;;  %v4789_v54 = vadd.f32 %v12603_v38, %v4500_v11  ;;  %vm12625_vm13 = vmmov %vm12579_vm5 }
 0x4f7   : > { %7171 = vmatprep.mubr.bf16.mxu0 %v5354_v50 }
 0x4f8   : > { %12602 = vst [vmem:[#allocation44_spill] sm:$0xff] %v10794_v14  ;;  %v4948_v1 = vrot.slane %v10794_v14, 7  ;;  %v5140_v16 = vrot.slane %v10794_v14, 1  ;;  %v10799_v46 = vmax.f32 %v4789_v54, 0.0 }
 0x4f9   : > { %v4504_v34 = vpop.f32.mrb[236].mxu0 }
 0x4fa   : > { %12604 = vst [vmem:[#allocation112_spill] sm:$0xff] %v10799_v46  ;;  %v10803_v9 = vsel %vm12605_vm11, %v4947_v22, %v4948_v1  ;;  %v5163_v62 = vsel %vm12579_vm5, %v5139_v0, %v5140_v16  ;;  %v4949_v3 = vrot.slane %v10799_v46, 7  ;;  %v5141_v4 = vrot.slane %v10799_v46, 1  ;;  %v4506_v11 = vpop.f32.mrb[237].mxu0  ;;  %vm12626_vm11 = vmmov %vm12587_vm2 }
 0x4fb   : > { %12606 = vst [vmem:[#allocation53_spill] sm:$0xff] %v10803_v9  ;;  %v5357_v50 = vpack.c.bf16 %v5163_v62, %v5164_v47  ;;  %v4505_v38 = vadd.f32 %v10635_v63, %v4504_v34  ;;  %v4507_v53 = vpop.f32.mrb[238].mxu0  ;;  %v12610_v47 = vld [vmem:[#allocation121_spill] sm:$0xff]  ;;  %v12611_v34 = vld [vmem:[#allocation123_spill] sm:$0xff] }
 0x4fc   : > { %v10814_v61 = vsel %vm12607_vm7, %v4948_v1, %v4949_v3  ;;  %v4508_v22 = vadd.f32 %v10635_v63, %v4507_v53  ;;  %v4509_v54 = vpop.f32.mrb[239].mxu0  ;;  %v5162_v0 = vsel %vm12609_vm6, %v5140_v16, %v5141_v4  ;;  %vm12635_vm7 = vmmov %vm12579_vm5 }
 0x4fd   : > { %12608 = vst [vmem:[#allocation113_spill] sm:$0xff] %v10814_v61  ;;  %v4794_v62 = vadd.f32 %v12610_v47, %v4505_v38  ;;  %7172 = vmatmul.mubr.bf16.gmra.mrb[48].mxu0 %v5357_v50  ;;  %v12621_v61 = vld [vmem:[#allocation130_spill] sm:$0xff] }
 0x4fe   : > { %v4797_v2 = vadd.f32 %v12611_v34, %v4508_v22  ;;  %v12619_v34 = vld [vmem:[#allocation126_spill] sm:$0xff] }
 0x4ff   : > { %v10823_v6 = vmax.f32 %v4794_v62, 0.0 }
 0x500   : > { %v10825_v43 = vmax.f32 %v4797_v2, 0.0 }
 0x501   : > { %12612 = vst [vmem:[#allocation114_spill] sm:$0xff] %v10823_v6  ;;  %v4950_v1 = vrot.slane %v10823_v6, 7  ;;  %v5142_v53 = vrot.slane %v10823_v6, 1  ;;  %v4512_v54 = vpop.f32.mrb[240].mxu0 }
 0x502   : > { %12613 = vst [vmem:[#allocation117_spill] sm:$0xff] %v10825_v43  ;;  %v4951_v14 = vrot.slane %v10825_v43, 7  ;;  %v5143_v16 = vrot.slane %v10825_v43, 1  ;;  %v4513_v11 = vadd.f32 %v10635_v63, %v4512_v54  ;;  %v4514_v9 = vpop.f32.mrb[241].mxu0 }
 0x503   : > { %v10836_v38 = vsel %vm12587_vm2, %v4949_v3, %v4950_v1  ;;  %v4515_v2 = vpop.f32.mrb[242].mxu0  ;;  %v5161_v22 = vsel %vm12615_vm14, %v5141_v4, %v5142_v53  ;;  %v12630_v3 = vld [vmem:[#allocation128_spill] sm:$0xff] }
 0x504   : > { %12614 = vst [vmem:[#allocation115_spill] sm:$0xff] %v10836_v38  ;;  %v10842_v47 = vsel %vm12616_vm15, %v4950_v1, %v4951_v14  ;;  %v5160_v62 = vsel %vm12618_vm9, %v5142_v53, %v5143_v16  ;;  %v4802_v9 = vadd.f32 %v12619_v34, %v4513_v11  ;;  %v4516_v54 = vadd.f32 %v10635_v63, %v4515_v2  ;;  %v4517_v50 = vpop.f32.mrb[243].mxu0 }
 0x505   : > { %12617 = vst [vmem:[#allocation116_spill] sm:$0xff] %v10842_v47  ;;  %v5360_v6 = vpack.c.bf16 %v5161_v22, %v5162_v0 }
 0x506   : > { %v10850_v43 = vmax.f32 %v4802_v9, 0.0  ;;  %v4805_v4 = vadd.f32 %v12621_v61, %v4516_v54 }
 0x507   : > { %7175 = vmatprep.mubr.bf16.mxu0 %v5360_v6 }
 0x508   : > { %12620 = vst [vmem:[#allocation118_spill] sm:$0xff] %v10850_v43  ;;  %v4952_v1 = vrot.slane %v10850_v43, 7  ;;  %v5144_v46 = vrot.slane %v10850_v43, 1  ;;  %v10855_v28 = vmax.f32 %v4805_v4, 0.0 }
 0x50a   : > { %12622 = vst [vmem:[#allocation122_spill] sm:$0xff] %v10855_v28  ;;  %v4520_v53 = vpop.f32.mrb[244].mxu0  ;;  %v10859_v11 = vsel %vm12623_vm4, %v4951_v14, %v4952_v1  ;;  %v5159_v50 = vsel %vm12625_vm13, %v5143_v16, %v5144_v46  ;;  %v4953_v0 = vrot.slane %v10855_v28, 7  ;;  %v5145_v2 = vrot.slane %v10855_v28, 1 }
 0x50b   : > { %12624 = vst [vmem:[#allocation119_spill] sm:$0xff] %v10859_v11  ;;  %v4522_v61 = vpop.f32.mrb[245].mxu0  ;;  %v6711_v6 = vpack.c.bf16 %v5159_v50, %v5160_v62  ;;  %v4521_v22 = vadd.f32 %v10635_v63, %v4520_v53  ;;  %v12628_v62 = vld [vmem:[#allocation127_spill] sm:$0xff] }
 0x50c   : > { %v4523_v34 = vpop.f32.mrb[246].mxu0  ;;  %v10870_v54 = vsel %vm12626_vm11, %v4952_v1, %v4953_v0  ;;  %v5158_v16 = vsel %vm12579_vm5, %v5144_v46, %v5145_v2 }
 0x50d   : > { %12627 = vst [vmem:[#allocation62_spill] sm:$0xff] %v10870_v54  ;;  %v4524_v14 = vadd.f32 %v10635_v63, %v4523_v34  ;;  %v4525_v4 = vpop.f32.mrb[247].mxu0  ;;  %v4810_v50 = vadd.f32 %v12628_v62, %v4521_v22  ;;  %7176 = vmatmul.mubr.msk.bf16.gmra.mrb[52].mxu0 %vm8082_vm1, %v6711_v6  ;;  %vm12633_vm1 = vmmov %vm12587_vm2  ;;  %v12641_v54 = vld [vmem:[#allocation134_spill] sm:$0xff] }
 0x50e   : > { %vm12636_vm6 = vmmov %vm12633_vm1 }
 0x50f   : > { %v4813_v9 = vadd.f32 %v12630_v3, %v4524_v14  ;;  %v10881_v43 = vmax.f32 %v4810_v50, 0.0  ;;  %vm12638_vm2 = vmmov %vm12579_vm5 }
 0x510   : > { %vm12643_vm14 = vmmov %vm12633_vm1 }
 0x511   : > { %12631 = vst [vmem:[#allocation120_spill] sm:$0xff] %v10881_v43  ;;  %v10883_v1 = vmax.f32 %v4813_v9, 0.0  ;;  %v4954_v34 = vrot.slane %v10881_v43, 7  ;;  %v5146_v4 = vrot.slane %v10881_v43, 1  ;;  %vm12645_vm15 = vmmov %vm12638_vm2 }
 0x512   : > { %vm12646_vm9 = vmmov %vm12633_vm1 }
 0x513   : > { %12632 = vst [vmem:[#allocation124_spill] sm:$0xff] %v10883_v1  ;;  %v4528_v28 = vpop.f32.mrb[248].mxu0  ;;  %v4955_v46 = vrot.slane %v10883_v1, 7  ;;  %v5147_v61 = vrot.slane %v10883_v1, 1  ;;  %v10894_v3 = vsel %vm12633_vm1, %v4953_v0, %v4954_v34  ;;  %v5157_v14 = vsel %vm12635_vm7, %v5145_v2, %v5146_v4  ;;  %vm12648_vm4 = vmmov %vm12638_vm2 }
 0x514   : > { %v4529_v22 = vadd.f32 %v10635_v63, %v4528_v28  ;;  %v4530_v62 = vpop.f32.mrb[249].mxu0  ;;  %12634 = vst [vmem:[#allocation125_spill] sm:$0xff] %v10894_v3  ;;  %v12639_v28 = vld [vmem:[#allocation131_spill] sm:$0xff]  ;;  %v5366_v43 = vpack.c.bf16 %v5157_v14, %v5158_v16  ;;  %vm12653_vm13 = vmmov %vm12633_vm1 }
 0x515   : > { %v4531_v9 = vpop.f32.mrb[250].mxu0  ;;  %v10900_v50 = vsel %vm12636_vm6, %v4954_v34, %v4955_v46  ;;  %v5156_v53 = vsel %vm12638_vm2, %v5146_v4, %v5147_v61  ;;  %vm12654_vm11 = vmmov %vm12638_vm2 }
 0x516   : > { %12637 = vst [vmem:[#allocation121_spill] sm:$0xff] %v10900_v50  ;;  %v4818_v62 = vadd.f32 %v12639_v28, %v4529_v22  ;;  %v4532_v11 = vadd.f32 %v10635_v63, %v4531_v9  ;;  %v4533_v6 = vpop.f32.mrb[251].mxu0  ;;  %7179 = vmatprep.mubr.bf16.mxu0 %v5366_v43  ;;  %vm12655_vm5 = vmmov %vm12633_vm1  ;;  %v12670_v50 = vld [vmem:[#allocation140_spill] sm:$0xff] }
 0x517   : > { %vm12658_vm7 = vmmov %vm12638_vm2 }
 0x518   : > { %v10908_v1 = vmax.f32 %v4818_v62, 0.0  ;;  %v4821_v2 = vadd.f32 %v12641_v54, %v4532_v11  ;;  %vm12660_vm6 = vmmov %vm12638_vm2 }
 0x51a   : > { %12640 = vst [vmem:[#allocation123_spill] sm:$0xff] %v10908_v1  ;;  %v4956_v34 = vrot.slane %v10908_v1, 7  ;;  %v5148_v38 = vrot.slane %v10908_v1, 1  ;;  %v10913_v47 = vmax.f32 %v4821_v2, 0.0 }
 0x51b   : > { %v4536_v4 = vpop.f32.mrb[252].mxu0 }
 0x51c   : > { %12642 = vst [vmem:[#allocation126_spill] sm:$0xff] %v10913_v47  ;;  %v10917_v22 = vsel %vm12643_vm14, %v4955_v46, %v4956_v34  ;;  %v5155_v6 = vsel %vm12645_vm15, %v5147_v61, %v5148_v38  ;;  %v4957_v16 = vrot.slane %v10913_v47, 7  ;;  %v5149_v9 = vrot.slane %v10913_v47, 1  ;;  %v4538_v11 = vpop.f32.mrb[253].mxu0 }
 0x51d   : > { %12644 = vst [vmem:[#allocation130_spill] sm:$0xff] %v10917_v22  ;;  %v5369_v43 = vpack.c.bf16 %v5155_v6, %v5156_v53  ;;  %v4537_v54 = vadd.f32 %v10635_v63, %v4536_v4  ;;  %v4539_v14 = vpop.f32.mrb[254].mxu0  ;;  %v12649_v53 = vld [vmem:[#allocation129_spill] sm:$0xff]  ;;  %v12650_v4 = vld [vmem:[#allocation132_spill] sm:$0xff] }
 0x51e   : > { %v10928_v62 = vsel %vm12646_vm9, %v4956_v34, %v4957_v16  ;;  %v4540_v46 = vadd.f32 %v10635_v63, %v4539_v14  ;;  %v4541_v2 = vpop.f32.mrb[255].mxu0  ;;  %v5154_v61 = vsel %vm12648_vm4, %v5148_v38, %v5149_v9 }
 0x51f   : > { %12647 = vst [vmem:[#allocation127_spill] sm:$0xff] %v10928_v62  ;;  %v4826_v6 = vadd.f32 %v12649_v53, %v4537_v54  ;;  %7180 = vmatmul.mubr.bf16.gmra.mrb[56].mxu0 %v5369_v43 }
 0x520   : > { %v4829_v0 = vadd.f32 %v12650_v4, %v4540_v46 }
 0x521   : > { %v10937_v3 = vmax.f32 %v4826_v6, 0.0  ;;  %v12656_v6 = vld [vmem:[#allocation133_spill] sm:$0xff] }
 0x522   : > { %v10939_v28 = vmax.f32 %v4829_v0, 0.0  ;;  %v12657_v4 = vrot.slane %v12656_v6, 7 }
 0x523   : > { %12651 = vst [vmem:[#allocation71_spill] sm:$0xff] %v10937_v3  ;;  %v4958_v34 = vrot.slane %v10937_v3, 7  ;;  %v5150_v63 = vrot.slane %v10937_v3, 1  ;;  %v10943_v14 = vpop.f32.mrb[0].mxu0 }
 0x524   : > { %12652 = vst [vmem:[#allocation128_spill] sm:$0xff] %v10939_v28  ;;  %v4959_v38 = vrot.slane %v10939_v28, 7  ;;  %v5151_v2 = vrot.slane %v10939_v28, 1  ;;  %v10947_v11 = vpop.f32.mrb[1].mxu0 }
 0x525   : > { %v10953_v54 = vsel %vm12653_vm13, %v4957_v16, %v4958_v34  ;;  %v10955_v0 = vpop.f32.mrb[2].mxu0  ;;  %v5153_v46 = vsel %vm12654_vm11, %v5149_v9, %v5150_v63  ;;  %v12659_v16 = vrot.slane %v12656_v6, 1  ;;  %v12665_v6 = vld [vmem:[#allocation137_spill] sm:$0xff] }
 0x526   : > { %v10961_v53 = vsel %vm12655_vm5, %v4958_v34, %v4959_v38  ;;  %v5023_v22 = vsel %vm12633_vm1, %v4959_v38, %v12657_v4  ;;  %v5152_v43 = vsel %vm12658_vm7, %v5150_v63, %v5151_v2  ;;  %v10973_v28 = vpop.f32.mrb[3].mxu0  ;;  %v12661_v34 = vld [vmem:[#allocation135_spill] sm:$0xff]  ;;  %v5372_v47 = vpack.c.bf16 %v5153_v46, %v5154_v61  ;;  %v12664_v63 = vld [vmem:[#allocation136_spill] sm:$0xff] }
 0x527   : > { %v5215_v3 = vsel %vm12660_vm6, %v5151_v2, %v12659_v16  ;;  %v6669_v62 = vpack.c.bf16 %v12661_v34, %v5023_v22  ;;  %v12666_v5 = vpack.c.bf16 %v12664_v63, %v12665_v6  ;;  %v12673_v63 = vpack.c.bf16 %v10059_v17, %v10051_v19 }
 0x528   : > { %v6714_v1 = vpack.c.bf16 %v5215_v3, %v5152_v43  ;;  %7183 = vmatprep.mubr.bf16.mxu0 %v5372_v47  ;;  %v12667_v3 = vld [vmem:[#allocation138_spill] sm:$0xff]  ;;  %v12668_v47 = vld [vmem:[#allocation139_spill] sm:$0xff]  ;;  %v12674_v6 = vpack.c.bf16 %v10077_v24, %v10066_v51  ;;  %v12677_v24 = vpack.c.bf16 %v10135_v52, %v10127_v23  ;;  %v12679_v17 = vpack.c.bf16 %v10150_v45, %v10142_v12 }
 0x529   : > { %6670 = vmatmul.mubr.msk.bf16.vlgmr.msra.gmra.mrb[192].mxu1 %vm8127_vm8, %v6669_v62  ;;  %v12669_v61 = vpack.c.bf16 %v12667_v3, %v12668_v47  ;;  %v12671_v62 = vld [vmem:[#allocation84_spill] sm:$0xff]  ;;  %v12676_v3 = vpack.c.bf16 %v10115_v20, %v10104_v29  ;;  %v12682_v29 = vpack.c.bf16 %v10184_v26, %v10177_v41  ;;  %v12685_v45 = vld [vmem:[#allocation83_spill] sm:$0xff]  ;;  %v12690_v26 = vpack.c.bf16 %v10248_v36, %v10243_v31  ;;  %v12696_v31 = vld [vmem:[#allocation90_spill] sm:$0xff] }
 0x52a   : > { %7184 = vmatmul.mubr.msk.bf16.gmra.mrb[60].mxu0 %vm8153_vm12, %v6714_v1  ;;  %5615 = vmatprep.mubr.bf16.mxu1 %v12666_v5  ;;  %v12672_v43 = vpack.c.bf16 %v12670_v50, %v12671_v62  ;;  %v12675_v5 = vpack.c.bf16 %v10097_v15, %v10089_v58  ;;  %v12680_v58 = vld [vmem:[#allocation86_spill] sm:$0xff]  ;;  %v12691_v51 = vld [vmem:[#allocation143_spill] sm:$0xff]  ;;  %v12697_v36 = vld [vmem:[#allocation144_spill] sm:$0xff] }
 0x52b   : > { %v10985_v2 = vpop.f32.mrb[4].mxu0  ;;  %v12681_v15 = vpack.c.bf16 %v10170_v32, %v12680_v58  ;;  %v12686_v32 = vpack.c.bf16 %v10216_v56, %v12685_v45  ;;  %v12692_v56 = vpack.c.bf16 %v10268_v44, %v12691_v51  ;;  %v12694_v58 = vld [vmem:[#allocation88_spill] sm:$0xff]  ;;  %v12705_v51 = vld [vmem:[#allocation146_spill] sm:$0xff] }
 0x52c   : > { %v10987_v4 = vpop.f32.mrb[5].mxu0 }
 0x52d   : > { %v10989_v16 = vpop.f32.mrb[6].mxu0 }
 0x52e   : > { %v10991_v22 = vpop.f32.mrb[7].mxu0 }
 0x531   : > { %5616 = vmatmul.mubr.bf16.gmra.mrb[196].mxu1 %v12669_v61 }
 0x532   : > { %5623 = vmatprep.mubr.bf16.mxu1 %v12672_v43  ;;  %v12683_v43 = vld [vmem:[#allocation141_spill] sm:$0xff] }
 0x533   : > { %v10999_v1 = vpop.f32.mrb[8].mxu0  ;;  %v12684_v12 = vpack.c.bf16 %v10204_v57, %v12683_v43  ;;  %v12699_v43 = vpack.c.bf16 %v10314_v60, %v10309_v49  ;;  %v12707_v60 = vpack.c.bf16 %v10378_v30, %v10373_v35  ;;  %v12713_v35 = vld [vmem:[#allocation94_spill] sm:$0xff]  ;;  %v12714_v30 = vld [vmem:[#allocation148_spill] sm:$0xff] }
 0x534   : > { %v11001_v46 = vpop.f32.mrb[9].mxu0 }
 0x535   : > { %v11003_v34 = vpop.f32.mrb[10].mxu0 }
 0x536   : > { %v11005_v38 = vpop.f32.mrb[11].mxu0 }
 0x539   : > { %5624 = vmatmul.mubr.bf16.gmra.mrb[200].mxu1 %v12673_v63  ;;  %v12687_v63 = vld [vmem:[#allocation85_spill] sm:$0xff] }
 0x53a   : > { %5631 = vmatprep.mubr.bf16.mxu1 %v12674_v6  ;;  %v12688_v6 = vld [vmem:[#allocation142_spill] sm:$0xff] }
 0x53b   : > { %v12689_v41 = vpack.c.bf16 %v12687_v63, %v12688_v6  ;;  %v12700_v63 = vld [vmem:[#allocation145_spill] sm:$0xff]  ;;  %v12702_v6 = vld [vmem:[#allocation87_spill] sm:$0xff] }
 0x540   : > { %v11019_v47 = vpop.f32.mrb[12].mxu0 }
 0x541   : > { %5632 = vmatmul.mubr.bf16.gmra.mrb[204].mxu1 %v12675_v5  ;;  %v11021_v61 = vpop.f32.mrb[13].mxu0 }
 0x542   : > { %5639 = vmatprep.mubr.bf16.mxu1 %v12676_v3  ;;  %v11023_v50 = vpop.f32.mrb[14].mxu0 }
 0x543   : > { %v11025_v19 = vpop.f32.mrb[15].mxu0 }
 0x549   : > { %6673 = vmatmul.mubr.msk.bf16.gmra.mrb[208].mxu1 %vm8185_vm0, %v12677_v24 }
 0x54a   : > { %5647 = vmatprep.mubr.bf16.mxu1 %v12679_v17 }
 0x550   : > { %v11041_v20 = vpop.f32.mrb[16].mxu0 }
 0x551   : > { %5648 = vmatmul.mubr.bf16.gmra.mrb[212].mxu1 %v12681_v15  ;;  %v11043_v62 = vpop.f32.mrb[17].mxu0  ;;  %v12695_v15 = vpack.c.bf16 %v10282_v25, %v12694_v58  ;;  %v12701_v25 = vpack.c.bf16 %v10334_v55, %v12700_v63  ;;  %v12716_v63 = vpack.c.bf16 %v10444_v42, %v10439_v37  ;;  %v12722_v42 = vld [vmem:[#allocation150_spill] sm:$0xff] }
 0x552   : > { %5655 = vmatprep.mubr.bf16.mxu1 %v12682_v29  ;;  %v11045_v23 = vpop.f32.mrb[18].mxu0  ;;  %v12698_v29 = vpack.c.bf16 %v12696_v31, %v12697_v36  ;;  %v12711_v36 = vld [vmem:[#allocation92_spill] sm:$0xff] }
 0x553   : > { %v11047_v52 = vpop.f32.mrb[19].mxu0 }
 0x559   : > { %5656 = vmatmul.mubr.bf16.gmra.mrb[216].mxu1 %v12684_v12 }
 0x55a   : > { %5663 = vmatprep.mubr.bf16.mxu1 %v12686_v32 }
 0x560   : > { %v11061_v5 = vpop.f32.mrb[20].mxu0 }
 0x561   : > { %5664 = vmatmul.mubr.bf16.gmra.mrb[220].mxu1 %v12689_v41  ;;  %v11063_v3 = vpop.f32.mrb[21].mxu0  ;;  %v12703_v41 = vpack.c.bf16 %v10346_v18, %v12702_v6 }
 0x562   : > { %5671 = vmatprep.mubr.bf16.mxu1 %v12690_v26  ;;  %v11065_v24 = vpop.f32.mrb[22].mxu0  ;;  %v12704_v26 = vld [vmem:[#allocation89_spill] sm:$0xff] }
 0x563   : > { %v11067_v57 = vpop.f32.mrb[23].mxu0  ;;  %v12706_v49 = vpack.c.bf16 %v12704_v26, %v12705_v51  ;;  %v12718_v26 = vpack.c.bf16 %v10476_v39, %v10471_v40  ;;  %v12719_v51 = vld [vmem:[#allocation91_spill] sm:$0xff]  ;;  %v12727_v39 = vld [vmem:[#allocation81_spill] sm:$0xff] }
 0x564   : > { %vm12728_vm8 = vnez %v12727_v39 }
 0x569   : > { %6676 = vmatmul.mubr.msk.bf16.gmra.mrb[224].mxu1 %vm8225_vm10, %v12692_v56 }
 0x56a   : > { %5679 = vmatprep.mubr.bf16.mxu1 %v12695_v15  ;;  %v12708_v15 = vld [vmem:[#allocation147_spill] sm:$0xff] }
 0x56b   : > { %v12709_v18 = vpack.c.bf16 %v10398_v48, %v12708_v15 }
 0x570   : > { %v11083_v12 = vpop.f32.mrb[24].mxu0 }
 0x571   : > { %5680 = vmatmul.mubr.bf16.gmra.mrb[228].mxu1 %v12698_v29  ;;  %v11085_v45 = vpop.f32.mrb[25].mxu0  ;;  %v12712_v29 = vpack.c.bf16 %v10412_v27, %v12711_v36  ;;  %v12717_v27 = vpack.c.bf16 %v10464_v21, %v10456_v13  ;;  %v12724_v21 = vld [vmem:[#allocation151_spill] sm:$0xff]  ;;  %v12725_v36 = vld [vmem:[#allocation93_spill] sm:$0xff] }
 0x572   : > { %5687 = vmatprep.mubr.bf16.mxu1 %v12699_v43  ;;  %v11087_v44 = vpop.f32.mrb[26].mxu0  ;;  %v12715_v43 = vpack.c.bf16 %v12713_v35, %v12714_v30  ;;  %v12726_v40 = vpack.c.bf16 %v12724_v21, %v12725_v36  ;;  %v12730_v35 = vld [vmem:[#allocation97_spill] sm:$0xff]  ;;  %v12738_v21 = vld [vmem:[#allocation96_spill] sm:$0xff]  ;;  %v12741_v36 = vld [vmem:[#allocation98_spill] sm:$0xff] }
 0x573   : > { %v11089_v32 = vpop.f32.mrb[27].mxu0 }
 0x579   : > { %5688 = vmatmul.mubr.bf16.gmra.mrb[232].mxu1 %v12701_v25 }
 0x57a   : > { %5695 = vmatprep.mubr.bf16.mxu1 %v12703_v41 }
 0x580   : > { %v11103_v56 = vpop.f32.mrb[28].mxu0 }
 0x581   : > { %5696 = vmatmul.mubr.bf16.gmra.mrb[236].mxu1 %v12706_v49  ;;  %v11105_v17 = vpop.f32.mrb[29].mxu0  ;;  %v12720_v49 = vld [vmem:[#allocation149_spill] sm:$0xff] }
 0x582   : > { %5703 = vmatprep.mubr.bf16.mxu1 %v12707_v60  ;;  %v11107_v58 = vpop.f32.mrb[30].mxu0  ;;  %v12721_v37 = vpack.c.bf16 %v12719_v51, %v12720_v49  ;;  %v12723_v60 = vpack.c.bf16 %v10508_v7, %v12722_v42  ;;  %v12732_v7 = vpack.c.bf16 %v10553_v8, %v10547_v10  ;;  %v12734_v49 = vld [vmem:[#allocation153_spill] sm:$0xff]  ;;  %v12740_v8 = vld [vmem:[#allocation155_spill] sm:$0xff] }
 0x583   : > { %v11109_v55 = vpop.f32.mrb[31].mxu0 }
 0x589   : > { %6679 = vmatmul.mubr.msk.bf16.gmra.mrb[240].mxu1 %vm8265_vm3, %v12709_v18 }
 0x58a   : > { %5711 = vmatprep.mubr.bf16.mxu1 %v12712_v29  ;;  %v12729_v29 = vld [vmem:[#allocation152_spill] sm:$0xff] }
 0x58b   : > { %v12731_v30 = vpack.c.bf16 %v12729_v29, %v12730_v35 }
 0x590   : > { %v11125_v25 = vpop.f32.mrb[32].mxu0 }
 0x591   : > { %5712 = vmatmul.mubr.bf16.gmra.mrb[244].mxu1 %v12715_v43  ;;  %v11127_v6 = vpop.f32.mrb[33].mxu0  ;;  %v12733_v43 = vpack.c.bf16 %v10566_v33, %v10561_v59  ;;  %v12742_v33 = vpack.c.bf16 %v12740_v8, %v12741_v36  ;;  %v12743_v59 = vld [vmem:[#allocation156_spill] sm:$0xff]  ;;  %v12757_v8 = vld [vmem:[#allocation105_spill] sm:$0xff]  ;;  %v12758_v36 = vld [vmem:[#allocation159_spill] sm:$0xff] }
 0x592   : > { %5719 = vmatprep.mubr.bf16.mxu1 %v12716_v63  ;;  %v11129_v48 = vpop.f32.mrb[34].mxu0 }
 0x593   : > { %v11131_v41 = vpop.f32.mrb[35].mxu0 }
 0x599   : > { %5720 = vmatmul.mubr.bf16.gmra.mrb[248].mxu1 %v12717_v27 }
 0x59a   : > { %5727 = vmatprep.mubr.bf16.mxu1 %v12718_v26 }
 0x5a0   : > { %v11145_v15 = vpop.f32.mrb[36].mxu0 }
 0x5a1   : > { %5728 = vmatmul.mubr.bf16.gmra.mrb[252].mxu1 %v12721_v37  ;;  %v11147_v18 = vpop.f32.mrb[37].mxu0  ;;  %v12735_v37 = vld [vmem:[#allocation99_spill] sm:$0xff] }
 0x5a2   : > { %5735 = vmatprep.mubr.bf16.mxu1 %v12723_v60  ;;  %v11149_v31 = vpop.f32.mrb[38].mxu0  ;;  %v12736_v42 = vpack.c.bf16 %v12734_v49, %v12735_v37  ;;  %v12737_v60 = vld [vmem:[#allocation154_spill] sm:$0xff]  ;;  %v12750_v49 = vld [vmem:[#allocation103_spill] sm:$0xff] }
 0x5a3   : > { %v11151_v13 = vpop.f32.mrb[39].mxu0  ;;  %v12739_v10 = vpack.c.bf16 %v12737_v60, %v12738_v21  ;;  %v12754_v60 = vld [vmem:[#allocation158_spill] sm:$0xff]  ;;  %v12755_v21 = vld [vmem:[#allocation100_spill] sm:$0xff] }
 0x5a9   : > { %6682 = vmatmul.mubr.msk.bf16.gmra.mrb[0].mxu1 %vm12728_vm8, %v12726_v40  ;;  %v12744_v40 = vld [vmem:[#allocation101_spill] sm:$0xff] }
 0x5aa   : > { %5743 = vmatprep.mubr.bf16.mxu1 %v12731_v30  ;;  %v12745_v39 = vpack.c.bf16 %v12743_v59, %v12744_v40  ;;  %v12760_v59 = vld [vmem:[#allocation161_spill] sm:$0xff]  ;;  %v12761_v40 = vld [vmem:[#allocation102_spill] sm:$0xff] }
 0x5b0   : > { %v11167_v63 = vpop.f32.mrb[40].mxu0 }
 0x5b1   : > { %5744 = vmatmul.mubr.bf16.gmra.mrb[4].mxu1 %v12732_v7  ;;  %v11169_v27 = vpop.f32.mrb[41].mxu0 }
 0x5b2   : > { %5751 = vmatprep.mubr.bf16.mxu1 %v12733_v43  ;;  %v11171_v26 = vpop.f32.mrb[42].mxu0  ;;  %v12749_v43 = vld [vmem:[#allocation157_spill] sm:$0xff] }
 0x5b3   : > { %v11173_v51 = vpop.f32.mrb[43].mxu0  ;;  %v12751_v37 = vpack.c.bf16 %v12749_v43, %v12750_v49 }
 0x5b9   : > { %5752 = vmatmul.mubr.bf16.gmra.mrb[8].mxu1 %v12736_v42  ;;  %v12752_v42 = vld [vmem:[#allocation82_spill] sm:$0xff] }
 0x5ba   : > { %5759 = vmatprep.mubr.bf16.mxu1 %v12739_v10  ;;  %vm12753_vm12 = vnez %v12752_v42  ;;  %v12756_v10 = vpack.c.bf16 %v12754_v60, %v12755_v21  ;;  %v12768_v42 = vld [vmem:[#allocation160_spill] sm:$0xff]  ;;  %v12770_v21 = vld [vmem:[#allocation106_spill] sm:$0xff] }
 0x5c0   : > { %v11187_v29 = vpop.f32.mrb[44].mxu0 }
 0x5c1   : > { %5760 = vmatmul.mubr.bf16.gmra.mrb[12].mxu1 %v12742_v33  ;;  %12746 = vst [vmem:[#allocation131_spill] sm:$0xff] %v11187_v29  ;;  %v11189_v35 = vpop.f32.mrb[45].mxu0  ;;  %v12759_v33 = vpack.c.bf16 %v12757_v8, %v12758_v36  ;;  %v12773_v36 = vld [vmem:[#allocation108_spill] sm:$0xff] }
 0x5c2   : > { %5767 = vmatprep.mubr.bf16.mxu1 %v12745_v39  ;;  %v11191_v30 = vpop.f32.mrb[46].mxu0  ;;  %v12762_v39 = vpack.c.bf16 %v12760_v59, %v12761_v40  ;;  %v12776_v40 = vld [vmem:[#allocation107_spill] sm:$0xff] }
 0x5c3   : > { %12747 = vst [vmem:[#allocation134_spill] sm:$0xff] %v11191_v30  ;;  %v11193_v7 = vpop.f32.mrb[47].mxu0 }
 0x5c4   : > { %12748 = vst [vmem:[#allocation129_spill] sm:$0xff] %v11193_v7  ;;  %v12816_v7 = vld [vmem:[#allocation6_spill] sm:$0xff] }
 0x5c9   : > { %6685 = vmatmul.mubr.msk.bf16.gmra.mrb[16].mxu1 %vm12753_vm12, %v12751_v37  ;;  %v12767_v37 = vld [vmem:[#allocation104_spill] sm:$0xff] }
 0x5ca   : > { %5775 = vmatprep.mubr.bf16.mxu1 %v12756_v10  ;;  %v12769_v60 = vpack.c.bf16 %v12767_v37, %v12768_v42  ;;  %v12771_v10 = vld [vmem:[#allocation162_spill] sm:$0xff]  ;;  %v12783_v42 = vld [vmem:[#allocation109_spill] sm:$0xff] }
 0x5cb   : > { %v12772_v8 = vpack.c.bf16 %v12770_v21, %v12771_v10  ;;  %v12786_v10 = vld [vmem:[#allocation95_spill] sm:$0xff] }
 0x5cc   : > { %vm12787_vm0 = vnez %v12786_v10  ;;  %v12802_v10 = vld [vmem:[#allocation53_spill] sm:$0xff] }
 0x5d0   : > { %v11209_v9 = vpop.f32.mrb[48].mxu0 }
 0x5d1   : > { %5776 = vmatmul.mubr.bf16.gmra.mrb[20].mxu1 %v12759_v33  ;;  %12763 = vst [vmem:[#allocation132_spill] sm:$0xff] %v11209_v9  ;;  %v11211_v30 = vpop.f32.mrb[49].mxu0  ;;  %v12774_v33 = vld [vmem:[#allocation163_spill] sm:$0xff] }
 0x5d2   : > { %5783 = vmatprep.mubr.bf16.mxu1 %v12762_v39  ;;  %12764 = vst [vmem:[#allocation133_spill] sm:$0xff] %v11211_v30  ;;  %v11213_v43 = vpop.f32.mrb[50].mxu0  ;;  %v12775_v59 = vpack.c.bf16 %v12773_v36, %v12774_v33  ;;  %v12777_v39 = vld [vmem:[#allocation164_spill] sm:$0xff]  ;;  %v12789_v36 = vld [vmem:[#allocation165_spill] sm:$0xff] }
 0x5d3   : > { %12765 = vst [vmem:[#allocation135_spill] sm:$0xff] %v11213_v43  ;;  %v11215_v49 = vpop.f32.mrb[51].mxu0  ;;  %v12778_v9 = vpack.c.bf16 %v12776_v40, %v12777_v39  ;;  %v12794_v39 = vld [vmem:[#allocation112_spill] sm:$0xff] }
 0x5d4   : > { %12766 = vst [vmem:[#allocation76_spill] sm:$0xff] %v11215_v49 }
 0x5d9   : > { %5784 = vmatmul.mubr.bf16.gmra.mrb[24].mxu1 %v12769_v60  ;;  %v12784_v60 = vld [vmem:[#allocation110_spill] sm:$0xff] }
 0x5da   : > { %5791 = vmatprep.mubr.bf16.mxu1 %v12772_v8  ;;  %v12785_v21 = vpack.c.bf16 %v12783_v42, %v12784_v60  ;;  %v12788_v8 = vld [vmem:[#allocation17_spill] sm:$0xff] }
 0x5db   : > { %v12790_v33 = vpack.c.bf16 %v12788_v8, %v12789_v36  ;;  %v12804_v36 = vld [vmem:[#allocation117_spill] sm:$0xff] }
 0x5e0   : > { %v11229_v43 = vpop.f32.mrb[52].mxu0 }
 0x5e1   : > { %5792 = vmatmul.mubr.bf16.gmra.mrb[28].mxu1 %v12775_v59  ;;  %12779 = vst [vmem:[#allocation77_spill] sm:$0xff] %v11229_v43  ;;  %v11231_v49 = vpop.f32.mrb[53].mxu0  ;;  %v12792_v59 = vld [vmem:[#allocation26_spill] sm:$0xff]  ;;  %v12795_v43 = vld [vmem:[#allocation44_spill] sm:$0xff] }
 0x5e2   : > { %5799 = vmatprep.mubr.bf16.mxu1 %v12778_v9  ;;  %12780 = vst [vmem:[#allocation136_spill] sm:$0xff] %v11231_v49  ;;  %v11233_v30 = vpop.f32.mrb[54].mxu0  ;;  %v12791_v9 = vld [vmem:[#allocation35_spill] sm:$0xff]  ;;  %v12796_v49 = vpack.c.bf16 %v12794_v39, %v12795_v43  ;;  %v11268_v43 = vld [vmem:[%s11628_s8] ss:$0 sm:$0xff] }
 0x5e3   : > { %12781 = vst [vmem:[#allocation137_spill] sm:$0xff] %v11233_v30  ;;  %v11235_v37 = vpop.f32.mrb[55].mxu0  ;;  %v12793_v40 = vpack.c.bf16 %v12791_v9, %v12792_v59 }
 0x5e4   : > { %12782 = vst [vmem:[#allocation138_spill] sm:$0xff] %v11235_v37 }
 0x5e9   : > { %6688 = vmatmul.mubr.msk.bf16.gmra.mrb[32].mxu1 %vm12787_vm0, %v12785_v21  ;;  %v12801_v21 = vld [vmem:[#allocation113_spill] sm:$0xff] }
 0x5ea   : > { %5807 = vmatprep.mubr.bf16.mxu1 %v12790_v33  ;;  %v12803_v8 = vpack.c.bf16 %v12801_v21, %v12802_v10  ;;  %v12805_v33 = vld [vmem:[#allocation114_spill] sm:$0xff] }
 0x5eb   : > { %v12806_v9 = vpack.c.bf16 %v12804_v36, %v12805_v33 }
 0x5f1   : > { %5808 = vmatmul.mubr.bf16.gmra.mrb[36].mxu1 %v12793_v40 }
 0x5f2   : > { %5815 = vmatprep.mubr.bf16.mxu1 %v12796_v49  ;;  %v11251_v30 = vpop.f32.mrb[56].mxu0 }
 0x5f3   : > { %12797 = vst [vmem:[#allocation139_spill] sm:$0xff] %v11251_v30  ;;  %v11253_v37 = vpop.f32.mrb[57].mxu0 }
 0x5f4   : > { %12798 = vst [vmem:[#allocation140_spill] sm:$0xff] %v11253_v37  ;;  %v11255_v42 = vpop.f32.mrb[58].mxu0  ;;  %v12814_v37 = vld [vmem:[#allocation118_spill] sm:$0xff] }
 0x5f5   : > { %12799 = vst [vmem:[#allocation84_spill] sm:$0xff] %v11255_v42  ;;  %v11257_v60 = vpop.f32.mrb[59].mxu0 }
 0x5f6   : > { %12800 = vst [vmem:[#allocation78_spill] sm:$0xff] %v11257_v60  ;;  %v12810_v60 = vld [vmem:[#allocation116_spill] sm:$0xff] }
 0x5f9   : > { %5816 = vmatmul.mubr.bf16.gmra.mrb[40].mxu1 %v12803_v8 }
 0x5fa   : > { %5823 = vmatprep.mubr.bf16.mxu1 %v12806_v9 }
 0x5fc   : > { %v5609_v49 = vpop.f32.mrb[192].mxu1 }
 0x5fd   : > { %v5610_v59 = vadd.f32 %v11268_v43, %v5609_v49  ;;  %v11272_v40 = vpop.f32.mrb[60].mxu0  ;;  %v5611_v39 = vpop.f32.mrb[193].mxu1 }
 0x5fe   : > { %12807 = vst [vmem:[#allocation86_spill] sm:$0xff] %v11272_v40  ;;  %v11274_v42 = vpop.f32.mrb[61].mxu0  ;;  %v5612_v21 = vpop.f32.mrb[194].mxu1  ;;  %v12811_v40 = vld [vmem:[#allocation115_spill] sm:$0xff] }
 0x5ff   : > { %12808 = vst [vmem:[#allocation141_spill] sm:$0xff] %v11274_v42  ;;  %v5899_v10 = vadd.f32 %v10947_v11, %v5610_v59  ;;  %v5613_v8 = vadd.f32 %v11268_v43, %v5612_v21  ;;  %v11280_v36 = vpop.f32.mrb[62].mxu0  ;;  %v5614_v33 = vpop.f32.mrb[195].mxu1  ;;  %v12812_v39 = vpack.c.bf16 %v12810_v60, %v12811_v40  ;;  %v12813_v42 = vld [vmem:[#allocation122_spill] sm:$0xff] }
 0x600   : > { %12809 = vst [vmem:[#allocation83_spill] sm:$0xff] %v11280_v36  ;;  %v11282_v9 = vpop.f32.mrb[63].mxu0  ;;  %v12815_v29 = vpack.c.bf16 %v12813_v42, %v12814_v37  ;;  %v12818_v33 = vld [vmem:[#allocation62_spill] sm:$0xff] }
 0x601   : > { %v6153_v30 = vmax.f32 %v5899_v10, 0.0  ;;  %v5902_v49 = vadd.f32 %v10973_v28, %v5613_v8  ;;  %5824 = vmatmul.mubr.bf16.gmra.mrb[44].mxu1 %v12812_v39  ;;  %v12817_v10 = vld [vmem:[#allocation7_spill] sm:$0xff] }
 0x602   : > { %5831 = vmatprep.mubr.bf16.mxu1 %v12815_v29 }
 0x603   : > { %v6217_v11 = vadd.f32 %v6153_v30, %v12816_v7  ;;  %v6154_v59 = vmax.f32 %v5902_v49, 0.0  ;;  %v12819_v49 = vld [vmem:[#allocation119_spill] sm:$0xff] }
 0x604   : > { %v5617_v21 = vpop.f32.mrb[196].mxu1  ;;  %v12820_v39 = vpack.c.bf16 %v12818_v33, %v12819_v49 }
 0x605   : > { %6281 = vst [vmem:[%s11292_s21] sm:$0xff] %v6217_v11  ;;  %v6218_v28 = vadd.f32 %v6154_v59, %v12817_v10  ;;  %v5618_v8 = vadd.f32 %v11268_v43, %v5617_v21  ;;  %v5619_v60 = vpop.f32.mrb[197].mxu1  ;;  %v12821_v11 = vld [vmem:[#allocation111_spill] sm:$0xff]  ;;  %v12823_v59 = vld [vmem:[#allocation124_spill] sm:$0xff] }
 0x606   : > { %v5620_v40 = vpop.f32.mrb[198].mxu1  ;;  %vm12822_vm10 = vnez %v12821_v11  ;;  %v12824_v21 = vld [vmem:[#allocation120_spill] sm:$0xff]  ;;  %v12829_v11 = vld [vmem:[#allocation125_spill] sm:$0xff] }
 0x607   : > { %6282 = vst [vmem:[%s11292_s21 + $0x8] sm:$0xff] %v6218_v28  ;;  %v5907_v29 = vadd.f32 %v10943_v14, %v5618_v8  ;;  %v5621_v30 = vadd.f32 %v11268_v43, %v5620_v40  ;;  %v5622_v7 = vpop.f32.mrb[199].mxu1  ;;  %v12825_v10 = vpack.c.bf16 %v12823_v59, %v12824_v21  ;;  %v12826_v28 = vld [vmem:[#allocation5_spill] sm:$0xff]  ;;  %v12827_v8 = vld [vmem:[#allocation8_spill] sm:$0xff]  ;;  %v12831_v21 = vld [vmem:[#allocation126_spill] sm:$0xff] }
 0x609   : > { %v6155_v37 = vmax.f32 %v5907_v29, 0.0  ;;  %v5910_v42 = vadd.f32 %v10955_v0, %v5621_v30  ;;  %6691 = vmatmul.mubr.msk.bf16.gmra.mrb[48].mxu1 %vm12822_vm10, %v12820_v39 }
 0x60a   : > { %5839 = vmatprep.mubr.bf16.mxu1 %v12825_v10 }
 0x60b   : > { %v6219_v60 = vadd.f32 %v6155_v37, %v12826_v28  ;;  %v6156_v36 = vmax.f32 %v5910_v42, 0.0  ;;  %v12828_v42 = vld [vmem:[#allocation121_spill] sm:$0xff]  ;;  %v12834_v28 = vld [vmem:[#allocation10_spill] sm:$0xff] }
 0x60c   : > { %v5625_v14 = vpop.f32.mrb[200].mxu1  ;;  %v12830_v59 = vpack.c.bf16 %v12828_v42, %v12829_v11  ;;  %v12837_v42 = vld [vmem:[#allocation130_spill] sm:$0xff] }
 0x60d   : > { %6283 = vst [vmem:[%s11292_s21 + $0x10] sm:$0xff] %v6219_v60  ;;  %v6220_v40 = vadd.f32 %v6156_v36, %v12827_v8  ;;  %v5626_v0 = vadd.f32 %v11268_v43, %v5625_v14  ;;  %v5627_v29 = vpop.f32.mrb[201].mxu1  ;;  %v12832_v36 = vld [vmem:[#allocation123_spill] sm:$0xff] }
 0x60e   : > { %v5628_v30 = vpop.f32.mrb[202].mxu1  ;;  %v12833_v10 = vpack.c.bf16 %v12831_v21, %v12832_v36  ;;  %v12840_v21 = vld [vmem:[#allocation71_spill] sm:$0xff] }
 0x60f   : > { %6284 = vst [vmem:[%s11292_s21 + $0x18] sm:$0xff] %v6220_v40  ;;  %v5915_v7 = vadd.f32 %v10987_v4, %v5626_v0  ;;  %v5629_v33 = vadd.f32 %v11268_v43, %v5628_v30  ;;  %v5630_v49 = vpop.f32.mrb[203].mxu1  ;;  %v12835_v4 = vld [vmem:[#allocation11_spill] sm:$0xff] }
 0x611   : > { %v6157_v39 = vmax.f32 %v5915_v7, 0.0  ;;  %v5918_v37 = vadd.f32 %v10991_v22, %v5629_v33  ;;  %5840 = vmatmul.mubr.bf16.gmra.mrb[52].mxu1 %v12830_v59  ;;  %v12839_v59 = vld [vmem:[#allocation128_spill] sm:$0xff] }
 0x612   : > { %5847 = vmatprep.mubr.bf16.mxu1 %v12833_v10  ;;  %v12841_v36 = vpack.c.bf16 %v12839_v59, %v12840_v21  ;;  %v12842_v10 = vld [vmem:[#allocation9_spill] sm:$0xff] }
 0x613   : > { %v6221_v60 = vadd.f32 %v6157_v39, %v12834_v28  ;;  %v6158_v14 = vmax.f32 %v5918_v37, 0.0  ;;  %v12836_v37 = vld [vmem:[#allocation127_spill] sm:$0xff] }
 0x614   : > { %v5633_v8 = vpop.f32.mrb[204].mxu1  ;;  %v12838_v11 = vpack.c.bf16 %v12836_v37, %v12837_v42 }
 0x615   : > { %6285 = vst [vmem:[%s11292_s21 + $0x20] sm:$0xff] %v6221_v60  ;;  %v6222_v40 = vadd.f32 %v6158_v14, %v12835_v4  ;;  %v5634_v0 = vadd.f32 %v11268_v43, %v5633_v8  ;;  %v5635_v29 = vpop.f32.mrb[205].mxu1 }
 0x616   : > { %v5636_v22 = vpop.f32.mrb[206].mxu1 }
 0x617   : > { %6286 = vst [vmem:[%s11292_s21 + $0x28] sm:$0xff] %v6222_v40  ;;  %v5923_v30 = vadd.f32 %v10985_v2, %v5634_v0  ;;  %v5637_v7 = vadd.f32 %v11268_v43, %v5636_v22  ;;  %v5638_v33 = vpop.f32.mrb[207].mxu1  ;;  %v12843_v2 = vld [vmem:[#allocation12_spill] sm:$0xff] }
 0x618   : > { %v12844_v33 = vpack.c.bf16 %v10961_v53, %v10953_v54 }
 0x619   : > { %v6159_v49 = vmax.f32 %v5923_v30, 0.0  ;;  %v5926_v39 = vadd.f32 %v10989_v16, %v5637_v7  ;;  %5848 = vmatmul.mubr.bf16.gmra.mrb[56].mxu1 %v12838_v11  ;;  %v12846_v11 = vld [vmem:[#allocation15_spill] sm:$0xff] }
 0x61a   : > { %5855 = vmatprep.mubr.bf16.mxu1 %v12841_v36 }
 0x61b   : > { %v6223_v28 = vadd.f32 %v6159_v49, %v12842_v10  ;;  %v6160_v60 = vmax.f32 %v5926_v39, 0.0  ;;  %v12845_v49 = vld [vmem:[#allocation14_spill] sm:$0xff] }
 0x61c   : > { %v5641_v14 = vpop.f32.mrb[208].mxu1 }
 0x61d   : > { %6287 = vst [vmem:[%s11292_s21 + $0x30] sm:$0xff] %v6223_v28  ;;  %v6224_v8 = vadd.f32 %v6160_v60, %v12843_v2  ;;  %v5642_v4 = vadd.f32 %v11268_v43, %v5641_v14  ;;  %v5643_v40 = vpop.f32.mrb[209].mxu1  ;;  %v12847_v60 = vld [vmem:[#allocation13_spill] sm:$0xff] }
 0x61e   : > { %v5644_v16 = vpop.f32.mrb[210].mxu1 }
 0x61f   : > { %6288 = vst [vmem:[%s11292_s21 + $0x38] sm:$0xff] %v6224_v8  ;;  %v5931_v0 = vadd.f32 %v11001_v46, %v5642_v4  ;;  %v5645_v29 = vadd.f32 %v11268_v43, %v5644_v16  ;;  %v5646_v22 = vpop.f32.mrb[211].mxu1  ;;  %v12848_v4 = vld [vmem:[#allocation16_spill] sm:$0xff] }
 0x621   : > { %v6161_v30 = vmax.f32 %v5931_v0, 0.0  ;;  %v5934_v7 = vadd.f32 %v11005_v38, %v5645_v29  ;;  %5856 = vmatmul.mubr.bf16.gmra.mrb[60].mxu1 %v12844_v33  ;;  %v12849_v33 = vld [vmem:[#allocation19_spill] sm:$0xff] }
 0x623   : > { %v6225_v39 = vadd.f32 %v6161_v30, %v12845_v49  ;;  %v6162_v37 = vmax.f32 %v5934_v7, 0.0 }
 0x624   : > { %v5649_v42 = vpop.f32.mrb[212].mxu1 }
 0x625   : > { %6289 = vst [vmem:[%s11292_s21 + $0x40] sm:$0xff] %v6225_v39  ;;  %v6226_v59 = vadd.f32 %v6162_v37, %v12846_v11  ;;  %v5650_v46 = vadd.f32 %v11268_v43, %v5649_v42  ;;  %v5651_v21 = vpop.f32.mrb[213].mxu1  ;;  %v12850_v42 = vld [vmem:[#allocation20_spill] sm:$0xff] }
 0x626   : > { %v5652_v36 = vpop.f32.mrb[214].mxu1 }
 0x627   : > { %6290 = vst [vmem:[%s11292_s21 + $0x48] sm:$0xff] %v6226_v59  ;;  %v5939_v38 = vadd.f32 %v10999_v1, %v5650_v46  ;;  %v5653_v10 = vadd.f32 %v11268_v43, %v5652_v36  ;;  %v5654_v54 = vpop.f32.mrb[215].mxu1 }
 0x628   : > { %v12851_v54 = vld [vmem:[#allocation18_spill] sm:$0xff] }
 0x629   : > { %v6163_v53 = vmax.f32 %v5939_v38, 0.0  ;;  %v5942_v28 = vadd.f32 %v11003_v34, %v5653_v10 }
 0x62b   : > { %v6227_v14 = vadd.f32 %v6163_v53, %v12847_v60  ;;  %v6164_v2 = vmax.f32 %v5942_v28, 0.0 }
 0x62c   : > { %v5657_v8 = vpop.f32.mrb[216].mxu1 }
 0x62d   : > { %6291 = vst [vmem:[%s11292_s21 + $0x50] sm:$0xff] %v6227_v14  ;;  %v6228_v40 = vadd.f32 %v6164_v2, %v12848_v4  ;;  %v5658_v16 = vadd.f32 %v11268_v43, %v5657_v8  ;;  %v5659_v0 = vpop.f32.mrb[217].mxu1  ;;  %v12852_v14 = vld [vmem:[#allocation21_spill] sm:$0xff] }
 0x62e   : > { %v5660_v29 = vpop.f32.mrb[218].mxu1 }
 0x62f   : > { %6292 = vst [vmem:[%s11292_s21 + $0x58] sm:$0xff] %v6228_v40  ;;  %v5947_v1 = vadd.f32 %v11021_v61, %v5658_v16  ;;  %v5661_v22 = vadd.f32 %v11268_v43, %v5660_v29  ;;  %v5662_v30 = vpop.f32.mrb[219].mxu1 }
 0x631   : > { %v6165_v34 = vmax.f32 %v5947_v1, 0.0  ;;  %v5950_v7 = vadd.f32 %v11025_v19, %v5661_v22  ;;  %v12853_v1 = vld [vmem:[#allocation23_spill] sm:$0xff] }
 0x633   : > { %v6229_v49 = vadd.f32 %v6165_v34, %v12849_v33  ;;  %v6166_v39 = vmax.f32 %v5950_v7, 0.0  ;;  %v12854_v7 = vld [vmem:[#allocation24_spill] sm:$0xff] }
 0x634   : > { %v5665_v37 = vpop.f32.mrb[220].mxu1 }
 0x635   : > { %6293 = vst [vmem:[%s11292_s21 + $0x60] sm:$0xff] %v6229_v49  ;;  %v6230_v11 = vadd.f32 %v6166_v39, %v12850_v42  ;;  %v5666_v59 = vadd.f32 %v11268_v43, %v5665_v37  ;;  %v5667_v46 = vpop.f32.mrb[221].mxu1 }
 0x636   : > { %v5668_v21 = vpop.f32.mrb[222].mxu1  ;;  %v12855_v46 = vld [vmem:[#allocation22_spill] sm:$0xff] }
 0x637   : > { %6294 = vst [vmem:[%s11292_s21 + $0x68] sm:$0xff] %v6230_v11  ;;  %v5955_v61 = vadd.f32 %v11019_v47, %v5666_v59  ;;  %v5669_v36 = vadd.f32 %v11268_v43, %v5668_v21  ;;  %v5670_v38 = vpop.f32.mrb[223].mxu1 }
 0x638   : > { %v12856_v38 = vld [vmem:[#allocation25_spill] sm:$0xff] }
 0x639   : > { %v6167_v19 = vmax.f32 %v5955_v61, 0.0  ;;  %v5958_v10 = vadd.f32 %v11023_v50, %v5669_v36 }
 0x63b   : > { %v6231_v53 = vadd.f32 %v6167_v19, %v12851_v54  ;;  %v6168_v28 = vmax.f32 %v5958_v10, 0.0 }
 0x63c   : > { %v5673_v60 = vpop.f32.mrb[224].mxu1 }
 0x63d   : > { %6295 = vst [vmem:[%s11292_s21 + $0x70] sm:$0xff] %v6231_v53  ;;  %v6232_v2 = vadd.f32 %v6168_v28, %v12852_v14  ;;  %v5674_v8 = vadd.f32 %v11268_v43, %v5673_v60  ;;  %v5675_v4 = vpop.f32.mrb[225].mxu1 }
 0x63e   : > { %v5676_v40 = vpop.f32.mrb[226].mxu1 }
 0x63f   : > { %6296 = vst [vmem:[%s11292_s21 + $0x78] sm:$0xff] %v6232_v2  ;;  %v5963_v47 = vadd.f32 %v11043_v62, %v5674_v8  ;;  %v5677_v16 = vadd.f32 %v11268_v43, %v5676_v40  ;;  %v5678_v0 = vpop.f32.mrb[227].mxu1  ;;  %v12857_v2 = vld [vmem:[#allocation28_spill] sm:$0xff] }
 0x641   : > { %v6169_v50 = vmax.f32 %v5963_v47, 0.0  ;;  %v5966_v29 = vadd.f32 %v11047_v52, %v5677_v16  ;;  %v12858_v47 = vld [vmem:[#allocation29_spill] sm:$0xff] }
 0x643   : > { %v6233_v22 = vadd.f32 %v6169_v50, %v12853_v1  ;;  %v6170_v30 = vmax.f32 %v5966_v29, 0.0 }
 0x644   : > { %v5681_v34 = vpop.f32.mrb[228].mxu1 }
 0x645   : > { %6297 = vst [vmem:[%s11292_s21 + $0x80] sm:$0xff] %v6233_v22  ;;  %v6234_v33 = vadd.f32 %v6170_v30, %v12854_v7  ;;  %v5682_v49 = vadd.f32 %v11268_v43, %v5681_v34  ;;  %v5683_v39 = vpop.f32.mrb[229].mxu1  ;;  %v12859_v34 = vld [vmem:[#allocation27_spill] sm:$0xff] }
 0x646   : > { %v5684_v37 = vpop.f32.mrb[230].mxu1  ;;  %v12860_v39 = vld [vmem:[#allocation30_spill] sm:$0xff] }
 0x647   : > { %6298 = vst [vmem:[%s11292_s21 + $0x88] sm:$0xff] %v6234_v33  ;;  %v5971_v62 = vadd.f32 %v11041_v20, %v5682_v49  ;;  %v5685_v42 = vadd.f32 %v11268_v43, %v5684_v37  ;;  %v5686_v11 = vpop.f32.mrb[231].mxu1 }
 0x649   : > { %v6171_v52 = vmax.f32 %v5971_v62, 0.0  ;;  %v5974_v59 = vadd.f32 %v11045_v23, %v5685_v42 }
 0x64b   : > { %v6235_v21 = vadd.f32 %v6171_v52, %v12855_v46  ;;  %v6172_v61 = vmax.f32 %v5974_v59, 0.0 }
 0x64c   : > { %v5689_v36 = vpop.f32.mrb[232].mxu1 }
 0x64d   : > { %6299 = vst [vmem:[%s11292_s21 + $0x90] sm:$0xff] %v6235_v21  ;;  %v6236_v19 = vadd.f32 %v6172_v61, %v12856_v38  ;;  %v5690_v10 = vadd.f32 %v11268_v43, %v5689_v36  ;;  %v5691_v54 = vpop.f32.mrb[233].mxu1  ;;  %v12861_v21 = vld [vmem:[#allocation32_spill] sm:$0xff] }
 0x64e   : > { %v5692_v53 = vpop.f32.mrb[234].mxu1 }
 0x64f   : > { %6300 = vst [vmem:[%s11292_s21 + $0x98] sm:$0xff] %v6236_v19  ;;  %v5979_v20 = vadd.f32 %v11063_v3, %v5690_v10  ;;  %v5693_v28 = vadd.f32 %v11268_v43, %v5692_v53  ;;  %v5694_v60 = vpop.f32.mrb[235].mxu1  ;;  %v12862_v19 = vld [vmem:[#allocation33_spill] sm:$0xff] }
 0x651   : > { %v6173_v23 = vmax.f32 %v5979_v20, 0.0  ;;  %v5982_v14 = vadd.f32 %v11067_v57, %v5693_v28 }
 0x653   : > { %v6237_v8 = vadd.f32 %v6173_v23, %v12857_v2  ;;  %v6174_v4 = vmax.f32 %v5982_v14, 0.0  ;;  %v12863_v14 = vld [vmem:[#allocation31_spill] sm:$0xff] }
 0x654   : > { %v5697_v40 = vpop.f32.mrb[236].mxu1 }
 0x655   : > { %6301 = vst [vmem:[%s11292_s21 + $0xa0] sm:$0xff] %v6237_v8  ;;  %v6238_v16 = vadd.f32 %v6174_v4, %v12858_v47  ;;  %v5698_v0 = vadd.f32 %v11268_v43, %v5697_v40  ;;  %v5699_v50 = vpop.f32.mrb[237].mxu1  ;;  %v12864_v40 = vld [vmem:[#allocation34_spill] sm:$0xff] }
 0x656   : > { %v5700_v29 = vpop.f32.mrb[238].mxu1 }
 0x657   : > { %6302 = vst [vmem:[%s11292_s21 + $0xa8] sm:$0xff] %v6238_v16  ;;  %v5987_v3 = vadd.f32 %v11061_v5, %v5698_v0  ;;  %v5701_v1 = vadd.f32 %v11268_v43, %v5700_v29  ;;  %v5702_v22 = vpop.f32.mrb[239].mxu1 }
 0x658   : > { %v12865_v22 = vld [vmem:[#allocation37_spill] sm:$0xff] }
 0x659   : > { %v6175_v57 = vmax.f32 %v5987_v3, 0.0  ;;  %v5990_v30 = vadd.f32 %v11065_v24, %v5701_v1 }
 0x65b   : > { %v6239_v7 = vadd.f32 %v6175_v57, %v12859_v34  ;;  %v6176_v33 = vmax.f32 %v5990_v30, 0.0 }
 0x65c   : > { %v5705_v49 = vpop.f32.mrb[240].mxu1 }
 0x65d   : > { %6303 = vst [vmem:[%s11292_s21 + $0xb0] sm:$0xff] %v6239_v7  ;;  %v6240_v37 = vadd.f32 %v6176_v33, %v12860_v39  ;;  %v5706_v62 = vadd.f32 %v11268_v43, %v5705_v49  ;;  %v5707_v42 = vpop.f32.mrb[241].mxu1  ;;  %v12866_v7 = vld [vmem:[#allocation38_spill] sm:$0xff] }
 0x65e   : > { %v5708_v11 = vpop.f32.mrb[242].mxu1 }
 0x65f   : > { %6304 = vst [vmem:[%s11292_s21 + $0xb8] sm:$0xff] %v6240_v37  ;;  %v5995_v5 = vadd.f32 %v11085_v45, %v5706_v62  ;;  %v5709_v52 = vadd.f32 %v11268_v43, %v5708_v11  ;;  %v5710_v59 = vpop.f32.mrb[243].mxu1 }
 0x661   : > { %v6177_v24 = vmax.f32 %v5995_v5, 0.0  ;;  %v5998_v46 = vadd.f32 %v11089_v32, %v5709_v52  ;;  %v12867_v5 = vld [vmem:[#allocation36_spill] sm:$0xff] }
 0x663   : > { %v6241_v61 = vadd.f32 %v6177_v24, %v12861_v21  ;;  %v6178_v36 = vmax.f32 %v5998_v46, 0.0  ;;  %v12868_v46 = vld [vmem:[#allocation39_spill] sm:$0xff] }
 0x664   : > { %v5713_v38 = vpop.f32.mrb[244].mxu1 }
 0x665   : > { %6305 = vst [vmem:[%s11292_s21 + $0xc0] sm:$0xff] %v6241_v61  ;;  %v6242_v10 = vadd.f32 %v6178_v36, %v12862_v19  ;;  %v5714_v54 = vadd.f32 %v11268_v43, %v5713_v38  ;;  %v5715_v53 = vpop.f32.mrb[245].mxu1 }
 0x666   : > { %v5716_v20 = vpop.f32.mrb[246].mxu1  ;;  %v12869_v53 = vld [vmem:[#allocation41_spill] sm:$0xff] }
 0x667   : > { %6306 = vst [vmem:[%s11292_s21 + $0xc8] sm:$0xff] %v6242_v10  ;;  %v6003_v45 = vadd.f32 %v11083_v12, %v5714_v54  ;;  %v5717_v28 = vadd.f32 %v11268_v43, %v5716_v20  ;;  %v5718_v60 = vpop.f32.mrb[247].mxu1 }
 0x668   : > { %v12870_v60 = vld [vmem:[#allocation42_spill] sm:$0xff] }
 0x669   : > { %v6179_v32 = vmax.f32 %v6003_v45, 0.0  ;;  %v6006_v23 = vadd.f32 %v11087_v44, %v5717_v28 }
 0x66b   : > { %v6243_v2 = vadd.f32 %v6179_v32, %v12863_v14  ;;  %v6180_v8 = vmax.f32 %v6006_v23, 0.0 }
 0x66c   : > { %v5721_v4 = vpop.f32.mrb[248].mxu1 }
 0x66d   : > { %6307 = vst [vmem:[%s11292_s21 + $0xd0] sm:$0xff] %v6243_v2  ;;  %v6244_v47 = vadd.f32 %v6180_v8, %v12864_v40  ;;  %v5722_v16 = vadd.f32 %v11268_v43, %v5721_v4  ;;  %v5723_v0 = vpop.f32.mrb[249].mxu1 }
 0x66e   : > { %v5724_v50 = vpop.f32.mrb[250].mxu1 }
 0x66f   : > { %6308 = vst [vmem:[%s11292_s21 + $0xd8] sm:$0xff] %v6244_v47  ;;  %v6011_v12 = vadd.f32 %v11105_v17, %v5722_v16  ;;  %v5725_v29 = vadd.f32 %v11268_v43, %v5724_v50  ;;  %v5726_v3 = vpop.f32.mrb[251].mxu1  ;;  %v12871_v47 = vld [vmem:[#allocation40_spill] sm:$0xff] }
 0x671   : > { %v6181_v44 = vmax.f32 %v6011_v12, 0.0  ;;  %v6014_v1 = vadd.f32 %v11109_v55, %v5725_v29  ;;  %v12872_v12 = vld [vmem:[#allocation43_spill] sm:$0xff] }
 0x673   : > { %v6245_v57 = vadd.f32 %v6181_v44, %v12865_v22  ;;  %v6182_v30 = vmax.f32 %v6014_v1, 0.0 }
 0x674   : > { %v5729_v34 = vpop.f32.mrb[252].mxu1 }
 0x675   : > { %6309 = vst [vmem:[%s11292_s21 + $0xe0] sm:$0xff] %v6245_v57  ;;  %v6246_v33 = vadd.f32 %v6182_v30, %v12866_v7  ;;  %v5730_v49 = vadd.f32 %v11268_v43, %v5729_v34  ;;  %v5731_v39 = vpop.f32.mrb[253].mxu1  ;;  %v12873_v34 = vld [vmem:[#allocation46_spill] sm:$0xff] }
 0x676   : > { %v5732_v37 = vpop.f32.mrb[254].mxu1  ;;  %v12874_v39 = vld [vmem:[#allocation47_spill] sm:$0xff] }
 0x677   : > { %6310 = vst [vmem:[%s11292_s21 + $0xe8] sm:$0xff] %v6246_v33  ;;  %v6019_v17 = vadd.f32 %v11103_v56, %v5730_v49  ;;  %v5733_v62 = vadd.f32 %v11268_v43, %v5732_v37  ;;  %v5734_v42 = vpop.f32.mrb[255].mxu1 }
 0x679   : > { %v6183_v55 = vmax.f32 %v6019_v17, 0.0  ;;  %v6022_v11 = vadd.f32 %v11107_v58, %v5733_v62 }
 0x67b   : > { %v6247_v52 = vadd.f32 %v6183_v55, %v12867_v5  ;;  %v6184_v59 = vmax.f32 %v6022_v11, 0.0 }
 0x67c   : > { %v5737_v24 = vpop.f32.mrb[0].mxu1 }
 0x67d   : > { %6311 = vst [vmem:[%s11292_s21 + $0xf0] sm:$0xff] %v6247_v52  ;;  %v6248_v21 = vadd.f32 %v6184_v59, %v12868_v46  ;;  %v5738_v61 = vadd.f32 %v11268_v43, %v5737_v24  ;;  %v5739_v36 = vpop.f32.mrb[1].mxu1  ;;  %v12875_v52 = vld [vmem:[#allocation45_spill] sm:$0xff] }
 0x67e   : > { %v5740_v38 = vpop.f32.mrb[2].mxu1 }
 0x67f   : > { %6312 = vst [vmem:[%s11292_s21 + $0xf8] sm:$0xff] %v6248_v21  ;;  %v6027_v56 = vadd.f32 %v11127_v6, %v5738_v61  ;;  %v5741_v19 = vadd.f32 %v11268_v43, %v5740_v38  ;;  %v5742_v10 = vpop.f32.mrb[3].mxu1  ;;  %v12876_v21 = vld [vmem:[#allocation48_spill] sm:$0xff] }
 0x681   : > { %v6185_v58 = vmax.f32 %v6027_v56, 0.0  ;;  %v6030_v54 = vadd.f32 %v11131_v41, %v5741_v19 }
 0x683   : > { %v6249_v20 = vadd.f32 %v6185_v58, %v12869_v53  ;;  %v6186_v45 = vmax.f32 %v6030_v54, 0.0  ;;  %v12877_v54 = vld [vmem:[#allocation50_spill] sm:$0xff] }
 0x684   : > { %v5745_v28 = vpop.f32.mrb[4].mxu1 }
 0x685   : > { %6313 = vst [vmem:[%s11292_s21 + $0x100] sm:$0xff] %v6249_v20  ;;  %v6250_v32 = vadd.f32 %v6186_v45, %v12870_v60  ;;  %v5746_v23 = vadd.f32 %v11268_v43, %v5745_v28  ;;  %v5747_v14 = vpop.f32.mrb[5].mxu1  ;;  %v12878_v28 = vld [vmem:[#allocation51_spill] sm:$0xff] }
 0x686   : > { %v5748_v2 = vpop.f32.mrb[6].mxu1 }
 0x687   : > { %6314 = vst [vmem:[%s11292_s21 + $0x108] sm:$0xff] %v6250_v32  ;;  %v6035_v6 = vadd.f32 %v11125_v25, %v5746_v23  ;;  %v5749_v8 = vadd.f32 %v11268_v43, %v5748_v2  ;;  %v5750_v4 = vpop.f32.mrb[7].mxu1 }
 0x688   : > { %v12879_v4 = vld [vmem:[#allocation49_spill] sm:$0xff] }
 0x689   : > { %v6187_v41 = vmax.f32 %v6035_v6, 0.0  ;;  %v6038_v40 = vadd.f32 %v11129_v48, %v5749_v8 }
 0x68b   : > { %v6251_v16 = vadd.f32 %v6187_v41, %v12871_v47  ;;  %v6188_v0 = vmax.f32 %v6038_v40, 0.0 }
 0x68c   : > { %v5753_v50 = vpop.f32.mrb[8].mxu1 }
 0x68d   : > { %6315 = vst [vmem:[%s11292_s21 + $0x110] sm:$0xff] %v6251_v16  ;;  %v6252_v29 = vadd.f32 %v6188_v0, %v12872_v12  ;;  %v5754_v3 = vadd.f32 %v11268_v43, %v5753_v50  ;;  %v5755_v44 = vpop.f32.mrb[9].mxu1  ;;  %v12880_v16 = vld [vmem:[#allocation52_spill] sm:$0xff] }
 0x68e   : > { %v5756_v1 = vpop.f32.mrb[10].mxu1 }
 0x68f   : > { %6316 = vst [vmem:[%s11292_s21 + $0x118] sm:$0xff] %v6252_v29  ;;  %v6043_v25 = vadd.f32 %v11147_v18, %v5754_v3  ;;  %v5757_v22 = vadd.f32 %v11268_v43, %v5756_v1  ;;  %v5758_v57 = vpop.f32.mrb[11].mxu1  ;;  %v12881_v1 = vld [vmem:[#allocation129_spill] sm:$0xff] }
 0x691   : > { %v6189_v48 = vmax.f32 %v6043_v25, 0.0  ;;  %v6046_v30 = vadd.f32 %v11151_v13, %v5757_v22  ;;  %v12882_v22 = vld [vmem:[#allocation55_spill] sm:$0xff] }
 0x693   : > { %v6253_v7 = vadd.f32 %v6189_v48, %v12873_v34  ;;  %v6190_v33 = vmax.f32 %v6046_v30, 0.0  ;;  %v12883_v34 = vld [vmem:[#allocation56_spill] sm:$0xff] }
 0x694   : > { %v5761_v49 = vpop.f32.mrb[12].mxu1 }
 0x695   : > { %6317 = vst [vmem:[%s11292_s21 + $0x120] sm:$0xff] %v6253_v7  ;;  %v6254_v37 = vadd.f32 %v6190_v33, %v12874_v39  ;;  %v5762_v17 = vadd.f32 %v11268_v43, %v5761_v49  ;;  %v5763_v62 = vpop.f32.mrb[13].mxu1 }
 0x696   : > { %v5764_v42 = vpop.f32.mrb[14].mxu1 }
 0x697   : > { %6318 = vst [vmem:[%s11292_s21 + $0x128] sm:$0xff] %v6254_v37  ;;  %v6051_v18 = vadd.f32 %v11145_v15, %v5762_v17  ;;  %v5765_v55 = vadd.f32 %v11268_v43, %v5764_v42  ;;  %v5766_v11 = vpop.f32.mrb[15].mxu1 }
 0x698   : > { %v12886_v11 = vld [vmem:[#allocation54_spill] sm:$0xff] }
 0x699   : > { %v6191_v13 = vmax.f32 %v6051_v18, 0.0  ;;  %v6054_v5 = vadd.f32 %v11149_v31, %v5765_v55  ;;  %v12885_v18 = vld [vmem:[#allocation134_spill] sm:$0xff] }
 0x69b   : > { %v6255_v59 = vadd.f32 %v6191_v13, %v12875_v52  ;;  %v6192_v24 = vmax.f32 %v6054_v5, 0.0 }
 0x69c   : > { %v5769_v46 = vpop.f32.mrb[16].mxu1 }
 0x69d   : > { %6319 = vst [vmem:[%s11292_s21 + $0x130] sm:$0xff] %v6255_v59  ;;  %v6256_v61 = vadd.f32 %v6192_v24, %v12876_v21  ;;  %v5770_v36 = vadd.f32 %v11268_v43, %v5769_v46  ;;  %v5771_v38 = vpop.f32.mrb[17].mxu1  ;;  %v12887_v59 = vld [vmem:[#allocation57_spill] sm:$0xff] }
 0x69e   : > { %v5772_v56 = vpop.f32.mrb[18].mxu1 }
 0x69f   : > { %6320 = vst [vmem:[%s11292_s21 + $0x138] sm:$0xff] %v6256_v61  ;;  %v6059_v15 = vadd.f32 %v11169_v27, %v5770_v36  ;;  %v5773_v19 = vadd.f32 %v11268_v43, %v5772_v56  ;;  %v5774_v10 = vpop.f32.mrb[19].mxu1  ;;  %v12888_v36 = vld [vmem:[#allocation133_spill] sm:$0xff] }
 0x6a0   : > { %v12889_v10 = vld [vmem:[#allocation76_spill] sm:$0xff] }
 0x6a1   : > { %v6193_v31 = vmax.f32 %v6059_v15, 0.0  ;;  %v6062_v58 = vadd.f32 %v11173_v51, %v5773_v19 }
 0x6a3   : > { %v6257_v53 = vadd.f32 %v6193_v31, %v12877_v54  ;;  %v6194_v20 = vmax.f32 %v6062_v58, 0.0  ;;  %v12890_v58 = vld [vmem:[#allocation59_spill] sm:$0xff] }
 0x6a4   : > { %v5777_v45 = vpop.f32.mrb[20].mxu1 }
 0x6a5   : > { %6321 = vst [vmem:[%s11292_s21 + $0x140] sm:$0xff] %v6257_v53  ;;  %v6258_v60 = vadd.f32 %v6194_v20, %v12878_v28  ;;  %v5778_v32 = vadd.f32 %v11268_v43, %v5777_v45  ;;  %v5779_v23 = vpop.f32.mrb[21].mxu1  ;;  %v12891_v45 = vld [vmem:[#allocation60_spill] sm:$0xff] }
 0x6a6   : > { %v5780_v14 = vpop.f32.mrb[22].mxu1 }
 0x6a7   : > { %6322 = vst [vmem:[%s11292_s21 + $0x148] sm:$0xff] %v6258_v60  ;;  %v6067_v27 = vadd.f32 %v11167_v63, %v5778_v32  ;;  %v5781_v2 = vadd.f32 %v11268_v43, %v5780_v14  ;;  %v5782_v6 = vpop.f32.mrb[23].mxu1  ;;  %v12892_v14 = vld [vmem:[#allocation132_spill] sm:$0xff] }
 0x6a9   : > { %v6195_v51 = vmax.f32 %v6067_v27, 0.0  ;;  %v6070_v8 = vadd.f32 %v11171_v26, %v5781_v2 }
 0x6ab   : > { %v6259_v41 = vadd.f32 %v6195_v51, %v12879_v4  ;;  %v6196_v40 = vmax.f32 %v6070_v8, 0.0  ;;  %v12893_v8 = vld [vmem:[#allocation135_spill] sm:$0xff] }
 0x6ac   : > { %v5785_v47 = vpop.f32.mrb[24].mxu1 }
 0x6ad   : > { %6323 = vst [vmem:[%s11292_s21 + $0x150] sm:$0xff] %v6259_v41  ;;  %v6260_v0 = vadd.f32 %v6196_v40, %v12880_v16  ;;  %v5786_v50 = vadd.f32 %v11268_v43, %v5785_v47  ;;  %v5787_v12 = vpop.f32.mrb[25].mxu1  ;;  %v12894_v41 = vld [vmem:[#allocation58_spill] sm:$0xff] }
 0x6ae   : > { %v5788_v29 = vpop.f32.mrb[26].mxu1 }
 0x6af   : > { %6324 = vst [vmem:[%s11292_s21 + $0x158] sm:$0xff] %v6260_v0  ;;  %v6075_v63 = vadd.f32 %v11189_v35, %v5786_v50  ;;  %v5789_v3 = vadd.f32 %v11268_v43, %v5788_v29  ;;  %v5790_v44 = vpop.f32.mrb[27].mxu1  ;;  %v12884_v35 = vld [vmem:[#allocation131_spill] sm:$0xff]  ;;  %v12895_v0 = vld [vmem:[#allocation61_spill] sm:$0xff] }
 0x6b1   : > { %v6197_v26 = vmax.f32 %v6075_v63, 0.0  ;;  %v6078_v25 = vadd.f32 %v12881_v1, %v5789_v3  ;;  %v12896_v3 = vld [vmem:[#allocation136_spill] sm:$0xff] }
 0x6b3   : > { %v6261_v57 = vadd.f32 %v6197_v26, %v12882_v22  ;;  %v6198_v48 = vmax.f32 %v6078_v25, 0.0  ;;  %v12897_v22 = vld [vmem:[#allocation138_spill] sm:$0xff] }
 0x6b4   : > { %v5793_v30 = vpop.f32.mrb[28].mxu1 }
 0x6b5   : > { %6325 = vst [vmem:[%s11292_s21 + $0x160] sm:$0xff] %v6261_v57  ;;  %v6262_v7 = vadd.f32 %v6198_v48, %v12883_v34  ;;  %v5794_v33 = vadd.f32 %v11268_v43, %v5793_v30  ;;  %v5795_v49 = vpop.f32.mrb[29].mxu1  ;;  %v12898_v48 = vld [vmem:[#allocation64_spill] sm:$0xff] }
 0x6b6   : > { %v5796_v39 = vpop.f32.mrb[30].mxu1 }
 0x6b7   : > { %6326 = vst [vmem:[%s11292_s21 + $0x168] sm:$0xff] %v6262_v7  ;;  %v6083_v37 = vadd.f32 %v12884_v35, %v5794_v33  ;;  %v5797_v17 = vadd.f32 %v11268_v43, %v5796_v39  ;;  %v5798_v62 = vpop.f32.mrb[31].mxu1  ;;  %v12899_v33 = vld [vmem:[#allocation65_spill] sm:$0xff] }
 0x6b9   : > { %v6199_v42 = vmax.f32 %v6083_v37, 0.0  ;;  %v6086_v55 = vadd.f32 %v12885_v18, %v5797_v17  ;;  %v12900_v17 = vld [vmem:[#allocation77_spill] sm:$0xff] }
 0x6bb   : > { %v6263_v13 = vadd.f32 %v6199_v42, %v12886_v11  ;;  %v6200_v5 = vmax.f32 %v6086_v55, 0.0  ;;  %v12901_v11 = vld [vmem:[#allocation137_spill] sm:$0xff] }
 0x6bc   : > { %v5801_v52 = vpop.f32.mrb[32].mxu1 }
 0x6bd   : > { %6327 = vst [vmem:[%s11292_s21 + $0x170] sm:$0xff] %v6263_v13  ;;  %v6264_v24 = vadd.f32 %v6200_v5, %v12887_v59  ;;  %v5802_v46 = vadd.f32 %v11268_v43, %v5801_v52  ;;  %v5803_v21 = vpop.f32.mrb[33].mxu1  ;;  %v12902_v5 = vld [vmem:[#allocation63_spill] sm:$0xff] }
 0x6be   : > { %v5804_v61 = vpop.f32.mrb[34].mxu1 }
 0x6bf   : > { %6328 = vst [vmem:[%s11292_s21 + $0x178] sm:$0xff] %v6264_v24  ;;  %v6091_v38 = vadd.f32 %v12888_v36, %v5802_v46  ;;  %v5805_v56 = vadd.f32 %v11268_v43, %v5804_v61  ;;  %v5806_v15 = vpop.f32.mrb[35].mxu1  ;;  %v12903_v46 = vld [vmem:[#allocation66_spill] sm:$0xff] }
 0x6c1   : > { %v6201_v19 = vmax.f32 %v6091_v38, 0.0  ;;  %v6094_v31 = vadd.f32 %v12889_v10, %v5805_v56  ;;  %v12904_v56 = vld [vmem:[#allocation140_spill] sm:$0xff] }
 0x6c3   : > { %v6265_v54 = vadd.f32 %v6201_v19, %v12890_v58  ;;  %v6202_v53 = vmax.f32 %v6094_v31, 0.0  ;;  %v12905_v58 = vld [vmem:[#allocation78_spill] sm:$0xff] }
 0x6c4   : > { %v5809_v20 = vpop.f32.mrb[36].mxu1 }
 0x6c5   : > { %6329 = vst [vmem:[%s11292_s21 + $0x180] sm:$0xff] %v6265_v54  ;;  %v6266_v28 = vadd.f32 %v6202_v53, %v12891_v45  ;;  %v5810_v60 = vadd.f32 %v11268_v43, %v5809_v20  ;;  %v5811_v32 = vpop.f32.mrb[37].mxu1  ;;  %v12906_v53 = vld [vmem:[#allocation68_spill] sm:$0xff] }
 0x6c6   : > { %v5812_v23 = vpop.f32.mrb[38].mxu1 }
 0x6c7   : > { %6330 = vst [vmem:[%s11292_s21 + $0x188] sm:$0xff] %v6266_v28  ;;  %v6099_v27 = vadd.f32 %v12892_v14, %v5810_v60  ;;  %v5813_v2 = vadd.f32 %v11268_v43, %v5812_v23  ;;  %v5814_v6 = vpop.f32.mrb[39].mxu1  ;;  %v12907_v60 = vld [vmem:[#allocation69_spill] sm:$0xff] }
 0x6c9   : > { %v6203_v51 = vmax.f32 %v6099_v27, 0.0  ;;  %v6102_v4 = vadd.f32 %v12893_v8, %v5813_v2  ;;  %v12908_v2 = vld [vmem:[#allocation139_spill] sm:$0xff] }
 0x6cb   : > { %v6267_v40 = vadd.f32 %v6203_v51, %v12894_v41  ;;  %v6204_v47 = vmax.f32 %v6102_v4, 0.0  ;;  %v12909_v41 = vld [vmem:[#allocation84_spill] sm:$0xff] }
 0x6cc   : > { %v5817_v16 = vpop.f32.mrb[40].mxu1 }
 0x6cd   : > { %6331 = vst [vmem:[%s11292_s21 + $0x190] sm:$0xff] %v6267_v40  ;;  %v6268_v50 = vadd.f32 %v6204_v47, %v12895_v0  ;;  %v5818_v12 = vadd.f32 %v11268_v43, %v5817_v16  ;;  %v5819_v29 = vpop.f32.mrb[41].mxu1  ;;  %v12910_v47 = vld [vmem:[#allocation67_spill] sm:$0xff] }
 0x6ce   : > { %v5820_v63 = vpop.f32.mrb[42].mxu1 }
 0x6cf   : > { %6332 = vst [vmem:[%s11292_s21 + $0x198] sm:$0xff] %v6268_v50  ;;  %v6107_v44 = vadd.f32 %v12896_v3, %v5818_v12  ;;  %v5821_v26 = vadd.f32 %v11268_v43, %v5820_v63  ;;  %v5822_v1 = vpop.f32.mrb[43].mxu1  ;;  %v12911_v12 = vld [vmem:[#allocation70_spill] sm:$0xff] }
 0x6d1   : > { %v6205_v25 = vmax.f32 %v6107_v44, 0.0  ;;  %v6110_v57 = vadd.f32 %v12897_v22, %v5821_v26  ;;  %v12912_v26 = vld [vmem:[#allocation141_spill] sm:$0xff] }
 0x6d3   : > { %v6269_v30 = vadd.f32 %v6205_v25, %v12898_v48  ;;  %v6206_v34 = vmax.f32 %v6110_v57, 0.0 }
 0x6d4   : > { %v5825_v7 = vpop.f32.mrb[44].mxu1 }
 0x6d5   : > { %6333 = vst [vmem:[%s11292_s21 + $0x1a0] sm:$0xff] %v6269_v30  ;;  %v6270_v49 = vadd.f32 %v6206_v34, %v12899_v33  ;;  %v5826_v39 = vadd.f32 %v11268_v43, %v5825_v7  ;;  %v5827_v35 = vpop.f32.mrb[45].mxu1  ;;  %v12913_v30 = vld [vmem:[#allocation73_spill] sm:$0xff] }
 0x6d6   : > { %v5828_v37 = vpop.f32.mrb[46].mxu1 }
 0x6d7   : > { %6334 = vst [vmem:[%s11292_s21 + $0x1a8] sm:$0xff] %v6270_v49  ;;  %v6115_v62 = vadd.f32 %v12900_v17, %v5826_v39  ;;  %v5829_v42 = vadd.f32 %v11268_v43, %v5828_v37  ;;  %v5830_v18 = vpop.f32.mrb[47].mxu1  ;;  %v12914_v49 = vld [vmem:[#allocation75_spill] sm:$0xff] }
 0x6d9   : > { %v6207_v55 = vmax.f32 %v6115_v62, 0.0  ;;  %v6118_v13 = vadd.f32 %v12901_v11, %v5829_v42  ;;  %v12915_v62 = vld [vmem:[#allocation86_spill] sm:$0xff]  ;;  %v12916_v11 = vld [vmem:[#allocation83_spill] sm:$0xff] }
 0x6db   : > { %v6271_v52 = vadd.f32 %v6207_v55, %v12902_v5  ;;  %v6208_v59 = vmax.f32 %v6118_v13, 0.0  ;;  %v12917_v5 = vld [vmem:[#allocation72_spill] sm:$0xff] }
 0x6dc   : > { %v5833_v24 = vpop.f32.mrb[48].mxu1 }
 0x6dd   : > { %6335 = vst [vmem:[%s11292_s21 + $0x1b0] sm:$0xff] %v6271_v52  ;;  %v6272_v21 = vadd.f32 %v6208_v59, %v12903_v46  ;;  %v5834_v61 = vadd.f32 %v11268_v43, %v5833_v24  ;;  %v5835_v36 = vpop.f32.mrb[49].mxu1 }
 0x6de   : > { %v5836_v38 = vpop.f32.mrb[50].mxu1 }
 0x6df   : > { %6336 = vst [vmem:[%s11292_s21 + $0x1b8] sm:$0xff] %v6272_v21  ;;  %v6123_v15 = vadd.f32 %v12904_v56, %v5834_v61  ;;  %v5837_v19 = vadd.f32 %v11268_v43, %v5836_v38  ;;  %v5838_v10 = vpop.f32.mrb[51].mxu1 }
 0x6e1   : > { %v6209_v31 = vmax.f32 %v6123_v15, 0.0  ;;  %v6126_v54 = vadd.f32 %v12905_v58, %v5837_v19 }
 0x6e3   : > { %v6273_v20 = vadd.f32 %v6209_v31, %v12906_v53  ;;  %v6210_v45 = vmax.f32 %v6126_v54, 0.0 }
 0x6e4   : > { %v5841_v28 = vpop.f32.mrb[52].mxu1 }
 0x6e5   : > { %6337 = vst [vmem:[%s11292_s21 + $0x1c0] sm:$0xff] %v6273_v20  ;;  %v6274_v32 = vadd.f32 %v6210_v45, %v12907_v60  ;;  %v5842_v23 = vadd.f32 %v11268_v43, %v5841_v28  ;;  %v5843_v14 = vpop.f32.mrb[53].mxu1 }
 0x6e6   : > { %v5844_v27 = vpop.f32.mrb[54].mxu1 }
 0x6e7   : > { %6338 = vst [vmem:[%s11292_s21 + $0x1c8] sm:$0xff] %v6274_v32  ;;  %v6131_v6 = vadd.f32 %v12908_v2, %v5842_v23  ;;  %v5845_v51 = vadd.f32 %v11268_v43, %v5844_v27  ;;  %v5846_v8 = vpop.f32.mrb[55].mxu1 }
 0x6e9   : > { %v6211_v4 = vmax.f32 %v6131_v6, 0.0  ;;  %v6134_v40 = vadd.f32 %v12909_v41, %v5845_v51 }
 0x6eb   : > { %v6275_v16 = vadd.f32 %v6211_v4, %v12910_v47  ;;  %v6212_v0 = vmax.f32 %v6134_v40, 0.0 }
 0x6ec   : > { %v5849_v50 = vpop.f32.mrb[56].mxu1 }
 0x6ed   : > { %6339 = vst [vmem:[%s11292_s21 + $0x1d0] sm:$0xff] %v6275_v16  ;;  %v6276_v29 = vadd.f32 %v6212_v0, %v12911_v12  ;;  %v5850_v63 = vadd.f32 %v11268_v43, %v5849_v50  ;;  %v5851_v3 = vpop.f32.mrb[57].mxu1 }
 0x6ee   : > { %v5852_v44 = vpop.f32.mrb[58].mxu1 }
 0x6ef   : > { %6340 = vst [vmem:[%s11292_s21 + $0x1d8] sm:$0xff] %v6276_v29  ;;  %v6139_v1 = vadd.f32 %v12912_v26, %v5850_v63  ;;  %v5853_v25 = vadd.f32 %v11268_v43, %v5852_v44  ;;  %v5854_v22 = vpop.f32.mrb[59].mxu1 }
 0x6f1   : > { %v6213_v57 = vmax.f32 %v6139_v1, 0.0  ;;  %v6142_v48 = vadd.f32 %v11282_v9, %v5853_v25 }
 0x6f3   : > { %v6277_v34 = vadd.f32 %v6213_v57, %v12913_v30  ;;  %v6214_v7 = vmax.f32 %v6142_v48, 0.0 }
 0x6f4   : > { %v5857_v33 = vpop.f32.mrb[60].mxu1 }
 0x6f5   : > { %6341 = vst [vmem:[%s11292_s21 + $0x1e0] sm:$0xff] %v6277_v34  ;;  %v6278_v39 = vadd.f32 %v6214_v7, %v12914_v49  ;;  %v5858_v35 = vadd.f32 %v11268_v43, %v5857_v33  ;;  %v5859_v37 = vpop.f32.mrb[61].mxu1 }
 0x6f6   : > { %v5860_v17 = vpop.f32.mrb[62].mxu1 }
 0x6f7   : > { %6342 = vst [vmem:[%s11292_s21 + $0x1e8] sm:$0xff] %v6278_v39  ;;  %v6147_v42 = vadd.f32 %v12915_v62, %v5858_v35  ;;  %v5861_v9 = vadd.f32 %v11268_v43, %v5860_v17  ;;  %v5862_v18 = vpop.f32.mrb[63].mxu1  ;;  %v12918_v43 = vld [vmem:[#allocation74_spill] sm:$0xff] }
 0x6f9   : > { %v6215_v55 = vmax.f32 %v6147_v42, 0.0  ;;  %v6150_v13 = vadd.f32 %v12916_v11, %v5861_v9 }
 0x6fb   : > { %v6279_v52 = vadd.f32 %v6215_v55, %v12917_v5  ;;  %v6216_v59 = vmax.f32 %v6150_v13, 0.0 }
 0x6fd   : > { %6343 = vst [vmem:[%s11292_s21 + $0x1f0] sm:$0xff] %v6279_v52  ;;  %v6280_v24 = vadd.f32 %v6216_v59, %v12918_v43 }
 0x6ff   : > { %6344 = vst [vmem:[%s11292_s21 + $0x1f8] sm:$0xff] %v6280_v24 }
 0x700   : > { %7352 = shalt.err (!%p7349_p3)
}
 0x701   : > { %s7353_s14 = scalar_lea.hbm %s11570_s26, 8192  ;;  %s7357_s22 = scalar_lea.hbm %s11629_s9, 32768 }
 0x702   : > { %p7354_p4 = scmp.ne.s32.totalorder %s11570_s26, %s7353_s14  ;;  %p7358_p9 = scmp.lt.u32.totalorder %s11570_s26, %s11629_s9 }
 0x703   : > { %p7359_p10 = scmp.lt.u32.totalorder %s7357_s22, %s7353_s14  ;;  %p7361_p12 = scmp.lt.u32.totalorder %s7353_s14, %s11570_s26 }
 0x704   : > { %p7355_p7 = pnand %p7354_p4, %p7496_p5 }
 0x705   : > { %p7360_p11 = por %p7359_p10, %p7358_p9 }
 0x706   : > { %p7356_p8 = pneg %p7355_p7 }
 0x707   : > { %p7362_p13 = por %p7361_p12, %p7360_p11 }
 0x709   : > { %p7363_p0 = pnand %p7362_p13, %p7356_p8 }
 0x70b   : > { %7366 = shalt.err (!%p7363_p0)
}
 0x70c   : > { %s7406_s16 = smov 128   ;;  %s7407_s27 = smov 8  }
 0x70d   : > { %7188 = dma.vmem_to_hbm [thread:$0]  (%p7496_p5), %s11572_s23, 8192, %s11570_s26, %s11579_s13, %s7406_s16, %s7406_s16, %s7407_s27  }
 0x70e PF: > { %p7194_p1 = scmp.ge.s32.totalorder %s7401_s12, 2  ;;  %s6375_s28 = sand.u32 1, %s7389_s30  }
 0x70f   : > { %s6376_s29 = scalar_lea.sflag [#allocation3], %s6375_s28 }
 0x710   : > { %p7191_p2 = pnand %p7194_p1, %p7500_p6 }
 0x712   : > { %7384 = dma.done.wait (!%p7191_p2), %s6376_s29, 8192  }
 0x713   : > { %7386 = vsyncadd (!%p7191_p2), %s6376_s29, 4294959104  ;;  %p19_p3 = scmp.ge.s32.totalorder %s7483_s15, 6   ;;  %s12919_s30 = smov %s7393_s10 }
 0x714   : > { %s12920_s10 = smov %s7397_s11  ;;  %s12921_s11 = smov %s7494_s18 }
 0x715   : > { %s12922_s12 = smov %s7483_s15  ;;  %21 = sbr.rel (!%p19_p3) target bundleno = 3 (0x3), region = 91 }
 0x71c   :  { %6381 = vsyncpa [#allocation3], 1 }
 0x71d   :  { %6383 = vsyncpa [#allocation3 + $0x1], 1 }

</bundles_post_ra>
